<compile_context>
chip_gen: v7x
topology: tpu7x:2x2x1
jax: 0.10.0
libtpu: 0.0.40
codegen_flags: <defaults>
</compile_context>

<pallas_src>
import functools

import jax
import jax.numpy as jnp
from jax.experimental import pallas as pl
from jax.experimental.pallas import tpu as pltpu


# ---------------------------------------------------------------------------
# VMEM budget: v5e/v6e have 128 MiB physical VMEM, v7x only 64 MiB.  Derive the
# scoped limit per chip with ~25% headroom; fall back to a v7x-safe 48 MiB.
# ---------------------------------------------------------------------------
def _derive_vmem_limit():
    try:
        info = pltpu.get_tpu_info()
        cap = getattr(info, "vmem_capacity_bytes", None)
        if cap:
            return int(cap) * 3 // 4
    except Exception:
        pass
    return 48 * 1024 * 1024


_VMEM_LIMIT = _derive_vmem_limit()
# FC1 weight K-tile: bigger tiles on 128 MiB-VMEM chips, conservative on v7x.
_FC1_TK = 8192 if _VMEM_LIMIT >= 80 * 1024 * 1024 else 4096


def _pick_tile(dim, desired, mult=8):
    """Largest multiple of `mult` that divides `dim` and is <= `desired`.
    Falls back to `dim` itself (a full-extent block is always legal)."""
    if desired >= dim:
        return dim
    t = (desired // mult) * mult
    while t >= mult:
        if dim % t == 0:
            return t
        t -= mult
    return dim


# ---------------------------------------------------------------------------
# Pallas kernels
# ---------------------------------------------------------------------------

def _matmul_bias_act_single_kernel(x_ref, w_ref, b_ref, o_ref, *, slope):
    """Single K-step matmul: fused bias (+LeakyReLU), store straight to output."""
    y = jnp.dot(x_ref[...], w_ref[...],
                preferred_element_type=jnp.float32) + b_ref[...]
    if slope is not None:
        y = jnp.where(y >= 0.0, y, slope * y)
    o_ref[...] = y.astype(o_ref.dtype)


def _matmul_bias_act_accum_kernel(x_ref, w_ref, b_ref, o_ref, *, slope):
    """Multi K-step matmul: accumulate directly into the resident f32 output
    block (no scratch); fused bias (+LeakyReLU) on the last K step."""
    k = pl.program_id(2)

    @pl.when(k == 0)
    def _():
        o_ref[...] = jnp.zeros_like(o_ref)

    o_ref[...] += jnp.dot(x_ref[...], w_ref[...],
                          preferred_element_type=jnp.float32)

    @pl.when(k == pl.num_programs(2) - 1)
    def _():
        y = o_ref[...] + b_ref[...]
        if slope is not None:
            y = jnp.where(y >= 0.0, y, slope * y)
        o_ref[...] = y


def fused_matmul(x, w, b, *, slope=None, out_dtype=jnp.float32,
                 tm=None, tn=None, tk=None):
    """y = leaky_relu(x @ w + b)  (activation optional), f32 MXU accumulation.

    x:[M,K], w:[K,N] (f32 or bf16), b:[N] f32.  Output dtype is `out_dtype`
    (must be f32 on the multi-K path, where the output block is the accumulator).
    """
    M, K = x.shape
    K2, N = w.shape
    assert K == K2
    tm = M if tm is None else min(tm, M)
    tn = N if tn is None else min(tn, N)
    tk = K if tk is None else min(tk, K)
    assert M % tm == 0 and N % tn == 0 and K % tk == 0, (M, tm, N, tn, K, tk)
    b2 = b.reshape(1, N).astype(jnp.float32)

    if tk == K:
        return pl.pallas_call(
            functools.partial(_matmul_bias_act_single_kernel, slope=slope),
            out_shape=jax.ShapeDtypeStruct((M, N), out_dtype),
            grid_spec=pltpu.PrefetchScalarGridSpec(
                num_scalar_prefetch=0,
                grid=(M // tm, N // tn),
                in_specs=[
                    pl.BlockSpec((tm, K), lambda i, j: (i, 0)),
                    pl.BlockSpec((K, tn), lambda i, j: (0, j)),
                    pl.BlockSpec((1, tn), lambda i, j: (0, j)),
                ],
                out_specs=pl.BlockSpec((tm, tn), lambda i, j: (i, j)),
            ),
            compiler_params=pltpu.CompilerParams(
                dimension_semantics=("parallel", "parallel"),
                vmem_limit_bytes=_VMEM_LIMIT,
            ),
        )(x, w, b2)

    assert out_dtype == jnp.float32, "multi-K path accumulates in the f32 output"
    return pl.pallas_call(
        functools.partial(_matmul_bias_act_accum_kernel, slope=slope),
        out_shape=jax.ShapeDtypeStruct((M, N), jnp.float32),
        grid_spec=pltpu.PrefetchScalarGridSpec(
            num_scalar_prefetch=0,
            grid=(M // tm, N // tn, K // tk),
            in_specs=[
                pl.BlockSpec((tm, tk), lambda i, j, k: (i, k)),
                pl.BlockSpec((tk, tn), lambda i, j, k: (k, j)),
                pl.BlockSpec((1, tn), lambda i, j, k: (0, j)),
            ],
            out_specs=pl.BlockSpec((tm, tn), lambda i, j, k: (i, j)),
        ),
        compiler_params=pltpu.CompilerParams(
            dimension_semantics=("parallel", "parallel", "arbitrary"),
            vmem_limit_bytes=_VMEM_LIMIT,
        ),
    )(x, w, b2)


def _conv2_stats_kernel(x_ref, w_ref, y_ref, sum_ref, sq_ref):
    """conv2 matmul (no bias) + fused per-block BatchNorm partial statistics."""
    y = jnp.dot(x_ref[...], w_ref[...], preferred_element_type=jnp.float32)
    y_ref[...] = y
    s = jnp.sum(y, axis=0, keepdims=True)
    q = jnp.sum(y * y, axis=0, keepdims=True)
    sum_ref[...] = s.reshape(1, 1, s.shape[-1])
    sq_ref[...] = q.reshape(1, 1, q.shape[-1])


def conv2_with_bn_stats(p2, w2, *, tm):
    """y2 = p2 @ w2 (f32 accumulation) plus per-M-block partial (sum, sumsq)
    over rows.  M axis stays 'parallel' (each partial block written once)."""
    M, K = p2.shape
    K2, C = w2.shape
    assert K == K2 and M % tm == 0
    G = M // tm
    return pl.pallas_call(
        _conv2_stats_kernel,
        out_shape=(jax.ShapeDtypeStruct((M, C), jnp.float32),
                   jax.ShapeDtypeStruct((G, 1, C), jnp.float32),
                   jax.ShapeDtypeStruct((G, 1, C), jnp.float32)),
        grid_spec=pltpu.PrefetchScalarGridSpec(
            num_scalar_prefetch=0,
            grid=(G,),
            in_specs=[pl.BlockSpec((tm, K), lambda i: (i, 0)),
                      pl.BlockSpec((K, C), lambda i: (0, 0))],
            out_specs=(pl.BlockSpec((tm, C), lambda i: (i, 0)),
                       pl.BlockSpec((1, 1, C), lambda i: (i, 0, 0)),
                       pl.BlockSpec((1, 1, C), lambda i: (i, 0, 0))),
        ),
        compiler_params=pltpu.CompilerParams(
            dimension_semantics=("parallel",),
            vmem_limit_bytes=_VMEM_LIMIT,
        ),
    )(p2, w2)


def _scale_shift_lrelu_kernel(x_ref, scale_ref, shift_ref, o_ref, *, slope):
    y = x_ref[...] * scale_ref[...] + shift_ref[...]
    o_ref[...] = jnp.where(y >= 0.0, y, slope * y).astype(o_ref.dtype)


def scale_shift_lrelu(x, scale, shift, *, slope=0.2, out_dtype=jnp.bfloat16,
                      tile_m=4096):
    """y = leaky_relu(x * scale + shift), tiled/pipelined over rows, bf16 out."""
    M, C = x.shape
    tm = _pick_tile(M, tile_m)
    return pl.pallas_call(
        functools.partial(_scale_shift_lrelu_kernel, slope=slope),
        out_shape=jax.ShapeDtypeStruct((M, C), out_dtype),
        grid_spec=pltpu.PrefetchScalarGridSpec(
            num_scalar_prefetch=0,
            grid=(M // tm,),
            in_specs=[pl.BlockSpec((tm, C), lambda i: (i, 0)),
                      pl.BlockSpec((1, C), lambda i: (0, 0)),
                      pl.BlockSpec((1, C), lambda i: (0, 0))],
            out_specs=pl.BlockSpec((tm, C), lambda i: (i, 0)),
        ),
        compiler_params=pltpu.CompilerParams(
            dimension_semantics=("parallel",),
            vmem_limit_bytes=_VMEM_LIMIT,
        ),
    )(x, scale.astype(jnp.float32), shift.astype(jnp.float32))


# ---------------------------------------------------------------------------
# Plain-JAX glue: NHWC im2col (slices/reshapes only).
# TODO(synk): gather conv2's 4x4 patches inside the Pallas kernel (manual DMA
# over strided row slices) instead of materializing the patch matrix in HBM.
# ---------------------------------------------------------------------------

def im2col_nhwc(x, kh, kw, stride, pad):
    """x:[N,H,W,C] -> patches:[N*OH*OW, kh*kw*C] with (kh, kw, C) feature order."""
    N, H, W, C = x.shape
    xp = jnp.pad(x, ((0, 0), (pad, pad), (pad, pad), (0, 0)))
    OH = (H + 2 * pad - kh) // stride + 1
    OW = (W + 2 * pad - kw) // stride + 1
    cols = []
    for i in range(kh):
        for j in range(kw):
            cols.append(xp[:, i:i + stride * OH:stride, j:j + stride * OW:stride, :])
    p = jnp.stack(cols, axis=3)                       # [N, OH, OW, kh*kw, C]
    p = p.reshape(N * OH * OW, kh * kw * C)           # feature order (kh, kw, C)
    return p, OH, OW


# ---------------------------------------------------------------------------
# Parameters
# ---------------------------------------------------------------------------

def init_params(key, num_classes=2):
    """PyTorch-layout f32 parameters (conv weights [O,C,kh,kw], fc [in,out])."""
    ks = jax.random.split(key, 6)
    s = 0.05
    return {
        "conv1_w": s * jax.random.normal(ks[0], (64, 3, 4, 4), jnp.float32),
        "conv1_b": jnp.zeros((64,), jnp.float32),
        "conv2_w": s * jax.random.normal(ks[1], (128, 64, 4, 4), jnp.float32),
        "conv2_b": jnp.zeros((128,), jnp.float32),
        "bn_gamma": jnp.ones((128,), jnp.float32),
        "bn_beta": jnp.zeros((128,), jnp.float32),
        "fc1_w": s * jax.random.normal(ks[2], (128 * 16 * 16, 1024), jnp.float32),
        "fc1_b": s * jax.random.normal(ks[3], (1024,), jnp.float32),
        "fc2_w": s * jax.random.normal(ks[4], (1024, num_classes), jnp.float32),
        "fc2_b": s * jax.random.normal(ks[5], (num_classes,), jnp.float32),
    }


def prepare_params(p):
    """One-time, outside-the-hot-path re-layout and dtype prep:
      * conv weights -> [kh*kw*C, O] matching im2col_nhwc feature order;
      * conv2_w and fc1_w cast to bf16 ONCE (no per-call casts in the forward);
      * fc1_w rows permuted from PyTorch (C,H,W) flatten order to our NHWC
        (H,W,C) order so the flatten before FC1 is a pure reshape;
      * conv2 bias dropped: it cancels exactly under train-mode BatchNorm.
    """
    O1, C1, kh1, kw1 = p["conv1_w"].shape
    w1 = p["conv1_w"].transpose(2, 3, 1, 0).reshape(kh1 * kw1 * C1, O1)
    O2, C2, kh2, kw2 = p["conv2_w"].shape
    w2 = p["conv2_w"].transpose(2, 3, 1, 0).reshape(kh2 * kw2 * C2, O2)

    K1, N1 = p["fc1_w"].shape                     # (128*16*16, 1024)
    hw = K1 // O2                                 # 256
    side = int(round(hw ** 0.5))                  # 16
    fc1 = (p["fc1_w"].reshape(O2, side, side, N1)
           .transpose(1, 2, 0, 3)                 # (C,H,W,·) -> (H,W,C,·)
           .reshape(K1, N1))

    return {
        "conv1_w": w1.astype(jnp.float32),
        "conv1_b": p["conv1_b"].astype(jnp.float32),
        "conv2_w": w2.astype(jnp.bfloat16),
        "bn_gamma": p["bn_gamma"].astype(jnp.float32),
        "bn_beta": p["bn_beta"].astype(jnp.float32),
        "fc1_w": fc1.astype(jnp.bfloat16),
        "fc1_b": p["fc1_b"].astype(jnp.float32),
        "fc2_w": p["fc2_w"].astype(jnp.float32),
        "fc2_b": p["fc2_b"].astype(jnp.float32),
    }


# ---------------------------------------------------------------------------
# Model forward
# ---------------------------------------------------------------------------

def discriminator_forward(params, x):
    """x: [N, 3, 64, 64] (NCHW, float32) -> logits [N, num_classes] (f32).
    Params must come from `prepare_params`."""
    N = x.shape[0]
    C2 = params["bn_gamma"].shape[0]                                  # 128

    # Internally NHWC: conv matmul outputs are already NHWC, no layout round trip.
    x_nhwc = x.transpose(0, 2, 3, 1)                                  # [N,64,64,3]

    # ---- Conv1 (3->64, k4 s2 p1) + LeakyReLU(0.2): f32 matmul, bf16 output.
    p1, oh1, ow1 = im2col_nhwc(x_nhwc, 4, 4, 2, 1)                    # [N*1024, 48] f32
    m1 = p1.shape[0]
    y1 = fused_matmul(p1, params["conv1_w"], params["conv1_b"], slope=0.2,
                      out_dtype=jnp.bfloat16,
                      tm=_pick_tile(m1, 1024), tn=64, tk=48)          # [N*1024, 64] bf16
    y1 = y1.reshape(N, oh1, ow1, 64)                                  # NHWC bf16

    # ---- Conv2 (64->128, k4 s2 p1): bf16 operands, f32 MXU accumulation,
    # bias dropped (cancels under BN), BN partial stats fused into the epilogue.
    p2, oh2, ow2 = im2col_nhwc(y1, 4, 4, 2, 1)                        # [N*256, 1024] bf16
    m2 = p2.shape[0]
    desired_tm2 = 1024 if m2 >= 2048 else max(8, m2 // 2)             # >=2 blocks (v7x)
    tm2 = _pick_tile(m2, desired_tm2)
    y2, psum, psq = conv2_with_bn_stats(p2, params["conv2_w"], tm=tm2)

    # ---- Finalize BatchNorm train-mode stats (tiny [1,128] math in JAX).
    cnt = jnp.float32(m2)
    s = jnp.sum(psum, axis=0)                                         # [1, 128]
    sq = jnp.sum(psq, axis=0)                                         # [1, 128]
    mean = s / cnt
    var = sq / cnt - mean * mean                                      # biased variance
    scale = params["bn_gamma"].reshape(1, C2) * jax.lax.rsqrt(var + 1e-5)
    shift = params["bn_beta"].reshape(1, C2) - mean * scale

    # ---- Normalize + LeakyReLU(0.2), tiled over M, bf16 output for FC1.
    y2n = scale_shift_lrelu(y2, scale, shift, slope=0.2,
                            out_dtype=jnp.bfloat16, tile_m=4096)      # [N*256, 128] bf16

    # ---- Flatten: pure reshape (fc1_w rows were permuted to (H,W,C) order).
    feat = y2n.reshape(N, oh2 * ow2 * C2)                             # [N, 32768] bf16

    # ---- Linear(32768 -> 1024) + LeakyReLU(0.2): HBM-bound; bf16 weight/act,
    # chip-dependent K tile, tn=512 keeps 2 parallel N blocks for 2 TensorCores.
    h = fused_matmul(feat, params["fc1_w"], params["fc1_b"], slope=0.2,
                     out_dtype=jnp.float32,
                     tm=N, tn=512, tk=_pick_tile(feat.shape[1], _FC1_TK, mult=512))

    # ---- Linear(1024 -> num_classes): tiny (2-lane output) -> plain JAX/XLA.
    logits = h @ params["fc2_w"] + params["fc2_b"]
    return logits


# ---------------------------------------------------------------------------

if __name__ == "__main__":
    key = jax.random.PRNGKey(0)
    pkey, xkey = jax.random.split(key)

    # Spatial size 64 is dictated by the classifier's 128*16*16 input features.
    x = jax.random.normal(xkey, (2, 3, 64, 64), jnp.float32)
    params = prepare_params(init_params(pkey, num_classes=2))

    out = jax.jit(discriminator_forward)(params, x)
    out = jax.block_until_ready(out)
    assert out.shape == (2, 2), out.shape
    assert out.dtype == jnp.float32
    print("KERNEL_OK")
</pallas_src>

<mosaic_0001>
module attributes {stable_mosaic.version = 11 : i64} {
  func.func @_matmul_bias_act_single_kernel(%arg0: i32, %arg1: i32, %arg2: memref<1024x48xf32, #tpu.memory_space<vmem>>, %arg3: memref<48x64xf32, #tpu.memory_space<vmem>>, %arg4: memref<1x64xf32, #tpu.memory_space<vmem>>, %arg5: memref<1024x64xbf16, #tpu.memory_space<vmem>>) attributes {dimension_semantics = [#tpu.dimension_semantics<parallel>, #tpu.dimension_semantics<parallel>], iteration_bounds = array<i64: 2, 1>, scalar_prefetch = 0 : i64, scratch_operands = 0 : i64, tpu.core_type = #tpu.core_type<tc>, window_params = [{transform_indices = @transform_0, window_bounds = array<i64: 1024, 48>}, {transform_indices = @transform_1, window_bounds = array<i64: 48, 64>}, {transform_indices = @transform_2, window_bounds = array<i64: 1, 64>}, {transform_indices = @transform_3, window_bounds = array<i64: 1024, 64>}]} {
    %c0 = arith.constant 0 : index
    %c0_0 = arith.constant 0 : index
    %0 = vector.load %arg2[%c0, %c0_0] : memref<1024x48xf32, #tpu.memory_space<vmem>>, vector<1024x48xf32>
    %c0_1 = arith.constant 0 : index
    %c0_2 = arith.constant 0 : index
    %1 = vector.load %arg3[%c0_1, %c0_2] : memref<48x64xf32, #tpu.memory_space<vmem>>, vector<48x64xf32>
    %cst = arith.constant dense<0.000000e+00> : vector<1024x64xf32>
    %2 = tpu.matmul %0, %1, %cst {dimension_numbers = #tpu.dot_dimension_numbers<[1], [0], [0], [1], [0, 0, 1, 1], [], []>} : vector<1024x48xf32>, vector<48x64xf32>, vector<1024x64xf32> -> vector<1024x64xf32>
    %c0_3 = arith.constant 0 : index
    %c0_4 = arith.constant 0 : index
    %3 = vector.load %arg4[%c0_3, %c0_4] : memref<1x64xf32, #tpu.memory_space<vmem>>, vector<1x64xf32>
    %4 = vector.broadcast %3 : vector<1x64xf32> to vector<1024x64xf32>
    %5 = arith.addf %2, %4 : vector<1024x64xf32>
    %cst_5 = arith.constant 0.000000e+00 : f32
    %6 = vector.broadcast %cst_5 : f32 to vector<1024x64xf32>
    %7 = arith.cmpf oge, %5, %6 : vector<1024x64xf32>
    %cst_6 = arith.constant 2.000000e-01 : f32
    %8 = vector.broadcast %cst_6 : f32 to vector<1024x64xf32>
    %9 = arith.mulf %8, %5 : vector<1024x64xf32>
    %10 = arith.select %7, %5, %9 : vector<1024x64xi1>, vector<1024x64xf32>
    %11 = arith.truncf %10 : vector<1024x64xf32> to vector<1024x64xbf16>
    %c0_7 = arith.constant 0 : index
    %c0_8 = arith.constant 0 : index
    %12 = vector.load %arg5[%c0_7, %c0_8] : memref<1024x64xbf16, #tpu.memory_space<vmem>>, vector<1024x64xbf16>
    tpu.vector_store %arg5[%c0_7, %c0_8], %11 {strides = array<i32>} : memref<1024x64xbf16, #tpu.memory_space<vmem>>, vector<1024x64xbf16>,
    return
  }
  func.func @transform_0(%arg0: i32, %arg1: i32) -> (i32, i32) {
    %c0_i32 = arith.constant 0 : i32
    %c0_i32_0 = arith.constant 0 : i32
    return %arg0, %c0_i32 : i32, i32
  }
  func.func @transform_1(%arg0: i32, %arg1: i32) -> (i32, i32) {
    %c0_i32 = arith.constant 0 : i32
    %c0_i32_0 = arith.constant 0 : i32
    return %c0_i32, %arg1 : i32, i32
  }
  func.func @transform_2(%arg0: i32, %arg1: i32) -> (i32, i32) {
    %c0_i32 = arith.constant 0 : i32
    %c0_i32_0 = arith.constant 0 : i32
    return %c0_i32, %arg1 : i32, i32
  }
  func.func @transform_3(%arg0: i32, %arg1: i32) -> (i32, i32) {
    %c0_i32 = arith.constant 0 : i32
    return %arg0, %arg1 : i32, i32
  }
}

module attributes {stable_mosaic.version = 11 : i64} {
  func.func @_conv2_stats_kernel(%arg0: i32, %arg1: memref<256x1024xbf16, #tpu.memory_space<vmem>>, %arg2: memref<1024x128xbf16, #tpu.memory_space<vmem>>, %arg3: memref<256x128xf32, #tpu.memory_space<vmem>>, %arg4: memref<1x1x128xf32, #tpu.memory_space<vmem>>, %arg5: memref<1x1x128xf32, #tpu.memory_space<vmem>>) attributes {dimension_semantics = [#tpu.dimension_semantics<parallel>], iteration_bounds = array<i64: 2>, scalar_prefetch = 0 : i64, scratch_operands = 0 : i64, tpu.core_type = #tpu.core_type<tc>, window_params = [{transform_indices = @transform_0, window_bounds = array<i64: 256, 1024>}, {pipeline_mode = #tpu.pipeline_mode<synchronous>, transform_indices = @transform_1, window_bounds = array<i64: 1024, 128>}, {transform_indices = @transform_2, window_bounds = array<i64: 256, 128>}, {transform_indices = @transform_3, window_bounds = array<i64: 1, 1, 128>}, {transform_indices = @transform_4, window_bounds = array<i64: 1, 1, 128>}]} {
    %c0 = arith.constant 0 : index
    %c0_0 = arith.constant 0 : index
    %0 = vector.load %arg1[%c0, %c0_0] : memref<256x1024xbf16, #tpu.memory_space<vmem>>, vector<256x1024xbf16>
    %c0_1 = arith.constant 0 : index
    %c0_2 = arith.constant 0 : index
    %1 = vector.load %arg2[%c0_1, %c0_2] : memref<1024x128xbf16, #tpu.memory_space<vmem>>, vector<1024x128xbf16>
    %cst = arith.constant dense<0.000000e+00> : vector<256x128xf32>
    %2 = tpu.matmul %0, %1, %cst {dimension_numbers = #tpu.dot_dimension_numbers<[1], [0], [0], [1], [0, 0, 1, 1], [], []>} : vector<256x1024xbf16>, vector<1024x128xbf16>, vector<256x128xf32> -> vector<256x128xf32>
    %c0_3 = arith.constant 0 : index
    %c0_4 = arith.constant 0 : index
    %3 = vector.load %arg3[%c0_3, %c0_4] : memref<256x128xf32, #tpu.memory_space<vmem>>, vector<256x128xf32>
    tpu.vector_store %arg3[%c0_3, %c0_4], %2 {strides = array<i32>} : memref<256x128xf32, #tpu.memory_space<vmem>>, vector<256x128xf32>,
    %cst_5 = arith.constant dense<0.000000e+00> : vector<128xf32>
    %4 = vector.multi_reduction <add>, %2, %cst_5 [0] : vector<256x128xf32> to vector<128xf32>
    %5 = vector.shape_cast %4 : vector<128xf32> to vector<1x128xf32>
    %6 = arith.mulf %2, %2 : vector<256x128xf32>
    %cst_6 = arith.constant dense<0.000000e+00> : vector<128xf32>
    %7 = vector.multi_reduction <add>, %6, %cst_6 [0] : vector<256x128xf32> to vector<128xf32>
    %8 = vector.shape_cast %7 : vector<128xf32> to vector<1x128xf32>
    %9 = vector.shape_cast %5 : vector<1x128xf32> to vector<1x1x128xf32>
    %c0_7 = arith.constant 0 : index
    %c0_8 = arith.constant 0 : index
    %c0_9 = arith.constant 0 : index
    %10 = vector.load %arg4[%c0_7, %c0_8, %c0_9] : memref<1x1x128xf32, #tpu.memory_space<vmem>>, vector<1x1x128xf32>
    tpu.vector_store %arg4[%c0_7, %c0_8, %c0_9], %9 {strides = array<i32>} : memref<1x1x128xf32, #tpu.memory_space<vmem>>, vector<1x1x128xf32>,
    %11 = vector.shape_cast %8 : vector<1x128xf32> to vector<1x1x128xf32>
    %c0_10 = arith.constant 0 : index
    %c0_11 = arith.constant 0 : index
    %c0_12 = arith.constant 0 : index
    %12 = vector.load %arg5[%c0_10, %c0_11, %c0_12] : memref<1x1x128xf32, #tpu.memory_space<vmem>>, vector<1x1x128xf32>
    tpu.vector_store %arg5[%c0_10, %c0_11, %c0_12], %11 {strides = array<i32>} : memref<1x1x128xf32, #tpu.memory_space<vmem>>, vector<1x1x128xf32>,
    return
  }
  func.func @transform_0(%arg0: i32) -> (i32, i32) {
    %c0_i32 = arith.constant 0 : i32
    %c0_i32_0 = arith.constant 0 : i32
    return %arg0, %c0_i32 : i32, i32
  }
  func.func @transform_1(%arg0: i32) -> (i32, i32) {
    %c0_i32 = arith.constant 0 : i32
    %c0_i32_0 = arith.constant 0 : i32
    %c0_i32_1 = arith.constant 0 : i32
    return %c0_i32, %c0_i32_0 : i32, i32
  }
  func.func @transform_2(%arg0: i32) -> (i32, i32) {
    %c0_i32 = arith.constant 0 : i32
    %c0_i32_0 = arith.constant 0 : i32
    return %arg0, %c0_i32 : i32, i32
  }
  func.func @transform_3(%arg0: i32) -> (i32, i32, i32) {
    %c0_i32 = arith.constant 0 : i32
    %c0_i32_0 = arith.constant 0 : i32
    %c0_i32_1 = arith.constant 0 : i32
    return %arg0, %c0_i32, %c0_i32_0 : i32, i32, i32
  }
  func.func @transform_4(%arg0: i32) -> (i32, i32, i32) {
    %c0_i32 = arith.constant 0 : i32
    %c0_i32_0 = arith.constant 0 : i32
    %c0_i32_1 = arith.constant 0 : i32
    return %arg0, %c0_i32, %c0_i32_0 : i32, i32, i32
  }
}

module attributes {stable_mosaic.version = 11 : i64} {
  func.func @_scale_shift_lrelu_kernel(%arg0: i32, %arg1: memref<512x128xf32, #tpu.memory_space<vmem>>, %arg2: memref<1x128xf32, #tpu.memory_space<vmem>>, %arg3: memref<1x128xf32, #tpu.memory_space<vmem>>, %arg4: memref<512x128xbf16, #tpu.memory_space<vmem>>) attributes {dimension_semantics = [#tpu.dimension_semantics<parallel>], iteration_bounds = array<i64: 1>, scalar_prefetch = 0 : i64, scratch_operands = 0 : i64, tpu.core_type = #tpu.core_type<tc>, window_params = [{transform_indices = @transform_0, window_bounds = array<i64: 512, 128>}, {pipeline_mode = #tpu.pipeline_mode<synchronous>, transform_indices = @transform_1, window_bounds = array<i64: 1, 128>}, {pipeline_mode = #tpu.pipeline_mode<synchronous>, transform_indices = @transform_2, window_bounds = array<i64: 1, 128>}, {transform_indices = @transform_3, window_bounds = array<i64: 512, 128>}]} {
    %c0 = arith.constant 0 : index
    %c0_0 = arith.constant 0 : index
    %0 = vector.load %arg1[%c0, %c0_0] : memref<512x128xf32, #tpu.memory_space<vmem>>, vector<512x128xf32>
    %c0_1 = arith.constant 0 : index
    %c0_2 = arith.constant 0 : index
    %1 = vector.load %arg2[%c0_1, %c0_2] : memref<1x128xf32, #tpu.memory_space<vmem>>, vector<1x128xf32>
    %2 = vector.broadcast %1 : vector<1x128xf32> to vector<512x128xf32>
    %3 = arith.mulf %0, %2 : vector<512x128xf32>
    %c0_3 = arith.constant 0 : index
    %c0_4 = arith.constant 0 : index
    %4 = vector.load %arg3[%c0_3, %c0_4] : memref<1x128xf32, #tpu.memory_space<vmem>>, vector<1x128xf32>
    %5 = vector.broadcast %4 : vector<1x128xf32> to vector<512x128xf32>
    %6 = arith.addf %3, %5 : vector<512x128xf32>
    %cst = arith.constant 0.000000e+00 : f32
    %7 = vector.broadcast %cst : f32 to vector<512x128xf32>
    %8 = arith.cmpf oge, %6, %7 : vector<512x128xf32>
    %cst_5 = arith.constant 2.000000e-01 : f32
    %9 = vector.broadcast %cst_5 : f32 to vector<512x128xf32>
    %10 = arith.mulf %9, %6 : vector<512x128xf32>
    %11 = arith.select %8, %6, %10 : vector<512x128xi1>, vector<512x128xf32>
    %12 = arith.truncf %11 : vector<512x128xf32> to vector<512x128xbf16>
    %c0_6 = arith.constant 0 : index
    %c0_7 = arith.constant 0 : index
    %13 = vector.load %arg4[%c0_6, %c0_7] : memref<512x128xbf16, #tpu.memory_space<vmem>>, vector<512x128xbf16>
    tpu.vector_store %arg4[%c0_6, %c0_7], %12 {strides = array<i32>} : memref<512x128xbf16, #tpu.memory_space<vmem>>, vector<512x128xbf16>,
    return
  }
  func.func @transform_0(%arg0: i32) -> (i32, i32) {
    %c0_i32 = arith.constant 0 : i32
    %c0_i32_0 = arith.constant 0 : i32
    return %arg0, %c0_i32 : i32, i32
  }
  func.func @transform_1(%arg0: i32) -> (i32, i32) {
    %c0_i32 = arith.constant 0 : i32
    %c0_i32_0 = arith.constant 0 : i32
    %c0_i32_1 = arith.constant 0 : i32
    return %c0_i32, %c0_i32_0 : i32, i32
  }
  func.func @transform_2(%arg0: i32) -> (i32, i32) {
    %c0_i32 = arith.constant 0 : i32
    %c0_i32_0 = arith.constant 0 : i32
    %c0_i32_1 = arith.constant 0 : i32
    return %c0_i32, %c0_i32_0 : i32, i32
  }
  func.func @transform_3(%arg0: i32) -> (i32, i32) {
    %c0_i32 = arith.constant 0 : i32
    %c0_i32_0 = arith.constant 0 : i32
    return %arg0, %c0_i32 : i32, i32
  }
}

module attributes {stable_mosaic.version = 11 : i64} {
  func.func @_matmul_bias_act_accum_kernel(%arg0: i32, %arg1: i32, %arg2: i32, %arg3: memref<2x4096xbf16, #tpu.memory_space<vmem>>, %arg4: memref<4096x512xbf16, #tpu.memory_space<vmem>>, %arg5: memref<1x512xf32, #tpu.memory_space<vmem>>, %arg6: memref<2x512xf32, #tpu.memory_space<vmem>>) attributes {dimension_semantics = [#tpu.dimension_semantics<parallel>, #tpu.dimension_semantics<parallel>, #tpu.dimension_semantics<arbitrary>], iteration_bounds = array<i64: 1, 2, 8>, scalar_prefetch = 0 : i64, scratch_operands = 0 : i64, tpu.core_type = #tpu.core_type<tc>, window_params = [{transform_indices = @transform_0, window_bounds = array<i64: 2, 4096>}, {transform_indices = @transform_1, window_bounds = array<i64: 4096, 512>}, {transform_indices = @transform_2, window_bounds = array<i64: 1, 512>}, {transform_indices = @transform_3, window_bounds = array<i64: 2, 512>}]} {
    %c0_i32 = arith.constant 0 : i32
    %0 = arith.cmpi eq, %arg2, %c0_i32 : i32
    %1 = arith.extui %0 : i1 to i32
    %c0_i32_0 = arith.constant 0 : i32
    %2 = arith.cmpi ne, %1, %c0_i32_0 : i32
    scf.if %2 {
      %cst_9 = arith.constant 0.000000e+00 : f32
      %12 = vector.broadcast %cst_9 : f32 to vector<2x512xf32>
      %c0_10 = arith.constant 0 : index
      %c0_11 = arith.constant 0 : index
      %13 = vector.load %arg6[%c0_10, %c0_11] : memref<2x512xf32, #tpu.memory_space<vmem>>, vector<2x512xf32>
      tpu.vector_store %arg6[%c0_10, %c0_11], %12 {strides = array<i32>} : memref<2x512xf32, #tpu.memory_space<vmem>>, vector<2x512xf32>,
    } else {
    }
    %c0 = arith.constant 0 : index
    %c0_1 = arith.constant 0 : index
    %3 = vector.load %arg6[%c0, %c0_1] : memref<2x512xf32, #tpu.memory_space<vmem>>, vector<2x512xf32>
    %c0_2 = arith.constant 0 : index
    %c0_3 = arith.constant 0 : index
    %4 = vector.load %arg3[%c0_2, %c0_3] : memref<2x4096xbf16, #tpu.memory_space<vmem>>, vector<2x4096xbf16>
    %c0_4 = arith.constant 0 : index
    %c0_5 = arith.constant 0 : index
    %5 = vector.load %arg4[%c0_4, %c0_5] : memref<4096x512xbf16, #tpu.memory_space<vmem>>, vector<4096x512xbf16>
    %cst = arith.constant dense<0.000000e+00> : vector<2x512xf32>
    %6 = tpu.matmul %4, %5, %cst {dimension_numbers = #tpu.dot_dimension_numbers<[1], [0], [0], [1], [0, 0, 1, 1], [], []>} : vector<2x4096xbf16>, vector<4096x512xbf16>, vector<2x512xf32> -> vector<2x512xf32>
    %7 = arith.addf %3, %6 : vector<2x512xf32>
    %c0_6 = arith.constant 0 : index
    %c0_7 = arith.constant 0 : index
    %8 = vector.load %arg6[%c0_6, %c0_7] : memref<2x512xf32, #tpu.memory_space<vmem>>, vector<2x512xf32>
    tpu.vector_store %arg6[%c0_6, %c0_7], %7 {strides = array<i32>} : memref<2x512xf32, #tpu.memory_space<vmem>>, vector<2x512xf32>,
    %c7_i32 = arith.constant 7 : i32
    %9 = arith.cmpi eq, %arg2, %c7_i32 : i32
    %10 = arith.extui %9 : i1 to i32
    %c0_i32_8 = arith.constant 0 : i32
    %11 = arith.cmpi ne, %10, %c0_i32_8 : i32
    scf.if %11 {
      %c0_9 = arith.constant 0 : index
      %c0_10 = arith.constant 0 : index
      %12 = vector.load %arg6[%c0_9, %c0_10] : memref<2x512xf32, #tpu.memory_space<vmem>>, vector<2x512xf32>
      %c0_11 = arith.constant 0 : index
      %c0_12 = arith.constant 0 : index
      %13 = vector.load %arg5[%c0_11, %c0_12] : memref<1x512xf32, #tpu.memory_space<vmem>>, vector<1x512xf32>
      %14 = vector.broadcast %13 : vector<1x512xf32> to vector<2x512xf32>
      %15 = arith.addf %12, %14 : vector<2x512xf32>
      %cst_13 = arith.constant 0.000000e+00 : f32
      %16 = vector.broadcast %cst_13 : f32 to vector<2x512xf32>
      %17 = arith.cmpf oge, %15, %16 : vector<2x512xf32>
      %cst_14 = arith.constant 2.000000e-01 : f32
      %18 = vector.broadcast %cst_14 : f32 to vector<2x512xf32>
      %19 = arith.mulf %18, %15 : vector<2x512xf32>
      %20 = arith.select %17, %15, %19 : vector<2x512xi1>, vector<2x512xf32>
      %c0_15 = arith.constant 0 : index
      %c0_16 = arith.constant 0 : index
      %21 = vector.load %arg6[%c0_15, %c0_16] : memref<2x512xf32, #tpu.memory_space<vmem>>, vector<2x512xf32>
      tpu.vector_store %arg6[%c0_15, %c0_16], %20 {strides = array<i32>} : memref<2x512xf32, #tpu.memory_space<vmem>>, vector<2x512xf32>,
    } else {
    }
    return
  }
  func.func @transform_0(%arg0: i32, %arg1: i32, %arg2: i32) -> (i32, i32) {
    %c0_i32 = arith.constant 0 : i32
    return %arg0, %arg2 : i32, i32
  }
  func.func @transform_1(%arg0: i32, %arg1: i32, %arg2: i32) -> (i32, i32) {
    %c0_i32 = arith.constant 0 : i32
    return %arg2, %arg1 : i32, i32
  }
  func.func @transform_2(%arg0: i32, %arg1: i32, %arg2: i32) -> (i32, i32) {
    %c0_i32 = arith.constant 0 : i32
    %c0_i32_0 = arith.constant 0 : i32
    return %c0_i32, %arg1 : i32, i32
  }
  func.func @transform_3(%arg0: i32, %arg1: i32, %arg2: i32) -> (i32, i32) {
    %c0_i32 = arith.constant 0 : i32
    return %arg0, %arg1 : i32, i32
  }
}

</mosaic_0001>

<bundles_post_ra>
// kernel: discriminator_forward.4
= control target key start
LH: loop header
LB: loop body
LE: loop exit
PB: predicated region body
PF: predicated region fallthrough
CT: control target
= control target key end

     0   :  { %s3406_s12 = smov 0   ;;  %s3408_s13 = smov 0   ;;  %s4379_s0 = inlined_call_operand.vmem [shape: f32[2048,48], index: 0, kind: input, shape index: {}]   ;;  %s4380_s1 = inlined_call_operand.vmem [shape: f32[48,64], index: 1, kind: input, shape index: {}]   ;;  %s4381_s2 = inlined_call_operand.vmem [shape: f32[1,64], index: 2, kind: input, shape index: {}]   ;;  %s4382_s3 = inlined_call_operand.vmem [shape: bf16[2048,64], index: 3, kind: output, shape index: {}]  }
   0x1   :  { %s3410_s14 = smov 0  }
   0x2 LB: > { %s25_s15 = sadd.s32 1, %s3380_s13  ;;  %p2589_p0 = scmp.ge.s32.totalorder %s3384_s14, 1  ;;  %s3384_s14 = sphi %s3410_s14, %s13_s14   ;;  %s3380_s13 = sphi %s3408_s13, %s4384_s13   ;;  %s3376_s12 = sphi %s3406_s12, %s4383_s12  }
   0x3   : > { %p27_p1 = scmp.ge.s32.totalorder %s25_s15, 2  ;;  %p169_p2 = scmp.lt.s32.totalorder %s3384_s14, 3 }
   0x5   : > { %s4386_s15 = smov (%p27_p1, %s25_s15), 0  ;;  %p170_p3 = pnand %p2589_p0, %p169_p2 }
   0x6   : > { %v353_v0 = vld [vmem:[%s4380_s1] sm:$0xff] (!%p170_p3)  ;;  %v354_v1 = vld [vmem:[%s4380_s1 + $0x8] sm:$0xff] (!%p170_p3)  ;;  %v355_v2 = vld [vmem:[%s4380_s1 + $0x10] sm:$0xff] (!%p170_p3)  ;;  %s2590_s22 = sshll.u32 (!%p170_p3), %s3376_s12, 7  ;;  %vm366_vm0 = vcmask (!%p170_p3), 392192   ;;  %vm2352_vm5 = vcmask (!%p170_p3), 519168  }
   0x7   : > { %173 = sbr.rel (%p170_p3) target bundleno = 401 (0x191), region = 32  ;;  %v3319_v3 = vpack.c.bf16 (!%p170_p3), %v354_v1, %v353_v0  ;;  %v356_v4 = vld [vmem:[%s4380_s1 + $0x18] sm:$0xff] (!%p170_p3)  ;;  %p204_p4 = scmp.lt.s32.totalorder (!%p170_p3), %s2590_s22, 255  ;;  %v357_v6 = vld [vmem:[%s4380_s1 + $0x20] sm:$0xff] (!%p170_p3)  ;;  %v358_v7 = vld [vmem:[%s4380_s1 + $0x28] sm:$0xff] (!%p170_p3) }
   0x8   : > { %v3323_v5 = vpack.c.bf16 (!%p170_p3), %v356_v4, %v355_v2  ;;  %v3327_v8 = vpack.c.bf16 (!%p170_p3), %v358_v7, %v357_v6 }
   0x9   : > { %3320 = vmatprep.subr.bf16.mxu0 (!%p170_p3), %v3319_v3  ;;  %3331 = vmatprep.subr.bf16.mxu1 (!%p170_p3), %v3319_v3 }
   0xa   : > { %3322 = vmatpush3.bf16.msra.mxu0 (!%p170_p3), %v3319_v3  ;;  %3334 = vmatpush3.bf16.msra.mxu1 (!%p170_p3), %v3319_v3 }
   0xb   : > { %3324 = vmatprep.subr.bf16.mxu0 (!%p170_p3), %v3323_v5  ;;  %3332 = vmatprep.subr.bf16.mxu1 (!%p170_p3), %v3323_v5 }
   0xe   : > { %s4388_s22 = smov (!%p204_p4, %s2590_s22), 255  ;;  %3326 = vmatpush3.bf16.msra.mxu0 %v3323_v5  ;;  %3335 = vmatpush3.bf16.msra.mxu1 %v3323_v5 }
   0xf   : > { %s2591_s29 = sshll.u32 %s4388_s22, 3  ;;  %3328 = vmatprep.subr.bf16.mxu0 %v3327_v8  ;;  %3333 = vmatprep.subr.bf16.mxu1 %v3327_v8  ;;  %s2593_s8 = sshll.u32 %s4388_s22, 2 }
  0x10   : > { %s3448_s5 = scalar_lea.vmem %s4379_s0, %s2591_s29  ;;  %s3719_s11 = scalar_lea.vmem %s4382_s3, %s2593_s8 }
  0x11   : > { %v225_v9 = vld [vmem:[%s3448_s5] sm:$0xff]  ;;  %v226_v11 = vld [vmem:[%s3448_s5 + $0x8] sm:$0xff]  ;;  %v227_v13 = vld [vmem:[%s3448_s5 + $0x10] sm:$0xff] }
  0x12   : > { %v289_v10 = vld [vmem:[%s3448_s5 + $0x200] sm:$0xff]  ;;  %3127 = vmatprep.mubr.msk.f32.mxu0 %vm366_vm0, %v225_v9  ;;  %3330 = vmatpush3.bf16.msra.mxu0 %v3327_v8  ;;  %v290_v12 = vld [vmem:[%s3448_s5 + $0x208] sm:$0xff]  ;;  %v291_v14 = vld [vmem:[%s3448_s5 + $0x210] sm:$0xff] }
  0x13   : > { %3223 = vmatprep.mubr.msk.f32.mxu1 %vm366_vm0, %v289_v10  ;;  %3336 = vmatpush3.bf16.msra.mxu1 %v3327_v8  ;;  %v228_v15 = vld [vmem:[%s3448_s5 + $0x18] sm:$0xff]  ;;  %v229_v17 = vld [vmem:[%s3448_s5 + $0x20] sm:$0xff]  ;;  %v230_v19 = vld [vmem:[%s3448_s5 + $0x28] sm:$0xff] }
  0x14   : > { %v292_v16 = vld [vmem:[%s3448_s5 + $0x218] sm:$0xff]  ;;  %v293_v18 = vld [vmem:[%s3448_s5 + $0x220] sm:$0xff]  ;;  %v294_v20 = vld [vmem:[%s3448_s5 + $0x228] sm:$0xff] }
  0x15   : > { %3128 = vmatmul.mubr.msk.f32.vlgmr.msra.gmra.mrb[0].mxu0 %vm366_vm0, %v226_v11  ;;  %v231_v21 = vld [vmem:[%s3448_s5 + $0x30] sm:$0xff]  ;;  %v232_v23 = vld [vmem:[%s3448_s5 + $0x38] sm:$0xff]  ;;  %v233_v25 = vld [vmem:[%s3448_s5 + $0x40] sm:$0xff] }
  0x16   : > { %3224 = vmatmul.mubr.msk.f32.vlgmr.msra.gmra.mrb[0].mxu1 %vm366_vm0, %v290_v12  ;;  %3130 = vmatprep.mubr.msk.f32.mxu0 %vm366_vm0, %v227_v13  ;;  %v295_v22 = vld [vmem:[%s3448_s5 + $0x230] sm:$0xff]  ;;  %v296_v24 = vld [vmem:[%s3448_s5 + $0x238] sm:$0xff]  ;;  %v297_v26 = vld [vmem:[%s3448_s5 + $0x240] sm:$0xff] }
  0x17   : > { %3226 = vmatprep.mubr.msk.f32.mxu1 %vm366_vm0, %v291_v14  ;;  %v234_v27 = vld [vmem:[%s3448_s5 + $0x48] sm:$0xff]  ;;  %v235_v29 = vld [vmem:[%s3448_s5 + $0x50] sm:$0xff]  ;;  %v236_v31 = vld [vmem:[%s3448_s5 + $0x58] sm:$0xff] }
  0x18   : > { %v298_v28 = vld [vmem:[%s3448_s5 + $0x248] sm:$0xff]  ;;  %v299_v30 = vld [vmem:[%s3448_s5 + $0x250] sm:$0xff]  ;;  %v300_v32 = vld [vmem:[%s3448_s5 + $0x258] sm:$0xff] }
  0x19   : > { %3131 = vmatmul.mubr.msk.f32.gmra.mrb[2].mxu0 %vm366_vm0, %v228_v15  ;;  %v237_v33 = vld [vmem:[%s3448_s5 + $0x60] sm:$0xff]  ;;  %v238_v35 = vld [vmem:[%s3448_s5 + $0x68] sm:$0xff]  ;;  %v239_v37 = vld [vmem:[%s3448_s5 + $0x70] sm:$0xff] }
  0x1a   : > { %3227 = vmatmul.mubr.msk.f32.gmra.mrb[2].mxu1 %vm366_vm0, %v292_v16  ;;  %3133 = vmatprep.mubr.msk.f32.mxu0 %vm366_vm0, %v229_v17  ;;  %v301_v34 = vld [vmem:[%s3448_s5 + $0x260] sm:$0xff]  ;;  %v302_v36 = vld [vmem:[%s3448_s5 + $0x268] sm:$0xff]  ;;  %v303_v38 = vld [vmem:[%s3448_s5 + $0x270] sm:$0xff] }
  0x1b   : > { %3229 = vmatprep.mubr.msk.f32.mxu1 %vm366_vm0, %v293_v18  ;;  %v240_v39 = vld [vmem:[%s3448_s5 + $0x78] sm:$0xff]  ;;  %v241_v41 = vld [vmem:[%s3448_s5 + $0x80] sm:$0xff]  ;;  %v242_v43 = vld [vmem:[%s3448_s5 + $0x88] sm:$0xff] }
  0x1c   : > { %v304_v40 = vld [vmem:[%s3448_s5 + $0x278] sm:$0xff]  ;;  %v305_v42 = vld [vmem:[%s3448_s5 + $0x280] sm:$0xff]  ;;  %v306_v44 = vld [vmem:[%s3448_s5 + $0x288] sm:$0xff] }
  0x1d   : > { %3134 = vmatmul.mubr.msk.f32.gmra.mrb[4].mxu0 %vm366_vm0, %v230_v19  ;;  %v243_v45 = vld [vmem:[%s3448_s5 + $0x90] sm:$0xff]  ;;  %v244_v47 = vld [vmem:[%s3448_s5 + $0x98] sm:$0xff]  ;;  %v245_v49 = vld [vmem:[%s3448_s5 + $0xa0] sm:$0xff] }
  0x1e   : > { %3230 = vmatmul.mubr.msk.f32.gmra.mrb[4].mxu1 %vm366_vm0, %v294_v20  ;;  %3136 = vmatprep.mubr.msk.f32.mxu0 %vm366_vm0, %v231_v21  ;;  %v307_v46 = vld [vmem:[%s3448_s5 + $0x290] sm:$0xff]  ;;  %v308_v48 = vld [vmem:[%s3448_s5 + $0x298] sm:$0xff]  ;;  %v309_v50 = vld [vmem:[%s3448_s5 + $0x2a0] sm:$0xff] }
  0x1f   : > { %3232 = vmatprep.mubr.msk.f32.mxu1 %vm366_vm0, %v295_v22  ;;  %v246_v51 = vld [vmem:[%s3448_s5 + $0xa8] sm:$0xff]  ;;  %v247_v53 = vld [vmem:[%s3448_s5 + $0xb0] sm:$0xff]  ;;  %v248_v55 = vld [vmem:[%s3448_s5 + $0xb8] sm:$0xff] }
  0x20   : > { %v310_v52 = vld [vmem:[%s3448_s5 + $0x2a8] sm:$0xff]  ;;  %v311_v54 = vld [vmem:[%s3448_s5 + $0x2b0] sm:$0xff]  ;;  %v312_v56 = vld [vmem:[%s3448_s5 + $0x2b8] sm:$0xff] }
  0x21   : > { %3137 = vmatmul.mubr.msk.f32.gmra.mrb[6].mxu0 %vm366_vm0, %v232_v23  ;;  %v249_v57 = vld [vmem:[%s3448_s5 + $0xc0] sm:$0xff]  ;;  %v250_v59 = vld [vmem:[%s3448_s5 + $0xc8] sm:$0xff]  ;;  %v251_v61 = vld [vmem:[%s3448_s5 + $0xd0] sm:$0xff] }
  0x22   : > { %3233 = vmatmul.mubr.msk.f32.gmra.mrb[6].mxu1 %vm366_vm0, %v296_v24  ;;  %3139 = vmatprep.mubr.msk.f32.mxu0 %vm366_vm0, %v233_v25  ;;  %v313_v58 = vld [vmem:[%s3448_s5 + $0x2c0] sm:$0xff]  ;;  %v314_v60 = vld [vmem:[%s3448_s5 + $0x2c8] sm:$0xff]  ;;  %v315_v62 = vld [vmem:[%s3448_s5 + $0x2d0] sm:$0xff] }
  0x23   : > { %3235 = vmatprep.mubr.msk.f32.mxu1 %vm366_vm0, %v297_v26  ;;  %v252_v63 = vld [vmem:[%s3448_s5 + $0xd8] sm:$0xff]  ;;  %v253_v1 = vld [vmem:[%s3448_s5 + $0xe0] sm:$0xff]  ;;  %v254_v3 = vld [vmem:[%s3448_s5 + $0xe8] sm:$0xff] }
  0x24   : > { %v316_v0 = vld [vmem:[%s3448_s5 + $0x2d8] sm:$0xff]  ;;  %v317_v2 = vld [vmem:[%s3448_s5 + $0x2e0] sm:$0xff]  ;;  %v318_v4 = vld [vmem:[%s3448_s5 + $0x2e8] sm:$0xff] }
  0x25   : > { %3140 = vmatmul.mubr.msk.f32.gmra.mrb[8].mxu0 %vm366_vm0, %v234_v27  ;;  %v255_v5 = vld [vmem:[%s3448_s5 + $0xf0] sm:$0xff]  ;;  %v256_v7 = vld [vmem:[%s3448_s5 + $0xf8] sm:$0xff]  ;;  %v257_v9 = vld [vmem:[%s3448_s5 + $0x100] sm:$0xff] }
  0x26   : > { %3236 = vmatmul.mubr.msk.f32.gmra.mrb[8].mxu1 %vm366_vm0, %v298_v28  ;;  %3142 = vmatprep.mubr.msk.f32.mxu0 %vm366_vm0, %v235_v29  ;;  %v319_v6 = vld [vmem:[%s3448_s5 + $0x2f0] sm:$0xff]  ;;  %v320_v8 = vld [vmem:[%s3448_s5 + $0x2f8] sm:$0xff]  ;;  %v321_v10 = vld [vmem:[%s3448_s5 + $0x300] sm:$0xff] }
  0x27   : > { %3238 = vmatprep.mubr.msk.f32.mxu1 %vm366_vm0, %v299_v30  ;;  %v258_v11 = vld [vmem:[%s3448_s5 + $0x108] sm:$0xff]  ;;  %v259_v13 = vld [vmem:[%s3448_s5 + $0x110] sm:$0xff]  ;;  %v260_v15 = vld [vmem:[%s3448_s5 + $0x118] sm:$0xff] }
  0x28   : > { %v322_v12 = vld [vmem:[%s3448_s5 + $0x308] sm:$0xff]  ;;  %v323_v14 = vld [vmem:[%s3448_s5 + $0x310] sm:$0xff]  ;;  %v324_v16 = vld [vmem:[%s3448_s5 + $0x318] sm:$0xff] }
  0x29   : > { %3143 = vmatmul.mubr.msk.f32.gmra.mrb[10].mxu0 %vm366_vm0, %v236_v31  ;;  %v261_v17 = vld [vmem:[%s3448_s5 + $0x120] sm:$0xff]  ;;  %v262_v19 = vld [vmem:[%s3448_s5 + $0x128] sm:$0xff]  ;;  %v263_v21 = vld [vmem:[%s3448_s5 + $0x130] sm:$0xff] }
  0x2a   : > { %3239 = vmatmul.mubr.msk.f32.gmra.mrb[10].mxu1 %vm366_vm0, %v300_v32  ;;  %3145 = vmatprep.mubr.msk.f32.mxu0 %vm366_vm0, %v237_v33  ;;  %v325_v18 = vld [vmem:[%s3448_s5 + $0x320] sm:$0xff]  ;;  %v326_v20 = vld [vmem:[%s3448_s5 + $0x328] sm:$0xff]  ;;  %v327_v22 = vld [vmem:[%s3448_s5 + $0x330] sm:$0xff] }
  0x2b   : > { %3241 = vmatprep.mubr.msk.f32.mxu1 %vm366_vm0, %v301_v34  ;;  %v264_v23 = vld [vmem:[%s3448_s5 + $0x138] sm:$0xff]  ;;  %v265_v25 = vld [vmem:[%s3448_s5 + $0x140] sm:$0xff]  ;;  %v266_v27 = vld [vmem:[%s3448_s5 + $0x148] sm:$0xff] }
  0x2c   : > { %v328_v24 = vld [vmem:[%s3448_s5 + $0x338] sm:$0xff]  ;;  %v329_v26 = vld [vmem:[%s3448_s5 + $0x340] sm:$0xff]  ;;  %v330_v28 = vld [vmem:[%s3448_s5 + $0x348] sm:$0xff] }
  0x2d   : > { %3146 = vmatmul.mubr.msk.f32.gmra.mrb[12].mxu0 %vm366_vm0, %v238_v35  ;;  %v267_v29 = vld [vmem:[%s3448_s5 + $0x150] sm:$0xff]  ;;  %v268_v31 = vld [vmem:[%s3448_s5 + $0x158] sm:$0xff]  ;;  %v269_v33 = vld [vmem:[%s3448_s5 + $0x160] sm:$0xff] }
  0x2e   : > { %3242 = vmatmul.mubr.msk.f32.gmra.mrb[12].mxu1 %vm366_vm0, %v302_v36  ;;  %3148 = vmatprep.mubr.msk.f32.mxu0 %vm366_vm0, %v239_v37  ;;  %v331_v30 = vld [vmem:[%s3448_s5 + $0x350] sm:$0xff]  ;;  %v332_v32 = vld [vmem:[%s3448_s5 + $0x358] sm:$0xff]  ;;  %v333_v34 = vld [vmem:[%s3448_s5 + $0x360] sm:$0xff] }
  0x2f   : > { %3244 = vmatprep.mubr.msk.f32.mxu1 %vm366_vm0, %v303_v38  ;;  %v270_v35 = vld [vmem:[%s3448_s5 + $0x168] sm:$0xff]  ;;  %v271_v37 = vld [vmem:[%s3448_s5 + $0x170] sm:$0xff] }
  0x30   : > { %v334_v36 = vld [vmem:[%s3448_s5 + $0x368] sm:$0xff]  ;;  %v335_v38 = vld [vmem:[%s3448_s5 + $0x370] sm:$0xff] }
  0x31   : > { %3149 = vmatmul.mubr.msk.f32.gmra.mrb[14].mxu0 %vm366_vm0, %v240_v39  ;;  %v272_v39 = vld [vmem:[%s3448_s5 + $0x178] sm:$0xff] }
  0x32   : > { %3245 = vmatmul.mubr.msk.f32.gmra.mrb[14].mxu1 %vm366_vm0, %v304_v40  ;;  %3151 = vmatprep.mubr.msk.f32.mxu0 %vm366_vm0, %v241_v41  ;;  %v336_v40 = vld [vmem:[%s3448_s5 + $0x378] sm:$0xff]  ;;  %v273_v41 = vld [vmem:[%s3448_s5 + $0x180] sm:$0xff] }
  0x33   : > { %3247 = vmatprep.mubr.msk.f32.mxu1 %vm366_vm0, %v305_v42  ;;  %v337_v42 = vld [vmem:[%s3448_s5 + $0x380] sm:$0xff] }
  0x35   : > { %3152 = vmatmul.mubr.msk.f32.gmra.mrb[16].mxu0 %vm366_vm0, %v242_v43  ;;  %v274_v43 = vld [vmem:[%s3448_s5 + $0x188] sm:$0xff] }
  0x36   : > { %3248 = vmatmul.mubr.msk.f32.gmra.mrb[16].mxu1 %vm366_vm0, %v306_v44  ;;  %3154 = vmatprep.mubr.msk.f32.mxu0 %vm366_vm0, %v243_v45  ;;  %v338_v44 = vld [vmem:[%s3448_s5 + $0x388] sm:$0xff]  ;;  %v275_v45 = vld [vmem:[%s3448_s5 + $0x190] sm:$0xff] }
  0x37   : > { %3250 = vmatprep.mubr.msk.f32.mxu1 %vm366_vm0, %v307_v46  ;;  %v339_v46 = vld [vmem:[%s3448_s5 + $0x390] sm:$0xff] }
  0x39   : > { %3155 = vmatmul.mubr.msk.f32.gmra.mrb[18].mxu0 %vm366_vm0, %v244_v47  ;;  %v276_v47 = vld [vmem:[%s3448_s5 + $0x198] sm:$0xff] }
  0x3a   : > { %3251 = vmatmul.mubr.msk.f32.gmra.mrb[18].mxu1 %vm366_vm0, %v308_v48  ;;  %3157 = vmatprep.mubr.msk.f32.mxu0 %vm366_vm0, %v245_v49  ;;  %v340_v48 = vld [vmem:[%s3448_s5 + $0x398] sm:$0xff]  ;;  %v277_v49 = vld [vmem:[%s3448_s5 + $0x1a0] sm:$0xff] }
  0x3b   : > { %3253 = vmatprep.mubr.msk.f32.mxu1 %vm366_vm0, %v309_v50  ;;  %v341_v50 = vld [vmem:[%s3448_s5 + $0x3a0] sm:$0xff] }
  0x3d   : > { %3158 = vmatmul.mubr.msk.f32.gmra.mrb[20].mxu0 %vm366_vm0, %v246_v51  ;;  %v278_v51 = vld [vmem:[%s3448_s5 + $0x1a8] sm:$0xff] }
  0x3e   : > { %3254 = vmatmul.mubr.msk.f32.gmra.mrb[20].mxu1 %vm366_vm0, %v310_v52  ;;  %3160 = vmatprep.mubr.msk.f32.mxu0 %vm366_vm0, %v247_v53  ;;  %v342_v52 = vld [vmem:[%s3448_s5 + $0x3a8] sm:$0xff]  ;;  %v279_v53 = vld [vmem:[%s3448_s5 + $0x1b0] sm:$0xff] }
  0x3f   : > { %3256 = vmatprep.mubr.msk.f32.mxu1 %vm366_vm0, %v311_v54  ;;  %v343_v54 = vld [vmem:[%s3448_s5 + $0x3b0] sm:$0xff] }
  0x41   : > { %3161 = vmatmul.mubr.msk.f32.gmra.mrb[22].mxu0 %vm366_vm0, %v248_v55  ;;  %v280_v55 = vld [vmem:[%s3448_s5 + $0x1b8] sm:$0xff] }
  0x42   : > { %3257 = vmatmul.mubr.msk.f32.gmra.mrb[22].mxu1 %vm366_vm0, %v312_v56  ;;  %3163 = vmatprep.mubr.msk.f32.mxu0 %vm366_vm0, %v249_v57  ;;  %v344_v56 = vld [vmem:[%s3448_s5 + $0x3b8] sm:$0xff]  ;;  %v281_v57 = vld [vmem:[%s3448_s5 + $0x1c0] sm:$0xff] }
  0x43   : > { %3259 = vmatprep.mubr.msk.f32.mxu1 %vm366_vm0, %v313_v58  ;;  %v345_v58 = vld [vmem:[%s3448_s5 + $0x3c0] sm:$0xff] }
  0x45   : > { %3164 = vmatmul.mubr.msk.f32.gmra.mrb[24].mxu0 %vm366_vm0, %v250_v59  ;;  %v282_v59 = vld [vmem:[%s3448_s5 + $0x1c8] sm:$0xff] }
  0x46   : > { %3260 = vmatmul.mubr.msk.f32.gmra.mrb[24].mxu1 %vm366_vm0, %v314_v60  ;;  %3166 = vmatprep.mubr.msk.f32.mxu0 %vm366_vm0, %v251_v61  ;;  %v346_v60 = vld [vmem:[%s3448_s5 + $0x3c8] sm:$0xff]  ;;  %v283_v61 = vld [vmem:[%s3448_s5 + $0x1d0] sm:$0xff] }
  0x47   : > { %3262 = vmatprep.mubr.msk.f32.mxu1 %vm366_vm0, %v315_v62  ;;  %v347_v62 = vld [vmem:[%s3448_s5 + $0x3d0] sm:$0xff] }
  0x49   : > { %3167 = vmatmul.mubr.msk.f32.gmra.mrb[26].mxu0 %vm366_vm0, %v252_v63  ;;  %v284_v63 = vld [vmem:[%s3448_s5 + $0x1d8] sm:$0xff] }
  0x4a   : > { %3263 = vmatmul.mubr.msk.f32.gmra.mrb[26].mxu1 %vm366_vm0, %v316_v0  ;;  %3169 = vmatprep.mubr.msk.f32.mxu0 %vm366_vm0, %v253_v1  ;;  %v348_v0 = vld [vmem:[%s3448_s5 + $0x3d8] sm:$0xff]  ;;  %v285_v1 = vld [vmem:[%s3448_s5 + $0x1e0] sm:$0xff] }
  0x4b   : > { %3265 = vmatprep.mubr.msk.f32.mxu1 %vm366_vm0, %v317_v2  ;;  %v349_v2 = vld [vmem:[%s3448_s5 + $0x3e0] sm:$0xff] }
  0x4d   : > { %3170 = vmatmul.mubr.msk.f32.gmra.mrb[28].mxu0 %vm366_vm0, %v254_v3  ;;  %v286_v3 = vld [vmem:[%s3448_s5 + $0x1e8] sm:$0xff] }
  0x4e   : > { %3266 = vmatmul.mubr.msk.f32.gmra.mrb[28].mxu1 %vm366_vm0, %v318_v4  ;;  %3172 = vmatprep.mubr.msk.f32.mxu0 %vm366_vm0, %v255_v5  ;;  %v350_v4 = vld [vmem:[%s3448_s5 + $0x3e8] sm:$0xff]  ;;  %v287_v5 = vld [vmem:[%s3448_s5 + $0x1f0] sm:$0xff] }
  0x4f   : > { %3268 = vmatprep.mubr.msk.f32.mxu1 %vm366_vm0, %v319_v6  ;;  %v351_v6 = vld [vmem:[%s3448_s5 + $0x3f0] sm:$0xff] }
  0x51   : > { %3173 = vmatmul.mubr.msk.f32.gmra.mrb[30].mxu0 %vm366_vm0, %v256_v7  ;;  %v288_v7 = vld [vmem:[%s3448_s5 + $0x1f8] sm:$0xff] }
  0x52   : > { %3269 = vmatmul.mubr.msk.f32.gmra.mrb[30].mxu1 %vm366_vm0, %v320_v8  ;;  %3175 = vmatprep.mubr.msk.f32.mxu0 %vm366_vm0, %v257_v9  ;;  %v352_v8 = vld [vmem:[%s3448_s5 + $0x3f8] sm:$0xff]  ;;  %v3709_v9 = vld [vmem:[%s4381_s2] ss:$0 sm:$0xff] }
  0x53   : > { %3271 = vmatprep.mubr.msk.f32.mxu1 %vm366_vm0, %v321_v10 }
  0x55   : > { %3176 = vmatmul.mubr.msk.f32.gmra.mrb[32].mxu0 %vm366_vm0, %v258_v11 }
  0x56   : > { %3272 = vmatmul.mubr.msk.f32.gmra.mrb[32].mxu1 %vm366_vm0, %v322_v12  ;;  %3178 = vmatprep.mubr.msk.f32.mxu0 %vm366_vm0, %v259_v13 }
  0x57   : > { %3274 = vmatprep.mubr.msk.f32.mxu1 %vm366_vm0, %v323_v14 }
  0x59   : > { %3179 = vmatmul.mubr.msk.f32.gmra.mrb[34].mxu0 %vm366_vm0, %v260_v15 }
  0x5a   : > { %3275 = vmatmul.mubr.msk.f32.gmra.mrb[34].mxu1 %vm366_vm0, %v324_v16  ;;  %3181 = vmatprep.mubr.msk.f32.mxu0 %vm366_vm0, %v261_v17 }
  0x5b   : > { %3277 = vmatprep.mubr.msk.f32.mxu1 %vm366_vm0, %v325_v18 }
  0x5d   : > { %3182 = vmatmul.mubr.msk.f32.gmra.mrb[36].mxu0 %vm366_vm0, %v262_v19 }
  0x5e   : > { %3278 = vmatmul.mubr.msk.f32.gmra.mrb[36].mxu1 %vm366_vm0, %v326_v20  ;;  %3184 = vmatprep.mubr.msk.f32.mxu0 %vm366_vm0, %v263_v21 }
  0x5f   : > { %3280 = vmatprep.mubr.msk.f32.mxu1 %vm366_vm0, %v327_v22 }
  0x61   : > { %3185 = vmatmul.mubr.msk.f32.gmra.mrb[38].mxu0 %vm366_vm0, %v264_v23 }
  0x62   : > { %3281 = vmatmul.mubr.msk.f32.gmra.mrb[38].mxu1 %vm366_vm0, %v328_v24  ;;  %3187 = vmatprep.mubr.msk.f32.mxu0 %vm366_vm0, %v265_v25 }
  0x63   : > { %3283 = vmatprep.mubr.msk.f32.mxu1 %vm366_vm0, %v329_v26 }
  0x65   : > { %3188 = vmatmul.mubr.msk.f32.gmra.mrb[40].mxu0 %vm366_vm0, %v266_v27 }
  0x66   : > { %3284 = vmatmul.mubr.msk.f32.gmra.mrb[40].mxu1 %vm366_vm0, %v330_v28  ;;  %3190 = vmatprep.mubr.msk.f32.mxu0 %vm366_vm0, %v267_v29 }
  0x67   : > { %3286 = vmatprep.mubr.msk.f32.mxu1 %vm366_vm0, %v331_v30 }
  0x69   : > { %3191 = vmatmul.mubr.msk.f32.gmra.mrb[42].mxu0 %vm366_vm0, %v268_v31 }
  0x6a   : > { %3287 = vmatmul.mubr.msk.f32.gmra.mrb[42].mxu1 %vm366_vm0, %v332_v32  ;;  %3193 = vmatprep.mubr.msk.f32.mxu0 %vm366_vm0, %v269_v33 }
  0x6b   : > { %3289 = vmatprep.mubr.msk.f32.mxu1 %vm366_vm0, %v333_v34 }
  0x6d   : > { %3194 = vmatmul.mubr.msk.f32.gmra.mrb[44].mxu0 %vm366_vm0, %v270_v35 }
  0x6e   : > { %3290 = vmatmul.mubr.msk.f32.gmra.mrb[44].mxu1 %vm366_vm0, %v334_v36  ;;  %3196 = vmatprep.mubr.msk.f32.mxu0 %vm366_vm0, %v271_v37 }
  0x6f   : > { %3292 = vmatprep.mubr.msk.f32.mxu1 %vm366_vm0, %v335_v38 }
  0x71   : > { %3197 = vmatmul.mubr.msk.f32.gmra.mrb[46].mxu0 %vm366_vm0, %v272_v39 }
  0x72   : > { %3293 = vmatmul.mubr.msk.f32.gmra.mrb[46].mxu1 %vm366_vm0, %v336_v40  ;;  %3199 = vmatprep.mubr.msk.f32.mxu0 %vm366_vm0, %v273_v41 }
  0x73   : > { %3295 = vmatprep.mubr.msk.f32.mxu1 %vm366_vm0, %v337_v42 }
  0x75   : > { %3200 = vmatmul.mubr.msk.f32.gmra.mrb[48].mxu0 %vm366_vm0, %v274_v43 }
  0x76   : > { %3296 = vmatmul.mubr.msk.f32.gmra.mrb[48].mxu1 %vm366_vm0, %v338_v44  ;;  %3202 = vmatprep.mubr.msk.f32.mxu0 %vm366_vm0, %v275_v45 }
  0x77   : > { %3298 = vmatprep.mubr.msk.f32.mxu1 %vm366_vm0, %v339_v46 }
  0x79   : > { %3203 = vmatmul.mubr.msk.f32.gmra.mrb[50].mxu0 %vm366_vm0, %v276_v47 }
  0x7a   : > { %3299 = vmatmul.mubr.msk.f32.gmra.mrb[50].mxu1 %vm366_vm0, %v340_v48  ;;  %3205 = vmatprep.mubr.msk.f32.mxu0 %vm366_vm0, %v277_v49 }
  0x7b   : > { %3301 = vmatprep.mubr.msk.f32.mxu1 %vm366_vm0, %v341_v50 }
  0x7d   : > { %3206 = vmatmul.mubr.msk.f32.gmra.mrb[52].mxu0 %vm366_vm0, %v278_v51 }
  0x7e   : > { %3302 = vmatmul.mubr.msk.f32.gmra.mrb[52].mxu1 %vm366_vm0, %v342_v52  ;;  %3208 = vmatprep.mubr.msk.f32.mxu0 %vm366_vm0, %v279_v53 }
  0x7f   : > { %3304 = vmatprep.mubr.msk.f32.mxu1 %vm366_vm0, %v343_v54 }
  0x81   : > { %3209 = vmatmul.mubr.msk.f32.gmra.mrb[54].mxu0 %vm366_vm0, %v280_v55 }
  0x82   : > { %3305 = vmatmul.mubr.msk.f32.gmra.mrb[54].mxu1 %vm366_vm0, %v344_v56  ;;  %3211 = vmatprep.mubr.msk.f32.mxu0 %vm366_vm0, %v281_v57 }
  0x83   : > { %3307 = vmatprep.mubr.msk.f32.mxu1 %vm366_vm0, %v345_v58 }
  0x85   : > { %3212 = vmatmul.mubr.msk.f32.gmra.mrb[56].mxu0 %vm366_vm0, %v282_v59 }
  0x86   : > { %3308 = vmatmul.mubr.msk.f32.gmra.mrb[56].mxu1 %vm366_vm0, %v346_v60  ;;  %3214 = vmatprep.mubr.msk.f32.mxu0 %vm366_vm0, %v283_v61 }
  0x87   : > { %3310 = vmatprep.mubr.msk.f32.mxu1 %vm366_vm0, %v347_v62 }
  0x89   : > { %3215 = vmatmul.mubr.msk.f32.gmra.mrb[58].mxu0 %vm366_vm0, %v284_v63 }
  0x8a   : > { %3311 = vmatmul.mubr.msk.f32.gmra.mrb[58].mxu1 %vm366_vm0, %v348_v0  ;;  %3217 = vmatprep.mubr.msk.f32.mxu0 %vm366_vm0, %v285_v1 }
  0x8b   : > { %3313 = vmatprep.mubr.msk.f32.mxu1 %vm366_vm0, %v349_v2 }
  0x8d   : > { %3218 = vmatmul.mubr.msk.f32.gmra.mrb[60].mxu0 %vm366_vm0, %v286_v3 }
  0x8e   : > { %3314 = vmatmul.mubr.msk.f32.gmra.mrb[60].mxu1 %vm366_vm0, %v350_v4  ;;  %3220 = vmatprep.mubr.msk.f32.mxu0 %vm366_vm0, %v287_v5 }
  0x8f   : > { %3316 = vmatprep.mubr.msk.f32.mxu1 %vm366_vm0, %v351_v6 }
  0x91   : > { %3221 = vmatmul.mubr.msk.f32.gmra.mrb[62].mxu0 %vm366_vm0, %v288_v7 }
  0x92   : > { %3317 = vmatmul.mubr.msk.f32.gmra.mrb[62].mxu1 %vm366_vm0, %v352_v8 }
  0xe8   : > { %v3129_v10 = vpop.f32.mrb[0].mxu0 }
  0xe9   : > { %v3225_v11 = vpop.f32.mrb[0].mxu1  ;;  %v823_v12 = vadd.f32 %v3129_v10, %v3709_v9  ;;  %v817_v14 = vpop.f32.mrb[1].mxu0 }
  0xea   : > { %v1143_v13 = vadd.f32 %v3225_v11, %v3709_v9  ;;  %v1137_v15 = vpop.f32.mrb[1].mxu1  ;;  %v818_v16 = vadd.f32 %v3709_v9, %v817_v14 }
  0xeb   : > { %v1138_v17 = vadd.f32 %v3709_v9, %v1137_v15  ;;  %vm1457_vm1 = vcmp.ge.f32.partialorder %v823_v12, 0.0  ;;  %v1585_v18 = vmul.f32 0.2, %v823_v12 }
  0xec   : > { %vm1521_vm2 = vcmp.ge.f32.partialorder %v1143_v13, 0.0  ;;  %v1649_v19 = vmul.f32 0.2, %v1143_v13  ;;  %vm1456_vm3 = vcmp.ge.f32.partialorder %v818_v16, 0.0  ;;  %v1584_v20 = vmul.f32 0.2, %v818_v16 }
  0xed   : > { %vm1520_vm4 = vcmp.ge.f32.partialorder %v1138_v17, 0.0  ;;  %v1648_v21 = vmul.f32 0.2, %v1138_v17  ;;  %v1713_v22 = vsel %vm1457_vm1, %v823_v12, %v1585_v18  ;;  %v3132_v24 = vpop.f32.mrb[2].mxu0  ;;  %v3228_v25 = vpop.f32.mrb[2].mxu1 }
  0xee   : > { %v1777_v23 = vsel %vm1521_vm2, %v1143_v13, %v1649_v19  ;;  %v2854_v26 = vpack.c.bf16 %v1713_v22, %v1713_v22  ;;  %v1712_v28 = vsel %vm1456_vm3, %v818_v16, %v1584_v20  ;;  %v827_v30 = vpop.f32.mrb[3].mxu0  ;;  %v1147_v31 = vpop.f32.mrb[3].mxu1  ;;  %v833_v34 = vadd.f32 %v3132_v24, %v3709_v9 }
  0xef   : > { %v2918_v27 = vpack.c.bf16 %v1777_v23, %v1777_v23  ;;  %v1776_v29 = vsel %vm1520_vm4, %v1138_v17, %v1648_v21  ;;  %v2853_v32 = vpack.c.bf16 %v1712_v28, %v1712_v28  ;;  %v1153_v35 = vadd.f32 %v3228_v25, %v3709_v9 }
  0xf0   : > { %v2917_v33 = vpack.c.bf16 %v1776_v29, %v1776_v29  ;;  %2354 = vst.msk [vmem:[%s3719_s11 + $0x4] sm:$0xf] %vm2352_vm5, %v2854_v26  ;;  %v828_v36 = vadd.f32 %v3709_v9, %v827_v30  ;;  %v1148_v37 = vadd.f32 %v3709_v9, %v1147_v31  ;;  %v3135_v38 = vpop.f32.mrb[4].mxu0  ;;  %vm1459_vm6 = vcmp.ge.f32.partialorder %v833_v34, 0.0 }
  0xf1   : > { %2418 = vst.msk [vmem:[%s3719_s11 + $0x104] sm:$0xf] %vm2352_vm5, %v2918_v27  ;;  %v3231_v39 = vpop.f32.mrb[4].mxu1  ;;  %2353 = vst.msk [vmem:[%s3719_s11] sm:$0xf] %vm2352_vm5, %v2853_v32  ;;  %vm1523_vm7 = vcmp.ge.f32.partialorder %v1153_v35, 0.0  ;;  %v843_v46 = vadd.f32 %v3135_v38, %v3709_v9 }
  0xf2   : > { %2417 = vst.msk [vmem:[%s3719_s11 + $0x100] sm:$0xf] %vm2352_vm5, %v2917_v33  ;;  %v1587_v40 = vmul.f32 0.2, %v833_v34  ;;  %v1651_v41 = vmul.f32 0.2, %v1153_v35  ;;  %v1163_v47 = vadd.f32 %v3231_v39, %v3709_v9 }
  0xf3   : > { %vm1458_vm8 = vcmp.ge.f32.partialorder %v828_v36, 0.0  ;;  %v1586_v42 = vmul.f32 0.2, %v828_v36  ;;  %vm1522_vm9 = vcmp.ge.f32.partialorder %v1148_v37, 0.0  ;;  %v1650_v43 = vmul.f32 0.2, %v1148_v37 }
  0xf4   : > { %v1715_v44 = vsel %vm1459_vm6, %v833_v34, %v1587_v40  ;;  %v1779_v45 = vsel %vm1523_vm7, %v1153_v35, %v1651_v41  ;;  %v837_v48 = vpop.f32.mrb[5].mxu0  ;;  %v1157_v49 = vpop.f32.mrb[5].mxu1  ;;  %vm1461_vm10 = vcmp.ge.f32.partialorder %v843_v46, 0.0  ;;  %v1589_v58 = vmul.f32 0.2, %v843_v46 }
  0xf5   : > { %v2856_v50 = vpack.c.bf16 %v1715_v44, %v1715_v44  ;;  %v2920_v51 = vpack.c.bf16 %v1779_v45, %v1779_v45  ;;  %v1714_v52 = vsel %vm1458_vm8, %v828_v36, %v1586_v42  ;;  %v1778_v53 = vsel %vm1522_vm9, %v1148_v37, %v1650_v43  ;;  %v3138_v54 = vpop.f32.mrb[6].mxu0  ;;  %v3234_v55 = vpop.f32.mrb[6].mxu1 }
  0xf6   : > { %v2855_v56 = vpack.c.bf16 %v1714_v52, %v1714_v52  ;;  %v2919_v57 = vpack.c.bf16 %v1778_v53, %v1778_v53  ;;  %v847_v59 = vpop.f32.mrb[7].mxu0  ;;  %v1167_v60 = vpop.f32.mrb[7].mxu1  ;;  %vm1525_vm11 = vcmp.ge.f32.partialorder %v1163_v47, 0.0  ;;  %v1653_v61 = vmul.f32 0.2, %v1163_v47 }
  0xf7   : > { %2356 = vst.msk [vmem:[%s3719_s11 + $0xc] sm:$0xf] %vm2352_vm5, %v2856_v50  ;;  %2420 = vst.msk [vmem:[%s3719_s11 + $0x10c] sm:$0xf] %vm2352_vm5, %v2920_v51  ;;  %v838_v62 = vadd.f32 %v3709_v9, %v837_v48  ;;  %v1158_v63 = vadd.f32 %v3709_v9, %v1157_v49  ;;  %v1717_v0 = vsel %vm1461_vm10, %v843_v46, %v1589_v58 }
  0xf8   : > { %2355 = vst.msk [vmem:[%s3719_s11 + $0x8] sm:$0xf] %vm2352_vm5, %v2855_v56  ;;  %2419 = vst.msk [vmem:[%s3719_s11 + $0x108] sm:$0xf] %vm2352_vm5, %v2919_v57  ;;  %v853_v1 = vadd.f32 %v3138_v54, %v3709_v9  ;;  %v1173_v2 = vadd.f32 %v3234_v55, %v3709_v9  ;;  %v848_v3 = vadd.f32 %v3709_v9, %v847_v59  ;;  %v3141_v7 = vpop.f32.mrb[8].mxu0 }
  0xf9   : > { %v2858_v4 = vpack.c.bf16 %v1717_v0, %v1717_v0  ;;  %v1781_v5 = vsel %vm1525_vm11, %v1163_v47, %v1653_v61  ;;  %vm1460_vm12 = vcmp.ge.f32.partialorder %v838_v62, 0.0  ;;  %v1588_v6 = vmul.f32 0.2, %v838_v62  ;;  %v3237_v8 = vpop.f32.mrb[8].mxu1  ;;  %v857_v12 = vpop.f32.mrb[9].mxu0 }
  0xfa   : > { %v2922_v10 = vpack.c.bf16 %v1781_v5, %v1781_v5  ;;  %vm1524_vm13 = vcmp.ge.f32.partialorder %v1158_v63, 0.0  ;;  %v1652_v11 = vmul.f32 0.2, %v1158_v63  ;;  %vm1463_vm14 = vcmp.ge.f32.partialorder %v853_v1, 0.0  ;;  %v1177_v13 = vpop.f32.mrb[9].mxu1 }
  0xfb   : > { %2358 = vst.msk [vmem:[%s3719_s11 + $0x14] sm:$0xf] %vm2352_vm5, %v2858_v4  ;;  %v1716_v14 = vsel %vm1460_vm12, %v838_v62, %v1588_v6  ;;  %v1591_v15 = vmul.f32 0.2, %v853_v1  ;;  %vm1527_vm15 = vcmp.ge.f32.partialorder %v1173_v2, 0.0  ;;  %vm1462_vm0 = vcmp.ge.f32.partialorder %v848_v3, 0.0 }
  0xfc   : > { %v1655_v16 = vmul.f32 0.2, %v1173_v2  ;;  %2422 = vst.msk [vmem:[%s3719_s11 + $0x114] sm:$0xf] %vm2352_vm5, %v2922_v10  ;;  %v2857_v17 = vpack.c.bf16 %v1716_v14, %v1716_v14  ;;  %v1780_v18 = vsel %vm1524_vm13, %v1158_v63, %v1652_v11  ;;  %v1590_v19 = vmul.f32 0.2, %v848_v3 }
  0xfd   : > { %v2921_v20 = vpack.c.bf16 %v1780_v18, %v1780_v18  ;;  %v1719_v21 = vsel %vm1463_vm14, %v853_v1, %v1591_v15  ;;  %v1168_v23 = vadd.f32 %v3709_v9, %v1167_v60  ;;  %v3144_v24 = vpop.f32.mrb[10].mxu0  ;;  %v3240_v25 = vpop.f32.mrb[10].mxu1  ;;  %v863_v29 = vadd.f32 %v3141_v7, %v3709_v9 }
  0xfe   : > { %v1783_v22 = vsel %vm1527_vm15, %v1173_v2, %v1655_v16  ;;  %2357 = vst.msk [vmem:[%s3719_s11 + $0x10] sm:$0xf] %vm2352_vm5, %v2857_v17  ;;  %v2860_v26 = vpack.c.bf16 %v1719_v21, %v1719_v21  ;;  %v1718_v28 = vsel %vm1462_vm0, %v848_v3, %v1590_v19  ;;  %v867_v30 = vpop.f32.mrb[11].mxu0  ;;  %v1187_v31 = vpop.f32.mrb[11].mxu1  ;;  %v1183_v34 = vadd.f32 %v3237_v8, %v3709_v9 }
  0xff   : > { %v2924_v27 = vpack.c.bf16 %v1783_v22, %v1783_v22  ;;  %2421 = vst.msk [vmem:[%s3719_s11 + $0x110] sm:$0xf] %vm2352_vm5, %v2921_v20  ;;  %v2859_v32 = vpack.c.bf16 %v1718_v28, %v1718_v28  ;;  %vm1526_vm1 = vcmp.ge.f32.partialorder %v1168_v23, 0.0  ;;  %v1654_v33 = vmul.f32 0.2, %v1168_v23 }
 0x100   : > { %2360 = vst.msk [vmem:[%s3719_s11 + $0x1c] sm:$0xf] %vm2352_vm5, %v2860_v26  ;;  %vm1465_vm2 = vcmp.ge.f32.partialorder %v863_v29, 0.0  ;;  %v1593_v35 = vmul.f32 0.2, %v863_v29  ;;  %v858_v36 = vadd.f32 %v3709_v9, %v857_v12  ;;  %v1178_v37 = vadd.f32 %v3709_v9, %v1177_v13  ;;  %v3147_v41 = vpop.f32.mrb[12].mxu0 }
 0x101   : > { %2424 = vst.msk [vmem:[%s3719_s11 + $0x11c] sm:$0xf] %vm2352_vm5, %v2924_v27  ;;  %2359 = vst.msk [vmem:[%s3719_s11 + $0x18] sm:$0xf] %vm2352_vm5, %v2859_v32  ;;  %v1782_v38 = vsel %vm1526_vm1, %v1168_v23, %v1654_v33  ;;  %vm1529_vm3 = vcmp.ge.f32.partialorder %v1183_v34, 0.0  ;;  %v873_v40 = vadd.f32 %v3144_v24, %v3709_v9  ;;  %v3243_v42 = vpop.f32.mrb[12].mxu1  ;;  %v1193_v56 = vadd.f32 %v3240_v25, %v3709_v9 }
 0x102   : > { %v1657_v39 = vmul.f32 0.2, %v1183_v34  ;;  %v2923_v43 = vpack.c.bf16 %v1782_v38, %v1782_v38  ;;  %v1721_v44 = vsel %vm1465_vm2, %v863_v29, %v1593_v35  ;;  %vm1464_vm4 = vcmp.ge.f32.partialorder %v858_v36, 0.0  ;;  %v877_v46 = vpop.f32.mrb[13].mxu0  ;;  %v1197_v47 = vpop.f32.mrb[13].mxu1 }
 0x103   : > { %v1592_v45 = vmul.f32 0.2, %v858_v36  ;;  %v2862_v48 = vpack.c.bf16 %v1721_v44, %v1721_v44  ;;  %vm1528_vm6 = vcmp.ge.f32.partialorder %v1178_v37, 0.0  ;;  %v1656_v50 = vmul.f32 0.2, %v1178_v37 }
 0x104   : > { %v1785_v49 = vsel %vm1529_vm3, %v1183_v34, %v1657_v39  ;;  %2423 = vst.msk [vmem:[%s3719_s11 + $0x118] sm:$0xf] %vm2352_vm5, %v2923_v43  ;;  %vm1467_vm7 = vcmp.ge.f32.partialorder %v873_v40, 0.0  ;;  %v1595_v53 = vmul.f32 0.2, %v873_v40  ;;  %v868_v57 = vadd.f32 %v3709_v9, %v867_v30  ;;  %v3150_v58 = vpop.f32.mrb[14].mxu0 }
 0x105   : > { %v2926_v51 = vpack.c.bf16 %v1785_v49, %v1785_v49  ;;  %v1720_v52 = vsel %vm1464_vm4, %v858_v36, %v1592_v45  ;;  %2362 = vst.msk [vmem:[%s3719_s11 + $0x24] sm:$0xf] %vm2352_vm5, %v2862_v48  ;;  %v1784_v55 = vsel %vm1528_vm6, %v1178_v37, %v1656_v50  ;;  %v3246_v59 = vpop.f32.mrb[14].mxu1  ;;  %v1188_v62 = vadd.f32 %v3709_v9, %v1187_v31  ;;  %v887_v0 = vpop.f32.mrb[15].mxu0 }
 0x106   : > { %v2861_v54 = vpack.c.bf16 %v1720_v52, %v1720_v52  ;;  %v2925_v60 = vpack.c.bf16 %v1784_v55, %v1784_v55  ;;  %v1723_v61 = vsel %vm1467_vm7, %v873_v40, %v1595_v53  ;;  %v883_v63 = vadd.f32 %v3147_v41, %v3709_v9  ;;  %v1207_v1 = vpop.f32.mrb[15].mxu1 }
 0x107   : > { %2426 = vst.msk [vmem:[%s3719_s11 + $0x124] sm:$0xf] %vm2352_vm5, %v2926_v51  ;;  %v2864_v2 = vpack.c.bf16 %v1723_v61, %v1723_v61  ;;  %vm1531_vm8 = vcmp.ge.f32.partialorder %v1193_v56, 0.0  ;;  %v1659_v3 = vmul.f32 0.2, %v1193_v56  ;;  %vm1466_vm9 = vcmp.ge.f32.partialorder %v868_v57, 0.0 }
 0x108   : > { %2361 = vst.msk [vmem:[%s3719_s11 + $0x20] sm:$0xf] %vm2352_vm5, %v2861_v54  ;;  %2425 = vst.msk [vmem:[%s3719_s11 + $0x120] sm:$0xf] %vm2352_vm5, %v2925_v60  ;;  %v1594_v4 = vmul.f32 0.2, %v868_v57  ;;  %v1203_v8 = vadd.f32 %v3243_v42, %v3709_v9  ;;  %v878_v10 = vadd.f32 %v3709_v9, %v877_v46  ;;  %v1198_v16 = vadd.f32 %v3709_v9, %v1197_v47 }
 0x109   : > { %vm1530_vm10 = vcmp.ge.f32.partialorder %v1188_v62, 0.0  ;;  %v1658_v5 = vmul.f32 0.2, %v1188_v62  ;;  %vm1469_vm11 = vcmp.ge.f32.partialorder %v883_v63, 0.0  ;;  %2364 = vst.msk [vmem:[%s3719_s11 + $0x2c] sm:$0xf] %vm2352_vm5, %v2864_v2  ;;  %v1787_v6 = vsel %vm1531_vm8, %v1193_v56, %v1659_v3 }
 0x10a   : > { %v1597_v7 = vmul.f32 0.2, %v883_v63  ;;  %v3153_v11 = vpop.f32.mrb[16].mxu0  ;;  %v3249_v12 = vpop.f32.mrb[16].mxu1  ;;  %v2928_v13 = vpack.c.bf16 %v1787_v6, %v1787_v6  ;;  %v1722_v14 = vsel %vm1466_vm9, %v868_v57, %v1594_v4  ;;  %vm1533_vm12 = vcmp.ge.f32.partialorder %v1203_v8, 0.0 }
 0x10b   : > { %v1786_v15 = vsel %vm1530_vm10, %v1188_v62, %v1658_v5  ;;  %v897_v17 = vpop.f32.mrb[17].mxu0  ;;  %v1217_v18 = vpop.f32.mrb[17].mxu1  ;;  %v2863_v19 = vpack.c.bf16 %v1722_v14, %v1722_v14  ;;  %v1661_v23 = vmul.f32 0.2, %v1203_v8  ;;  %vm1468_vm13 = vcmp.ge.f32.partialorder %v878_v10, 0.0 }
 0x10c   : > { %v2927_v20 = vpack.c.bf16 %v1786_v15, %v1786_v15  ;;  %v1725_v21 = vsel %vm1469_vm11, %v883_v63, %v1597_v7  ;;  %2428 = vst.msk [vmem:[%s3719_s11 + $0x12c] sm:$0xf] %vm2352_vm5, %v2928_v13  ;;  %v1596_v24 = vmul.f32 0.2, %v878_v10  ;;  %vm1532_vm14 = vcmp.ge.f32.partialorder %v1198_v16, 0.0  ;;  %v3156_v28 = vpop.f32.mrb[18].mxu0 }
 0x10d   : > { %v2866_v22 = vpack.c.bf16 %v1725_v21, %v1725_v21  ;;  %2363 = vst.msk [vmem:[%s3719_s11 + $0x28] sm:$0xf] %vm2352_vm5, %v2863_v19  ;;  %v1660_v25 = vmul.f32 0.2, %v1198_v16  ;;  %v893_v26 = vadd.f32 %v3150_v58, %v3709_v9  ;;  %v1213_v27 = vadd.f32 %v3246_v59, %v3709_v9  ;;  %v3252_v29 = vpop.f32.mrb[18].mxu1  ;;  %v907_v34 = vpop.f32.mrb[19].mxu0 }
 0x10e   : > { %2427 = vst.msk [vmem:[%s3719_s11 + $0x128] sm:$0xf] %vm2352_vm5, %v2927_v20  ;;  %v1789_v30 = vsel %vm1533_vm12, %v1203_v8, %v1661_v23  ;;  %v1724_v31 = vsel %vm1468_vm13, %v878_v10, %v1596_v24  ;;  %v888_v32 = vadd.f32 %v3709_v9, %v887_v0  ;;  %v1208_v33 = vadd.f32 %v3709_v9, %v1207_v1  ;;  %v3800_v35 = vpop.f32.mrb[19].mxu1 }
 0x10f   : > { %2366 = vst.msk [vmem:[%s3719_s11 + $0x34] sm:$0xf] %vm2352_vm5, %v2866_v22  ;;  %v2930_v36 = vpack.c.bf16 %v1789_v30, %v1789_v30  ;;  %v2865_v37 = vpack.c.bf16 %v1724_v31, %v1724_v31  ;;  %v1788_v38 = vsel %vm1532_vm14, %v1198_v16, %v1660_v25  ;;  %vm1471_vm15 = vcmp.ge.f32.partialorder %v893_v26, 0.0 }
 0x110   : > { %v2929_v39 = vpack.c.bf16 %v1788_v38, %v1788_v38  ;;  %v1599_v40 = vmul.f32 0.2, %v893_v26  ;;  %vm1535_vm0 = vcmp.ge.f32.partialorder %v1213_v27, 0.0  ;;  %v1663_v41 = vmul.f32 0.2, %v1213_v27  ;;  %v3159_v48 = vpop.f32.mrb[20].mxu0 }
 0x111   : > { %2430 = vst.msk [vmem:[%s3719_s11 + $0x134] sm:$0xf] %vm2352_vm5, %v2930_v36  ;;  %2365 = vst.msk [vmem:[%s3719_s11 + $0x30] sm:$0xf] %vm2352_vm5, %v2865_v37  ;;  %vm1470_vm1 = vcmp.ge.f32.partialorder %v888_v32, 0.0  ;;  %vm1534_vm2 = vcmp.ge.f32.partialorder %v1208_v33, 0.0  ;;  %v903_v46 = vadd.f32 %v3153_v11, %v3709_v9  ;;  %v1223_v47 = vadd.f32 %v3249_v12, %v3709_v9 }
 0x112   : > { %v1598_v42 = vmul.f32 0.2, %v888_v32  ;;  %v1662_v43 = vmul.f32 0.2, %v1208_v33  ;;  %2429 = vst.msk [vmem:[%s3719_s11 + $0x130] sm:$0xf] %vm2352_vm5, %v2929_v39  ;;  %v1727_v44 = vsel %vm1471_vm15, %v893_v26, %v1599_v40  ;;  %v1791_v45 = vsel %vm1535_vm0, %v1213_v27, %v1663_v41 }
 0x113   : > { %v3255_v49 = vpop.f32.mrb[20].mxu1  ;;  %v2868_v50 = vpack.c.bf16 %v1727_v44, %v1727_v44  ;;  %v2932_v51 = vpack.c.bf16 %v1791_v45, %v1791_v45  ;;  %v3810_v54 = vpop.f32.mrb[21].mxu0  ;;  %vm1473_vm3 = vcmp.ge.f32.partialorder %v903_v46, 0.0  ;;  %v1601_v58 = vmul.f32 0.2, %v903_v46 }
 0x114   : > { %v1726_v52 = vsel %vm1470_vm1, %v888_v32, %v1598_v42  ;;  %v1790_v53 = vsel %vm1534_vm2, %v1208_v33, %v1662_v43  ;;  %v3812_v55 = vpop.f32.mrb[21].mxu1  ;;  %vm1537_vm4 = vcmp.ge.f32.partialorder %v1223_v47, 0.0  ;;  %v1665_v59 = vmul.f32 0.2, %v1223_v47  ;;  %v3162_v62 = vpop.f32.mrb[22].mxu0 }
 0x115   : > { %v2867_v56 = vpack.c.bf16 %v1726_v52, %v1726_v52  ;;  %v2931_v57 = vpack.c.bf16 %v1790_v53, %v1790_v53  ;;  %2368 = vst.msk [vmem:[%s3719_s11 + $0x3c] sm:$0xf] %vm2352_vm5, %v2868_v50  ;;  %2432 = vst.msk [vmem:[%s3719_s11 + $0x13c] sm:$0xf] %vm2352_vm5, %v2932_v51  ;;  %v898_v60 = vadd.f32 %v3709_v9, %v897_v17  ;;  %v3820_v63 = vpop.f32.mrb[22].mxu1  ;;  %v3829_v4 = vpop.f32.mrb[23].mxu0 }
 0x116   : > { %v1218_v61 = vadd.f32 %v3709_v9, %v1217_v18  ;;  %v1729_v0 = vsel %vm1473_vm3, %v903_v46, %v1601_v58  ;;  %v913_v1 = vadd.f32 %v3156_v28, %v3709_v9  ;;  %v1233_v2 = vadd.f32 %v3252_v29, %v3709_v9  ;;  %v3831_v5 = vpop.f32.mrb[23].mxu1 }
 0x117   : > { %2367 = vst.msk [vmem:[%s3719_s11 + $0x38] sm:$0xf] %vm2352_vm5, %v2867_v56  ;;  %2431 = vst.msk [vmem:[%s3719_s11 + $0x138] sm:$0xf] %vm2352_vm5, %v2931_v57  ;;  %v908_v3 = vadd.f32 %v3709_v9, %v907_v34  ;;  %v2870_v6 = vpack.c.bf16 %v1729_v0, %v1729_v0  ;;  %v1793_v7 = vsel %vm1537_vm4, %v1223_v47, %v1665_v59  ;;  %vm1472_vm6 = vcmp.ge.f32.partialorder %v898_v60, 0.0 }
 0x118   : > { %v1600_v8 = vmul.f32 0.2, %v898_v60  ;;  %v2934_v10 = vpack.c.bf16 %v1793_v7, %v1793_v7  ;;  %vm1536_vm7 = vcmp.ge.f32.partialorder %v1218_v61, 0.0  ;;  %v1664_v11 = vmul.f32 0.2, %v1218_v61  ;;  %v3835_v15 = vpop.f32.mrb[24].mxu0 }
 0x119   : > { %vm1475_vm8 = vcmp.ge.f32.partialorder %v913_v1, 0.0  ;;  %2370 = vst.msk [vmem:[%s3719_s11 + $0x44] sm:$0xf] %vm2352_vm5, %v2870_v6  ;;  %v1603_v13 = vmul.f32 0.2, %v913_v1  ;;  %vm1539_vm9 = vcmp.ge.f32.partialorder %v1233_v2, 0.0  ;;  %v1228_v24 = vadd.f32 %v3709_v9, %v3800_v35 }
 0x11a   : > { %v1728_v12 = vsel %vm1472_vm6, %v898_v60, %v1600_v8  ;;  %v1667_v14 = vmul.f32 0.2, %v1233_v2  ;;  %2434 = vst.msk [vmem:[%s3719_s11 + $0x144] sm:$0xf] %vm2352_vm5, %v2934_v10  ;;  %v1792_v17 = vsel %vm1536_vm7, %v1218_v61, %v1664_v11  ;;  %vm1474_vm10 = vcmp.ge.f32.partialorder %v908_v3, 0.0  ;;  %v3839_v19 = vpop.f32.mrb[24].mxu1 }
 0x11b   : > { %v2869_v16 = vpack.c.bf16 %v1728_v12, %v1728_v12  ;;  %v1602_v18 = vmul.f32 0.2, %v908_v3  ;;  %v3841_v20 = vpop.f32.mrb[25].mxu0  ;;  %v2933_v21 = vpack.c.bf16 %v1792_v17, %v1792_v17  ;;  %v1731_v22 = vsel %vm1475_vm8, %v913_v1, %v1603_v13  ;;  %v3845_v25 = vpop.f32.mrb[25].mxu1 }
 0x11c   : > { %v1795_v23 = vsel %vm1539_vm9, %v1233_v2, %v1667_v14  ;;  %v2872_v26 = vpack.c.bf16 %v1731_v22, %v1731_v22  ;;  %v923_v29 = vadd.f32 %v3159_v48, %v3709_v9  ;;  %vm1538_vm11 = vcmp.ge.f32.partialorder %v1228_v24, 0.0  ;;  %v3853_v33 = vpop.f32.mrb[26].mxu0 }
 0x11d   : > { %2369 = vst.msk [vmem:[%s3719_s11 + $0x40] sm:$0xf] %vm2352_vm5, %v2869_v16  ;;  %v2936_v27 = vpack.c.bf16 %v1795_v23, %v1795_v23  ;;  %v1730_v28 = vsel %vm1474_vm10, %v908_v3, %v1602_v18  ;;  %2433 = vst.msk [vmem:[%s3719_s11 + $0x140] sm:$0xf] %vm2352_vm5, %v2933_v21  ;;  %v1666_v31 = vmul.f32 0.2, %v1228_v24  ;;  %v1243_v32 = vadd.f32 %v3255_v49, %v3709_v9 }
 0x11e   : > { %v2871_v30 = vpack.c.bf16 %v1730_v28, %v1730_v28  ;;  %v3855_v34 = vpop.f32.mrb[26].mxu1  ;;  %2372 = vst.msk [vmem:[%s3719_s11 + $0x4c] sm:$0xf] %vm2352_vm5, %v2872_v26  ;;  %vm1477_vm12 = vcmp.ge.f32.partialorder %v923_v29, 0.0  ;;  %v1605_v35 = vmul.f32 0.2, %v923_v29  ;;  %v918_v36 = vadd.f32 %v3709_v9, %v3810_v54 }
 0x11f   : > { %2436 = vst.msk [vmem:[%s3719_s11 + $0x14c] sm:$0xf] %vm2352_vm5, %v2936_v27  ;;  %v1238_v37 = vadd.f32 %v3709_v9, %v3812_v55  ;;  %v3865_v38 = vpop.f32.mrb[27].mxu0  ;;  %v3867_v39 = vpop.f32.mrb[27].mxu1  ;;  %v1794_v40 = vsel %vm1538_vm11, %v1228_v24, %v1666_v31  ;;  %vm1541_vm13 = vcmp.ge.f32.partialorder %v1243_v32, 0.0  ;;  %v933_v42 = vadd.f32 %v3162_v62, %v3709_v9 }
 0x120   : > { %2371 = vst.msk [vmem:[%s3719_s11 + $0x48] sm:$0xf] %vm2352_vm5, %v2871_v30  ;;  %v1669_v41 = vmul.f32 0.2, %v1243_v32  ;;  %v2935_v43 = vpack.c.bf16 %v1794_v40, %v1794_v40  ;;  %v1733_v44 = vsel %vm1477_vm12, %v923_v29, %v1605_v35  ;;  %vm1476_vm14 = vcmp.ge.f32.partialorder %v918_v36, 0.0  ;;  %v3872_v49 = vpop.f32.mrb[28].mxu0 }
 0x121   : > { %v1604_v45 = vmul.f32 0.2, %v918_v36  ;;  %v2874_v46 = vpack.c.bf16 %v1733_v44, %v1733_v44  ;;  %vm1540_vm15 = vcmp.ge.f32.partialorder %v1238_v37, 0.0  ;;  %v1668_v48 = vmul.f32 0.2, %v1238_v37  ;;  %v3874_v50 = vpop.f32.mrb[28].mxu1 }
 0x122   : > { %v1797_v47 = vsel %vm1541_vm13, %v1243_v32, %v1669_v41  ;;  %2435 = vst.msk [vmem:[%s3719_s11 + $0x148] sm:$0xf] %vm2352_vm5, %v2935_v43  ;;  %vm1479_vm0 = vcmp.ge.f32.partialorder %v933_v42, 0.0  ;;  %v1607_v53 = vmul.f32 0.2, %v933_v42  ;;  %v3878_v54 = vpop.f32.mrb[29].mxu0  ;;  %v1253_v58 = vadd.f32 %v3820_v63, %v3709_v9 }
 0x123   : > { %v2938_v51 = vpack.c.bf16 %v1797_v47, %v1797_v47  ;;  %v1732_v52 = vsel %vm1476_vm14, %v918_v36, %v1604_v45  ;;  %v3880_v55 = vpop.f32.mrb[29].mxu1  ;;  %2374 = vst.msk [vmem:[%s3719_s11 + $0x54] sm:$0xf] %vm2352_vm5, %v2874_v46  ;;  %v1796_v57 = vsel %vm1540_vm15, %v1238_v37, %v1668_v48  ;;  %v928_v59 = vadd.f32 %v3709_v9, %v3829_v4 }
 0x124   : > { %v2873_v56 = vpack.c.bf16 %v1732_v52, %v1732_v52  ;;  %v2937_v60 = vpack.c.bf16 %v1796_v57, %v1796_v57  ;;  %v1735_v61 = vsel %vm1479_vm0, %v933_v42, %v1607_v53  ;;  %v1248_v62 = vadd.f32 %v3709_v9, %v3831_v5  ;;  %v3896_v63 = vpop.f32.mrb[30].mxu0 }
 0x125   : > { %2438 = vst.msk [vmem:[%s3719_s11 + $0x154] sm:$0xf] %vm2352_vm5, %v2938_v51  ;;  %v943_v0 = vadd.f32 %v3835_v15, %v3709_v9  ;;  %v2876_v1 = vpack.c.bf16 %v1735_v61, %v1735_v61  ;;  %vm1543_vm1 = vcmp.ge.f32.partialorder %v1253_v58, 0.0  ;;  %v1671_v2 = vmul.f32 0.2, %v1253_v58  ;;  %v3898_v3 = vpop.f32.mrb[30].mxu1 }
 0x126   : > { %2373 = vst.msk [vmem:[%s3719_s11 + $0x50] sm:$0xf] %vm2352_vm5, %v2873_v56  ;;  %vm1478_vm2 = vcmp.ge.f32.partialorder %v928_v59, 0.0  ;;  %2437 = vst.msk [vmem:[%s3719_s11 + $0x150] sm:$0xf] %vm2352_vm5, %v2937_v60  ;;  %vm1542_vm3 = vcmp.ge.f32.partialorder %v1248_v62, 0.0  ;;  %v1263_v8 = vadd.f32 %v3839_v19, %v3709_v9  ;;  %v938_v10 = vadd.f32 %v3709_v9, %v3841_v20 }
 0x127   : > { %v1606_v4 = vmul.f32 0.2, %v928_v59  ;;  %v1670_v6 = vmul.f32 0.2, %v1248_v62  ;;  %vm1481_vm4 = vcmp.ge.f32.partialorder %v943_v0, 0.0  ;;  %v1799_v5 = vsel %vm1543_vm1, %v1253_v58, %v1671_v2  ;;  %v3908_v11 = vpop.f32.mrb[31].mxu0 }
 0x128   : > { %2376 = vst.msk [vmem:[%s3719_s11 + $0x5c] sm:$0xf] %vm2352_vm5, %v2876_v1  ;;  %v1609_v7 = vmul.f32 0.2, %v943_v0  ;;  %v3910_v12 = vpop.f32.mrb[31].mxu1  ;;  %v2940_v13 = vpack.c.bf16 %v1799_v5, %v1799_v5  ;;  %v1258_v16 = vadd.f32 %v3709_v9, %v3845_v25  ;;  %vm1545_vm6 = vcmp.ge.f32.partialorder %v1263_v8, 0.0 }
 0x129   : > { %v1734_v14 = vsel %vm1478_vm2, %v928_v59, %v1606_v4  ;;  %v1798_v15 = vsel %vm1542_vm3, %v1248_v62, %v1670_v6  ;;  %v3915_v19 = vpop.f32.mrb[32].mxu0  ;;  %v3917_v20 = vpop.f32.mrb[32].mxu1  ;;  %v1673_v23 = vmul.f32 0.2, %v1263_v8  ;;  %vm1480_vm7 = vcmp.ge.f32.partialorder %v938_v10, 0.0 }
 0x12a   : > { %v2875_v17 = vpack.c.bf16 %v1734_v14, %v1734_v14  ;;  %v2939_v18 = vpack.c.bf16 %v1798_v15, %v1798_v15  ;;  %v1737_v21 = vsel %vm1481_vm4, %v943_v0, %v1609_v7  ;;  %2440 = vst.msk [vmem:[%s3719_s11 + $0x15c] sm:$0xf] %vm2352_vm5, %v2940_v13  ;;  %v1608_v24 = vmul.f32 0.2, %v938_v10  ;;  %v3921_v26 = vpop.f32.mrb[33].mxu0  ;;  %v3931_v29 = vpop.f32.mrb[33].mxu1 }
 0x12b   : > { %v2878_v22 = vpack.c.bf16 %v1737_v21, %v1737_v21  ;;  %vm1544_vm8 = vcmp.ge.f32.partialorder %v1258_v16, 0.0  ;;  %v1672_v25 = vmul.f32 0.2, %v1258_v16  ;;  %v953_v27 = vadd.f32 %v3853_v33, %v3709_v9 }
 0x12c   : > { %2375 = vst.msk [vmem:[%s3719_s11 + $0x58] sm:$0xf] %vm2352_vm5, %v2875_v17  ;;  %2439 = vst.msk [vmem:[%s3719_s11 + $0x158] sm:$0xf] %vm2352_vm5, %v2939_v18  ;;  %v1273_v28 = vadd.f32 %v3855_v34, %v3709_v9  ;;  %v1801_v30 = vsel %vm1545_vm6, %v1263_v8, %v1673_v23  ;;  %v1736_v31 = vsel %vm1480_vm7, %v938_v10, %v1608_v24  ;;  %v3940_v34 = vpop.f32.mrb[34].mxu0 }
 0x12d   : > { %2378 = vst.msk [vmem:[%s3719_s11 + $0x64] sm:$0xf] %vm2352_vm5, %v2878_v22  ;;  %v948_v32 = vadd.f32 %v3709_v9, %v3865_v38  ;;  %v1268_v35 = vadd.f32 %v3709_v9, %v3867_v39  ;;  %v2942_v36 = vpack.c.bf16 %v1801_v30, %v1801_v30  ;;  %v2877_v33 = vpack.c.bf16 %v1736_v31, %v1736_v31  ;;  %v3942_v40 = vpop.f32.mrb[34].mxu1  ;;  %v3944_v44 = vpop.f32.mrb[35].mxu0 }
 0x12e   : > { %v1800_v37 = vsel %vm1544_vm8, %v1258_v16, %v1672_v25  ;;  %vm1483_vm9 = vcmp.ge.f32.partialorder %v953_v27, 0.0  ;;  %v1611_v42 = vmul.f32 0.2, %v953_v27  ;;  %vm1547_vm10 = vcmp.ge.f32.partialorder %v1273_v28, 0.0  ;;  %v3956_v51 = vpop.f32.mrb[35].mxu1 }
 0x12f   : > { %v2941_v41 = vpack.c.bf16 %v1800_v37, %v1800_v37  ;;  %v1675_v43 = vmul.f32 0.2, %v1273_v28  ;;  %2442 = vst.msk [vmem:[%s3719_s11 + $0x164] sm:$0xf] %vm2352_vm5, %v2942_v36  ;;  %2377 = vst.msk [vmem:[%s3719_s11 + $0x60] sm:$0xf] %vm2352_vm5, %v2877_v33  ;;  %v963_v47 = vadd.f32 %v3872_v49, %v3709_v9  ;;  %v1283_v48 = vadd.f32 %v3874_v50, %v3709_v9 }
 0x130   : > { %vm1482_vm11 = vcmp.ge.f32.partialorder %v948_v32, 0.0  ;;  %v1610_v38 = vmul.f32 0.2, %v948_v32  ;;  %vm1546_vm12 = vcmp.ge.f32.partialorder %v1268_v35, 0.0  ;;  %v1674_v39 = vmul.f32 0.2, %v1268_v35 }
 0x131   : > { %2441 = vst.msk [vmem:[%s3719_s11 + $0x160] sm:$0xf] %vm2352_vm5, %v2941_v41  ;;  %v1739_v45 = vsel %vm1483_vm9, %v953_v27, %v1611_v42  ;;  %v1803_v46 = vsel %vm1547_vm10, %v1273_v28, %v1675_v43  ;;  %v3958_v58 = vpop.f32.mrb[36].mxu0  ;;  %v3960_v59 = vpop.f32.mrb[36].mxu1  ;;  %vm1485_vm13 = vcmp.ge.f32.partialorder %v963_v47, 0.0  ;;  %vm1549_vm14 = vcmp.ge.f32.partialorder %v1283_v48, 0.0 }
 0x132   : > { %v2880_v52 = vpack.c.bf16 %v1739_v45, %v1739_v45  ;;  %v2944_v53 = vpack.c.bf16 %v1803_v46, %v1803_v46  ;;  %v1738_v56 = vsel %vm1482_vm11, %v948_v32, %v1610_v38  ;;  %v1802_v57 = vsel %vm1546_vm12, %v1268_v35, %v1674_v39  ;;  %v3962_v62 = vpop.f32.mrb[37].mxu0  ;;  %v3964_v0 = vpop.f32.mrb[37].mxu1 }
 0x133   : > { %v2879_v60 = vpack.c.bf16 %v1738_v56, %v1738_v56  ;;  %v2943_v61 = vpack.c.bf16 %v1802_v57, %v1802_v57  ;;  %v1613_v49 = vmul.f32 0.2, %v963_v47  ;;  %v1677_v50 = vmul.f32 0.2, %v1283_v48 }
 0x134   : > { %2380 = vst.msk [vmem:[%s3719_s11 + $0x6c] sm:$0xf] %vm2352_vm5, %v2880_v52  ;;  %2444 = vst.msk [vmem:[%s3719_s11 + $0x16c] sm:$0xf] %vm2352_vm5, %v2944_v53  ;;  %v958_v1 = vadd.f32 %v3709_v9, %v3878_v54  ;;  %v1278_v2 = vadd.f32 %v3709_v9, %v3880_v55  ;;  %v973_v6 = vadd.f32 %v3896_v63, %v3709_v9  ;;  %v3984_v10 = vpop.f32.mrb[38].mxu0 }
 0x135   : > { %2379 = vst.msk [vmem:[%s3719_s11 + $0x68] sm:$0xf] %vm2352_vm5, %v2879_v60  ;;  %2443 = vst.msk [vmem:[%s3719_s11 + $0x168] sm:$0xf] %vm2352_vm5, %v2943_v61  ;;  %v1741_v4 = vsel %vm1485_vm13, %v963_v47, %v1613_v49  ;;  %v1293_v5 = vadd.f32 %v3898_v3, %v3709_v9  ;;  %v968_v7 = vadd.f32 %v3709_v9, %v3908_v11  ;;  %v3986_v13 = vpop.f32.mrb[38].mxu1  ;;  %v3988_v63 = vpop.f32.mrb[39].mxu0 }
 0x136   : > { %v2882_v8 = vpack.c.bf16 %v1741_v4, %v1741_v4  ;;  %v1805_v54 = vsel %vm1549_vm14, %v1283_v48, %v1677_v50  ;;  %vm1484_vm15 = vcmp.ge.f32.partialorder %v958_v1, 0.0  ;;  %v1612_v55 = vmul.f32 0.2, %v958_v1  ;;  %v3990_v16 = vpop.f32.mrb[39].mxu1 }
 0x137   : > { %v2946_v14 = vpack.c.bf16 %v1805_v54, %v1805_v54  ;;  %vm1548_vm0 = vcmp.ge.f32.partialorder %v1278_v2, 0.0  ;;  %v1676_v15 = vmul.f32 0.2, %v1278_v2  ;;  %vm1487_vm1 = vcmp.ge.f32.partialorder %v973_v6, 0.0 }
 0x138   : > { %2382 = vst.msk [vmem:[%s3719_s11 + $0x74] sm:$0xf] %vm2352_vm5, %v2882_v8  ;;  %v1740_v3 = vsel %vm1484_vm15, %v958_v1, %v1612_v55  ;;  %v1615_v11 = vmul.f32 0.2, %v973_v6  ;;  %vm1551_vm2 = vcmp.ge.f32.partialorder %v1293_v5, 0.0  ;;  %vm1486_vm3 = vcmp.ge.f32.partialorder %v968_v7, 0.0 }
 0x139   : > { %v1679_v17 = vmul.f32 0.2, %v1293_v5  ;;  %2446 = vst.msk [vmem:[%s3719_s11 + $0x174] sm:$0xf] %vm2352_vm5, %v2946_v14  ;;  %v2881_v18 = vpack.c.bf16 %v1740_v3, %v1740_v3  ;;  %v1804_v21 = vsel %vm1548_vm0, %v1278_v2, %v1676_v15  ;;  %v1614_v22 = vmul.f32 0.2, %v968_v7 }
 0x13a   : > { %v2945_v23 = vpack.c.bf16 %v1804_v21, %v1804_v21  ;;  %v1743_v24 = vsel %vm1487_vm1, %v973_v6, %v1615_v11  ;;  %v1288_v27 = vadd.f32 %v3709_v9, %v3910_v12  ;;  %v3998_v28 = vpop.f32.mrb[40].mxu0  ;;  %v4000_v30 = vpop.f32.mrb[40].mxu1  ;;  %v983_v36 = vadd.f32 %v3915_v19, %v3709_v9 }
 0x13b   : > { %v1807_v25 = vsel %vm1551_vm2, %v1293_v5, %v1679_v17  ;;  %2381 = vst.msk [vmem:[%s3719_s11 + $0x70] sm:$0xf] %vm2352_vm5, %v2881_v18  ;;  %v2884_v31 = vpack.c.bf16 %v1743_v24, %v1743_v24  ;;  %v1742_v35 = vsel %vm1486_vm3, %v968_v7, %v1614_v22  ;;  %v4006_v33 = vpop.f32.mrb[41].mxu0  ;;  %v4008_v37 = vpop.f32.mrb[41].mxu1  ;;  %v1303_v42 = vadd.f32 %v3917_v20, %v3709_v9 }
 0x13c   : > { %v2948_v32 = vpack.c.bf16 %v1807_v25, %v1807_v25  ;;  %2445 = vst.msk [vmem:[%s3719_s11 + $0x170] sm:$0xf] %vm2352_vm5, %v2945_v23  ;;  %v2883_v12 = vpack.c.bf16 %v1742_v35, %v1742_v35  ;;  %vm1550_vm4 = vcmp.ge.f32.partialorder %v1288_v27, 0.0  ;;  %v1678_v41 = vmul.f32 0.2, %v1288_v27  ;;  %v4026_v46 = vpop.f32.mrb[42].mxu0 }
 0x13d   : > { %2384 = vst.msk [vmem:[%s3719_s11 + $0x7c] sm:$0xf] %vm2352_vm5, %v2884_v31  ;;  %vm1489_vm6 = vcmp.ge.f32.partialorder %v983_v36, 0.0  ;;  %v1617_v43 = vmul.f32 0.2, %v983_v36  ;;  %v978_v19 = vadd.f32 %v3709_v9, %v3921_v26  ;;  %v1298_v38 = vadd.f32 %v3709_v9, %v3931_v29  ;;  %v4028_v47 = vpop.f32.mrb[42].mxu1 }
 0x13e   : > { %2448 = vst.msk [vmem:[%s3719_s11 + $0x17c] sm:$0xf] %vm2352_vm5, %v2948_v32  ;;  %2383 = vst.msk [vmem:[%s3719_s11 + $0x78] sm:$0xf] %vm2352_vm5, %v2883_v12  ;;  %v1806_v39 = vsel %vm1550_vm4, %v1288_v27, %v1678_v41  ;;  %vm1553_vm7 = vcmp.ge.f32.partialorder %v1303_v42, 0.0  ;;  %v993_v20 = vadd.f32 %v3940_v34, %v3709_v9  ;;  %v4030_v53 = vpop.f32.mrb[43].mxu0  ;;  %v1313_v2 = vadd.f32 %v3942_v40, %v3709_v9 }
 0x13f   : > { %v1681_v45 = vmul.f32 0.2, %v1303_v42  ;;  %v2947_v48 = vpack.c.bf16 %v1806_v39, %v1806_v39  ;;  %v1745_v52 = vsel %vm1489_vm6, %v983_v36, %v1617_v43  ;;  %vm1488_vm8 = vcmp.ge.f32.partialorder %v978_v19, 0.0  ;;  %v4032_v29 = vpop.f32.mrb[43].mxu1 }
 0x140   : > { %v1616_v26 = vmul.f32 0.2, %v978_v19  ;;  %v2886_v56 = vpack.c.bf16 %v1745_v52, %v1745_v52  ;;  %vm1552_vm9 = vcmp.ge.f32.partialorder %v1298_v38, 0.0  ;;  %v1680_v60 = vmul.f32 0.2, %v1298_v38  ;;  %v4042_v6 = vpop.f32.mrb[44].mxu0 }
 0x141   : > { %v1809_v57 = vsel %vm1553_vm7, %v1303_v42, %v1681_v45  ;;  %2447 = vst.msk [vmem:[%s3719_s11 + $0x178] sm:$0xf] %vm2352_vm5, %v2947_v48  ;;  %vm1491_vm10 = vcmp.ge.f32.partialorder %v993_v20, 0.0  ;;  %v1619_v49 = vmul.f32 0.2, %v993_v20  ;;  %v988_v4 = vadd.f32 %v3709_v9, %v3944_v44  ;;  %v4044_v5 = vpop.f32.mrb[44].mxu1 }
 0x142   : > { %v2950_v34 = vpack.c.bf16 %v1809_v57, %v1809_v57  ;;  %v1744_v61 = vsel %vm1488_vm8, %v978_v19, %v1616_v26  ;;  %2386 = vst.msk [vmem:[%s3719_s11 + $0x84] sm:$0xf] %vm2352_vm5, %v2886_v56  ;;  %v1808_v1 = vsel %vm1552_vm9, %v1298_v38, %v1680_v60  ;;  %v1308_v54 = vadd.f32 %v3709_v9, %v3956_v51  ;;  %v4052_v40 = vpop.f32.mrb[45].mxu0  ;;  %v4054_v14 = vpop.f32.mrb[45].mxu1 }
 0x143   : > { %v2885_v50 = vpack.c.bf16 %v1744_v61, %v1744_v61  ;;  %v2949_v7 = vpack.c.bf16 %v1808_v1, %v1808_v1  ;;  %v1747_v8 = vsel %vm1491_vm10, %v993_v20, %v1619_v49  ;;  %v1003_v55 = vadd.f32 %v3958_v58, %v3709_v9  ;;  %v4065_v58 = vld [vmem:[%s4381_s2] ss:$0 sm:$0xff] }
 0x144   : > { %2450 = vst.msk [vmem:[%s3719_s11 + $0x184] sm:$0xf] %vm2352_vm5, %v2950_v34  ;;  %v2888_v44 = vpack.c.bf16 %v1747_v8, %v1747_v8  ;;  %vm1555_vm11 = vcmp.ge.f32.partialorder %v1313_v2, 0.0  ;;  %v1683_v15 = vmul.f32 0.2, %v1313_v2  ;;  %vm1490_vm12 = vcmp.ge.f32.partialorder %v988_v4, 0.0 }
 0x145   : > { %2385 = vst.msk [vmem:[%s3719_s11 + $0x80] sm:$0xf] %vm2352_vm5, %v2885_v50  ;;  %2449 = vst.msk [vmem:[%s3719_s11 + $0x180] sm:$0xf] %vm2352_vm5, %v2949_v7  ;;  %v1618_v3 = vmul.f32 0.2, %v988_v4  ;;  %v1323_v17 = vadd.f32 %v4065_v58, %v3960_v59  ;;  %v998_v18 = vadd.f32 %v4065_v58, %v3962_v62  ;;  %v1318_v27 = vadd.f32 %v4065_v58, %v3964_v0 }
 0x146   : > { %vm1554_vm13 = vcmp.ge.f32.partialorder %v1308_v54, 0.0  ;;  %v1682_v11 = vmul.f32 0.2, %v1308_v54  ;;  %vm1493_vm14 = vcmp.ge.f32.partialorder %v1003_v55, 0.0  ;;  %2388 = vst.msk [vmem:[%s3719_s11 + $0x8c] sm:$0xf] %vm2352_vm5, %v2888_v44  ;;  %v1811_v51 = vsel %vm1555_vm11, %v1313_v2, %v1683_v15 }
 0x147   : > { %v1621_v9 = vmul.f32 0.2, %v1003_v55  ;;  %v4071_v21 = vpop.f32.mrb[46].mxu0  ;;  %v4073_v22 = vpop.f32.mrb[46].mxu1  ;;  %v2952_v23 = vpack.c.bf16 %v1811_v51, %v1811_v51  ;;  %v1746_v24 = vsel %vm1490_vm12, %v988_v4, %v1618_v3  ;;  %vm1557_vm15 = vcmp.ge.f32.partialorder %v1323_v17, 0.0 }
 0x148   : > { %v1810_v25 = vsel %vm1554_vm13, %v1308_v54, %v1682_v11  ;;  %v4077_v31 = vpop.f32.mrb[47].mxu0  ;;  %v4079_v32 = vpop.f32.mrb[47].mxu1  ;;  %v2887_v59 = vpack.c.bf16 %v1746_v24, %v1746_v24  ;;  %v1685_v12 = vmul.f32 0.2, %v1323_v17  ;;  %vm1492_vm0 = vcmp.ge.f32.partialorder %v998_v18, 0.0 }
 0x149   : > { %v2951_v35 = vpack.c.bf16 %v1810_v25, %v1810_v25  ;;  %v1749_v62 = vsel %vm1493_vm14, %v1003_v55, %v1621_v9  ;;  %2452 = vst.msk [vmem:[%s3719_s11 + $0x18c] sm:$0xf] %vm2352_vm5, %v2952_v23  ;;  %v1620_v41 = vmul.f32 0.2, %v998_v18  ;;  %vm1556_vm1 = vcmp.ge.f32.partialorder %v1318_v27, 0.0  ;;  %v4092_v19 = vpop.f32.mrb[48].mxu0 }
 0x14a   : > { %v2890_v36 = vpack.c.bf16 %v1749_v62, %v1749_v62  ;;  %2387 = vst.msk [vmem:[%s3719_s11 + $0x88] sm:$0xf] %vm2352_vm5, %v2887_v59  ;;  %v1684_v0 = vmul.f32 0.2, %v1318_v27  ;;  %v1013_v42 = vadd.f32 %v4065_v58, %v3984_v10  ;;  %v1333_v43 = vadd.f32 %v4065_v58, %v3986_v13  ;;  %v4094_v38 = vpop.f32.mrb[48].mxu1  ;;  %v4102_v10 = vpop.f32.mrb[49].mxu0 }
 0x14b   : > { %2451 = vst.msk [vmem:[%s3719_s11 + $0x188] sm:$0xf] %vm2352_vm5, %v2951_v35  ;;  %v1813_v39 = vsel %vm1557_vm15, %v1323_v17, %v1685_v12  ;;  %v1748_v45 = vsel %vm1492_vm0, %v998_v18, %v1620_v41  ;;  %v1008_v20 = vadd.f32 %v4065_v58, %v3988_v63  ;;  %v1328_v48 = vadd.f32 %v4065_v58, %v3990_v16  ;;  %v4104_v13 = vpop.f32.mrb[49].mxu1 }
 0x14c   : > { %2390 = vst.msk [vmem:[%s3719_s11 + $0x94] sm:$0xf] %vm2352_vm5, %v2890_v36  ;;  %v2954_v52 = vpack.c.bf16 %v1813_v39, %v1813_v39  ;;  %v2889_v26 = vpack.c.bf16 %v1748_v45, %v1748_v45  ;;  %v1812_v56 = vsel %vm1556_vm1, %v1318_v27, %v1684_v0  ;;  %vm1495_vm2 = vcmp.ge.f32.partialorder %v1013_v42, 0.0  ;;  %v4116_v2 = vpop.f32.mrb[50].mxu0 }
 0x14d   : > { %v2953_v57 = vpack.c.bf16 %v1812_v56, %v1812_v56  ;;  %v1623_v60 = vmul.f32 0.2, %v1013_v42  ;;  %vm1559_vm3 = vcmp.ge.f32.partialorder %v1333_v43, 0.0  ;;  %v1687_v34 = vmul.f32 0.2, %v1333_v43  ;;  %v4118_v4 = vpop.f32.mrb[50].mxu1 }
 0x14e   : > { %2454 = vst.msk [vmem:[%s3719_s11 + $0x194] sm:$0xf] %vm2352_vm5, %v2954_v52  ;;  %2389 = vst.msk [vmem:[%s3719_s11 + $0x90] sm:$0xf] %vm2352_vm5, %v2889_v26  ;;  %vm1494_vm4 = vcmp.ge.f32.partialorder %v1008_v20, 0.0  ;;  %vm1558_vm6 = vcmp.ge.f32.partialorder %v1328_v48, 0.0  ;;  %v1023_v50 = vadd.f32 %v4065_v58, %v3998_v28  ;;  %v1343_v1 = vadd.f32 %v4065_v58, %v4000_v30 }
 0x14f   : > { %v1622_v63 = vmul.f32 0.2, %v1008_v20  ;;  %v1686_v16 = vmul.f32 0.2, %v1328_v48  ;;  %2453 = vst.msk [vmem:[%s3719_s11 + $0x190] sm:$0xf] %vm2352_vm5, %v2953_v57  ;;  %v1751_v61 = vsel %vm1495_vm2, %v1013_v42, %v1623_v60  ;;  %v1815_v49 = vsel %vm1559_vm3, %v1333_v43, %v1687_v34 }
 0x150   : > { %v2892_v7 = vpack.c.bf16 %v1751_v61, %v1751_v61  ;;  %v2956_v8 = vpack.c.bf16 %v1815_v49, %v1815_v49  ;;  %v4120_v44 = vpop.f32.mrb[51].mxu0  ;;  %v4122_v15 = vpop.f32.mrb[51].mxu1  ;;  %vm1497_vm7 = vcmp.ge.f32.partialorder %v1023_v50, 0.0  ;;  %v1625_v28 = vmul.f32 0.2, %v1023_v50 }
 0x151   : > { %v1750_v54 = vsel %vm1494_vm4, %v1008_v20, %v1622_v63  ;;  %v1814_v55 = vsel %vm1558_vm6, %v1328_v48, %v1686_v16  ;;  %vm1561_vm8 = vcmp.ge.f32.partialorder %v1343_v1, 0.0  ;;  %v1689_v30 = vmul.f32 0.2, %v1343_v1  ;;  %v4132_v17 = vpop.f32.mrb[52].mxu0  ;;  %v4134_v18 = vpop.f32.mrb[52].mxu1 }
 0x152   : > { %v2891_v3 = vpack.c.bf16 %v1750_v54, %v1750_v54  ;;  %v2955_v11 = vpack.c.bf16 %v1814_v55, %v1814_v55  ;;  %2392 = vst.msk [vmem:[%s3719_s11 + $0x9c] sm:$0xf] %vm2352_vm5, %v2892_v7  ;;  %2456 = vst.msk [vmem:[%s3719_s11 + $0x19c] sm:$0xf] %vm2352_vm5, %v2956_v8  ;;  %v1018_v51 = vadd.f32 %v4065_v58, %v4006_v33  ;;  %v4148_v27 = vpop.f32.mrb[53].mxu1 }
 0x153   : > { %v1338_v9 = vadd.f32 %v4065_v58, %v4008_v37  ;;  %v1753_v23 = vsel %vm1497_vm7, %v1023_v50, %v1625_v28  ;;  %v1033_v24 = vadd.f32 %v4065_v58, %v4026_v46  ;;  %v1353_v25 = vadd.f32 %v4065_v58, %v4028_v47  ;;  %v4146_v37 = vpop.f32.mrb[53].mxu0 }
 0x154   : > { %2391 = vst.msk [vmem:[%s3719_s11 + $0x98] sm:$0xf] %vm2352_vm5, %v2891_v3  ;;  %2455 = vst.msk [vmem:[%s3719_s11 + $0x198] sm:$0xf] %vm2352_vm5, %v2955_v11  ;;  %v1028_v33 = vadd.f32 %v4065_v58, %v4030_v53  ;;  %v2894_v59 = vpack.c.bf16 %v1753_v23, %v1753_v23  ;;  %v1817_v35 = vsel %vm1561_vm8, %v1343_v1, %v1689_v30  ;;  %vm1496_vm9 = vcmp.ge.f32.partialorder %v1018_v51, 0.0  ;;  %v4152_v41 = vpop.f32.mrb[54].mxu0 }
 0x155   : > { %v1624_v62 = vmul.f32 0.2, %v1018_v51  ;;  %v2958_v36 = vpack.c.bf16 %v1817_v35, %v1817_v35  ;;  %vm1560_vm10 = vcmp.ge.f32.partialorder %v1338_v9, 0.0  ;;  %v1688_v12 = vmul.f32 0.2, %v1338_v9  ;;  %v4156_v39 = vpop.f32.mrb[54].mxu1 }
 0x156   : > { %vm1499_vm11 = vcmp.ge.f32.partialorder %v1033_v24, 0.0  ;;  %2394 = vst.msk [vmem:[%s3719_s11 + $0xa4] sm:$0xf] %vm2352_vm5, %v2894_v59  ;;  %v1627_v47 = vmul.f32 0.2, %v1033_v24  ;;  %vm1563_vm12 = vcmp.ge.f32.partialorder %v1353_v25, 0.0  ;;  %v1348_v26 = vadd.f32 %v4065_v58, %v4032_v29 }
 0x157   : > { %v1752_v46 = vsel %vm1496_vm9, %v1018_v51, %v1624_v62  ;;  %v1691_v53 = vmul.f32 0.2, %v1353_v25  ;;  %2458 = vst.msk [vmem:[%s3719_s11 + $0x1a4] sm:$0xf] %vm2352_vm5, %v2958_v36  ;;  %v1816_v42 = vsel %vm1560_vm10, %v1338_v9, %v1688_v12  ;;  %vm1498_vm13 = vcmp.ge.f32.partialorder %v1028_v33, 0.0  ;;  %v4158_v45 = vpop.f32.mrb[55].mxu0 }
 0x158   : > { %v2893_v0 = vpack.c.bf16 %v1752_v46, %v1752_v46  ;;  %v1626_v43 = vmul.f32 0.2, %v1028_v33  ;;  %v2957_v20 = vpack.c.bf16 %v1816_v42, %v1816_v42  ;;  %v1755_v48 = vsel %vm1499_vm11, %v1033_v24, %v1627_v47  ;;  %v4162_v56 = vpop.f32.mrb[55].mxu1  ;;  %v4172_v29 = vpop.f32.mrb[56].mxu0 }
 0x159   : > { %v1819_v52 = vsel %vm1563_vm12, %v1353_v25, %v1691_v53  ;;  %v2896_v57 = vpack.c.bf16 %v1755_v48, %v1755_v48  ;;  %v1043_v63 = vadd.f32 %v4065_v58, %v4042_v6  ;;  %vm1562_vm14 = vcmp.ge.f32.partialorder %v1348_v26, 0.0  ;;  %v4174_v50 = vpop.f32.mrb[56].mxu1  ;;  %v4184_v8 = vpop.f32.mrb[57].mxu0 }
 0x15a   : > { %2393 = vst.msk [vmem:[%s3719_s11 + $0xa0] sm:$0xf] %vm2352_vm5, %v2893_v0  ;;  %v2960_v60 = vpack.c.bf16 %v1819_v52, %v1819_v52  ;;  %v1754_v34 = vsel %vm1498_vm13, %v1028_v33, %v1626_v43  ;;  %2457 = vst.msk [vmem:[%s3719_s11 + $0x1a0] sm:$0xf] %vm2352_vm5, %v2957_v20  ;;  %v1690_v61 = vmul.f32 0.2, %v1348_v26  ;;  %v1363_v49 = vadd.f32 %v4065_v58, %v4044_v5 }
 0x15b   : > { %v2895_v16 = vpack.c.bf16 %v1754_v34, %v1754_v34  ;;  %2396 = vst.msk [vmem:[%s3719_s11 + $0xac] sm:$0xf] %vm2352_vm5, %v2896_v57  ;;  %vm1501_vm15 = vcmp.ge.f32.partialorder %v1043_v63, 0.0  ;;  %v1629_v1 = vmul.f32 0.2, %v1043_v63  ;;  %v1038_v6 = vadd.f32 %v4065_v58, %v4052_v40  ;;  %v4186_v54 = vpop.f32.mrb[57].mxu1 }
 0x15c   : > { %2460 = vst.msk [vmem:[%s3719_s11 + $0x1ac] sm:$0xf] %vm2352_vm5, %v2960_v60  ;;  %v1358_v7 = vadd.f32 %v4065_v58, %v4054_v14  ;;  %v1818_v5 = vsel %vm1562_vm14, %v1348_v26, %v1690_v61  ;;  %vm1565_vm0 = vcmp.ge.f32.partialorder %v1363_v49, 0.0  ;;  %v1693_v55 = vmul.f32 0.2, %v1363_v49  ;;  %v4192_v9 = vpop.f32.mrb[58].mxu0 }
 0x15d   : > { %2395 = vst.msk [vmem:[%s3719_s11 + $0xa8] sm:$0xf] %vm2352_vm5, %v2895_v16  ;;  %v1053_v3 = vadd.f32 %v4065_v58, %v4071_v21  ;;  %v2959_v11 = vpack.c.bf16 %v1818_v5, %v1818_v5  ;;  %v1757_v28 = vsel %vm1501_vm15, %v1043_v63, %v1629_v1  ;;  %vm1500_vm1 = vcmp.ge.f32.partialorder %v1038_v6, 0.0  ;;  %v4194_v23 = vpop.f32.mrb[58].mxu1  ;;  %v4198_v33 = vpop.f32.mrb[59].mxu0 }
 0x15e   : > { %v1628_v40 = vmul.f32 0.2, %v1038_v6  ;;  %v2898_v30 = vpack.c.bf16 %v1757_v28, %v1757_v28  ;;  %v1821_v14 = vsel %vm1565_vm0, %v1363_v49, %v1693_v55  ;;  %vm1564_vm2 = vcmp.ge.f32.partialorder %v1358_v7, 0.0  ;;  %v4200_v59 = vpop.f32.mrb[59].mxu1 }
 0x15f   : > { %v1692_v51 = vmul.f32 0.2, %v1358_v7  ;;  %2459 = vst.msk [vmem:[%s3719_s11 + $0x1a8] sm:$0xf] %vm2352_vm5, %v2959_v11  ;;  %v2962_v24 = vpack.c.bf16 %v1821_v14, %v1821_v14  ;;  %vm1503_vm3 = vcmp.ge.f32.partialorder %v1053_v3, 0.0  ;;  %v1373_v36 = vadd.f32 %v4065_v58, %v4073_v22 }
 0x160   : > { %v1756_v25 = vsel %vm1500_vm1, %v1038_v6, %v1628_v40  ;;  %v1631_v21 = vmul.f32 0.2, %v1053_v3  ;;  %2398 = vst.msk [vmem:[%s3719_s11 + $0xb4] sm:$0xf] %vm2352_vm5, %v2898_v30  ;;  %v1048_v12 = vadd.f32 %v4065_v58, %v4077_v31  ;;  %v1368_v53 = vadd.f32 %v4065_v58, %v4079_v32  ;;  %v4216_v22 = vpop.f32.mrb[60].mxu0 }
 0x161   : > { %v2897_v35 = vpack.c.bf16 %v1756_v25, %v1756_v25  ;;  %v1820_v62 = vsel %vm1564_vm2, %v1358_v7, %v1692_v51  ;;  %2462 = vst.msk [vmem:[%s3719_s11 + $0x1b4] sm:$0xf] %vm2352_vm5, %v2962_v24  ;;  %v1063_v0 = vadd.f32 %v4065_v58, %v4092_v19  ;;  %vm1567_vm4 = vcmp.ge.f32.partialorder %v1373_v36, 0.0  ;;  %v4218_v31 = vpop.f32.mrb[60].mxu1  ;;  %v4228_v57 = vpop.f32.mrb[61].mxu0 }
 0x162   : > { %v2961_v46 = vpack.c.bf16 %v1820_v62, %v1820_v62  ;;  %v1759_v47 = vsel %vm1503_vm3, %v1053_v3, %v1631_v21  ;;  %v1695_v43 = vmul.f32 0.2, %v1373_v36  ;;  %vm1502_vm6 = vcmp.ge.f32.partialorder %v1048_v12, 0.0  ;;  %v4230_v60 = vpop.f32.mrb[61].mxu1 }
 0x163   : > { %2397 = vst.msk [vmem:[%s3719_s11 + $0xb0] sm:$0xf] %vm2352_vm5, %v2897_v35  ;;  %v2900_v42 = vpack.c.bf16 %v1759_v47, %v1759_v47  ;;  %v1630_v20 = vmul.f32 0.2, %v1048_v12  ;;  %vm1566_vm7 = vcmp.ge.f32.partialorder %v1368_v53, 0.0  ;;  %vm1505_vm8 = vcmp.ge.f32.partialorder %v1063_v0, 0.0 }
 0x164   : > { %2461 = vst.msk [vmem:[%s3719_s11 + $0x1b0] sm:$0xf] %vm2352_vm5, %v2961_v46  ;;  %v1694_v48 = vmul.f32 0.2, %v1368_v53  ;;  %v1823_v32 = vsel %vm1567_vm4, %v1373_v36, %v1695_v43  ;;  %v1633_v19 = vmul.f32 0.2, %v1063_v0  ;;  %v1383_v52 = vadd.f32 %v4065_v58, %v4094_v38 }
 0x165   : > { %2400 = vst.msk [vmem:[%s3719_s11 + $0xbc] sm:$0xf] %vm2352_vm5, %v2900_v42  ;;  %v1058_v26 = vadd.f32 %v4065_v58, %v4102_v10  ;;  %v2964_v34 = vpack.c.bf16 %v1823_v32, %v1823_v32  ;;  %v1758_v63 = vsel %vm1502_vm6, %v1048_v12, %v1630_v20  ;;  %v1378_v61 = vadd.f32 %v4065_v58, %v4104_v13  ;;  %v4235_v38 = vpop.f32.mrb[62].mxu0  ;;  %v4237_v10 = vpop.f32.mrb[62].mxu1 }
 0x166   : > { %v1822_v16 = vsel %vm1566_vm7, %v1368_v53, %v1694_v48  ;;  %v2899_v49 = vpack.c.bf16 %v1758_v63, %v1758_v63  ;;  %v1761_v6 = vsel %vm1505_vm8, %v1063_v0, %v1633_v19  ;;  %vm1569_vm9 = vcmp.ge.f32.partialorder %v1383_v52, 0.0  ;;  %v4241_v3 = vpop.f32.mrb[63].mxu0  ;;  %v4251_v40 = vpop.f32.mrb[63].mxu1 }
 0x167   : > { %v2963_v1 = vpack.c.bf16 %v1822_v16, %v1822_v16  ;;  %2464 = vst.msk [vmem:[%s3719_s11 + $0x1bc] sm:$0xf] %vm2352_vm5, %v2964_v34  ;;  %v2902_v7 = vpack.c.bf16 %v1761_v6, %v1761_v6  ;;  %v1697_v5 = vmul.f32 0.2, %v1383_v52  ;;  %vm1504_vm10 = vcmp.ge.f32.partialorder %v1058_v26, 0.0 }
 0x168   : > { %v1632_v55 = vmul.f32 0.2, %v1058_v26  ;;  %2399 = vst.msk [vmem:[%s3719_s11 + $0xb8] sm:$0xf] %vm2352_vm5, %v2899_v49  ;;  %vm1568_vm11 = vcmp.ge.f32.partialorder %v1378_v61, 0.0  ;;  %v1073_v11 = vadd.f32 %v4065_v58, %v4116_v2  ;;  %v1393_v28 = vadd.f32 %v4065_v58, %v4118_v4 }
 0x169   : > { %2463 = vst.msk [vmem:[%s3719_s11 + $0x1b8] sm:$0xf] %vm2352_vm5, %v2963_v1  ;;  %v1696_v13 = vmul.f32 0.2, %v1378_v61  ;;  %2402 = vst.msk [vmem:[%s3719_s11 + $0xc4] sm:$0xf] %vm2352_vm5, %v2902_v7  ;;  %v1825_v30 = vsel %vm1569_vm9, %v1383_v52, %v1697_v5  ;;  %v1068_v51 = vadd.f32 %v4065_v58, %v4120_v44  ;;  %v1388_v24 = vadd.f32 %v4065_v58, %v4122_v15 }
 0x16a   : > { %v1760_v14 = vsel %vm1504_vm10, %v1058_v26, %v1632_v55  ;;  %v2966_v2 = vpack.c.bf16 %v1825_v30, %v1825_v30  ;;  %vm1507_vm12 = vcmp.ge.f32.partialorder %v1073_v11, 0.0  ;;  %v1635_v35 = vmul.f32 0.2, %v1073_v11 }
 0x16b   : > { %v2901_v25 = vpack.c.bf16 %v1760_v14, %v1760_v14  ;;  %v1824_v21 = vsel %vm1568_vm11, %v1378_v61, %v1696_v13  ;;  %vm1571_vm13 = vcmp.ge.f32.partialorder %v1393_v28, 0.0  ;;  %v1699_v62 = vmul.f32 0.2, %v1393_v28 }
 0x16c   : > { %v2965_v4 = vpack.c.bf16 %v1824_v21, %v1824_v21  ;;  %2466 = vst.msk [vmem:[%s3719_s11 + $0x1c4] sm:$0xf] %vm2352_vm5, %v2966_v2  ;;  %vm1506_vm14 = vcmp.ge.f32.partialorder %v1068_v51, 0.0  ;;  %v1634_v36 = vmul.f32 0.2, %v1068_v51  ;;  %vm1570_vm15 = vcmp.ge.f32.partialorder %v1388_v24, 0.0 }
 0x16d   : > { %2401 = vst.msk [vmem:[%s3719_s11 + $0xc0] sm:$0xf] %vm2352_vm5, %v2901_v25  ;;  %v1698_v44 = vmul.f32 0.2, %v1388_v24  ;;  %v1763_v15 = vsel %vm1507_vm12, %v1073_v11, %v1635_v35  ;;  %v1827_v12 = vsel %vm1571_vm13, %v1393_v28, %v1699_v62  ;;  %v1083_v46 = vadd.f32 %v4065_v58, %v4132_v17 }
 0x16e   : > { %2465 = vst.msk [vmem:[%s3719_s11 + $0x1c0] sm:$0xf] %vm2352_vm5, %v2965_v4  ;;  %v1403_v47 = vadd.f32 %v4065_v58, %v4134_v18  ;;  %v2904_v53 = vpack.c.bf16 %v1763_v15, %v1763_v15  ;;  %v2968_v0 = vpack.c.bf16 %v1827_v12, %v1827_v12  ;;  %v1762_v42 = vsel %vm1506_vm14, %v1068_v51, %v1634_v36 }
 0x16f   : > { %v1826_v43 = vsel %vm1570_vm15, %v1388_v24, %v1698_v44  ;;  %v2903_v20 = vpack.c.bf16 %v1762_v42, %v1762_v42  ;;  %vm1509_vm0 = vcmp.ge.f32.partialorder %v1083_v46, 0.0  ;;  %v1637_v32 = vmul.f32 0.2, %v1083_v46 }
 0x170   : > { %v2967_v48 = vpack.c.bf16 %v1826_v43, %v1826_v43  ;;  %2404 = vst.msk [vmem:[%s3719_s11 + $0xcc] sm:$0xf] %vm2352_vm5, %v2904_v53  ;;  %2468 = vst.msk [vmem:[%s3719_s11 + $0x1cc] sm:$0xf] %vm2352_vm5, %v2968_v0  ;;  %vm1573_vm1 = vcmp.ge.f32.partialorder %v1403_v47, 0.0  ;;  %v1078_v17 = vadd.f32 %v4065_v58, %v4146_v37  ;;  %v1398_v18 = vadd.f32 %v4065_v58, %v4148_v27 }
 0x171   : > { %v1701_v19 = vmul.f32 0.2, %v1403_v47  ;;  %2403 = vst.msk [vmem:[%s3719_s11 + $0xc8] sm:$0xf] %vm2352_vm5, %v2903_v20  ;;  %v1765_v52 = vsel %vm1509_vm0, %v1083_v46, %v1637_v32  ;;  %v1093_v26 = vadd.f32 %v4065_v58, %v4152_v41  ;;  %v1413_v34 = vadd.f32 %v4065_v58, %v4156_v39 }
 0x172   : > { %2467 = vst.msk [vmem:[%s3719_s11 + $0x1c8] sm:$0xf] %vm2352_vm5, %v2967_v48  ;;  %v1088_v63 = vadd.f32 %v4065_v58, %v4158_v45  ;;  %v2906_v37 = vpack.c.bf16 %v1765_v52, %v1765_v52  ;;  %vm1508_vm2 = vcmp.ge.f32.partialorder %v1078_v17, 0.0  ;;  %v1636_v61 = vmul.f32 0.2, %v1078_v17 }
 0x173   : > { %v1829_v16 = vsel %vm1573_vm1, %v1403_v47, %v1701_v19  ;;  %vm1572_vm3 = vcmp.ge.f32.partialorder %v1398_v18, 0.0  ;;  %v1700_v49 = vmul.f32 0.2, %v1398_v18  ;;  %vm1511_vm4 = vcmp.ge.f32.partialorder %v1093_v26, 0.0 }
 0x174   : > { %v2970_v27 = vpack.c.bf16 %v1829_v16, %v1829_v16  ;;  %2406 = vst.msk [vmem:[%s3719_s11 + $0xd4] sm:$0xf] %vm2352_vm5, %v2906_v37  ;;  %v1764_v1 = vsel %vm1508_vm2, %v1078_v17, %v1636_v61  ;;  %v1639_v41 = vmul.f32 0.2, %v1093_v26  ;;  %vm1575_vm6 = vcmp.ge.f32.partialorder %v1413_v34, 0.0 }
 0x175   : > { %v1703_v6 = vmul.f32 0.2, %v1413_v34  ;;  %v2905_v39 = vpack.c.bf16 %v1764_v1, %v1764_v1  ;;  %v1828_v45 = vsel %vm1572_vm3, %v1398_v18, %v1700_v49  ;;  %vm1510_vm7 = vcmp.ge.f32.partialorder %v1088_v63, 0.0 }
 0x176   : > { %2470 = vst.msk [vmem:[%s3719_s11 + $0x1d4] sm:$0xf] %vm2352_vm5, %v2970_v27  ;;  %v1638_v7 = vmul.f32 0.2, %v1088_v63  ;;  %v2969_v5 = vpack.c.bf16 %v1828_v45, %v1828_v45  ;;  %v1767_v55 = vsel %vm1511_vm4, %v1093_v26, %v1639_v41  ;;  %v1408_v11 = vadd.f32 %v4065_v58, %v4162_v56 }
 0x177   : > { %v1831_v13 = vsel %vm1575_vm6, %v1413_v34, %v1703_v6  ;;  %2405 = vst.msk [vmem:[%s3719_s11 + $0xd0] sm:$0xf] %vm2352_vm5, %v2905_v39  ;;  %v2908_v28 = vpack.c.bf16 %v1767_v55, %v1767_v55  ;;  %v1103_v51 = vadd.f32 %v4065_v58, %v4172_v29  ;;  %v1423_v25 = vadd.f32 %v4065_v58, %v4174_v50 }
 0x178   : > { %v2972_v30 = vpack.c.bf16 %v1831_v13, %v1831_v13  ;;  %v1766_v14 = vsel %vm1510_vm7, %v1088_v63, %v1638_v7  ;;  %2469 = vst.msk [vmem:[%s3719_s11 + $0x1d0] sm:$0xf] %vm2352_vm5, %v2969_v5  ;;  %vm1574_vm8 = vcmp.ge.f32.partialorder %v1408_v11, 0.0  ;;  %v1702_v2 = vmul.f32 0.2, %v1408_v11 }
 0x179   : > { %v2907_v24 = vpack.c.bf16 %v1766_v14, %v1766_v14  ;;  %2408 = vst.msk [vmem:[%s3719_s11 + $0xdc] sm:$0xf] %vm2352_vm5, %v2908_v28  ;;  %vm1513_vm9 = vcmp.ge.f32.partialorder %v1103_v51, 0.0  ;;  %v1641_v56 = vmul.f32 0.2, %v1103_v51  ;;  %v1098_v21 = vadd.f32 %v4065_v58, %v4184_v8 }
 0x17a   : > { %2472 = vst.msk [vmem:[%s3719_s11 + $0x1dc] sm:$0xf] %vm2352_vm5, %v2972_v30  ;;  %v1418_v29 = vadd.f32 %v4065_v58, %v4186_v54  ;;  %v1830_v4 = vsel %vm1574_vm8, %v1408_v11, %v1702_v2  ;;  %vm1577_vm10 = vcmp.ge.f32.partialorder %v1423_v25, 0.0  ;;  %v1705_v35 = vmul.f32 0.2, %v1423_v25 }
 0x17b   : > { %2407 = vst.msk [vmem:[%s3719_s11 + $0xd8] sm:$0xf] %vm2352_vm5, %v2907_v24  ;;  %v1113_v50 = vadd.f32 %v4065_v58, %v4192_v9  ;;  %v2971_v62 = vpack.c.bf16 %v1830_v4, %v1830_v4  ;;  %v1769_v36 = vsel %vm1513_vm9, %v1103_v51, %v1641_v56  ;;  %vm1512_vm11 = vcmp.ge.f32.partialorder %v1098_v21, 0.0 }
 0x17c   : > { %v1640_v44 = vmul.f32 0.2, %v1098_v21  ;;  %v2910_v15 = vpack.c.bf16 %v1769_v36, %v1769_v36  ;;  %v1833_v12 = vsel %vm1577_vm10, %v1423_v25, %v1705_v35  ;;  %vm1576_vm12 = vcmp.ge.f32.partialorder %v1418_v29, 0.0 }
 0x17d   : > { %v1704_v8 = vmul.f32 0.2, %v1418_v29  ;;  %2471 = vst.msk [vmem:[%s3719_s11 + $0x1d8] sm:$0xf] %vm2352_vm5, %v2971_v62  ;;  %v2974_v54 = vpack.c.bf16 %v1833_v12, %v1833_v12  ;;  %vm1515_vm13 = vcmp.ge.f32.partialorder %v1113_v50, 0.0  ;;  %v1433_v0 = vadd.f32 %v4065_v58, %v4194_v23 }
 0x17e   : > { %v1768_v46 = vsel %vm1512_vm11, %v1098_v21, %v1640_v44  ;;  %v1643_v47 = vmul.f32 0.2, %v1113_v50  ;;  %2410 = vst.msk [vmem:[%s3719_s11 + $0xe4] sm:$0xf] %vm2352_vm5, %v2910_v15  ;;  %v1108_v42 = vadd.f32 %v4065_v58, %v4198_v33  ;;  %v1428_v48 = vadd.f32 %v4065_v58, %v4200_v59 }
 0x17f   : > { %v2909_v9 = vpack.c.bf16 %v1768_v46, %v1768_v46  ;;  %v1832_v53 = vsel %vm1576_vm12, %v1418_v29, %v1704_v8  ;;  %2474 = vst.msk [vmem:[%s3719_s11 + $0x1e4] sm:$0xf] %vm2352_vm5, %v2974_v54  ;;  %v1123_v32 = vadd.f32 %v4065_v58, %v4216_v22  ;;  %vm1579_vm14 = vcmp.ge.f32.partialorder %v1433_v0, 0.0 }
 0x180   : > { %v2973_v43 = vpack.c.bf16 %v1832_v53, %v1832_v53  ;;  %v1771_v20 = vsel %vm1515_vm13, %v1113_v50, %v1643_v47  ;;  %v1707_v17 = vmul.f32 0.2, %v1433_v0  ;;  %vm1514_vm15 = vcmp.ge.f32.partialorder %v1108_v42, 0.0 }
 0x181   : > { %2409 = vst.msk [vmem:[%s3719_s11 + $0xe0] sm:$0xf] %vm2352_vm5, %v2909_v9  ;;  %v2912_v19 = vpack.c.bf16 %v1771_v20, %v1771_v20  ;;  %v1642_v23 = vmul.f32 0.2, %v1108_v42  ;;  %vm1578_vm0 = vcmp.ge.f32.partialorder %v1428_v48, 0.0  ;;  %vm1517_vm1 = vcmp.ge.f32.partialorder %v1123_v32, 0.0 }
 0x182   : > { %2473 = vst.msk [vmem:[%s3719_s11 + $0x1e0] sm:$0xf] %vm2352_vm5, %v2973_v43  ;;  %v1706_v33 = vmul.f32 0.2, %v1428_v48  ;;  %v1835_v18 = vsel %vm1579_vm14, %v1433_v0, %v1707_v17  ;;  %v1645_v59 = vmul.f32 0.2, %v1123_v32  ;;  %v1443_v22 = vadd.f32 %v4065_v58, %v4218_v31 }
 0x183   : > { %2412 = vst.msk [vmem:[%s3719_s11 + $0xec] sm:$0xf] %vm2352_vm5, %v2912_v19  ;;  %v1118_v52 = vadd.f32 %v4065_v58, %v4228_v57  ;;  %v2976_v26 = vpack.c.bf16 %v1835_v18, %v1835_v18  ;;  %v1770_v34 = vsel %vm1514_vm15, %v1108_v42, %v1642_v23  ;;  %v1438_v37 = vadd.f32 %v4065_v58, %v4230_v60 }
 0x184   : > { %v1834_v63 = vsel %vm1578_vm0, %v1428_v48, %v1706_v33  ;;  %v2911_v16 = vpack.c.bf16 %v1770_v34, %v1770_v34  ;;  %v1773_v27 = vsel %vm1517_vm1, %v1123_v32, %v1645_v59  ;;  %vm1581_vm2 = vcmp.ge.f32.partialorder %v1443_v22, 0.0 }
 0x185   : > { %v2975_v61 = vpack.c.bf16 %v1834_v63, %v1834_v63  ;;  %2476 = vst.msk [vmem:[%s3719_s11 + $0x1ec] sm:$0xf] %vm2352_vm5, %v2976_v26  ;;  %v2914_v49 = vpack.c.bf16 %v1773_v27, %v1773_v27  ;;  %v1709_v1 = vmul.f32 0.2, %v1443_v22  ;;  %vm1516_vm3 = vcmp.ge.f32.partialorder %v1118_v52, 0.0 }
 0x186   : > { %v1644_v31 = vmul.f32 0.2, %v1118_v52  ;;  %2411 = vst.msk [vmem:[%s3719_s11 + $0xe8] sm:$0xf] %vm2352_vm5, %v2911_v16  ;;  %vm1580_vm4 = vcmp.ge.f32.partialorder %v1438_v37, 0.0  ;;  %v1133_v60 = vadd.f32 %v4065_v58, %v4235_v38  ;;  %v1453_v41 = vadd.f32 %v4065_v58, %v4237_v10 }
 0x187   : > { %2475 = vst.msk [vmem:[%s3719_s11 + $0x1e8] sm:$0xf] %vm2352_vm5, %v2975_v61  ;;  %v1708_v57 = vmul.f32 0.2, %v1438_v37  ;;  %2414 = vst.msk [vmem:[%s3719_s11 + $0xf4] sm:$0xf] %vm2352_vm5, %v2914_v49  ;;  %v1837_v6 = vsel %vm1581_vm2, %v1443_v22, %v1709_v1  ;;  %v1128_v45 = vadd.f32 %v4065_v58, %v4241_v3  ;;  %v1448_v7 = vadd.f32 %v4065_v58, %v4251_v40 }
 0x188   : > { %v1772_v39 = vsel %vm1516_vm3, %v1118_v52, %v1644_v31  ;;  %v2978_v5 = vpack.c.bf16 %v1837_v6, %v1837_v6  ;;  %vm1519_vm6 = vcmp.ge.f32.partialorder %v1133_v60, 0.0  ;;  %v1647_v11 = vmul.f32 0.2, %v1133_v60 }
 0x189   : > { %v2913_v55 = vpack.c.bf16 %v1772_v39, %v1772_v39  ;;  %v1836_v13 = vsel %vm1580_vm4, %v1438_v37, %v1708_v57  ;;  %vm1583_vm7 = vcmp.ge.f32.partialorder %v1453_v41, 0.0  ;;  %v1711_v28 = vmul.f32 0.2, %v1453_v41 }
 0x18a   : > { %v2977_v38 = vpack.c.bf16 %v1836_v13, %v1836_v13  ;;  %2478 = vst.msk [vmem:[%s3719_s11 + $0x1f4] sm:$0xf] %vm2352_vm5, %v2978_v5  ;;  %vm1518_vm8 = vcmp.ge.f32.partialorder %v1128_v45, 0.0  ;;  %v1646_v10 = vmul.f32 0.2, %v1128_v45  ;;  %vm1582_vm9 = vcmp.ge.f32.partialorder %v1448_v7, 0.0 }
 0x18b   : > { %2413 = vst.msk [vmem:[%s3719_s11 + $0xf0] sm:$0xf] %vm2352_vm5, %v2913_v55  ;;  %v1710_v58 = vmul.f32 0.2, %v1448_v7  ;;  %v1775_v3 = vsel %vm1519_vm6, %v1133_v60, %v1647_v11  ;;  %v1839_v40 = vsel %vm1583_vm7, %v1453_v41, %v1711_v28 }
 0x18c   : > { %2477 = vst.msk [vmem:[%s3719_s11 + $0x1f0] sm:$0xf] %vm2352_vm5, %v2977_v38  ;;  %v2916_v30 = vpack.c.bf16 %v1775_v3, %v1775_v3  ;;  %v2980_v14 = vpack.c.bf16 %v1839_v40, %v1839_v40  ;;  %v1774_v51 = vsel %vm1518_vm8, %v1128_v45, %v1646_v10 }
 0x18d   : > { %v1838_v24 = vsel %vm1582_vm9, %v1448_v7, %v1710_v58  ;;  %v2915_v2 = vpack.c.bf16 %v1774_v51, %v1774_v51 }
 0x18e   : > { %v2979_v25 = vpack.c.bf16 %v1838_v24, %v1838_v24  ;;  %2416 = vst.msk [vmem:[%s3719_s11 + $0xfc] sm:$0xf] %vm2352_vm5, %v2916_v30  ;;  %2480 = vst.msk [vmem:[%s3719_s11 + $0x1fc] sm:$0xf] %vm2352_vm5, %v2980_v14 }
 0x18f   : > { %2415 = vst.msk [vmem:[%s3719_s11 + $0xf8] sm:$0xf] %vm2352_vm5, %v2915_v2 }
 0x190   : > { %2479 = vst.msk [vmem:[%s3719_s11 + $0x1f8] sm:$0xf] %vm2352_vm5, %v2979_v25 }
 0x191 PF: > { %s13_s14 = sadd.s32 1, %s3384_s14   ;;  %s4383_s12 = smov %s3380_s13 }
 0x192   : > { %p10_p5 = scmp.ge.s32.totalorder %s13_s14, 4   ;;  %s4384_s13 = smov %s4386_s15 }
 0x194   :  { %12 = sbr.rel (!%p10_p5) target bundleno = 2 (0x2), region = 68 }

// kernel: discriminator_forward.6
= control target key start
LH: loop header
LB: loop body
LE: loop exit
PB: predicated region body
PF: predicated region fallthrough
CT: control target
= control target key end

     0   :  { %s1503_s0 = inlined_call_operand.vmem [shape: f32[512,128], index: 0, kind: input, shape index: {}]   ;;  %s1504_s1 = inlined_call_operand.vmem [shape: f32[1,128], index: 1, kind: input, shape index: {}]   ;;  %s1505_s2 = inlined_call_operand.vmem [shape: f32[1,128], index: 2, kind: input, shape index: {}]   ;;  %s1506_s3 = inlined_call_operand.vmem [shape: bf16[512,128], index: 3, kind: output, shape index: {}]  }
   0x1   :  { %v14_v0 = vld [vmem:[%s1503_s0] sm:$0xff]  ;;  %v15_v1 = vld [vmem:[%s1503_s0 + $0x8] sm:$0xff]  ;;  %v16_v6 = vld [vmem:[%s1503_s0 + $0x10] sm:$0xff] }
   0x2   :  { %v1086_v2 = vld [vmem:[%s1504_s1] ss:$0 sm:$0xff]  ;;  %v17_v7 = vld [vmem:[%s1503_s0 + $0x18] sm:$0xff]  ;;  %v19_v11 = vld [vmem:[%s1503_s0 + $0x28] sm:$0xff] }
   0x3   :  { %v85_v3 = vmul.f32 %v1086_v2, %v14_v0  ;;  %v86_v4 = vmul.f32 %v1086_v2, %v15_v1  ;;  %v1093_v5 = vld [vmem:[%s1505_s2] ss:$0 sm:$0xff]  ;;  %v87_v8 = vmul.f32 %v1086_v2, %v16_v6  ;;  %v88_v9 = vmul.f32 %v1086_v2, %v17_v7  ;;  %v20_v12 = vld [vmem:[%s1503_s0 + $0x30] sm:$0xff]  ;;  %v21_v17 = vld [vmem:[%s1503_s0 + $0x38] sm:$0xff] }
   0x4   :  { %v18_v10 = vld [vmem:[%s1503_s0 + $0x20] sm:$0xff]  ;;  %v90_v16 = vmul.f32 %v1086_v2, %v19_v11  ;;  %v91_v20 = vmul.f32 %v1086_v2, %v20_v12  ;;  %v92_v21 = vmul.f32 %v1086_v2, %v21_v17  ;;  %v23_v35 = vld [vmem:[%s1503_s0 + $0x48] sm:$0xff]  ;;  %v24_v36 = vld [vmem:[%s1503_s0 + $0x50] sm:$0xff] }
   0x5   :  { %v156_v13 = vadd.f32 %v1093_v5, %v85_v3  ;;  %v157_v14 = vadd.f32 %v1093_v5, %v86_v4  ;;  %v89_v15 = vmul.f32 %v1086_v2, %v18_v10  ;;  %v158_v18 = vadd.f32 %v1093_v5, %v87_v8  ;;  %v22_v34 = vld [vmem:[%s1503_s0 + $0x40] sm:$0xff]  ;;  %v25_v42 = vld [vmem:[%s1503_s0 + $0x58] sm:$0xff]  ;;  %v27_v48 = vld [vmem:[%s1503_s0 + $0x68] sm:$0xff] }
   0x6   :  { %v159_v19 = vadd.f32 %v1093_v5, %v88_v9  ;;  %v161_v29 = vadd.f32 %v1093_v5, %v90_v16  ;;  %v162_v33 = vadd.f32 %v1093_v5, %v91_v20  ;;  %v163_v40 = vadd.f32 %v1093_v5, %v92_v21  ;;  %v26_v47 = vld [vmem:[%s1503_s0 + $0x60] sm:$0xff]  ;;  %v28_v60 = vld [vmem:[%s1503_s0 + $0x70] sm:$0xff]  ;;  %v29_v7 = vld [vmem:[%s1503_s0 + $0x78] sm:$0xff] }
   0x7   :  { %vm220_vm0 = vcmp.ge.f32.partialorder %v156_v13, 0.0  ;;  %vm221_vm1 = vcmp.ge.f32.partialorder %v157_v14, 0.0  ;;  %v284_v22 = vmul.f32 0.2, %v156_v13  ;;  %v285_v23 = vmul.f32 0.2, %v157_v14 }
   0x8   :  { %vm222_vm2 = vcmp.ge.f32.partialorder %v158_v18, 0.0  ;;  %vm223_vm3 = vcmp.ge.f32.partialorder %v159_v19, 0.0  ;;  %v286_v24 = vmul.f32 0.2, %v158_v18  ;;  %v287_v25 = vmul.f32 0.2, %v159_v19 }
   0x9   :  { %v348_v26 = vsel %vm220_vm0, %v156_v13, %v284_v22  ;;  %v349_v27 = vsel %vm221_vm1, %v157_v14, %v285_v23  ;;  %v160_v28 = vadd.f32 %v1093_v5, %v89_v15  ;;  %vm225_vm5 = vcmp.ge.f32.partialorder %v161_v29, 0.0  ;;  %v30_v12 = vld [vmem:[%s1503_s0 + $0x80] sm:$0xff]  ;;  %v31_v13 = vld [vmem:[%s1503_s0 + $0x88] sm:$0xff]  ;;  %v32_v20 = vld [vmem:[%s1503_s0 + $0x90] sm:$0xff] }
   0xa   :  { %v869_v30 = vpack.c.bf16 %v349_v27, %v348_v26  ;;  %v350_v31 = vsel %vm222_vm2, %v158_v18, %v286_v24  ;;  %v351_v32 = vsel %vm223_vm3, %v159_v19, %v287_v25  ;;  %v289_v39 = vmul.f32 0.2, %v161_v29  ;;  %v33_v25 = vld [vmem:[%s1503_s0 + $0x98] sm:$0xff] }
   0xb   :  { %v874_v37 = vpack.c.bf16 %v351_v32, %v350_v31  ;;  %vm224_vm4 = vcmp.ge.f32.partialorder %v160_v28, 0.0  ;;  %v288_v38 = vmul.f32 0.2, %v160_v28  ;;  %vm226_vm6 = vcmp.ge.f32.partialorder %v162_v33, 0.0 }
   0xc   :  { %870 = vst [vmem:[%s1506_s3] sm:$0xff] %v869_v30   ;;  %v290_v41 = vmul.f32 0.2, %v162_v33  ;;  %v93_v44 = vmul.f32 %v1086_v2, %v22_v34  ;;  %v94_v45 = vmul.f32 %v1086_v2, %v23_v35  ;;  %v95_v46 = vmul.f32 %v1086_v2, %v24_v36 }
   0xd   :  { %1026 = vst [vmem:[%s1506_s3 + $0x8] sm:$0xff] %v874_v37   ;;  %v352_v43 = vsel %vm224_vm4, %v160_v28, %v288_v38  ;;  %v353_v49 = vsel %vm225_vm5, %v161_v29, %v289_v39  ;;  %vm227_vm7 = vcmp.ge.f32.partialorder %v163_v40, 0.0  ;;  %v291_v50 = vmul.f32 0.2, %v163_v40  ;;  %v35_v37 = vld [vmem:[%s1503_s0 + $0xa8] sm:$0xff] }
   0xe   :  { %v354_v51 = vsel %vm226_vm6, %v162_v33, %v290_v41  ;;  %v879_v52 = vpack.c.bf16 %v353_v49, %v352_v43  ;;  %v164_v53 = vadd.f32 %v1093_v5, %v93_v44  ;;  %v165_v54 = vadd.f32 %v1093_v5, %v94_v45  ;;  %v34_v33 = vld [vmem:[%s1503_s0 + $0xa0] sm:$0xff]  ;;  %v36_v44 = vld [vmem:[%s1503_s0 + $0xb0] sm:$0xff]  ;;  %v37_v49 = vld [vmem:[%s1503_s0 + $0xb8] sm:$0xff] }
   0xf   :  { %v96_v55 = vmul.f32 %v1086_v2, %v25_v42  ;;  %v355_v56 = vsel %vm227_vm7, %v163_v40, %v291_v50  ;;  %v166_v57 = vadd.f32 %v1093_v5, %v95_v46  ;;  %v97_v58 = vmul.f32 %v1086_v2, %v26_v47  ;;  %v38_v50 = vld [vmem:[%s1503_s0 + $0xc0] sm:$0xff] }
  0x10   :  { %v98_v59 = vmul.f32 %v1086_v2, %v27_v48  ;;  %1027 = vst [vmem:[%s1506_s3 + $0x10] sm:$0xff] %v879_v52   ;;  %v884_v61 = vpack.c.bf16 %v355_v56, %v354_v51  ;;  %vm228_vm8 = vcmp.ge.f32.partialorder %v164_v53, 0.0  ;;  %vm229_vm9 = vcmp.ge.f32.partialorder %v165_v54, 0.0  ;;  %v39_v51 = vld [vmem:[%s1503_s0 + $0xc8] sm:$0xff] }
  0x11   :  { %v292_v62 = vmul.f32 0.2, %v164_v53  ;;  %v293_v63 = vmul.f32 0.2, %v165_v54  ;;  %v167_v0 = vadd.f32 %v1093_v5, %v96_v55  ;;  %vm230_vm10 = vcmp.ge.f32.partialorder %v166_v57, 0.0 }
  0x12   :  { %v294_v1 = vmul.f32 0.2, %v166_v57  ;;  %1028 = vst [vmem:[%s1506_s3 + $0x18] sm:$0xff] %v884_v61   ;;  %v168_v4 = vadd.f32 %v1093_v5, %v97_v58  ;;  %v169_v6 = vadd.f32 %v1093_v5, %v98_v59  ;;  %v99_v8 = vmul.f32 %v1086_v2, %v28_v60 }
  0x13   :  { %v356_v3 = vsel %vm228_vm8, %v164_v53, %v292_v62  ;;  %v357_v9 = vsel %vm229_vm9, %v165_v54, %v293_v63  ;;  %vm231_vm11 = vcmp.ge.f32.partialorder %v167_v0, 0.0  ;;  %v295_v10 = vmul.f32 0.2, %v167_v0  ;;  %v40_v62 = vld [vmem:[%s1503_s0 + $0xd0] sm:$0xff] }
  0x14   :  { %v358_v11 = vsel %vm230_vm10, %v166_v57, %v294_v1  ;;  %v889_v14 = vpack.c.bf16 %v357_v9, %v356_v3  ;;  %vm232_vm12 = vcmp.ge.f32.partialorder %v168_v4, 0.0  ;;  %vm233_vm13 = vcmp.ge.f32.partialorder %v169_v6, 0.0 }
  0x15   :  { %v296_v15 = vmul.f32 0.2, %v168_v4  ;;  %v359_v16 = vsel %vm231_vm11, %v167_v0, %v295_v10  ;;  %v297_v17 = vmul.f32 0.2, %v169_v6  ;;  %v100_v18 = vmul.f32 %v1086_v2, %v29_v7  ;;  %v41_v10 = vld [vmem:[%s1503_s0 + $0xd8] sm:$0xff] }
  0x16   :  { %v170_v19 = vadd.f32 %v1093_v5, %v99_v8  ;;  %1029 = vst [vmem:[%s1506_s3 + $0x20] sm:$0xff] %v889_v14   ;;  %v894_v21 = vpack.c.bf16 %v359_v16, %v358_v11  ;;  %v101_v23 = vmul.f32 %v1086_v2, %v30_v12  ;;  %v102_v24 = vmul.f32 %v1086_v2, %v31_v13  ;;  %v42_v14 = vld [vmem:[%s1503_s0 + $0xe0] sm:$0xff] }
  0x17   :  { %v360_v22 = vsel %vm232_vm12, %v168_v4, %v296_v15  ;;  %v361_v26 = vsel %vm233_vm13, %v169_v6, %v297_v17  ;;  %v171_v27 = vadd.f32 %v1093_v5, %v100_v18  ;;  %v103_v32 = vmul.f32 %v1086_v2, %v32_v20  ;;  %v43_v15 = vld [vmem:[%s1503_s0 + $0xe8] sm:$0xff] }
  0x18   :  { %vm234_vm14 = vcmp.ge.f32.partialorder %v170_v19, 0.0  ;;  %v298_v28 = vmul.f32 0.2, %v170_v19  ;;  %1030 = vst [vmem:[%s1506_s3 + $0x28] sm:$0xff] %v894_v21   ;;  %v899_v29 = vpack.c.bf16 %v361_v26, %v360_v22  ;;  %v172_v30 = vadd.f32 %v1093_v5, %v101_v23  ;;  %v44_v26 = vld [vmem:[%s1503_s0 + $0xf0] sm:$0xff] }
  0x19   :  { %v173_v31 = vadd.f32 %v1093_v5, %v102_v24  ;;  %vm235_vm15 = vcmp.ge.f32.partialorder %v171_v27, 0.0  ;;  %v299_v34 = vmul.f32 0.2, %v171_v27  ;;  %v104_v36 = vmul.f32 %v1086_v2, %v33_v25 }
  0x1a   :  { %v362_v35 = vsel %vm234_vm14, %v170_v19, %v298_v28  ;;  %1031 = vst [vmem:[%s1506_s3 + $0x30] sm:$0xff] %v899_v29   ;;  %vm236_vm0 = vcmp.ge.f32.partialorder %v172_v30, 0.0  ;;  %v300_v38 = vmul.f32 0.2, %v172_v30  ;;  %v174_v41 = vadd.f32 %v1093_v5, %v103_v32 }
  0x1b   :  { %vm237_vm1 = vcmp.ge.f32.partialorder %v173_v31, 0.0  ;;  %v301_v39 = vmul.f32 0.2, %v173_v31  ;;  %v363_v40 = vsel %vm235_vm15, %v171_v27, %v299_v34  ;;  %v175_v42 = vadd.f32 %v1093_v5, %v104_v36 }
  0x1c   :  { %v105_v43 = vmul.f32 %v1086_v2, %v34_v33  ;;  %v904_v45 = vpack.c.bf16 %v363_v40, %v362_v35  ;;  %v364_v46 = vsel %vm236_vm0, %v172_v30, %v300_v38  ;;  %v106_v48 = vmul.f32 %v1086_v2, %v35_v37  ;;  %v46_v38 = vld [vmem:[%s1503_s0 + $0x100] sm:$0xff] }
  0x1d   :  { %v365_v47 = vsel %vm237_vm1, %v173_v31, %v301_v39  ;;  %vm238_vm2 = vcmp.ge.f32.partialorder %v174_v41, 0.0  ;;  %vm239_vm3 = vcmp.ge.f32.partialorder %v175_v42, 0.0  ;;  %v302_v53 = vmul.f32 0.2, %v174_v41  ;;  %v45_v31 = vld [vmem:[%s1503_s0 + $0xf8] sm:$0xff] }
  0x1e   :  { %v909_v52 = vpack.c.bf16 %v365_v47, %v364_v46  ;;  %1032 = vst [vmem:[%s1506_s3 + $0x38] sm:$0xff] %v904_v45   ;;  %v303_v54 = vmul.f32 0.2, %v175_v42  ;;  %v176_v55 = vadd.f32 %v1093_v5, %v105_v43  ;;  %v177_v56 = vadd.f32 %v1093_v5, %v106_v48 }
  0x1f   :  { %v107_v57 = vmul.f32 %v1086_v2, %v36_v44  ;;  %v366_v58 = vsel %vm238_vm2, %v174_v41, %v302_v53  ;;  %v108_v59 = vmul.f32 %v1086_v2, %v37_v49  ;;  %v109_v60 = vmul.f32 %v1086_v2, %v38_v50  ;;  %v48_v50 = vld [vmem:[%s1503_s0 + $0x110] sm:$0xff] }
  0x20   :  { %1033 = vst [vmem:[%s1506_s3 + $0x40] sm:$0xff] %v909_v52   ;;  %v110_v61 = vmul.f32 %v1086_v2, %v39_v51  ;;  %v367_v63 = vsel %vm239_vm3, %v175_v42, %v303_v54  ;;  %vm240_vm4 = vcmp.ge.f32.partialorder %v176_v55, 0.0  ;;  %vm241_vm5 = vcmp.ge.f32.partialorder %v177_v56, 0.0  ;;  %v47_v42 = vld [vmem:[%s1503_s0 + $0x108] sm:$0xff]  ;;  %v49_v51 = vld [vmem:[%s1503_s0 + $0x118] sm:$0xff] }
  0x21   :  { %v304_v0 = vmul.f32 0.2, %v176_v55  ;;  %v914_v1 = vpack.c.bf16 %v367_v63, %v366_v58  ;;  %v305_v3 = vmul.f32 0.2, %v177_v56  ;;  %v178_v4 = vadd.f32 %v1093_v5, %v107_v57  ;;  %v51_v63 = vld [vmem:[%s1503_s0 + $0x128] sm:$0xff] }
  0x22   :  { %v179_v6 = vadd.f32 %v1093_v5, %v108_v59  ;;  %v180_v8 = vadd.f32 %v1093_v5, %v109_v60  ;;  %v181_v9 = vadd.f32 %v1093_v5, %v110_v61  ;;  %v111_v11 = vmul.f32 %v1086_v2, %v40_v62 }
  0x23   :  { %v368_v7 = vsel %vm240_vm4, %v176_v55, %v304_v0  ;;  %1034 = vst [vmem:[%s1506_s3 + $0x48] sm:$0xff] %v914_v1   ;;  %v369_v12 = vsel %vm241_vm5, %v177_v56, %v305_v3  ;;  %vm242_vm6 = vcmp.ge.f32.partialorder %v178_v4, 0.0  ;;  %v306_v13 = vmul.f32 0.2, %v178_v4  ;;  %v50_v55 = vld [vmem:[%s1503_s0 + $0x120] sm:$0xff] }
  0x24   :  { %vm243_vm7 = vcmp.ge.f32.partialorder %v179_v6, 0.0  ;;  %v919_v16 = vpack.c.bf16 %v369_v12, %v368_v7  ;;  %v307_v17 = vmul.f32 0.2, %v179_v6  ;;  %vm244_vm8 = vcmp.ge.f32.partialorder %v180_v8, 0.0 }
  0x25   :  { %vm245_vm9 = vcmp.ge.f32.partialorder %v181_v9, 0.0  ;;  %v370_v18 = vsel %vm242_vm6, %v178_v4, %v306_v13  ;;  %v308_v19 = vmul.f32 0.2, %v180_v8  ;;  %v309_v20 = vmul.f32 0.2, %v181_v9  ;;  %v52_v4 = vld [vmem:[%s1503_s0 + $0x130] sm:$0xff] }
  0x26   :  { %v112_v21 = vmul.f32 %v1086_v2, %v41_v10  ;;  %1035 = vst [vmem:[%s1506_s3 + $0x50] sm:$0xff] %v919_v16   ;;  %v371_v22 = vsel %vm243_vm7, %v179_v6, %v307_v17  ;;  %v182_v23 = vadd.f32 %v1093_v5, %v111_v11  ;;  %v113_v24 = vmul.f32 %v1086_v2, %v42_v14  ;;  %v53_v13 = vld [vmem:[%s1503_s0 + $0x138] sm:$0xff] }
  0x27   :  { %v114_v25 = vmul.f32 %v1086_v2, %v43_v15  ;;  %v924_v27 = vpack.c.bf16 %v371_v22, %v370_v18  ;;  %v372_v28 = vsel %vm244_vm8, %v180_v8, %v308_v19  ;;  %v373_v29 = vsel %vm245_vm9, %v181_v9, %v309_v20  ;;  %v54_v20 = vld [vmem:[%s1503_s0 + $0x140] sm:$0xff] }
  0x28   :  { %v183_v30 = vadd.f32 %v1093_v5, %v112_v21  ;;  %v929_v32 = vpack.c.bf16 %v373_v29, %v372_v28  ;;  %vm246_vm10 = vcmp.ge.f32.partialorder %v182_v23, 0.0  ;;  %v310_v33 = vmul.f32 0.2, %v182_v23 }
  0x29   :  { %v184_v34 = vadd.f32 %v1093_v5, %v113_v24  ;;  %1036 = vst [vmem:[%s1506_s3 + $0x58] sm:$0xff] %v924_v27   ;;  %v185_v36 = vadd.f32 %v1093_v5, %v114_v25  ;;  %v115_v37 = vmul.f32 %v1086_v2, %v44_v26  ;;  %v116_v41 = vmul.f32 %v1086_v2, %v45_v31  ;;  %v55_v24 = vld [vmem:[%s1503_s0 + $0x148] sm:$0xff] }
  0x2a   :  { %vm247_vm11 = vcmp.ge.f32.partialorder %v183_v30, 0.0  ;;  %v311_v35 = vmul.f32 0.2, %v183_v30  ;;  %1037 = vst [vmem:[%s1506_s3 + $0x60] sm:$0xff] %v929_v32   ;;  %v374_v39 = vsel %vm246_vm10, %v182_v23, %v310_v33  ;;  %v117_v49 = vmul.f32 %v1086_v2, %v46_v38  ;;  %v56_v32 = vld [vmem:[%s1503_s0 + $0x150] sm:$0xff]  ;;  %v57_v33 = vld [vmem:[%s1503_s0 + $0x158] sm:$0xff] }
  0x2b   :  { %vm248_vm12 = vcmp.ge.f32.partialorder %v184_v34, 0.0  ;;  %v312_v40 = vmul.f32 0.2, %v184_v34  ;;  %vm249_vm13 = vcmp.ge.f32.partialorder %v185_v36, 0.0  ;;  %v313_v44 = vmul.f32 0.2, %v185_v36 }
  0x2c   :  { %v375_v43 = vsel %vm247_vm11, %v183_v30, %v311_v35  ;;  %v186_v45 = vadd.f32 %v1093_v5, %v115_v37  ;;  %v187_v48 = vadd.f32 %v1093_v5, %v116_v41  ;;  %v118_v54 = vmul.f32 %v1086_v2, %v47_v42  ;;  %v58_v37 = vld [vmem:[%s1503_s0 + $0x160] sm:$0xff] }
  0x2d   :  { %v934_v46 = vpack.c.bf16 %v375_v43, %v374_v39  ;;  %v376_v47 = vsel %vm248_vm12, %v184_v34, %v312_v40  ;;  %v377_v52 = vsel %vm249_vm13, %v185_v36, %v313_v44  ;;  %v188_v58 = vadd.f32 %v1093_v5, %v117_v49  ;;  %v60_v49 = vld [vmem:[%s1503_s0 + $0x170] sm:$0xff] }
  0x2e   :  { %vm250_vm14 = vcmp.ge.f32.partialorder %v186_v45, 0.0  ;;  %v314_v53 = vmul.f32 0.2, %v186_v45  ;;  %v939_v56 = vpack.c.bf16 %v377_v52, %v376_v47  ;;  %vm251_vm15 = vcmp.ge.f32.partialorder %v187_v48, 0.0 }
  0x2f   :  { %1038 = vst [vmem:[%s1506_s3 + $0x68] sm:$0xff] %v934_v46   ;;  %v315_v57 = vmul.f32 0.2, %v187_v48  ;;  %v189_v60 = vadd.f32 %v1093_v5, %v118_v54  ;;  %v119_v61 = vmul.f32 %v1086_v2, %v48_v50  ;;  %v120_v62 = vmul.f32 %v1086_v2, %v49_v51 }
  0x30   :  { %v378_v59 = vsel %vm250_vm14, %v186_v45, %v314_v53  ;;  %1039 = vst [vmem:[%s1506_s3 + $0x70] sm:$0xff] %v939_v56   ;;  %vm252_vm0 = vcmp.ge.f32.partialorder %v188_v58, 0.0  ;;  %v316_v1 = vmul.f32 0.2, %v188_v58  ;;  %v121_v3 = vmul.f32 %v1086_v2, %v50_v55  ;;  %v59_v45 = vld [vmem:[%s1503_s0 + $0x168] sm:$0xff] }
  0x31   :  { %v379_v0 = vsel %vm251_vm15, %v187_v48, %v315_v57  ;;  %vm253_vm1 = vcmp.ge.f32.partialorder %v189_v60, 0.0  ;;  %v317_v7 = vmul.f32 0.2, %v189_v60  ;;  %v190_v8 = vadd.f32 %v1093_v5, %v119_v61  ;;  %v61_v57 = vld [vmem:[%s1503_s0 + $0x178] sm:$0xff] }
  0x32   :  { %v944_v6 = vpack.c.bf16 %v379_v0, %v378_v59  ;;  %v380_v9 = vsel %vm252_vm0, %v188_v58, %v316_v1  ;;  %v191_v10 = vadd.f32 %v1093_v5, %v120_v62  ;;  %v122_v11 = vmul.f32 %v1086_v2, %v51_v63  ;;  %v62_v0 = vld [vmem:[%s1503_s0 + $0x180] sm:$0xff] }
  0x33   :  { %v192_v12 = vadd.f32 %v1093_v5, %v121_v3  ;;  %v381_v14 = vsel %vm253_vm1, %v189_v60, %v317_v7  ;;  %vm254_vm2 = vcmp.ge.f32.partialorder %v190_v8, 0.0  ;;  %v318_v15 = vmul.f32 0.2, %v190_v8 }
  0x34   :  { %1040 = vst [vmem:[%s1506_s3 + $0x78] sm:$0xff] %v944_v6   ;;  %v123_v16 = vmul.f32 %v1086_v2, %v52_v4  ;;  %v949_v17 = vpack.c.bf16 %v381_v14, %v380_v9  ;;  %vm255_vm3 = vcmp.ge.f32.partialorder %v191_v10, 0.0  ;;  %v319_v18 = vmul.f32 0.2, %v191_v10  ;;  %v63_v6 = vld [vmem:[%s1503_s0 + $0x188] sm:$0xff]  ;;  %v64_v14 = vld [vmem:[%s1503_s0 + $0x190] sm:$0xff] }
  0x35   :  { %v193_v19 = vadd.f32 %v1093_v5, %v122_v11  ;;  %v382_v21 = vsel %vm254_vm2, %v190_v8, %v318_v15  ;;  %vm256_vm4 = vcmp.ge.f32.partialorder %v192_v12, 0.0  ;;  %v320_v22 = vmul.f32 0.2, %v192_v12  ;;  %v65_v15 = vld [vmem:[%s1503_s0 + $0x198] sm:$0xff] }
  0x36   :  { %v124_v23 = vmul.f32 %v1086_v2, %v53_v13  ;;  %1041 = vst [vmem:[%s1506_s3 + $0x80] sm:$0xff] %v949_v17   ;;  %v383_v25 = vsel %vm255_vm3, %v191_v10, %v319_v18  ;;  %v194_v27 = vadd.f32 %v1093_v5, %v123_v16  ;;  %v125_v31 = vmul.f32 %v1086_v2, %v54_v20 }
  0x37   :  { %vm257_vm5 = vcmp.ge.f32.partialorder %v193_v19, 0.0  ;;  %v321_v26 = vmul.f32 0.2, %v193_v19  ;;  %v954_v28 = vpack.c.bf16 %v383_v25, %v382_v21  ;;  %v384_v29 = vsel %vm256_vm4, %v192_v12, %v320_v22 }
  0x38   :  { %v195_v30 = vadd.f32 %v1093_v5, %v124_v23  ;;  %vm258_vm6 = vcmp.ge.f32.partialorder %v194_v27, 0.0  ;;  %v322_v35 = vmul.f32 0.2, %v194_v27  ;;  %v126_v36 = vmul.f32 %v1086_v2, %v55_v24 }
  0x39   :  { %v385_v34 = vsel %vm257_vm5, %v193_v19, %v321_v26  ;;  %1042 = vst [vmem:[%s1506_s3 + $0x88] sm:$0xff] %v954_v28   ;;  %v196_v40 = vadd.f32 %v1093_v5, %v125_v31  ;;  %v127_v43 = vmul.f32 %v1086_v2, %v56_v32  ;;  %v128_v44 = vmul.f32 %v1086_v2, %v57_v33  ;;  %v66_v19 = vld [vmem:[%s1503_s0 + $0x1a0] sm:$0xff]  ;;  %v68_v31 = vld [vmem:[%s1503_s0 + $0x1b0] sm:$0xff] }
  0x3a   :  { %v959_v38 = vpack.c.bf16 %v385_v34, %v384_v29  ;;  %vm259_vm7 = vcmp.ge.f32.partialorder %v195_v30, 0.0  ;;  %v323_v39 = vmul.f32 0.2, %v195_v30  ;;  %v386_v41 = vsel %vm258_vm6, %v194_v27, %v322_v35  ;;  %v67_v27 = vld [vmem:[%s1503_s0 + $0x1a8] sm:$0xff] }
  0x3b   :  { %v197_v42 = vadd.f32 %v1093_v5, %v126_v36  ;;  %vm260_vm8 = vcmp.ge.f32.partialorder %v196_v40, 0.0  ;;  %v324_v47 = vmul.f32 0.2, %v196_v40  ;;  %v129_v48 = vmul.f32 %v1086_v2, %v58_v37 }
  0x3c   :  { %1043 = vst [vmem:[%s1506_s3 + $0x90] sm:$0xff] %v959_v38   ;;  %v387_v46 = vsel %vm259_vm7, %v195_v30, %v323_v39  ;;  %v198_v52 = vadd.f32 %v1093_v5, %v127_v43  ;;  %v199_v54 = vadd.f32 %v1093_v5, %v128_v44  ;;  %v130_v55 = vmul.f32 %v1086_v2, %v59_v45  ;;  %v69_v39 = vld [vmem:[%s1503_s0 + $0x1b8] sm:$0xff] }
  0x3d   :  { %v964_v50 = vpack.c.bf16 %v387_v46, %v386_v41  ;;  %vm261_vm9 = vcmp.ge.f32.partialorder %v197_v42, 0.0  ;;  %v325_v51 = vmul.f32 0.2, %v197_v42  ;;  %v388_v53 = vsel %vm260_vm8, %v196_v40, %v324_v47  ;;  %v70_v46 = vld [vmem:[%s1503_s0 + $0x1c0] sm:$0xff] }
  0x3e   :  { %v200_v56 = vadd.f32 %v1093_v5, %v129_v48  ;;  %vm262_vm10 = vcmp.ge.f32.partialorder %v198_v52, 0.0  ;;  %v326_v59 = vmul.f32 0.2, %v198_v52  ;;  %v131_v60 = vmul.f32 %v1086_v2, %v60_v49 }
  0x3f   :  { %1044 = vst [vmem:[%s1506_s3 + $0x98] sm:$0xff] %v964_v50   ;;  %v389_v58 = vsel %vm261_vm9, %v197_v42, %v325_v51  ;;  %vm263_vm11 = vcmp.ge.f32.partialorder %v199_v54, 0.0  ;;  %v327_v62 = vmul.f32 0.2, %v199_v54  ;;  %v201_v63 = vadd.f32 %v1093_v5, %v130_v55  ;;  %v71_v50 = vld [vmem:[%s1503_s0 + $0x1c8] sm:$0xff] }
  0x40   :  { %v969_v61 = vpack.c.bf16 %v389_v58, %v388_v53  ;;  %v390_v1 = vsel %vm262_vm10, %v198_v52, %v326_v59  ;;  %vm264_vm12 = vcmp.ge.f32.partialorder %v200_v56, 0.0  ;;  %v328_v3 = vmul.f32 0.2, %v200_v56  ;;  %v72_v58 = vld [vmem:[%s1503_s0 + $0x1d0] sm:$0xff]  ;;  %v73_v59 = vld [vmem:[%s1503_s0 + $0x1d8] sm:$0xff] }
  0x41   :  { %v132_v4 = vmul.f32 %v1086_v2, %v61_v57  ;;  %v391_v7 = vsel %vm263_vm11, %v199_v54, %v327_v62  ;;  %vm265_vm13 = vcmp.ge.f32.partialorder %v201_v63, 0.0  ;;  %v329_v8 = vmul.f32 0.2, %v201_v63 }
  0x42   :  { %1045 = vst [vmem:[%s1506_s3 + $0xa0] sm:$0xff] %v969_v61   ;;  %v202_v9 = vadd.f32 %v1093_v5, %v131_v60  ;;  %v974_v10 = vpack.c.bf16 %v391_v7, %v390_v1  ;;  %v392_v11 = vsel %vm264_vm12, %v200_v56, %v328_v3  ;;  %v133_v13 = vmul.f32 %v1086_v2, %v62_v0 }
  0x43   :  { %v203_v12 = vadd.f32 %v1093_v5, %v132_v4  ;;  %v393_v16 = vsel %vm265_vm13, %v201_v63, %v329_v8  ;;  %v134_v18 = vmul.f32 %v1086_v2, %v63_v6  ;;  %v135_v25 = vmul.f32 %v1086_v2, %v64_v14  ;;  %v74_v63 = vld [vmem:[%s1503_s0 + $0x1e0] sm:$0xff] }
  0x44   :  { %vm266_vm14 = vcmp.ge.f32.partialorder %v202_v9, 0.0  ;;  %v330_v17 = vmul.f32 0.2, %v202_v9  ;;  %1046 = vst [vmem:[%s1506_s3 + $0xa8] sm:$0xff] %v974_v10   ;;  %v979_v20 = vpack.c.bf16 %v393_v16, %v392_v11  ;;  %v204_v22 = vadd.f32 %v1093_v5, %v133_v13  ;;  %v76_v13 = vld [vmem:[%s1503_s0 + $0x1f0] sm:$0xff] }
  0x45   :  { %vm267_vm15 = vcmp.ge.f32.partialorder %v203_v12, 0.0  ;;  %v331_v21 = vmul.f32 0.2, %v203_v12  ;;  %v205_v24 = vadd.f32 %v1093_v5, %v134_v18  ;;  %v136_v26 = vmul.f32 %v1086_v2, %v65_v15 }
  0x46   :  { %v394_v23 = vsel %vm266_vm14, %v202_v9, %v330_v17  ;;  %1047 = vst [vmem:[%s1506_s3 + $0xb0] sm:$0xff] %v979_v20   ;;  %vm268_vm0 = vcmp.ge.f32.partialorder %v204_v22, 0.0  ;;  %v332_v29 = vmul.f32 0.2, %v204_v22  ;;  %v137_v30 = vmul.f32 %v1086_v2, %v66_v19  ;;  %v75_v9 = vld [vmem:[%s1503_s0 + $0x1e8] sm:$0xff] }
  0x47   :  { %v395_v28 = vsel %vm267_vm15, %v203_v12, %v331_v21  ;;  %vm269_vm1 = vcmp.ge.f32.partialorder %v205_v24, 0.0  ;;  %v333_v33 = vmul.f32 0.2, %v205_v24  ;;  %v206_v34 = vadd.f32 %v1093_v5, %v135_v25  ;;  %v77_v21 = vld [vmem:[%s1503_s0 + $0x1f8] sm:$0xff] }
  0x48   :  { %v984_v32 = vpack.c.bf16 %v395_v28, %v394_v23  ;;  %v396_v35 = vsel %vm268_vm0, %v204_v22, %v332_v29  ;;  %v207_v36 = vadd.f32 %v1093_v5, %v136_v26  ;;  %v138_v37 = vmul.f32 %v1086_v2, %v67_v27 }
  0x49   :  { %v208_v38 = vadd.f32 %v1093_v5, %v137_v30  ;;  %v397_v40 = vsel %vm269_vm1, %v205_v24, %v333_v33  ;;  %vm270_vm2 = vcmp.ge.f32.partialorder %v206_v34, 0.0  ;;  %v334_v41 = vmul.f32 0.2, %v206_v34 }
  0x4a   :  { %1048 = vst [vmem:[%s1506_s3 + $0xb8] sm:$0xff] %v984_v32   ;;  %v139_v42 = vmul.f32 %v1086_v2, %v68_v31  ;;  %v989_v43 = vpack.c.bf16 %v397_v40, %v396_v35  ;;  %vm271_vm3 = vcmp.ge.f32.partialorder %v207_v36, 0.0  ;;  %v335_v44 = vmul.f32 0.2, %v207_v36 }
  0x4b   :  { %v209_v45 = vadd.f32 %v1093_v5, %v138_v37  ;;  %v398_v47 = vsel %vm270_vm2, %v206_v34, %v334_v41  ;;  %vm272_vm4 = vcmp.ge.f32.partialorder %v208_v38, 0.0  ;;  %v336_v48 = vmul.f32 0.2, %v208_v38 }
  0x4c   :  { %v140_v49 = vmul.f32 %v1086_v2, %v69_v39  ;;  %1049 = vst [vmem:[%s1506_s3 + $0xc0] sm:$0xff] %v989_v43   ;;  %v399_v51 = vsel %vm271_vm3, %v207_v36, %v335_v44  ;;  %v210_v53 = vadd.f32 %v1093_v5, %v139_v42  ;;  %v141_v57 = vmul.f32 %v1086_v2, %v70_v46 }
  0x4d   :  { %vm273_vm5 = vcmp.ge.f32.partialorder %v209_v45, 0.0  ;;  %v337_v52 = vmul.f32 0.2, %v209_v45  ;;  %v994_v54 = vpack.c.bf16 %v399_v51, %v398_v47  ;;  %v400_v55 = vsel %vm272_vm4, %v208_v38, %v336_v48 }
  0x4e   :  { %v211_v56 = vadd.f32 %v1093_v5, %v140_v49  ;;  %vm274_vm6 = vcmp.ge.f32.partialorder %v210_v53, 0.0  ;;  %v338_v61 = vmul.f32 0.2, %v210_v53  ;;  %v142_v62 = vmul.f32 %v1086_v2, %v71_v50 }
  0x4f   :  { %v401_v60 = vsel %vm273_vm5, %v209_v45, %v337_v52  ;;  %1050 = vst [vmem:[%s1506_s3 + $0xc8] sm:$0xff] %v994_v54   ;;  %v212_v3 = vadd.f32 %v1093_v5, %v141_v57  ;;  %v143_v7 = vmul.f32 %v1086_v2, %v72_v58  ;;  %v144_v8 = vmul.f32 %v1086_v2, %v73_v59 }
  0x50   :  { %v999_v0 = vpack.c.bf16 %v401_v60, %v400_v55  ;;  %vm275_vm7 = vcmp.ge.f32.partialorder %v211_v56, 0.0  ;;  %v339_v1 = vmul.f32 0.2, %v211_v56  ;;  %v402_v4 = vsel %vm274_vm6, %v210_v53, %v338_v61 }
  0x51   :  { %v213_v6 = vadd.f32 %v1093_v5, %v142_v62  ;;  %vm276_vm8 = vcmp.ge.f32.partialorder %v212_v3, 0.0  ;;  %v340_v11 = vmul.f32 0.2, %v212_v3  ;;  %v145_v12 = vmul.f32 %v1086_v2, %v74_v63 }
  0x52   :  { %1051 = vst [vmem:[%s1506_s3 + $0xd0] sm:$0xff] %v999_v0   ;;  %v403_v10 = vsel %vm275_vm7, %v211_v56, %v339_v1  ;;  %v214_v16 = vadd.f32 %v1093_v5, %v143_v7  ;;  %v215_v18 = vadd.f32 %v1093_v5, %v144_v8  ;;  %v146_v19 = vmul.f32 %v1086_v2, %v75_v9 }
  0x53   :  { %v1004_v14 = vpack.c.bf16 %v403_v10, %v402_v4  ;;  %vm277_vm9 = vcmp.ge.f32.partialorder %v213_v6, 0.0  ;;  %v341_v15 = vmul.f32 0.2, %v213_v6  ;;  %v404_v17 = vsel %vm276_vm8, %v212_v3, %v340_v11 }
  0x54   :  { %v216_v20 = vadd.f32 %v1093_v5, %v145_v12  ;;  %vm278_vm10 = vcmp.ge.f32.partialorder %v214_v16, 0.0  ;;  %v342_v23 = vmul.f32 0.2, %v214_v16  ;;  %v147_v24 = vmul.f32 %v1086_v2, %v76_v13 }
  0x55   :  { %1052 = vst [vmem:[%s1506_s3 + $0xd8] sm:$0xff] %v1004_v14   ;;  %v405_v22 = vsel %vm277_vm9, %v213_v6, %v341_v15  ;;  %vm279_vm11 = vcmp.ge.f32.partialorder %v215_v18, 0.0  ;;  %v343_v26 = vmul.f32 0.2, %v215_v18  ;;  %v217_v27 = vadd.f32 %v1093_v5, %v146_v19 }
  0x56   :  { %v1009_v25 = vpack.c.bf16 %v405_v22, %v404_v17  ;;  %v406_v28 = vsel %vm278_vm10, %v214_v16, %v342_v23  ;;  %vm280_vm12 = vcmp.ge.f32.partialorder %v216_v20, 0.0  ;;  %v344_v29 = vmul.f32 0.2, %v216_v20 }
  0x57   :  { %v148_v30 = vmul.f32 %v1086_v2, %v77_v21  ;;  %v407_v31 = vsel %vm279_vm11, %v215_v18, %v343_v26  ;;  %vm281_vm13 = vcmp.ge.f32.partialorder %v217_v27, 0.0  ;;  %v345_v32 = vmul.f32 0.2, %v217_v27 }
  0x58   :  { %1053 = vst [vmem:[%s1506_s3 + $0xe0] sm:$0xff] %v1009_v25   ;;  %v218_v33 = vadd.f32 %v1093_v5, %v147_v24  ;;  %v1014_v34 = vpack.c.bf16 %v407_v31, %v406_v28  ;;  %v408_v35 = vsel %vm280_vm12, %v216_v20, %v344_v29 }
  0x59   :  { %v219_v36 = vadd.f32 %v1093_v5, %v148_v30  ;;  %v409_v37 = vsel %vm281_vm13, %v217_v27, %v345_v32 }
  0x5a   :  { %vm282_vm14 = vcmp.ge.f32.partialorder %v218_v33, 0.0  ;;  %v346_v38 = vmul.f32 0.2, %v218_v33  ;;  %1054 = vst [vmem:[%s1506_s3 + $0xe8] sm:$0xff] %v1014_v34   ;;  %v1019_v2 = vpack.c.bf16 %v409_v37, %v408_v35 }
  0x5b   :  { %vm283_vm15 = vcmp.ge.f32.partialorder %v219_v36, 0.0  ;;  %v347_v39 = vmul.f32 0.2, %v219_v36 }
  0x5c   :  { %v410_v40 = vsel %vm282_vm14, %v218_v33, %v346_v38  ;;  %1055 = vst [vmem:[%s1506_s3 + $0xf0] sm:$0xff] %v1019_v2  }
  0x5d   :  { %v411_v41 = vsel %vm283_vm15, %v219_v36, %v347_v39 }
  0x5e   :  { %v1024_v42 = vpack.c.bf16 %v411_v41, %v410_v40 }
  0x60   :  { %1056 = vst [vmem:[%s1506_s3 + $0xf8] sm:$0xff] %v1024_v42  }

// kernel: discriminator_forward.5
= control target key start
LH: loop header
LB: loop body
LE: loop exit
PB: predicated region body
PF: predicated region fallthrough
CT: control target
= control target key end

     0   :  { %s3150_s15 = smov 0   ;;  %s3634_s0 = inlined_call_operand.vmem [shape: bf16[512,1024], index: 0, kind: input, shape index: {}]   ;;  %s3635_s1 = inlined_call_operand.vmem [shape: bf16[1024,128], index: 1, kind: input, shape index: {}]   ;;  %s3636_s2 = inlined_call_operand.vmem [shape: f32[512,128], index: 2, kind: output, shape index: {0}]   ;;  %s3637_s3 = inlined_call_operand.vmem [shape: f32[2,1,128], index: 3, kind: output, shape index: {1}]   ;;  %s3638_s4 = inlined_call_operand.vmem [shape: f32[2,1,128], index: 4, kind: output, shape index: {2}]  }
   0x1 LB: > { %s3156_s16 = sadd.s32 4294967295, %s3123_s15   ;;  %p2396_p0 = scmp.ge.s32.totalorder %s3123_s15, 1  ;;  %s3123_s15 = sphi %s3150_s15, %s15_s15  }
   0x2   : > { %p169_p1 = scmp.lt.s32.totalorder %s3123_s15, 3 }
   0x4   : > { %p170_p2 = pnand %p2396_p0, %p169_p1 }
   0x5   : > { %v3053_v0 = vld [vmem:[%s3635_s1 + $0x40] sm:$0xff] (!%p170_p2)   ;;  %v3057_v4 = vld [vmem:[%s3635_s1 + $0x48] sm:$0xff] (!%p170_p2)   ;;  %v3061_v8 = vld [vmem:[%s3635_s1 + $0x50] sm:$0xff] (!%p170_p2)   ;;  %s2397_s25 = sshll.u32 (!%p170_p2), %s3156_s16, 5  ;;  %p215_p4 = scmp.lt.s32.totalorder (!%p170_p2), %s3156_s16, 1 }
   0x6   : > { %173 = sbr.rel (%p170_p2) target bundleno = 525 (0x20d), region = 28  ;;  %v3054_v1 = vld [vmem:[%s3635_s1 + $0xc0] sm:$0xff] (!%p170_p2)   ;;  %2597 = vmatprep.subr.bf16.mxu0 (!%p170_p2), %v3053_v0  ;;  %v3058_v5 = vld [vmem:[%s3635_s1 + $0xc8] sm:$0xff] (!%p170_p2)   ;;  %v3062_v9 = vld [vmem:[%s3635_s1 + $0xd0] sm:$0xff] (!%p170_p2)   ;;  %p203_p3 = scmp.lt.s32.totalorder (!%p170_p2), %s2397_s25, 63 }
   0x7   : > { %v3055_v2 = vld [vmem:[%s3635_s1] sm:$0xff] (!%p170_p2)   ;;  %2709 = vmatprep.subr.bf16.mxu1 (!%p170_p2), %v3054_v1  ;;  %v3059_v6 = vld [vmem:[%s3635_s1 + $0x8] sm:$0xff] (!%p170_p2)   ;;  %v3063_v10 = vld [vmem:[%s3635_s1 + $0x10] sm:$0xff] (!%p170_p2)  }
   0x8   : > { %v3056_v3 = vld [vmem:[%s3635_s1 + $0x80] sm:$0xff] (!%p170_p2)   ;;  %2598 = vmatpush3.bf16.msra.mxu0 (!%p170_p2), %v3055_v2  ;;  %v3060_v7 = vld [vmem:[%s3635_s1 + $0x88] sm:$0xff] (!%p170_p2)   ;;  %v3064_v11 = vld [vmem:[%s3635_s1 + $0x90] sm:$0xff] (!%p170_p2)  }
   0x9   : > { %2710 = vmatpush3.bf16.msra.mxu1 (!%p170_p2), %v3056_v3  ;;  %2599 = vmatprep.subr.bf16.mxu0 (!%p170_p2), %v3057_v4  ;;  %v3065_v12 = vld [vmem:[%s3635_s1 + $0x58] sm:$0xff] (!%p170_p2)   ;;  %v3069_v16 = vld [vmem:[%s3635_s1 + $0x60] sm:$0xff] (!%p170_p2)   ;;  %v3073_v20 = vld [vmem:[%s3635_s1 + $0x68] sm:$0xff] (!%p170_p2)  }
   0xa   : > { %2711 = vmatprep.subr.bf16.mxu1 (!%p170_p2), %v3058_v5  ;;  %v3066_v13 = vld [vmem:[%s3635_s1 + $0xd8] sm:$0xff] (!%p170_p2)   ;;  %v3070_v17 = vld [vmem:[%s3635_s1 + $0xe0] sm:$0xff] (!%p170_p2)   ;;  %v3074_v21 = vld [vmem:[%s3635_s1 + $0xe8] sm:$0xff] (!%p170_p2)  }
   0xb   : > { %v3067_v14 = vld [vmem:[%s3635_s1 + $0x18] sm:$0xff] (!%p170_p2)   ;;  %v3071_v18 = vld [vmem:[%s3635_s1 + $0x20] sm:$0xff] (!%p170_p2)   ;;  %v3075_v22 = vld [vmem:[%s3635_s1 + $0x28] sm:$0xff] (!%p170_p2)  }
   0xc   : > { %2600 = vmatpush3.bf16.msra.mxu0 (!%p170_p2), %v3059_v6  ;;  %v3068_v15 = vld [vmem:[%s3635_s1 + $0x98] sm:$0xff] (!%p170_p2)   ;;  %v3072_v19 = vld [vmem:[%s3635_s1 + $0xa0] sm:$0xff] (!%p170_p2)   ;;  %v3076_v23 = vld [vmem:[%s3635_s1 + $0xa8] sm:$0xff] (!%p170_p2)  }
   0xd   : > { %2712 = vmatpush3.bf16.msra.mxu1 %v3060_v7  ;;  %2601 = vmatprep.subr.bf16.mxu0 %v3061_v8  ;;  %s3640_s25 = smov (!%p203_p3, %s2397_s25), 63  ;;  %v3077_v24 = vld [vmem:[%s3635_s1 + $0x70] sm:$0xff]   ;;  %v3081_v28 = vld [vmem:[%s3635_s1 + $0x78] sm:$0xff]   ;;  %v3085_v40 = vld [vmem:[%s3635_s1 + $0x140] sm:$0xff]   ;;  %s3642_s16 = smov (!%p215_p4, %s3156_s16), 1 }
   0xe   : > { %2713 = vmatprep.subr.bf16.mxu1 %v3062_v9  ;;  %v3078_v25 = vld [vmem:[%s3635_s1 + $0xf0] sm:$0xff]   ;;  %s2596_s24 = sshll.u32 %s3640_s25, 5  ;;  %v3082_v29 = vld [vmem:[%s3635_s1 + $0xf8] sm:$0xff]   ;;  %v3086_v41 = vld [vmem:[%s3635_s1 + $0x100] sm:$0xff]   ;;  %s217_s17 = scalar_lea.vmem %s3637_s3, %s3642_s16 }
   0xf   : > { %v3079_v26 = vld [vmem:[%s3635_s1 + $0x30] sm:$0xff]   ;;  %s3257_s8 = scalar_lea.vmem %s3634_s0, %s2596_s24  ;;  %v3083_v30 = vld [vmem:[%s3635_s1 + $0x38] sm:$0xff]   ;;  %v3087_v42 = vld [vmem:[%s3635_s1 + $0x1c0] sm:$0xff]   ;;  %s220_s20 = scalar_lea.vmem %s3638_s4, %s3642_s16 }
  0x10   : > { %2602 = vmatpush3.bf16.msra.mxu0 %v3063_v10  ;;  %v3080_v27 = vld [vmem:[%s3635_s1 + $0xb0] sm:$0xff]   ;;  %v3084_v31 = vld [vmem:[%s3635_s1 + $0xb8] sm:$0xff]   ;;  %v222_v32 = vld [vmem:[%s3257_s8] sm:$0xff] }
  0x11   : > { %2714 = vmatpush3.bf16.msra.mxu1 %v3064_v11  ;;  %2603 = vmatprep.subr.bf16.mxu0 %v3065_v12  ;;  %v226_v33 = vld [vmem:[%s3257_s8 + $0x20] sm:$0xff]  ;;  %v223_v34 = vld [vmem:[%s3257_s8 + $0x8] sm:$0xff]  ;;  %v3093_v2 = vld [vmem:[%s3635_s1 + $0x150] sm:$0xff]  }
  0x12   : > { %2715 = vmatprep.subr.bf16.mxu1 %v3066_v13  ;;  %v2402_v35 = vcombine.low %v222_v32, %v226_v33  ;;  %v2403_v36 = vcombine.high %v222_v32, %v226_v33  ;;  %v227_v37 = vld [vmem:[%s3257_s8 + $0x28] sm:$0xff]  ;;  %v3088_v43 = vld [vmem:[%s3635_s1 + $0x180] sm:$0xff]   ;;  %v3094_v4 = vld [vmem:[%s3635_s1 + $0x110] sm:$0xff]  }
  0x13   : > { %v2404_v38 = vcombine.low %v223_v34, %v227_v37  ;;  %v2405_v39 = vcombine.high %v223_v34, %v227_v37  ;;  %v230_v44 = vld [vmem:[%s3257_s8 + $0x40] sm:$0xff]  ;;  %v231_v47 = vld [vmem:[%s3257_s8 + $0x48] sm:$0xff]  ;;  %v3095_v7 = vld [vmem:[%s3635_s1 + $0x1d0] sm:$0xff]  }
  0x14   : > { %2604 = vmatpush3.bf16.msra.mxu0 %v3067_v14  ;;  %1534 = vmatprep.mubr.bf16.mxu0 %v2403_v36  ;;  %v234_v45 = vld [vmem:[%s3257_s8 + $0x60] sm:$0xff]  ;;  %v235_v48 = vld [vmem:[%s3257_s8 + $0x68] sm:$0xff]  ;;  %v3096_v9 = vld [vmem:[%s3635_s1 + $0x190] sm:$0xff]  }
  0x15   : > { %2716 = vmatpush3.bf16.msra.mxu1 %v3068_v15  ;;  %2605 = vmatprep.subr.bf16.mxu0 %v3069_v16  ;;  %v2411_v46 = vcombine.high %v230_v44, %v234_v45  ;;  %v238_v49 = vld [vmem:[%s3257_s8 + $0x80] sm:$0xff]  ;;  %v2413_v50 = vcombine.high %v231_v47, %v235_v48  ;;  %v239_v52 = vld [vmem:[%s3257_s8 + $0x88] sm:$0xff]  ;;  %v2410_v54 = vcombine.low %v230_v44, %v234_v45  ;;  %v3097_v14 = vld [vmem:[%s3635_s1 + $0x158] sm:$0xff]  }
  0x16   : > { %2717 = vmatprep.subr.bf16.mxu1 %v3070_v17  ;;  %1695 = vmatprep.mubr.bf16.mxu1 %v2405_v39  ;;  %v242_v51 = vld [vmem:[%s3257_s8 + $0xa0] sm:$0xff]  ;;  %v243_v53 = vld [vmem:[%s3257_s8 + $0xa8] sm:$0xff]  ;;  %v2412_v56 = vcombine.low %v231_v47, %v235_v48  ;;  %v3098_v15 = vld [vmem:[%s3635_s1 + $0x118] sm:$0xff]  }
  0x17   : > { %v3089_v55 = vld [vmem:[%s3635_s1 + $0x148] sm:$0xff]   ;;  %v2419_v57 = vcombine.high %v238_v49, %v242_v51  ;;  %v2421_v59 = vcombine.high %v239_v52, %v243_v53  ;;  %v246_v62 = vld [vmem:[%s3257_s8 + $0xc0] sm:$0xff]  ;;  %v2418_v3 = vcombine.low %v238_v49, %v242_v51  ;;  %v2420_v5 = vcombine.low %v239_v52, %v243_v53  ;;  %v3099_v17 = vld [vmem:[%s3635_s1 + $0x1d8] sm:$0xff]  }
  0x18   : > { %2606 = vmatpush3.bf16.msra.mxu0 %v3071_v18  ;;  %v3090_v58 = vld [vmem:[%s3635_s1 + $0x108] sm:$0xff]   ;;  %v250_v63 = vld [vmem:[%s3257_s8 + $0xe0] sm:$0xff]  ;;  %v3110_v47 = vld [vmem:[%s3635_s1 + $0x130] sm:$0xff]  }
  0x19   : > { %2718 = vmatpush3.bf16.msra.mxu1 %v3072_v19  ;;  %2607 = vmatprep.subr.bf16.mxu0 %v3073_v20  ;;  %v3091_v60 = vld [vmem:[%s3635_s1 + $0x1c8] sm:$0xff]   ;;  %v2427_v6 = vcombine.high %v246_v62, %v250_v63  ;;  %v254_v10 = vld [vmem:[%s3257_s8 + $0x100] sm:$0xff]  ;;  %v2426_v16 = vcombine.low %v246_v62, %v250_v63  ;;  %v3100_v20 = vld [vmem:[%s3635_s1 + $0x198] sm:$0xff]  }
  0x1a   : > { %2719 = vmatprep.subr.bf16.mxu1 %v3074_v21  ;;  %v3092_v61 = vld [vmem:[%s3635_s1 + $0x188] sm:$0xff]   ;;  %v258_v11 = vld [vmem:[%s3257_s8 + $0x120] sm:$0xff]  ;;  %v3111_v48 = vld [vmem:[%s3635_s1 + $0x1f0] sm:$0xff]  }
  0x1b   : > { %v247_v0 = vld [vmem:[%s3257_s8 + $0xc8] sm:$0xff]  ;;  %v2435_v19 = vcombine.high %v254_v10, %v258_v11  ;;  %v3112_v49 = vld [vmem:[%s3635_s1 + $0x1b0] sm:$0xff]   ;;  %v282_v51 = vld [vmem:[%s3257_s8 + $0x1e0] sm:$0xff] }
  0x1c   : > { %2608 = vmatpush3.bf16.msra.mxu0 %v3075_v22  ;;  %v251_v1 = vld [vmem:[%s3257_s8 + $0xe8] sm:$0xff]  ;;  %v262_v22 = vld [vmem:[%s3257_s8 + $0x140] sm:$0xff] }
  0x1d   : > { %2720 = vmatpush3.bf16.msra.mxu1 %v3076_v23  ;;  %2609 = vmatprep.subr.bf16.mxu0 %v3077_v24  ;;  %v2429_v8 = vcombine.high %v247_v0, %v251_v1  ;;  %v255_v12 = vld [vmem:[%s3257_s8 + $0x108] sm:$0xff]  ;;  %v2428_v18 = vcombine.low %v247_v0, %v251_v1  ;;  %v266_v23 = vld [vmem:[%s3257_s8 + $0x160] sm:$0xff] }
  0x1e   : > { %2721 = vmatprep.subr.bf16.mxu1 %v3078_v25  ;;  %v259_v13 = vld [vmem:[%s3257_s8 + $0x128] sm:$0xff]  ;;  %v3101_v24 = vld [vmem:[%s3635_s1 + $0x160] sm:$0xff]   ;;  %v2443_v32 = vcombine.high %v262_v22, %v266_v23 }
  0x1f   : > { %v2437_v21 = vcombine.high %v255_v12, %v259_v13  ;;  %v263_v25 = vld [vmem:[%s3257_s8 + $0x148] sm:$0xff]  ;;  %v286_v62 = vld [vmem:[%s3257_s8 + $0x200] sm:$0xff] }
  0x20   : > { %2610 = vmatpush3.bf16.msra.mxu0 %v3079_v26  ;;  %v267_v26 = vld [vmem:[%s3257_s8 + $0x168] sm:$0xff]  ;;  %v290_v63 = vld [vmem:[%s3257_s8 + $0x220] sm:$0xff] }
  0x21   : > { %2722 = vmatpush3.bf16.msra.mxu1 %v3080_v27  ;;  %2611 = vmatprep.subr.bf16.mxu0 %v3081_v28  ;;  %v3102_v27 = vld [vmem:[%s3635_s1 + $0x120] sm:$0xff]   ;;  %v2445_v33 = vcombine.high %v263_v25, %v267_v26  ;;  %v3105_v34 = vld [vmem:[%s3635_s1 + $0x168] sm:$0xff]  }
  0x22   : > { %2723 = vmatprep.subr.bf16.mxu1 %v3082_v29  ;;  %v3103_v28 = vld [vmem:[%s3635_s1 + $0x1e0] sm:$0xff]   ;;  %v3106_v36 = vld [vmem:[%s3635_s1 + $0x128] sm:$0xff]  }
  0x23   : > { %v3104_v29 = vld [vmem:[%s3635_s1 + $0x1a0] sm:$0xff]   ;;  %v3107_v37 = vld [vmem:[%s3635_s1 + $0x1e8] sm:$0xff]  }
  0x24   : > { %2612 = vmatpush3.bf16.msra.mxu0 %v3083_v30  ;;  %v2434_v30 = vcombine.low %v254_v10, %v258_v11  ;;  %v3108_v39 = vld [vmem:[%s3635_s1 + $0x1a8] sm:$0xff]   ;;  %v2466_v10 = vcombine.low %v286_v62, %v290_v63 }
  0x25   : > { %2724 = vmatpush3.bf16.msra.mxu1 %v3084_v31  ;;  %2821 = vmatprep.subr.bf16.mxu0 %v3085_v40  ;;  %v2436_v31 = vcombine.low %v255_v12, %v259_v13  ;;  %v271_v40 = vld [vmem:[%s3257_s8 + $0x188] sm:$0xff] }
  0x26   : > { %2933 = vmatprep.subr.bf16.mxu1 %v3087_v42  ;;  %v2442_v42 = vcombine.low %v262_v22, %v266_v23  ;;  %v279_v52 = vld [vmem:[%s3257_s8 + $0x1c8] sm:$0xff]  ;;  %v310_v22 = vld [vmem:[%s3257_s8 + $0x2c0] sm:$0xff] }
  0x27   : > { %1535 = vmatmul.mubr.bf16.vlgmr.msra.gmra.mrb[0].mxu0 %v2402_v35  ;;  %v270_v35 = vld [vmem:[%s3257_s8 + $0x180] sm:$0xff]  ;;  %v283_v53 = vld [vmem:[%s3257_s8 + $0x1e8] sm:$0xff] }
  0x28   : > { %1696 = vmatmul.mubr.bf16.vlgmr.msra.gmra.mrb[0].mxu1 %v2404_v38  ;;  %2822 = vmatpush3.bf16.msra.mxu0 %v3086_v41  ;;  %v274_v38 = vld [vmem:[%s3257_s8 + $0x1a0] sm:$0xff]  ;;  %v275_v41 = vld [vmem:[%s3257_s8 + $0x1a8] sm:$0xff] }
  0x29   : > { %2934 = vmatpush3.bf16.msra.mxu1 %v3088_v43  ;;  %1542 = vmatprep.mubr.bf16.mxu0 %v2411_v46  ;;  %v2444_v43 = vcombine.low %v263_v25, %v267_v26  ;;  %v2451_v44 = vcombine.high %v270_v35, %v274_v38  ;;  %v2453_v45 = vcombine.high %v271_v40, %v275_v41  ;;  %v3109_v46 = vld [vmem:[%s3635_s1 + $0x170] sm:$0xff]   ;;  %v287_v0 = vld [vmem:[%s3257_s8 + $0x208] sm:$0xff]  ;;  %v314_v23 = vld [vmem:[%s3257_s8 + $0x2e0] sm:$0xff] }
  0x2a   : > { %1703 = vmatprep.mubr.bf16.mxu1 %v2413_v50  ;;  %2823 = vmatprep.subr.bf16.mxu0 %v3089_v55  ;;  %v278_v50 = vld [vmem:[%s3257_s8 + $0x1c0] sm:$0xff]  ;;  %v3113_v55 = vld [vmem:[%s3635_s1 + $0x178] sm:$0xff]   ;;  %v291_v1 = vld [vmem:[%s3257_s8 + $0x228] sm:$0xff] }
  0x2b   : > { %2935 = vmatprep.subr.bf16.mxu1 %v3091_v60  ;;  %v3115_v60 = vld [vmem:[%s3635_s1 + $0x1f8] sm:$0xff]   ;;  %v2468_v11 = vcombine.low %v287_v0, %v291_v1  ;;  %v315_v25 = vld [vmem:[%s3257_s8 + $0x2e8] sm:$0xff] }
  0x2c   : > { %2824 = vmatpush3.bf16.msra.mxu0 %v3090_v58  ;;  %v3114_v58 = vld [vmem:[%s3635_s1 + $0x138] sm:$0xff]  }
  0x2d   : > { %2936 = vmatpush3.bf16.msra.mxu1 %v3092_v61  ;;  %2825 = vmatprep.subr.bf16.mxu0 %v3093_v2  ;;  %v3116_v61 = vld [vmem:[%s3635_s1 + $0x1b8] sm:$0xff]   ;;  %v2458_v2 = vcombine.low %v278_v50, %v282_v51 }
  0x2e   : > { %2937 = vmatprep.subr.bf16.mxu1 %v3095_v7  ;;  %v298_v7 = vld [vmem:[%s3257_s8 + $0x260] sm:$0xff] }
  0x2f   : > { %1543 = vmatmul.mubr.bf16.gmra.mrb[4].mxu0 %v2410_v54  ;;  %v2450_v54 = vcombine.low %v270_v35, %v274_v38  ;;  %v326_v38 = vld [vmem:[%s3257_s8 + $0x340] sm:$0xff] }
  0x30   : > { %1704 = vmatmul.mubr.bf16.gmra.mrb[4].mxu1 %v2412_v56  ;;  %1550 = vmatprep.mubr.bf16.mxu0 %v2419_v57  ;;  %v2452_v56 = vcombine.low %v271_v40, %v275_v41  ;;  %v2459_v57 = vcombine.high %v278_v50, %v282_v51  ;;  %v327_v40 = vld [vmem:[%s3257_s8 + $0x348] sm:$0xff] }
  0x31   : > { %1711 = vmatprep.mubr.bf16.mxu1 %v2421_v59  ;;  %2826 = vmatpush3.bf16.msra.mxu0 %v3094_v4  ;;  %v2461_v59 = vcombine.high %v279_v52, %v283_v53  ;;  %v2467_v4 = vcombine.high %v286_v62, %v290_v63  ;;  %v331_v41 = vld [vmem:[%s3257_s8 + $0x368] sm:$0xff]  ;;  %v224_v62 = vld [vmem:[%s3257_s8 + $0x10] sm:$0xff] }
  0x32   : > { %2938 = vmatpush3.bf16.msra.mxu1 %v3096_v9  ;;  %2827 = vmatprep.subr.bf16.mxu0 %v3097_v14  ;;  %v299_v9 = vld [vmem:[%s3257_s8 + $0x268] sm:$0xff]  ;;  %v302_v14 = vld [vmem:[%s3257_s8 + $0x280] sm:$0xff]  ;;  %v2508_v51 = vcombine.low %v327_v40, %v331_v41  ;;  %v228_v63 = vld [vmem:[%s3257_s8 + $0x30] sm:$0xff] }
  0x33   : > { %2939 = vmatprep.subr.bf16.mxu1 %v3099_v17  ;;  %v307_v17 = vld [vmem:[%s3257_s8 + $0x2a8] sm:$0xff] }
  0x35   : > { %2828 = vmatpush3.bf16.msra.mxu0 %v3098_v15  ;;  %v306_v15 = vld [vmem:[%s3257_s8 + $0x2a0] sm:$0xff] }
  0x36   : > { %2940 = vmatpush3.bf16.msra.mxu1 %v3100_v20  ;;  %2829 = vmatprep.subr.bf16.mxu0 %v3101_v24  ;;  %v2483_v20 = vcombine.high %v302_v14, %v306_v15  ;;  %v311_v24 = vld [vmem:[%s3257_s8 + $0x2c8] sm:$0xff]  ;;  %v2482_v26 = vcombine.low %v302_v14, %v306_v15  ;;  %v240_v14 = vld [vmem:[%s3257_s8 + $0x90] sm:$0xff] }
  0x37   : > { %1551 = vmatmul.mubr.bf16.gmra.mrb[8].mxu0 %v2418_v3  ;;  %2941 = vmatprep.subr.bf16.mxu1 %v3103_v28  ;;  %v2460_v3 = vcombine.low %v279_v52, %v283_v53  ;;  %v2491_v28 = vcombine.high %v310_v22, %v314_v23  ;;  %v2492_v35 = vcombine.low %v311_v24, %v315_v25  ;;  %v244_v15 = vld [vmem:[%s3257_s8 + $0xb0] sm:$0xff] }
  0x38   : > { %1712 = vmatmul.mubr.bf16.gmra.mrb[8].mxu1 %v2420_v5  ;;  %1558 = vmatprep.mubr.bf16.mxu0 %v2427_v6  ;;  %v2469_v5 = vcombine.high %v287_v0, %v291_v1  ;;  %v294_v6 = vld [vmem:[%s3257_s8 + $0x240] sm:$0xff]  ;;  %v225_v0 = vld [vmem:[%s3257_s8 + $0x18] sm:$0xff] }
  0x39   : > { %1719 = vmatprep.mubr.bf16.mxu1 %v2429_v8  ;;  %2830 = vmatpush3.bf16.msra.mxu0 %v3102_v27  ;;  %v295_v8 = vld [vmem:[%s3257_s8 + $0x248] sm:$0xff]  ;;  %v2475_v12 = vcombine.high %v294_v6, %v298_v7  ;;  %v229_v1 = vld [vmem:[%s3257_s8 + $0x38] sm:$0xff] }
  0x3a   : > { %2942 = vmatpush3.bf16.msra.mxu1 %v3104_v29  ;;  %2831 = vmatprep.subr.bf16.mxu0 %v3105_v34  ;;  %v2477_v13 = vcombine.high %v295_v8, %v299_v9  ;;  %v2493_v29 = vcombine.high %v311_v24, %v315_v25  ;;  %v2490_v34 = vcombine.low %v310_v22, %v314_v23  ;;  %v248_v22 = vld [vmem:[%s3257_s8 + $0xd0] sm:$0xff]  ;;  %v249_v24 = vld [vmem:[%s3257_s8 + $0xd8] sm:$0xff] }
  0x3b   : > { %2943 = vmatprep.subr.bf16.mxu1 %v3107_v37  ;;  %v252_v23 = vld [vmem:[%s3257_s8 + $0xf0] sm:$0xff]  ;;  %v253_v25 = vld [vmem:[%s3257_s8 + $0xf8] sm:$0xff] }
  0x3d   : > { %2832 = vmatpush3.bf16.msra.mxu0 %v3106_v36 }
  0x3e   : > { %2944 = vmatpush3.bf16.msra.mxu1 %v3108_v39  ;;  %2833 = vmatprep.subr.bf16.mxu0 %v3109_v46  ;;  %v330_v39 = vld [vmem:[%s3257_s8 + $0x360] sm:$0xff] }
  0x3f   : > { %1559 = vmatmul.mubr.bf16.gmra.mrb[12].mxu0 %v2426_v16  ;;  %2945 = vmatprep.subr.bf16.mxu1 %v3111_v48  ;;  %v303_v16 = vld [vmem:[%s3257_s8 + $0x288] sm:$0xff]  ;;  %v334_v46 = vld [vmem:[%s3257_s8 + $0x380] sm:$0xff]  ;;  %v2506_v50 = vcombine.low %v326_v38, %v330_v39 }
  0x40   : > { %1720 = vmatmul.mubr.bf16.gmra.mrb[12].mxu1 %v2428_v18  ;;  %1566 = vmatprep.mubr.bf16.mxu0 %v2435_v19  ;;  %v2474_v18 = vcombine.low %v294_v6, %v298_v7  ;;  %v2476_v19 = vcombine.low %v295_v8, %v299_v9  ;;  %v2484_v27 = vcombine.low %v303_v16, %v307_v17  ;;  %v335_v48 = vld [vmem:[%s3257_s8 + $0x388] sm:$0xff]  ;;  %v232_v6 = vld [vmem:[%s3257_s8 + $0x50] sm:$0xff]  ;;  %v233_v8 = vld [vmem:[%s3257_s8 + $0x58] sm:$0xff] }
  0x41   : > { %1727 = vmatprep.mubr.bf16.mxu1 %v2437_v21  ;;  %2834 = vmatpush3.bf16.msra.mxu0 %v3110_v47  ;;  %v2485_v21 = vcombine.high %v303_v16, %v307_v17  ;;  %v338_v47 = vld [vmem:[%s3257_s8 + $0x3a0] sm:$0xff]  ;;  %v236_v7 = vld [vmem:[%s3257_s8 + $0x70] sm:$0xff]  ;;  %v237_v9 = vld [vmem:[%s3257_s8 + $0x78] sm:$0xff] }
  0x42   : > { %2946 = vmatpush3.bf16.msra.mxu1 %v3112_v49  ;;  %2835 = vmatprep.subr.bf16.mxu0 %v3113_v55  ;;  %v339_v49 = vld [vmem:[%s3257_s8 + $0x3a8] sm:$0xff]  ;;  %v2515_v52 = vcombine.high %v334_v46, %v338_v47  ;;  %v346_v55 = vld [vmem:[%s3257_s8 + $0x3e0] sm:$0xff]  ;;  %v241_v16 = vld [vmem:[%s3257_s8 + $0x98] sm:$0xff] }
  0x43   : > { %2947 = vmatprep.subr.bf16.mxu1 %v3115_v60  ;;  %v2517_v53 = vcombine.high %v335_v48, %v339_v49  ;;  %v245_v17 = vld [vmem:[%s3257_s8 + $0xb8] sm:$0xff] }
  0x45   : > { %2836 = vmatpush3.bf16.msra.mxu0 %v3114_v58  ;;  %v2514_v58 = vcombine.low %v334_v46, %v338_v47  ;;  %v272_v46 = vld [vmem:[%s3257_s8 + $0x190] sm:$0xff] }
  0x46   : > { %2948 = vmatpush3.bf16.msra.mxu1 %v3116_v61  ;;  %v276_v47 = vld [vmem:[%s3257_s8 + $0x1b0] sm:$0xff] }
  0x47   : > { %1567 = vmatmul.mubr.bf16.gmra.mrb[16].mxu0 %v2434_v30  ;;  %v318_v30 = vld [vmem:[%s3257_s8 + $0x300] sm:$0xff] }
  0x48   : > { %1728 = vmatmul.mubr.bf16.gmra.mrb[16].mxu1 %v2436_v31  ;;  %1574 = vmatprep.mubr.bf16.mxu0 %v2443_v32  ;;  %v322_v31 = vld [vmem:[%s3257_s8 + $0x320] sm:$0xff]  ;;  %v319_v32 = vld [vmem:[%s3257_s8 + $0x308] sm:$0xff] }
  0x49   : > { %1735 = vmatprep.mubr.bf16.mxu1 %v2445_v33  ;;  %v323_v33 = vld [vmem:[%s3257_s8 + $0x328] sm:$0xff]  ;;  %v2499_v36 = vcombine.high %v318_v30, %v322_v31 }
  0x4a   : > { %v2501_v37 = vcombine.high %v319_v32, %v323_v33 }
  0x4f   : > { %1575 = vmatmul.mubr.bf16.gmra.mrb[20].mxu0 %v2442_v42  ;;  %v2498_v42 = vcombine.low %v318_v30, %v322_v31  ;;  %v256_v30 = vld [vmem:[%s3257_s8 + $0x110] sm:$0xff] }
  0x50   : > { %1736 = vmatmul.mubr.bf16.gmra.mrb[20].mxu1 %v2444_v43  ;;  %1582 = vmatprep.mubr.bf16.mxu0 %v2451_v44  ;;  %v2500_v43 = vcombine.low %v319_v32, %v323_v33  ;;  %v2507_v44 = vcombine.high %v326_v38, %v330_v39  ;;  %v260_v31 = vld [vmem:[%s3257_s8 + $0x130] sm:$0xff]  ;;  %v257_v32 = vld [vmem:[%s3257_s8 + $0x118] sm:$0xff] }
  0x51   : > { %1743 = vmatprep.mubr.bf16.mxu1 %v2453_v45  ;;  %v2509_v45 = vcombine.high %v327_v40, %v331_v41  ;;  %v261_v33 = vld [vmem:[%s3257_s8 + $0x138] sm:$0xff]  ;;  %v264_v38 = vld [vmem:[%s3257_s8 + $0x150] sm:$0xff] }
  0x52   : > { %v268_v39 = vld [vmem:[%s3257_s8 + $0x170] sm:$0xff]  ;;  %v265_v40 = vld [vmem:[%s3257_s8 + $0x158] sm:$0xff] }
  0x53   : > { %v269_v41 = vld [vmem:[%s3257_s8 + $0x178] sm:$0xff] }
  0x57   : > { %1583 = vmatmul.mubr.bf16.gmra.mrb[24].mxu0 %v2450_v54  ;;  %v342_v54 = vld [vmem:[%s3257_s8 + $0x3c0] sm:$0xff] }
  0x58   : > { %1744 = vmatmul.mubr.bf16.gmra.mrb[24].mxu1 %v2452_v56  ;;  %1590 = vmatprep.mubr.bf16.mxu0 %v2459_v57  ;;  %v343_v56 = vld [vmem:[%s3257_s8 + $0x3c8] sm:$0xff]  ;;  %v2523_v60 = vcombine.high %v342_v54, %v346_v55 }
  0x59   : > { %1751 = vmatprep.mubr.bf16.mxu1 %v2461_v59  ;;  %v347_v57 = vld [vmem:[%s3257_s8 + $0x3e8] sm:$0xff]  ;;  %v2516_v59 = vcombine.low %v335_v48, %v339_v49  ;;  %v273_v48 = vld [vmem:[%s3257_s8 + $0x198] sm:$0xff] }
  0x5a   : > { %v2525_v61 = vcombine.high %v343_v56, %v347_v57  ;;  %v277_v49 = vld [vmem:[%s3257_s8 + $0x1b8] sm:$0xff] }
  0x5f   : > { %1591 = vmatmul.mubr.bf16.gmra.mrb[28].mxu0 %v2458_v2  ;;  %v2522_v2 = vcombine.low %v342_v54, %v346_v55  ;;  %v280_v54 = vld [vmem:[%s3257_s8 + $0x1d0] sm:$0xff] }
  0x60   : > { %1752 = vmatmul.mubr.bf16.gmra.mrb[28].mxu1 %v2460_v3  ;;  %1598 = vmatprep.mubr.bf16.mxu0 %v2467_v4  ;;  %v2524_v3 = vcombine.low %v343_v56, %v347_v57  ;;  %v2407_v4 = vcombine.high %v224_v62, %v228_v63  ;;  %v284_v55 = vld [vmem:[%s3257_s8 + $0x1f0] sm:$0xff]  ;;  %v281_v56 = vld [vmem:[%s3257_s8 + $0x1d8] sm:$0xff] }
  0x61   : > { %1759 = vmatprep.mubr.bf16.mxu1 %v2469_v5  ;;  %v2409_v5 = vcombine.high %v225_v0, %v229_v1  ;;  %v285_v57 = vld [vmem:[%s3257_s8 + $0x1f8] sm:$0xff] }
  0x67   : > { %1599 = vmatmul.mubr.bf16.gmra.mrb[32].mxu0 %v2466_v10  ;;  %v2406_v10 = vcombine.low %v224_v62, %v228_v63  ;;  %v288_v62 = vld [vmem:[%s3257_s8 + $0x210] sm:$0xff] }
  0x68   : > { %1760 = vmatmul.mubr.bf16.gmra.mrb[32].mxu1 %v2468_v11  ;;  %1606 = vmatprep.mubr.bf16.mxu0 %v2475_v12  ;;  %v2408_v11 = vcombine.low %v225_v0, %v229_v1  ;;  %v2415_v12 = vcombine.high %v232_v6, %v236_v7  ;;  %v292_v63 = vld [vmem:[%s3257_s8 + $0x230] sm:$0xff]  ;;  %v289_v0 = vld [vmem:[%s3257_s8 + $0x218] sm:$0xff] }
  0x69   : > { %1767 = vmatprep.mubr.bf16.mxu1 %v2477_v13  ;;  %v2417_v13 = vcombine.high %v233_v8, %v237_v9  ;;  %v293_v1 = vld [vmem:[%s3257_s8 + $0x238] sm:$0xff] }
  0x6f   : > { %1607 = vmatmul.mubr.bf16.gmra.mrb[36].mxu0 %v2474_v18  ;;  %v2414_v18 = vcombine.low %v232_v6, %v236_v7  ;;  %v296_v6 = vld [vmem:[%s3257_s8 + $0x250] sm:$0xff] }
  0x70   : > { %1768 = vmatmul.mubr.bf16.gmra.mrb[36].mxu1 %v2476_v19  ;;  %1614 = vmatprep.mubr.bf16.mxu0 %v2483_v20  ;;  %v2416_v19 = vcombine.low %v233_v8, %v237_v9  ;;  %v2423_v20 = vcombine.high %v240_v14, %v244_v15  ;;  %v300_v7 = vld [vmem:[%s3257_s8 + $0x270] sm:$0xff]  ;;  %v297_v8 = vld [vmem:[%s3257_s8 + $0x258] sm:$0xff] }
  0x71   : > { %1775 = vmatprep.mubr.bf16.mxu1 %v2485_v21  ;;  %v2425_v21 = vcombine.high %v241_v16, %v245_v17  ;;  %v301_v9 = vld [vmem:[%s3257_s8 + $0x278] sm:$0xff] }
  0x77   : > { %1615 = vmatmul.mubr.bf16.gmra.mrb[40].mxu0 %v2482_v26  ;;  %v2422_v26 = vcombine.low %v240_v14, %v244_v15  ;;  %v304_v14 = vld [vmem:[%s3257_s8 + $0x290] sm:$0xff] }
  0x78   : > { %1776 = vmatmul.mubr.bf16.gmra.mrb[40].mxu1 %v2484_v27  ;;  %1622 = vmatprep.mubr.bf16.mxu0 %v2491_v28  ;;  %v2424_v27 = vcombine.low %v241_v16, %v245_v17  ;;  %v2431_v28 = vcombine.high %v248_v22, %v252_v23  ;;  %v308_v15 = vld [vmem:[%s3257_s8 + $0x2b0] sm:$0xff]  ;;  %v305_v16 = vld [vmem:[%s3257_s8 + $0x298] sm:$0xff] }
  0x79   : > { %1783 = vmatprep.mubr.bf16.mxu1 %v2493_v29  ;;  %v2433_v29 = vcombine.high %v249_v24, %v253_v25  ;;  %v309_v17 = vld [vmem:[%s3257_s8 + $0x2b8] sm:$0xff] }
  0x7f   : > { %1623 = vmatmul.mubr.bf16.gmra.mrb[44].mxu0 %v2490_v34  ;;  %v2430_v34 = vcombine.low %v248_v22, %v252_v23  ;;  %v312_v22 = vld [vmem:[%s3257_s8 + $0x2d0] sm:$0xff] }
  0x80   : > { %1784 = vmatmul.mubr.bf16.gmra.mrb[44].mxu1 %v2492_v35  ;;  %1630 = vmatprep.mubr.bf16.mxu0 %v2499_v36  ;;  %v2432_v35 = vcombine.low %v249_v24, %v253_v25  ;;  %v2439_v36 = vcombine.high %v256_v30, %v260_v31  ;;  %v316_v23 = vld [vmem:[%s3257_s8 + $0x2f0] sm:$0xff]  ;;  %v313_v24 = vld [vmem:[%s3257_s8 + $0x2d8] sm:$0xff] }
  0x81   : > { %1791 = vmatprep.mubr.bf16.mxu1 %v2501_v37  ;;  %v2441_v37 = vcombine.high %v257_v32, %v261_v33  ;;  %v317_v25 = vld [vmem:[%s3257_s8 + $0x2f8] sm:$0xff] }
  0x87   : > { %1631 = vmatmul.mubr.bf16.gmra.mrb[48].mxu0 %v2498_v42  ;;  %v2438_v42 = vcombine.low %v256_v30, %v260_v31  ;;  %v320_v30 = vld [vmem:[%s3257_s8 + $0x310] sm:$0xff] }
  0x88   : > { %1792 = vmatmul.mubr.bf16.gmra.mrb[48].mxu1 %v2500_v43  ;;  %1638 = vmatprep.mubr.bf16.mxu0 %v2507_v44  ;;  %v2440_v43 = vcombine.low %v257_v32, %v261_v33  ;;  %v2447_v44 = vcombine.high %v264_v38, %v268_v39  ;;  %v324_v31 = vld [vmem:[%s3257_s8 + $0x330] sm:$0xff]  ;;  %v321_v33 = vld [vmem:[%s3257_s8 + $0x318] sm:$0xff] }
  0x89   : > { %1799 = vmatprep.mubr.bf16.mxu1 %v2509_v45  ;;  %v2449_v45 = vcombine.high %v265_v40, %v269_v41 }
  0x8f   : > { %1639 = vmatmul.mubr.bf16.gmra.mrb[52].mxu0 %v2506_v50  ;;  %v2446_v50 = vcombine.low %v264_v38, %v268_v39 }
  0x90   : > { %1800 = vmatmul.mubr.bf16.gmra.mrb[52].mxu1 %v2508_v51  ;;  %1646 = vmatprep.mubr.bf16.mxu0 %v2515_v52  ;;  %v2448_v51 = vcombine.low %v265_v40, %v269_v41  ;;  %v2455_v52 = vcombine.high %v272_v46, %v276_v47  ;;  %v2496_v41 = vcombine.low %v313_v24, %v317_v25 }
  0x91   : > { %1807 = vmatprep.mubr.bf16.mxu1 %v2517_v53  ;;  %v2457_v53 = vcombine.high %v273_v48, %v277_v49 }
  0x97   : > { %1647 = vmatmul.mubr.bf16.gmra.mrb[56].mxu0 %v2514_v58  ;;  %v2454_v58 = vcombine.low %v272_v46, %v276_v47 }
  0x98   : > { %1808 = vmatmul.mubr.bf16.gmra.mrb[56].mxu1 %v2516_v59  ;;  %1654 = vmatprep.mubr.bf16.mxu0 %v2523_v60  ;;  %v2456_v59 = vcombine.low %v273_v48, %v277_v49  ;;  %v2463_v60 = vcombine.high %v280_v54, %v284_v55 }
  0x99   : > { %1815 = vmatprep.mubr.bf16.mxu1 %v2525_v61  ;;  %v2465_v61 = vcombine.high %v281_v56, %v285_v57 }
  0x9f   : > { %1655 = vmatmul.mubr.bf16.gmra.mrb[60].mxu0 %v2522_v2  ;;  %v2462_v2 = vcombine.low %v280_v54, %v284_v55  ;;  %v329_v55 = vld [vmem:[%s3257_s8 + $0x358] sm:$0xff] }
  0xa0   : > { %1816 = vmatmul.mubr.bf16.gmra.mrb[60].mxu1 %v2524_v3  ;;  %1856 = vmatprep.mubr.bf16.mxu0 %v2407_v4  ;;  %v2464_v3 = vcombine.low %v281_v56, %v285_v57  ;;  %v2471_v4 = vcombine.high %v288_v62, %v292_v63  ;;  %v333_v56 = vld [vmem:[%s3257_s8 + $0x378] sm:$0xff] }
  0xa1   : > { %2017 = vmatprep.mubr.bf16.mxu1 %v2409_v5  ;;  %v2473_v5 = vcombine.high %v289_v0, %v293_v1 }
  0xa7   : > { %1857 = vmatmul.mubr.bf16.vlgmr.msra.gmra.mrb[64].mxu0 %v2406_v10  ;;  %v2470_v10 = vcombine.low %v288_v62, %v292_v63 }
  0xa8   : > { %2018 = vmatmul.mubr.bf16.vlgmr.msra.gmra.mrb[64].mxu1 %v2408_v11  ;;  %1864 = vmatprep.mubr.bf16.mxu0 %v2415_v12  ;;  %v2472_v11 = vcombine.low %v289_v0, %v293_v1  ;;  %v2479_v12 = vcombine.high %v296_v6, %v300_v7 }
  0xa9   : > { %2025 = vmatprep.mubr.bf16.mxu1 %v2417_v13  ;;  %v2481_v13 = vcombine.high %v297_v8, %v301_v9 }
  0xaf   : > { %1865 = vmatmul.mubr.bf16.gmra.mrb[68].mxu0 %v2414_v18  ;;  %v2478_v18 = vcombine.low %v296_v6, %v300_v7 }
  0xb0   : > { %2026 = vmatmul.mubr.bf16.gmra.mrb[68].mxu1 %v2416_v19  ;;  %1872 = vmatprep.mubr.bf16.mxu0 %v2423_v20  ;;  %v2480_v19 = vcombine.low %v297_v8, %v301_v9  ;;  %v2487_v20 = vcombine.high %v304_v14, %v308_v15 }
  0xb1   : > { %2033 = vmatprep.mubr.bf16.mxu1 %v2425_v21  ;;  %v2489_v21 = vcombine.high %v305_v16, %v309_v17 }
  0xb7   : > { %1873 = vmatmul.mubr.bf16.gmra.mrb[72].mxu0 %v2422_v26  ;;  %v2486_v26 = vcombine.low %v304_v14, %v308_v15  ;;  %v341_v14 = vld [vmem:[%s3257_s8 + $0x3b8] sm:$0xff] }
  0xb8   : > { %2034 = vmatmul.mubr.bf16.gmra.mrb[72].mxu1 %v2424_v27  ;;  %1880 = vmatprep.mubr.bf16.mxu0 %v2431_v28  ;;  %v2488_v27 = vcombine.low %v305_v16, %v309_v17  ;;  %v2495_v28 = vcombine.high %v312_v22, %v316_v23 }
  0xb9   : > { %2041 = vmatprep.mubr.bf16.mxu1 %v2433_v29  ;;  %v2497_v29 = vcombine.high %v313_v24, %v317_v25 }
  0xbf   : > { %1881 = vmatmul.mubr.bf16.gmra.mrb[76].mxu0 %v2430_v34  ;;  %v325_v34 = vld [vmem:[%s3257_s8 + $0x338] sm:$0xff] }
  0xc0   : > { %2042 = vmatmul.mubr.bf16.gmra.mrb[76].mxu1 %v2432_v35  ;;  %1888 = vmatprep.mubr.bf16.mxu0 %v2439_v36  ;;  %v2505_v46 = vcombine.high %v321_v33, %v325_v34  ;;  %v2504_v63 = vcombine.low %v321_v33, %v325_v34  ;;  %v348_v33 = vld [vmem:[%s3257_s8 + $0x3f0] sm:$0xff] }
  0xc1   : > { %2049 = vmatprep.mubr.bf16.mxu1 %v2441_v37  ;;  %v2494_v37 = vcombine.low %v312_v22, %v316_v23 }
  0xc7   : > { %1889 = vmatmul.mubr.bf16.gmra.mrb[80].mxu0 %v2438_v42  ;;  %v2503_v42 = vcombine.high %v320_v30, %v324_v31 }
  0xc8   : > { %2050 = vmatmul.mubr.bf16.gmra.mrb[80].mxu1 %v2440_v43  ;;  %1896 = vmatprep.mubr.bf16.mxu0 %v2447_v44 }
  0xc9   : > { %2057 = vmatprep.mubr.bf16.mxu1 %v2449_v45 }
  0xcf   : > { %1897 = vmatmul.mubr.bf16.gmra.mrb[84].mxu0 %v2446_v50 }
  0xd0   : > { %2058 = vmatmul.mubr.bf16.gmra.mrb[84].mxu1 %v2448_v51  ;;  %1904 = vmatprep.mubr.bf16.mxu0 %v2455_v52  ;;  %v328_v52 = vld [vmem:[%s3257_s8 + $0x350] sm:$0xff] }
  0xd1   : > { %2065 = vmatprep.mubr.bf16.mxu1 %v2457_v53  ;;  %v332_v53 = vld [vmem:[%s3257_s8 + $0x370] sm:$0xff] }
  0xd2   : > { %v2511_v0 = vcombine.high %v328_v52, %v332_v53  ;;  %v2510_v17 = vcombine.low %v328_v52, %v332_v53 }
  0xd7   : > { %1905 = vmatmul.mubr.bf16.gmra.mrb[88].mxu0 %v2454_v58 }
  0xd8   : > { %2066 = vmatmul.mubr.bf16.gmra.mrb[88].mxu1 %v2456_v59  ;;  %1912 = vmatprep.mubr.bf16.mxu0 %v2463_v60  ;;  %v2502_v59 = vcombine.low %v320_v30, %v324_v31 }
  0xd9   : > { %2073 = vmatprep.mubr.bf16.mxu1 %v2465_v61 }
  0xdf   : > { %1913 = vmatmul.mubr.bf16.gmra.mrb[92].mxu0 %v2462_v2 }
  0xe0   : > { %2074 = vmatmul.mubr.bf16.gmra.mrb[92].mxu1 %v2464_v3  ;;  %1920 = vmatprep.mubr.bf16.mxu0 %v2471_v4  ;;  %v2513_v4 = vcombine.high %v329_v55, %v333_v56 }
  0xe1   : > { %2081 = vmatprep.mubr.bf16.mxu1 %v2473_v5 }
  0xe7   : > { %1921 = vmatmul.mubr.bf16.gmra.mrb[96].mxu0 %v2470_v10  ;;  %v336_v10 = vld [vmem:[%s3257_s8 + $0x390] sm:$0xff] }
  0xe8   : > { %2082 = vmatmul.mubr.bf16.gmra.mrb[96].mxu1 %v2472_v11  ;;  %1928 = vmatprep.mubr.bf16.mxu0 %v2479_v12  ;;  %v340_v11 = vld [vmem:[%s3257_s8 + $0x3b0] sm:$0xff] }
  0xe9   : > { %2089 = vmatprep.mubr.bf16.mxu1 %v2481_v13  ;;  %v337_v13 = vld [vmem:[%s3257_s8 + $0x398] sm:$0xff]  ;;  %v2519_v22 = vcombine.high %v336_v10, %v340_v11 }
  0xef   : > { %1929 = vmatmul.mubr.bf16.gmra.mrb[100].mxu0 %v2478_v18 }
  0xf0   : > { %2090 = vmatmul.mubr.bf16.gmra.mrb[100].mxu1 %v2480_v19  ;;  %1936 = vmatprep.mubr.bf16.mxu0 %v2487_v20 }
  0xf1   : > { %2097 = vmatprep.mubr.bf16.mxu1 %v2489_v21  ;;  %v2512_v21 = vcombine.low %v329_v55, %v333_v56 }
  0xf7   : > { %1937 = vmatmul.mubr.bf16.gmra.mrb[104].mxu0 %v2486_v26  ;;  %v2521_v26 = vcombine.high %v337_v13, %v341_v14 }
  0xf8   : > { %2098 = vmatmul.mubr.bf16.gmra.mrb[104].mxu1 %v2488_v27  ;;  %1944 = vmatprep.mubr.bf16.mxu0 %v2495_v28 }
  0xf9   : > { %2105 = vmatprep.mubr.bf16.mxu1 %v2497_v29 }
  0xfa   : > { %v2613_v32 = vpop.f32.mrb[0].mxu0 }
  0xfb   : > { %v2725_v35 = vpop.f32.mrb[0].mxu1  ;;  %v2614_v36 = vpop.f32.mrb[1].mxu0 }
  0xfc   : > { %v2615_v38 = vadd.f32 %v2614_v36, %v2613_v32  ;;  %v2726_v39 = vpop.f32.mrb[1].mxu1  ;;  %v2616_v40 = vpop.f32.mrb[2].mxu0  ;;  %v344_v32 = vld [vmem:[%s3257_s8 + $0x3d0] sm:$0xff]  ;;  %v349_v36 = vld [vmem:[%s3257_s8 + $0x3f8] sm:$0xff] }
  0xfd   : > { %v2727_v43 = vadd.f32 %v2726_v39, %v2725_v35  ;;  %v2728_v44 = vpop.f32.mrb[2].mxu1  ;;  %v2617_v45 = vpop.f32.mrb[3].mxu0  ;;  %v345_v35 = vld [vmem:[%s3257_s8 + $0x3d8] sm:$0xff]  ;;  %v2518_v39 = vcombine.low %v336_v10, %v340_v11  ;;  %s2401_s8 = sshll.u32 %s3640_s25, 3 }
  0xfe   : > { %v2618_v47 = vadd.f32 %v2617_v45, %v2616_v40  ;;  %v2729_v48 = vpop.f32.mrb[3].mxu1  ;;  %s3558_s13 = scalar_lea.vmem %s3636_s2, %s2401_s8 }
  0xff   : > { %v3477_v49 = vadd.f32 %v2727_v43, %v2615_v38  ;;  %v2730_v50 = vadd.f32 %v2729_v48, %v2728_v44  ;;  %1945 = vmatmul.mubr.bf16.gmra.mrb[108].mxu0 %v2494_v37  ;;  %v2520_v43 = vcombine.low %v337_v13, %v341_v14  ;;  %v2527_v44 = vcombine.high %v344_v32, %v348_v33 }
 0x100   : > { %2106 = vmatmul.mubr.bf16.gmra.mrb[108].mxu1 %v2496_v41  ;;  %1952 = vmatprep.mubr.bf16.mxu0 %v2503_v42  ;;  %v2529_v48 = vcombine.high %v345_v35, %v349_v36 }
 0x101   : > { %v3479_v51 = vadd.f32 %v2730_v50, %v2618_v47  ;;  %2113 = vmatprep.mubr.bf16.mxu1 %v2505_v46 }
 0x102   : > { %v2619_v54 = vpop.f32.mrb[4].mxu0 }
 0x103   : > { %v2731_v57 = vpop.f32.mrb[4].mxu1  ;;  %v2620_v58 = vpop.f32.mrb[5].mxu0 }
 0x104   : > { %v2621_v60 = vadd.f32 %v2620_v58, %v2619_v54  ;;  %v2732_v61 = vpop.f32.mrb[5].mxu1  ;;  %v2622_v62 = vpop.f32.mrb[6].mxu0 }
 0x105   : > { %v2733_v1 = vadd.f32 %v2732_v61, %v2731_v57  ;;  %v2734_v2 = vpop.f32.mrb[6].mxu1  ;;  %v2623_v3 = vpop.f32.mrb[7].mxu0 }
 0x106   : > { %v2624_v5 = vadd.f32 %v2623_v3, %v2622_v62  ;;  %v2735_v6 = vpop.f32.mrb[7].mxu1 }
 0x107   : > { %v3485_v7 = vadd.f32 %v2733_v1, %v2621_v60  ;;  %v2736_v8 = vadd.f32 %v2735_v6, %v2734_v2  ;;  %1953 = vmatmul.mubr.bf16.gmra.mrb[112].mxu0 %v2502_v59  ;;  %v2526_v59 = vcombine.low %v344_v32, %v348_v33 }
 0x108   : > { %2114 = vmatmul.mubr.bf16.gmra.mrb[112].mxu1 %v2504_v63  ;;  %1960 = vmatprep.mubr.bf16.mxu0 %v2511_v0  ;;  %v2528_v63 = vcombine.low %v345_v35, %v349_v36 }
 0x109   : > { %v3487_v9 = vadd.f32 %v2736_v8, %v2624_v5  ;;  %2121 = vmatprep.mubr.bf16.mxu1 %v2513_v4 }
 0x10a   : > { %v2625_v12 = vpop.f32.mrb[8].mxu0 }
 0x10b   : > { %v2737_v15 = vpop.f32.mrb[8].mxu1  ;;  %v2626_v16 = vpop.f32.mrb[9].mxu0 }
 0x10c   : > { %v2627_v18 = vadd.f32 %v2626_v16, %v2625_v12  ;;  %v2738_v19 = vpop.f32.mrb[9].mxu1  ;;  %v2628_v20 = vpop.f32.mrb[10].mxu0 }
 0x10d   : > { %v2739_v23 = vadd.f32 %v2738_v19, %v2737_v15  ;;  %v2740_v24 = vpop.f32.mrb[10].mxu1  ;;  %v2629_v25 = vpop.f32.mrb[11].mxu0 }
 0x10e   : > { %v2630_v27 = vadd.f32 %v2629_v25, %v2628_v20  ;;  %v2741_v28 = vpop.f32.mrb[11].mxu1 }
 0x10f   : > { %v3493_v29 = vadd.f32 %v2739_v23, %v2627_v18  ;;  %v2742_v30 = vadd.f32 %v2741_v28, %v2740_v24  ;;  %1961 = vmatmul.mubr.bf16.gmra.mrb[116].mxu0 %v2510_v17 }
 0x110   : > { %2122 = vmatmul.mubr.bf16.gmra.mrb[116].mxu1 %v2512_v21  ;;  %1968 = vmatprep.mubr.bf16.mxu0 %v2519_v22 }
 0x111   : > { %v3495_v31 = vadd.f32 %v2742_v30, %v2630_v27  ;;  %2129 = vmatprep.mubr.bf16.mxu1 %v2521_v26 }
 0x112   : > { %v2631_v34 = vpop.f32.mrb[12].mxu0 }
 0x113   : > { %v2743_v37 = vpop.f32.mrb[12].mxu1  ;;  %v2632_v38 = vpop.f32.mrb[13].mxu0 }
 0x114   : > { %v2633_v40 = vadd.f32 %v2632_v38, %v2631_v34  ;;  %v2744_v41 = vpop.f32.mrb[13].mxu1  ;;  %v2634_v42 = vpop.f32.mrb[14].mxu0 }
 0x115   : > { %v2745_v45 = vadd.f32 %v2744_v41, %v2743_v37  ;;  %v2746_v46 = vpop.f32.mrb[14].mxu1  ;;  %v2635_v47 = vpop.f32.mrb[15].mxu0 }
 0x116   : > { %v2636_v50 = vadd.f32 %v2635_v47, %v2634_v42  ;;  %v2747_v52 = vpop.f32.mrb[15].mxu1 }
 0x117   : > { %v3501_v53 = vadd.f32 %v2745_v45, %v2633_v40  ;;  %v2748_v54 = vadd.f32 %v2747_v52, %v2746_v46  ;;  %1969 = vmatmul.mubr.bf16.gmra.mrb[120].mxu0 %v2518_v39 }
 0x118   : > { %2130 = vmatmul.mubr.bf16.gmra.mrb[120].mxu1 %v2520_v43  ;;  %1976 = vmatprep.mubr.bf16.mxu0 %v2527_v44 }
 0x119   : > { %v3503_v55 = vadd.f32 %v2748_v54, %v2636_v50  ;;  %2137 = vmatprep.mubr.bf16.mxu1 %v2529_v48 }
 0x11a   : > { %v2637_v56 = vpop.f32.mrb[16].mxu0 }
 0x11b   : > { %v2749_v57 = vpop.f32.mrb[16].mxu1  ;;  %v2638_v58 = vpop.f32.mrb[17].mxu0 }
 0x11c   : > { %v2639_v60 = vadd.f32 %v2638_v58, %v2637_v56  ;;  %v2750_v61 = vpop.f32.mrb[17].mxu1  ;;  %v2640_v62 = vpop.f32.mrb[18].mxu0 }
 0x11d   : > { %v2751_v0 = vadd.f32 %v2750_v61, %v2749_v57  ;;  %v2752_v1 = vpop.f32.mrb[18].mxu1  ;;  %v2641_v2 = vpop.f32.mrb[19].mxu0 }
 0x11e   : > { %v2642_v3 = vadd.f32 %v2641_v2, %v2640_v62  ;;  %v2753_v4 = vpop.f32.mrb[19].mxu1 }
 0x11f   : > { %v3505_v5 = vadd.f32 %v2751_v0, %v2639_v60  ;;  %v2754_v6 = vadd.f32 %v2753_v4, %v2752_v1  ;;  %1977 = vmatmul.mubr.bf16.gmra.mrb[124].mxu0 %v2526_v59 }
 0x120   : > { %2138 = vmatmul.mubr.bf16.gmra.mrb[124].mxu1 %v2528_v63 }
 0x121   : > { %v3507_v8 = vadd.f32 %v2754_v6, %v2642_v3 }
 0x122   : > { %v2643_v10 = vpop.f32.mrb[20].mxu0 }
 0x123   : > { %v2755_v11 = vpop.f32.mrb[20].mxu1  ;;  %v2644_v12 = vpop.f32.mrb[21].mxu0 }
 0x124   : > { %v2645_v13 = vadd.f32 %v2644_v12, %v2643_v10  ;;  %v2756_v14 = vpop.f32.mrb[21].mxu1  ;;  %v2646_v15 = vpop.f32.mrb[22].mxu0 }
 0x125   : > { %v2757_v16 = vadd.f32 %v2756_v14, %v2755_v11  ;;  %v2758_v17 = vpop.f32.mrb[22].mxu1  ;;  %v2647_v18 = vpop.f32.mrb[23].mxu0 }
 0x126   : > { %v2648_v19 = vadd.f32 %v2647_v18, %v2646_v15  ;;  %v2759_v20 = vpop.f32.mrb[23].mxu1 }
 0x127   : > { %v3509_v21 = vadd.f32 %v2757_v16, %v2645_v13  ;;  %v2760_v22 = vadd.f32 %v2759_v20, %v2758_v17 }
 0x129   : > { %v3511_v23 = vadd.f32 %v2760_v22, %v2648_v19 }
 0x12a   : > { %v2649_v24 = vpop.f32.mrb[24].mxu0 }
 0x12b   : > { %v2761_v25 = vpop.f32.mrb[24].mxu1  ;;  %v2650_v26 = vpop.f32.mrb[25].mxu0 }
 0x12c   : > { %v2651_v27 = vadd.f32 %v2650_v26, %v2649_v24  ;;  %v2762_v28 = vpop.f32.mrb[25].mxu1  ;;  %v2652_v30 = vpop.f32.mrb[26].mxu0 }
 0x12d   : > { %v2763_v32 = vadd.f32 %v2762_v28, %v2761_v25  ;;  %v2764_v33 = vpop.f32.mrb[26].mxu1  ;;  %v2653_v34 = vpop.f32.mrb[27].mxu0 }
 0x12e   : > { %v2654_v35 = vadd.f32 %v2653_v34, %v2652_v30  ;;  %v2765_v36 = vpop.f32.mrb[27].mxu1 }
 0x12f   : > { %v3513_v37 = vadd.f32 %v2763_v32, %v2651_v27  ;;  %v2766_v38 = vadd.f32 %v2765_v36, %v2764_v33 }
 0x131   : > { %v3515_v39 = vadd.f32 %v2766_v38, %v2654_v35 }
 0x132   : > { %v2655_v40 = vpop.f32.mrb[28].mxu0 }
 0x133   : > { %v2767_v41 = vpop.f32.mrb[28].mxu1  ;;  %v2656_v42 = vpop.f32.mrb[29].mxu0 }
 0x134   : > { %v2657_v43 = vadd.f32 %v2656_v42, %v2655_v40  ;;  %v2768_v44 = vpop.f32.mrb[29].mxu1  ;;  %v2658_v45 = vpop.f32.mrb[30].mxu0 }
 0x135   : > { %v2769_v46 = vadd.f32 %v2768_v44, %v2767_v41  ;;  %v2770_v47 = vpop.f32.mrb[30].mxu1  ;;  %v2659_v48 = vpop.f32.mrb[31].mxu0 }
 0x136   : > { %v2660_v50 = vadd.f32 %v2659_v48, %v2658_v45  ;;  %v2771_v52 = vpop.f32.mrb[31].mxu1 }
 0x137   : > { %v3517_v54 = vadd.f32 %v2769_v46, %v2657_v43  ;;  %v2772_v56 = vadd.f32 %v2771_v52, %v2770_v47 }
 0x139   : > { %v3519_v57 = vadd.f32 %v2772_v56, %v2660_v50 }
 0x13a   : > { %v2661_v58 = vpop.f32.mrb[32].mxu0 }
 0x13b   : > { %v2773_v59 = vpop.f32.mrb[32].mxu1  ;;  %v2662_v60 = vpop.f32.mrb[33].mxu0 }
 0x13c   : > { %v2663_v61 = vadd.f32 %v2662_v60, %v2661_v58  ;;  %v2774_v62 = vpop.f32.mrb[33].mxu1  ;;  %v2664_v63 = vpop.f32.mrb[34].mxu0 }
 0x13d   : > { %v2775_v0 = vadd.f32 %v2774_v62, %v2773_v59  ;;  %v2776_v1 = vpop.f32.mrb[34].mxu1  ;;  %v2665_v2 = vpop.f32.mrb[35].mxu0 }
 0x13e   : > { %v2666_v3 = vadd.f32 %v2665_v2, %v2664_v63  ;;  %v2777_v4 = vpop.f32.mrb[35].mxu1 }
 0x13f   : > { %v3521_v6 = vadd.f32 %v2775_v0, %v2663_v61  ;;  %v2778_v10 = vadd.f32 %v2777_v4, %v2776_v1 }
 0x141   : > { %v3523_v11 = vadd.f32 %v2778_v10, %v2666_v3 }
 0x142   : > { %v2667_v12 = vpop.f32.mrb[36].mxu0 }
 0x143   : > { %v2779_v13 = vpop.f32.mrb[36].mxu1  ;;  %v2668_v14 = vpop.f32.mrb[37].mxu0 }
 0x144   : > { %v2669_v15 = vadd.f32 %v2668_v14, %v2667_v12  ;;  %v2780_v16 = vpop.f32.mrb[37].mxu1  ;;  %v2670_v17 = vpop.f32.mrb[38].mxu0 }
 0x145   : > { %v2781_v18 = vadd.f32 %v2780_v16, %v2779_v13  ;;  %v2782_v19 = vpop.f32.mrb[38].mxu1  ;;  %v2671_v20 = vpop.f32.mrb[39].mxu0 }
 0x146   : > { %v2672_v22 = vadd.f32 %v2671_v20, %v2670_v17  ;;  %v2783_v24 = vpop.f32.mrb[39].mxu1 }
 0x147   : > { %v3525_v25 = vadd.f32 %v2781_v18, %v2669_v15  ;;  %v2784_v26 = vadd.f32 %v2783_v24, %v2782_v19 }
 0x149   : > { %v3527_v27 = vadd.f32 %v2784_v26, %v2672_v22 }
 0x14a   : > { %v2673_v28 = vpop.f32.mrb[40].mxu0 }
 0x14b   : > { %v2785_v30 = vpop.f32.mrb[40].mxu1  ;;  %v2674_v32 = vpop.f32.mrb[41].mxu0 }
 0x14c   : > { %v2675_v33 = vadd.f32 %v2674_v32, %v2673_v28  ;;  %v2786_v34 = vpop.f32.mrb[41].mxu1  ;;  %v2676_v35 = vpop.f32.mrb[42].mxu0 }
 0x14d   : > { %v2787_v36 = vadd.f32 %v2786_v34, %v2785_v30  ;;  %v2788_v38 = vpop.f32.mrb[42].mxu1  ;;  %v2677_v40 = vpop.f32.mrb[43].mxu0 }
 0x14e   : > { %v2678_v41 = vadd.f32 %v2677_v40, %v2676_v35  ;;  %v2789_v42 = vpop.f32.mrb[43].mxu1 }
 0x14f   : > { %v3529_v43 = vadd.f32 %v2787_v36, %v2675_v33  ;;  %v2790_v44 = vadd.f32 %v2789_v42, %v2788_v38 }
 0x151   : > { %v3531_v45 = vadd.f32 %v2790_v44, %v2678_v41 }
 0x152   : > { %v2679_v46 = vpop.f32.mrb[44].mxu0 }
 0x153   : > { %v2791_v47 = vpop.f32.mrb[44].mxu1  ;;  %v2680_v48 = vpop.f32.mrb[45].mxu0 }
 0x154   : > { %v2681_v50 = vadd.f32 %v2680_v48, %v2679_v46  ;;  %v2792_v52 = vpop.f32.mrb[45].mxu1  ;;  %v2682_v56 = vpop.f32.mrb[46].mxu0 }
 0x155   : > { %v2793_v58 = vadd.f32 %v2792_v52, %v2791_v47  ;;  %v2794_v59 = vpop.f32.mrb[46].mxu1  ;;  %v2683_v60 = vpop.f32.mrb[47].mxu0 }
 0x156   : > { %v2684_v61 = vadd.f32 %v2683_v60, %v2682_v56  ;;  %v2795_v62 = vpop.f32.mrb[47].mxu1 }
 0x157   : > { %v3533_v63 = vadd.f32 %v2793_v58, %v2681_v50  ;;  %v2796_v0 = vadd.f32 %v2795_v62, %v2794_v59 }
 0x159   : > { %v3535_v1 = vadd.f32 %v2796_v0, %v2684_v61 }
 0x15a   : > { %v2685_v2 = vpop.f32.mrb[48].mxu0 }
 0x15b   : > { %v2797_v3 = vpop.f32.mrb[48].mxu1  ;;  %v2686_v4 = vpop.f32.mrb[49].mxu0 }
 0x15c   : > { %v2687_v10 = vadd.f32 %v2686_v4, %v2685_v2  ;;  %v2798_v12 = vpop.f32.mrb[49].mxu1  ;;  %v2688_v13 = vpop.f32.mrb[50].mxu0 }
 0x15d   : > { %v2799_v14 = vadd.f32 %v2798_v12, %v2797_v3  ;;  %v2800_v15 = vpop.f32.mrb[50].mxu1  ;;  %v2689_v16 = vpop.f32.mrb[51].mxu0 }
 0x15e   : > { %v2690_v17 = vadd.f32 %v2689_v16, %v2688_v13  ;;  %v2801_v18 = vpop.f32.mrb[51].mxu1 }
 0x15f   : > { %v3537_v19 = vadd.f32 %v2799_v14, %v2687_v10  ;;  %v2802_v20 = vadd.f32 %v2801_v18, %v2800_v15 }
 0x161   : > { %v3539_v22 = vadd.f32 %v2802_v20, %v2690_v17 }
 0x162   : > { %v2691_v24 = vpop.f32.mrb[52].mxu0 }
 0x163   : > { %v2803_v26 = vpop.f32.mrb[52].mxu1  ;;  %v2692_v28 = vpop.f32.mrb[53].mxu0 }
 0x164   : > { %v2693_v30 = vadd.f32 %v2692_v28, %v2691_v24  ;;  %v2804_v32 = vpop.f32.mrb[53].mxu1  ;;  %v2694_v33 = vpop.f32.mrb[54].mxu0 }
 0x165   : > { %v2805_v34 = vadd.f32 %v2804_v32, %v2803_v26  ;;  %v2806_v35 = vpop.f32.mrb[54].mxu1  ;;  %v2695_v36 = vpop.f32.mrb[55].mxu0 }
 0x166   : > { %v2696_v38 = vadd.f32 %v2695_v36, %v2694_v33  ;;  %v2807_v40 = vpop.f32.mrb[55].mxu1 }
 0x167   : > { %v3541_v41 = vadd.f32 %v2805_v34, %v2693_v30  ;;  %v2808_v42 = vadd.f32 %v2807_v40, %v2806_v35 }
 0x169   : > { %v3543_v44 = vadd.f32 %v2808_v42, %v2696_v38 }
 0x16a   : > { %v2697_v46 = vpop.f32.mrb[56].mxu0 }
 0x16b   : > { %v2809_v47 = vpop.f32.mrb[56].mxu1  ;;  %v2698_v48 = vpop.f32.mrb[57].mxu0 }
 0x16c   : > { %v2699_v50 = vadd.f32 %v2698_v48, %v2697_v46  ;;  %v2810_v52 = vpop.f32.mrb[57].mxu1  ;;  %v2700_v56 = vpop.f32.mrb[58].mxu0 }
 0x16d   : > { %v2811_v58 = vadd.f32 %v2810_v52, %v2809_v47  ;;  %v2812_v59 = vpop.f32.mrb[58].mxu1  ;;  %v2701_v60 = vpop.f32.mrb[59].mxu0 }
 0x16e   : > { %v2702_v61 = vadd.f32 %v2701_v60, %v2700_v56  ;;  %v2813_v62 = vpop.f32.mrb[59].mxu1 }
 0x16f   : > { %v3545_v0 = vadd.f32 %v2811_v58, %v2699_v50  ;;  %v2814_v2 = vadd.f32 %v2813_v62, %v2812_v59 }
 0x171   : > { %v3547_v3 = vadd.f32 %v2814_v2, %v2702_v61 }
 0x172   : > { %v2703_v4 = vpop.f32.mrb[60].mxu0 }
 0x173   : > { %v2815_v10 = vpop.f32.mrb[60].mxu1  ;;  %v2704_v12 = vpop.f32.mrb[61].mxu0 }
 0x174   : > { %v2705_v13 = vadd.f32 %v2704_v12, %v2703_v4  ;;  %v2816_v14 = vpop.f32.mrb[61].mxu1  ;;  %v2706_v15 = vpop.f32.mrb[62].mxu0 }
 0x175   : > { %v2817_v16 = vadd.f32 %v2816_v14, %v2815_v10  ;;  %v2818_v17 = vpop.f32.mrb[62].mxu1  ;;  %v2707_v18 = vpop.f32.mrb[63].mxu0 }
 0x176   : > { %v2708_v20 = vadd.f32 %v2707_v18, %v2706_v15  ;;  %v2819_v24 = vpop.f32.mrb[63].mxu1 }
 0x177   : > { %v3549_v26 = vadd.f32 %v2817_v16, %v2705_v13  ;;  %v2820_v28 = vadd.f32 %v2819_v24, %v2818_v17 }
 0x179   : > { %v3551_v30 = vadd.f32 %v2820_v28, %v2708_v20 }
 0x17a   : > { %v2837_v32 = vpop.f32.mrb[64].mxu0 }
 0x17b   : > { %v2949_v33 = vpop.f32.mrb[64].mxu1  ;;  %v2838_v34 = vpop.f32.mrb[65].mxu0 }
 0x17c   : > { %v2839_v35 = vadd.f32 %v2838_v34, %v2837_v32  ;;  %v2950_v36 = vpop.f32.mrb[65].mxu1  ;;  %v2840_v38 = vpop.f32.mrb[66].mxu0 }
 0x17d   : > { %v2951_v40 = vadd.f32 %v2950_v36, %v2949_v33  ;;  %v2952_v42 = vpop.f32.mrb[66].mxu1  ;;  %v2841_v46 = vpop.f32.mrb[67].mxu0 }
 0x17e   : > { %v1859_v47 = vadd.f32 %v2839_v35, %v3477_v49  ;;  %v2842_v48 = vadd.f32 %v2841_v46, %v2840_v38  ;;  %v2953_v50 = vpop.f32.mrb[67].mxu1 }
 0x17f   : > { %v2954_v52 = vadd.f32 %v2953_v50, %v2952_v42 }
 0x180   : > { %v2020_v56 = vadd.f32 %v2951_v40, %v1859_v47  ;;  %v1862_v58 = vadd.f32 %v2842_v48, %v3479_v51 }
 0x182   : > { %2146 = vst [vmem:[%s3558_s13] sm:$0xff] %v2020_v56  ;;  %v2023_v59 = vadd.f32 %v2954_v52, %v1862_v58  ;;  %v2843_v60 = vpop.f32.mrb[68].mxu0  ;;  %v2215_v2 = vmul.f32 %v2020_v56, %v2020_v56 }
 0x183   : > { %v2955_v61 = vpop.f32.mrb[68].mxu1  ;;  %v2844_v62 = vpop.f32.mrb[69].mxu0 }
 0x184   : > { %2147 = vst [vmem:[%s3558_s13 + $0x8] sm:$0xff] %v2023_v59  ;;  %v2178_v49 = vadd.f32 %v2023_v59, %v2020_v56  ;;  %v2216_v4 = vmul.f32 %v2023_v59, %v2023_v59  ;;  %v2845_v10 = vadd.f32 %v2844_v62, %v2843_v60  ;;  %v2956_v12 = vpop.f32.mrb[69].mxu1  ;;  %v2846_v13 = vpop.f32.mrb[70].mxu0 }
 0x185   : > { %v2957_v14 = vadd.f32 %v2956_v12, %v2955_v61  ;;  %v2958_v15 = vpop.f32.mrb[70].mxu1  ;;  %v2847_v16 = vpop.f32.mrb[71].mxu0 }
 0x186   : > { %v2247_v17 = vadd.f32 %v2216_v4, %v2215_v2  ;;  %v1867_v51 = vadd.f32 %v2845_v10, %v3485_v7  ;;  %v2848_v18 = vadd.f32 %v2847_v16, %v2846_v13  ;;  %v2959_v20 = vpop.f32.mrb[71].mxu1 }
 0x187   : > { %v2960_v24 = vadd.f32 %v2959_v20, %v2958_v15 }
 0x188   : > { %v2028_v28 = vadd.f32 %v2957_v14, %v1867_v51  ;;  %v1870_v32 = vadd.f32 %v2848_v18, %v3487_v9 }
 0x18a   : > { %2148 = vst [vmem:[%s3558_s13 + $0x10] sm:$0xff] %v2028_v28  ;;  %v2179_v33 = vadd.f32 %v2178_v49, %v2028_v28  ;;  %v2217_v34 = vmul.f32 %v2028_v28, %v2028_v28  ;;  %v2031_v35 = vadd.f32 %v2960_v24, %v1870_v32  ;;  %v2849_v36 = vpop.f32.mrb[72].mxu0 }
 0x18b   : > { %v2961_v38 = vpop.f32.mrb[72].mxu1  ;;  %v2850_v40 = vpop.f32.mrb[73].mxu0 }
 0x18c   : > { %v2248_v42 = vadd.f32 %v2247_v17, %v2217_v34  ;;  %2149 = vst [vmem:[%s3558_s13 + $0x18] sm:$0xff] %v2031_v35  ;;  %v2180_v46 = vadd.f32 %v2179_v33, %v2031_v35  ;;  %v2218_v47 = vmul.f32 %v2031_v35, %v2031_v35  ;;  %v2851_v48 = vadd.f32 %v2850_v40, %v2849_v36  ;;  %v2962_v7 = vpop.f32.mrb[73].mxu1  ;;  %v2852_v50 = vpop.f32.mrb[74].mxu0 }
 0x18d   : > { %v2963_v52 = vadd.f32 %v2962_v7, %v2961_v38  ;;  %v2964_v56 = vpop.f32.mrb[74].mxu1  ;;  %v2853_v58 = vpop.f32.mrb[75].mxu0 }
 0x18e   : > { %v2249_v9 = vadd.f32 %v2248_v42, %v2218_v47  ;;  %v1875_v59 = vadd.f32 %v2851_v48, %v3493_v29  ;;  %v2854_v60 = vadd.f32 %v2853_v58, %v2852_v50  ;;  %v2965_v61 = vpop.f32.mrb[75].mxu1 }
 0x18f   : > { %v2966_v62 = vadd.f32 %v2965_v61, %v2964_v56 }
 0x190   : > { %v2036_v2 = vadd.f32 %v2963_v52, %v1875_v59  ;;  %v1878_v49 = vadd.f32 %v2854_v60, %v3495_v31 }
 0x192   : > { %2150 = vst [vmem:[%s3558_s13 + $0x20] sm:$0xff] %v2036_v2  ;;  %v2181_v4 = vadd.f32 %v2180_v46, %v2036_v2  ;;  %v2219_v10 = vmul.f32 %v2036_v2, %v2036_v2  ;;  %v2039_v12 = vadd.f32 %v2966_v62, %v1878_v49  ;;  %v2855_v13 = vpop.f32.mrb[76].mxu0 }
 0x193   : > { %v2967_v14 = vpop.f32.mrb[76].mxu1  ;;  %v2856_v15 = vpop.f32.mrb[77].mxu0 }
 0x194   : > { %v2250_v16 = vadd.f32 %v2249_v9, %v2219_v10  ;;  %2151 = vst [vmem:[%s3558_s13 + $0x28] sm:$0xff] %v2039_v12  ;;  %v2182_v17 = vadd.f32 %v2181_v4, %v2039_v12  ;;  %v2220_v51 = vmul.f32 %v2039_v12, %v2039_v12  ;;  %v2857_v18 = vadd.f32 %v2856_v15, %v2855_v13  ;;  %v2968_v29 = vpop.f32.mrb[77].mxu1  ;;  %v2858_v20 = vpop.f32.mrb[78].mxu0 }
 0x195   : > { %v2969_v24 = vadd.f32 %v2968_v29, %v2967_v14  ;;  %v2970_v28 = vpop.f32.mrb[78].mxu1  ;;  %v2859_v32 = vpop.f32.mrb[79].mxu0 }
 0x196   : > { %v2251_v31 = vadd.f32 %v2250_v16, %v2220_v51  ;;  %v1883_v33 = vadd.f32 %v2857_v18, %v3501_v53  ;;  %v2860_v34 = vadd.f32 %v2859_v32, %v2858_v20  ;;  %v2971_v35 = vpop.f32.mrb[79].mxu1 }
 0x197   : > { %v2972_v36 = vadd.f32 %v2971_v35, %v2970_v28 }
 0x198   : > { %v2044_v38 = vadd.f32 %v2969_v24, %v1883_v33  ;;  %v1886_v40 = vadd.f32 %v2860_v34, %v3503_v55 }
 0x19a   : > { %2152 = vst [vmem:[%s3558_s13 + $0x30] sm:$0xff] %v2044_v38  ;;  %v2183_v42 = vadd.f32 %v2182_v17, %v2044_v38  ;;  %v2221_v46 = vmul.f32 %v2044_v38, %v2044_v38  ;;  %v2047_v47 = vadd.f32 %v2972_v36, %v1886_v40  ;;  %v2861_v48 = vpop.f32.mrb[80].mxu0 }
 0x19b   : > { %v2973_v7 = vpop.f32.mrb[80].mxu1  ;;  %v2862_v50 = vpop.f32.mrb[81].mxu0 }
 0x19c   : > { %v2252_v52 = vadd.f32 %v2251_v31, %v2221_v46  ;;  %2153 = vst [vmem:[%s3558_s13 + $0x38] sm:$0xff] %v2047_v47  ;;  %v2184_v56 = vadd.f32 %v2183_v42, %v2047_v47  ;;  %v2222_v58 = vmul.f32 %v2047_v47, %v2047_v47  ;;  %v2863_v9 = vadd.f32 %v2862_v50, %v2861_v48  ;;  %v2974_v53 = vpop.f32.mrb[81].mxu1  ;;  %v2864_v59 = vpop.f32.mrb[82].mxu0 }
 0x19d   : > { %v2975_v60 = vadd.f32 %v2974_v53, %v2973_v7  ;;  %v2976_v61 = vpop.f32.mrb[82].mxu1  ;;  %v2865_v62 = vpop.f32.mrb[83].mxu0 }
 0x19e   : > { %v2253_v55 = vadd.f32 %v2252_v52, %v2222_v58  ;;  %v1891_v2 = vadd.f32 %v2863_v9, %v3505_v5  ;;  %v2866_v49 = vadd.f32 %v2865_v62, %v2864_v59  ;;  %v2977_v4 = vpop.f32.mrb[83].mxu1 }
 0x19f   : > { %v2978_v10 = vadd.f32 %v2977_v4, %v2976_v61 }
 0x1a0   : > { %v2052_v12 = vadd.f32 %v2975_v60, %v1891_v2  ;;  %v1894_v13 = vadd.f32 %v2866_v49, %v3507_v8 }
 0x1a2   : > { %2154 = vst [vmem:[%s3558_s13 + $0x40] sm:$0xff] %v2052_v12  ;;  %v2185_v14 = vadd.f32 %v2184_v56, %v2052_v12  ;;  %v2223_v15 = vmul.f32 %v2052_v12, %v2052_v12  ;;  %v2055_v16 = vadd.f32 %v2978_v10, %v1894_v13  ;;  %v2867_v17 = vpop.f32.mrb[84].mxu0 }
 0x1a3   : > { %v2979_v51 = vpop.f32.mrb[84].mxu1  ;;  %v2868_v18 = vpop.f32.mrb[85].mxu0 }
 0x1a4   : > { %v2254_v29 = vadd.f32 %v2253_v55, %v2223_v15  ;;  %2155 = vst [vmem:[%s3558_s13 + $0x48] sm:$0xff] %v2055_v16  ;;  %v2186_v20 = vadd.f32 %v2185_v14, %v2055_v16  ;;  %v2224_v24 = vmul.f32 %v2055_v16, %v2055_v16  ;;  %v2869_v28 = vadd.f32 %v2868_v18, %v2867_v17  ;;  %v2980_v5 = vpop.f32.mrb[85].mxu1  ;;  %v2870_v32 = vpop.f32.mrb[86].mxu0 }
 0x1a5   : > { %v2981_v31 = vadd.f32 %v2980_v5, %v2979_v51  ;;  %v2982_v33 = vpop.f32.mrb[86].mxu1  ;;  %v2871_v34 = vpop.f32.mrb[87].mxu0 }
 0x1a6   : > { %v2255_v8 = vadd.f32 %v2254_v29, %v2224_v24  ;;  %v1899_v35 = vadd.f32 %v2869_v28, %v3509_v21  ;;  %v2872_v36 = vadd.f32 %v2871_v34, %v2870_v32  ;;  %v2983_v38 = vpop.f32.mrb[87].mxu1 }
 0x1a7   : > { %v2984_v40 = vadd.f32 %v2983_v38, %v2982_v33 }
 0x1a8   : > { %v2060_v42 = vadd.f32 %v2981_v31, %v1899_v35  ;;  %v1902_v46 = vadd.f32 %v2872_v36, %v3511_v23 }
 0x1aa   : > { %2156 = vst [vmem:[%s3558_s13 + $0x50] sm:$0xff] %v2060_v42  ;;  %v2187_v47 = vadd.f32 %v2186_v20, %v2060_v42  ;;  %v2225_v48 = vmul.f32 %v2060_v42, %v2060_v42  ;;  %v2063_v7 = vadd.f32 %v2984_v40, %v1902_v46  ;;  %v2873_v50 = vpop.f32.mrb[88].mxu0 }
 0x1ab   : > { %v2985_v52 = vpop.f32.mrb[88].mxu1  ;;  %v2874_v56 = vpop.f32.mrb[89].mxu0 }
 0x1ac   : > { %v2256_v58 = vadd.f32 %v2255_v8, %v2225_v48  ;;  %2157 = vst [vmem:[%s3558_s13 + $0x58] sm:$0xff] %v2063_v7  ;;  %v2188_v9 = vadd.f32 %v2187_v47, %v2063_v7  ;;  %v2226_v53 = vmul.f32 %v2063_v7, %v2063_v7  ;;  %v2875_v59 = vadd.f32 %v2874_v56, %v2873_v50  ;;  %v2986_v21 = vpop.f32.mrb[89].mxu1  ;;  %v2876_v60 = vpop.f32.mrb[90].mxu0 }
 0x1ad   : > { %v2987_v61 = vadd.f32 %v2986_v21, %v2985_v52  ;;  %v2988_v62 = vpop.f32.mrb[90].mxu1  ;;  %v2877_v55 = vpop.f32.mrb[91].mxu0 }
 0x1ae   : > { %v2257_v23 = vadd.f32 %v2256_v58, %v2226_v53  ;;  %v1907_v2 = vadd.f32 %v2875_v59, %v3513_v37  ;;  %v2878_v49 = vadd.f32 %v2877_v55, %v2876_v60  ;;  %v2989_v4 = vpop.f32.mrb[91].mxu1 }
 0x1af   : > { %v2990_v10 = vadd.f32 %v2989_v4, %v2988_v62 }
 0x1b0   : > { %v2068_v12 = vadd.f32 %v2987_v61, %v1907_v2  ;;  %v1910_v13 = vadd.f32 %v2878_v49, %v3515_v39 }
 0x1b2   : > { %2158 = vst [vmem:[%s3558_s13 + $0x60] sm:$0xff] %v2068_v12  ;;  %v2189_v14 = vadd.f32 %v2188_v9, %v2068_v12  ;;  %v2227_v15 = vmul.f32 %v2068_v12, %v2068_v12  ;;  %v2071_v16 = vadd.f32 %v2990_v10, %v1910_v13  ;;  %v2879_v17 = vpop.f32.mrb[92].mxu0 }
 0x1b3   : > { %v2991_v51 = vpop.f32.mrb[92].mxu1  ;;  %v2880_v18 = vpop.f32.mrb[93].mxu0 }
 0x1b4   : > { %v2258_v29 = vadd.f32 %v2257_v23, %v2227_v15  ;;  %2159 = vst [vmem:[%s3558_s13 + $0x68] sm:$0xff] %v2071_v16  ;;  %v2190_v20 = vadd.f32 %v2189_v14, %v2071_v16  ;;  %v2228_v24 = vmul.f32 %v2071_v16, %v2071_v16  ;;  %v2881_v28 = vadd.f32 %v2880_v18, %v2879_v17  ;;  %v2992_v37 = vpop.f32.mrb[93].mxu1  ;;  %v2882_v5 = vpop.f32.mrb[94].mxu0 }
 0x1b5   : > { %v2993_v32 = vadd.f32 %v2992_v37, %v2991_v51  ;;  %v2994_v31 = vpop.f32.mrb[94].mxu1  ;;  %v2883_v33 = vpop.f32.mrb[95].mxu0 }
 0x1b6   : > { %v2259_v39 = vadd.f32 %v2258_v29, %v2228_v24  ;;  %v1915_v34 = vadd.f32 %v2881_v28, %v3517_v54  ;;  %v2884_v8 = vadd.f32 %v2883_v33, %v2882_v5  ;;  %v2995_v35 = vpop.f32.mrb[95].mxu1 }
 0x1b7   : > { %v2996_v36 = vadd.f32 %v2995_v35, %v2994_v31 }
 0x1b8   : > { %v2076_v38 = vadd.f32 %v2993_v32, %v1915_v34  ;;  %v1918_v40 = vadd.f32 %v2884_v8, %v3519_v57 }
 0x1ba   : > { %2160 = vst [vmem:[%s3558_s13 + $0x70] sm:$0xff] %v2076_v38  ;;  %v2191_v42 = vadd.f32 %v2190_v20, %v2076_v38  ;;  %v2229_v46 = vmul.f32 %v2076_v38, %v2076_v38  ;;  %v2079_v47 = vadd.f32 %v2996_v36, %v1918_v40  ;;  %v2885_v48 = vpop.f32.mrb[96].mxu0 }
 0x1bb   : > { %v2997_v7 = vpop.f32.mrb[96].mxu1  ;;  %v2886_v50 = vpop.f32.mrb[97].mxu0 }
 0x1bc   : > { %v2260_v52 = vadd.f32 %v2259_v39, %v2229_v46  ;;  %2161 = vst [vmem:[%s3558_s13 + $0x78] sm:$0xff] %v2079_v47  ;;  %v2192_v56 = vadd.f32 %v2191_v42, %v2079_v47  ;;  %v2230_v58 = vmul.f32 %v2079_v47, %v2079_v47  ;;  %v2887_v9 = vadd.f32 %v2886_v50, %v2885_v48  ;;  %v2998_v54 = vpop.f32.mrb[97].mxu1  ;;  %v2888_v53 = vpop.f32.mrb[98].mxu0 }
 0x1bd   : > { %v2999_v59 = vadd.f32 %v2998_v54, %v2997_v7  ;;  %v3000_v21 = vpop.f32.mrb[98].mxu1  ;;  %v2889_v60 = vpop.f32.mrb[99].mxu0 }
 0x1be   : > { %v2261_v57 = vadd.f32 %v2260_v52, %v2230_v58  ;;  %v1923_v61 = vadd.f32 %v2887_v9, %v3521_v6  ;;  %v2890_v62 = vadd.f32 %v2889_v60, %v2888_v53  ;;  %v3001_v55 = vpop.f32.mrb[99].mxu1 }
 0x1bf   : > { %v3002_v23 = vadd.f32 %v3001_v55, %v3000_v21 }
 0x1c0   : > { %v2084_v2 = vadd.f32 %v2999_v59, %v1923_v61  ;;  %v1926_v49 = vadd.f32 %v2890_v62, %v3523_v11 }
 0x1c2   : > { %2162 = vst [vmem:[%s3558_s13 + $0x80] sm:$0xff] %v2084_v2  ;;  %v2193_v4 = vadd.f32 %v2192_v56, %v2084_v2  ;;  %v2231_v10 = vmul.f32 %v2084_v2, %v2084_v2  ;;  %v2087_v12 = vadd.f32 %v3002_v23, %v1926_v49  ;;  %v2891_v13 = vpop.f32.mrb[100].mxu0 }
 0x1c3   : > { %v3003_v14 = vpop.f32.mrb[100].mxu1  ;;  %v2892_v15 = vpop.f32.mrb[101].mxu0 }
 0x1c4   : > { %v2262_v16 = vadd.f32 %v2261_v57, %v2231_v10  ;;  %2163 = vst [vmem:[%s3558_s13 + $0x88] sm:$0xff] %v2087_v12  ;;  %v2194_v17 = vadd.f32 %v2193_v4, %v2087_v12  ;;  %v2232_v51 = vmul.f32 %v2087_v12, %v2087_v12  ;;  %v2893_v18 = vadd.f32 %v2892_v15, %v2891_v13  ;;  %v3004_v6 = vpop.f32.mrb[101].mxu1  ;;  %v2894_v29 = vpop.f32.mrb[102].mxu0 }
 0x1c5   : > { %v3005_v20 = vadd.f32 %v3004_v6, %v3003_v14  ;;  %v3006_v24 = vpop.f32.mrb[102].mxu1  ;;  %v2895_v28 = vpop.f32.mrb[103].mxu0 }
 0x1c6   : > { %v2263_v11 = vadd.f32 %v2262_v16, %v2232_v51  ;;  %v1931_v37 = vadd.f32 %v2893_v18, %v3525_v25  ;;  %v2896_v5 = vadd.f32 %v2895_v28, %v2894_v29  ;;  %v3007_v32 = vpop.f32.mrb[103].mxu1 }
 0x1c7   : > { %v3008_v31 = vadd.f32 %v3007_v32, %v3006_v24 }
 0x1c8   : > { %v2092_v33 = vadd.f32 %v3005_v20, %v1931_v37  ;;  %v1934_v39 = vadd.f32 %v2896_v5, %v3527_v27 }
 0x1ca   : > { %2164 = vst [vmem:[%s3558_s13 + $0x90] sm:$0xff] %v2092_v33  ;;  %v2195_v34 = vadd.f32 %v2194_v17, %v2092_v33  ;;  %v2233_v8 = vmul.f32 %v2092_v33, %v2092_v33  ;;  %v2095_v35 = vadd.f32 %v3008_v31, %v1934_v39  ;;  %v2897_v36 = vpop.f32.mrb[104].mxu0 }
 0x1cb   : > { %v3009_v38 = vpop.f32.mrb[104].mxu1  ;;  %v2898_v40 = vpop.f32.mrb[105].mxu0 }
 0x1cc   : > { %v2264_v42 = vadd.f32 %v2263_v11, %v2233_v8  ;;  %2165 = vst [vmem:[%s3558_s13 + $0x98] sm:$0xff] %v2095_v35  ;;  %v2196_v46 = vadd.f32 %v2195_v34, %v2095_v35  ;;  %v2234_v47 = vmul.f32 %v2095_v35, %v2095_v35  ;;  %v2899_v48 = vadd.f32 %v2898_v40, %v2897_v36  ;;  %v3010_v25 = vpop.f32.mrb[105].mxu1  ;;  %v2900_v7 = vpop.f32.mrb[106].mxu0 }
 0x1cd   : > { %v3011_v50 = vadd.f32 %v3010_v25, %v3009_v38  ;;  %v3012_v52 = vpop.f32.mrb[106].mxu1  ;;  %v2901_v56 = vpop.f32.mrb[107].mxu0 }
 0x1ce   : > { %v2265_v27 = vadd.f32 %v2264_v42, %v2234_v47  ;;  %v1939_v58 = vadd.f32 %v2899_v48, %v3529_v43  ;;  %v2902_v9 = vadd.f32 %v2901_v56, %v2900_v7  ;;  %v3013_v54 = vpop.f32.mrb[107].mxu1 }
 0x1cf   : > { %v3014_v53 = vadd.f32 %v3013_v54, %v3012_v52 }
 0x1d0   : > { %v2100_v59 = vadd.f32 %v3011_v50, %v1939_v58  ;;  %v1942_v21 = vadd.f32 %v2902_v9, %v3531_v45 }
 0x1d2   : > { %2166 = vst [vmem:[%s3558_s13 + $0xa0] sm:$0xff] %v2100_v59  ;;  %v2197_v60 = vadd.f32 %v2196_v46, %v2100_v59  ;;  %v2235_v57 = vmul.f32 %v2100_v59, %v2100_v59  ;;  %v2103_v61 = vadd.f32 %v3014_v53, %v1942_v21  ;;  %v2903_v62 = vpop.f32.mrb[108].mxu0 }
 0x1d3   : > { %v3015_v55 = vpop.f32.mrb[108].mxu1  ;;  %v2904_v23 = vpop.f32.mrb[109].mxu0 }
 0x1d4   : > { %v2266_v2 = vadd.f32 %v2265_v27, %v2235_v57  ;;  %2167 = vst [vmem:[%s3558_s13 + $0xa8] sm:$0xff] %v2103_v61  ;;  %v2198_v49 = vadd.f32 %v2197_v60, %v2103_v61  ;;  %v2236_v4 = vmul.f32 %v2103_v61, %v2103_v61  ;;  %v2905_v10 = vadd.f32 %v2904_v23, %v2903_v62  ;;  %v3016_v43 = vpop.f32.mrb[109].mxu1  ;;  %v2906_v12 = vpop.f32.mrb[110].mxu0 }
 0x1d5   : > { %v3017_v13 = vadd.f32 %v3016_v43, %v3015_v55  ;;  %v3018_v14 = vpop.f32.mrb[110].mxu1  ;;  %v2907_v15 = vpop.f32.mrb[111].mxu0 }
 0x1d6   : > { %v2267_v45 = vadd.f32 %v2266_v2, %v2236_v4  ;;  %v1947_v16 = vadd.f32 %v2905_v10, %v3533_v63  ;;  %v2908_v17 = vadd.f32 %v2907_v15, %v2906_v12  ;;  %v3019_v51 = vpop.f32.mrb[111].mxu1 }
 0x1d7   : > { %v3020_v18 = vadd.f32 %v3019_v51, %v3018_v14 }
 0x1d8   : > { %v2108_v6 = vadd.f32 %v3017_v13, %v1947_v16  ;;  %v1950_v29 = vadd.f32 %v2908_v17, %v3535_v1 }
 0x1da   : > { %2168 = vst [vmem:[%s3558_s13 + $0xb0] sm:$0xff] %v2108_v6  ;;  %v2199_v20 = vadd.f32 %v2198_v49, %v2108_v6  ;;  %v2237_v24 = vmul.f32 %v2108_v6, %v2108_v6  ;;  %v2111_v28 = vadd.f32 %v3020_v18, %v1950_v29  ;;  %v2909_v11 = vpop.f32.mrb[112].mxu0 }
 0x1db   : > { %v3021_v37 = vpop.f32.mrb[112].mxu1  ;;  %v2910_v5 = vpop.f32.mrb[113].mxu0 }
 0x1dc   : > { %v2268_v32 = vadd.f32 %v2267_v45, %v2237_v24  ;;  %2169 = vst [vmem:[%s3558_s13 + $0xb8] sm:$0xff] %v2111_v28  ;;  %v2200_v31 = vadd.f32 %v2199_v20, %v2111_v28  ;;  %v2238_v33 = vmul.f32 %v2111_v28, %v2111_v28  ;;  %v2911_v39 = vadd.f32 %v2910_v5, %v2909_v11  ;;  %v3022_v63 = vpop.f32.mrb[113].mxu1  ;;  %v2912_v34 = vpop.f32.mrb[114].mxu0 }
 0x1dd   : > { %v3023_v8 = vadd.f32 %v3022_v63, %v3021_v37  ;;  %v3024_v35 = vpop.f32.mrb[114].mxu1  ;;  %v2913_v36 = vpop.f32.mrb[115].mxu0 }
 0x1de   : > { %v2269_v1 = vadd.f32 %v2268_v32, %v2238_v33  ;;  %v1955_v38 = vadd.f32 %v2911_v39, %v3537_v19  ;;  %v2914_v40 = vadd.f32 %v2913_v36, %v2912_v34  ;;  %v3025_v42 = vpop.f32.mrb[115].mxu1 }
 0x1df   : > { %v3026_v46 = vadd.f32 %v3025_v42, %v3024_v35 }
 0x1e0   : > { %v2116_v47 = vadd.f32 %v3023_v8, %v1955_v38  ;;  %v1958_v48 = vadd.f32 %v2914_v40, %v3539_v22 }
 0x1e2   : > { %2170 = vst [vmem:[%s3558_s13 + $0xc0] sm:$0xff] %v2116_v47  ;;  %v2201_v25 = vadd.f32 %v2200_v31, %v2116_v47  ;;  %v2239_v7 = vmul.f32 %v2116_v47, %v2116_v47  ;;  %v2119_v50 = vadd.f32 %v3026_v46, %v1958_v48  ;;  %v2915_v52 = vpop.f32.mrb[116].mxu0 }
 0x1e3   : > { %v3027_v56 = vpop.f32.mrb[116].mxu1  ;;  %v2916_v27 = vpop.f32.mrb[117].mxu0 }
 0x1e4   : > { %v2270_v58 = vadd.f32 %v2269_v1, %v2239_v7  ;;  %2171 = vst [vmem:[%s3558_s13 + $0xc8] sm:$0xff] %v2119_v50  ;;  %v2202_v9 = vadd.f32 %v2201_v25, %v2119_v50  ;;  %v2240_v54 = vmul.f32 %v2119_v50, %v2119_v50  ;;  %v2917_v53 = vadd.f32 %v2916_v27, %v2915_v52  ;;  %v3028_v19 = vpop.f32.mrb[117].mxu1  ;;  %v2918_v59 = vpop.f32.mrb[118].mxu0 }
 0x1e5   : > { %v3029_v21 = vadd.f32 %v3028_v19, %v3027_v56  ;;  %v3030_v60 = vpop.f32.mrb[118].mxu1  ;;  %v2919_v57 = vpop.f32.mrb[119].mxu0 }
 0x1e6   : > { %v2271_v22 = vadd.f32 %v2270_v58, %v2240_v54  ;;  %v1963_v61 = vadd.f32 %v2917_v53, %v3541_v41  ;;  %v2920_v62 = vadd.f32 %v2919_v57, %v2918_v59  ;;  %v3031_v55 = vpop.f32.mrb[119].mxu1 }
 0x1e7   : > { %v3032_v23 = vadd.f32 %v3031_v55, %v3030_v60 }
 0x1e8   : > { %v2124_v2 = vadd.f32 %v3029_v21, %v1963_v61  ;;  %v1966_v49 = vadd.f32 %v2920_v62, %v3543_v44 }
 0x1ea   : > { %2172 = vst [vmem:[%s3558_s13 + $0xd0] sm:$0xff] %v2124_v2  ;;  %v2203_v4 = vadd.f32 %v2202_v9, %v2124_v2  ;;  %v2241_v10 = vmul.f32 %v2124_v2, %v2124_v2  ;;  %v2127_v43 = vadd.f32 %v3032_v23, %v1966_v49  ;;  %v2921_v12 = vpop.f32.mrb[120].mxu0 }
 0x1eb   : > { %v3033_v13 = vpop.f32.mrb[120].mxu1  ;;  %v2922_v14 = vpop.f32.mrb[121].mxu0 }
 0x1ec   : > { %v2272_v15 = vadd.f32 %v2271_v22, %v2241_v10  ;;  %2173 = vst [vmem:[%s3558_s13 + $0xd8] sm:$0xff] %v2127_v43  ;;  %v2204_v45 = vadd.f32 %v2203_v4, %v2127_v43  ;;  %v2242_v16 = vmul.f32 %v2127_v43, %v2127_v43  ;;  %v2923_v17 = vadd.f32 %v2922_v14, %v2921_v12  ;;  %v3034_v41 = vpop.f32.mrb[121].mxu1  ;;  %v2924_v51 = vpop.f32.mrb[122].mxu0 }
 0x1ed   : > { %v3035_v18 = vadd.f32 %v3034_v41, %v3033_v13  ;;  %v3036_v6 = vpop.f32.mrb[122].mxu1  ;;  %v2925_v29 = vpop.f32.mrb[123].mxu0 }
 0x1ee   : > { %v2273_v44 = vadd.f32 %v2272_v15, %v2242_v16  ;;  %v1971_v20 = vadd.f32 %v2923_v17, %v3545_v0  ;;  %v2926_v24 = vadd.f32 %v2925_v29, %v2924_v51  ;;  %v3037_v28 = vpop.f32.mrb[123].mxu1 }
 0x1ef   : > { %v3038_v11 = vadd.f32 %v3037_v28, %v3036_v6 }
 0x1f0   : > { %v2132_v37 = vadd.f32 %v3035_v18, %v1971_v20  ;;  %v1974_v5 = vadd.f32 %v2926_v24, %v3547_v3 }
 0x1f2   : > { %2174 = vst [vmem:[%s3558_s13 + $0xe0] sm:$0xff] %v2132_v37  ;;  %v2205_v32 = vadd.f32 %v2204_v45, %v2132_v37  ;;  %v2243_v31 = vmul.f32 %v2132_v37, %v2132_v37  ;;  %v2135_v33 = vadd.f32 %v3038_v11, %v1974_v5  ;;  %v2927_v39 = vpop.f32.mrb[124].mxu0 }
 0x1f3   : > { %v3039_v63 = vpop.f32.mrb[124].mxu1  ;;  %v2928_v34 = vpop.f32.mrb[125].mxu0 }
 0x1f4   : > { %v2274_v8 = vadd.f32 %v2273_v44, %v2243_v31  ;;  %2175 = vst [vmem:[%s3558_s13 + $0xe8] sm:$0xff] %v2135_v33  ;;  %v2206_v35 = vadd.f32 %v2205_v32, %v2135_v33  ;;  %v2244_v36 = vmul.f32 %v2135_v33, %v2135_v33  ;;  %v2929_v1 = vadd.f32 %v2928_v34, %v2927_v39  ;;  %v3040_v0 = vpop.f32.mrb[125].mxu1  ;;  %v2930_v38 = vpop.f32.mrb[126].mxu0 }
 0x1f5   : > { %v3041_v40 = vadd.f32 %v3040_v0, %v3039_v63  ;;  %v3042_v42 = vpop.f32.mrb[126].mxu1  ;;  %v2931_v46 = vpop.f32.mrb[127].mxu0 }
 0x1f6   : > { %v2275_v3 = vadd.f32 %v2274_v8, %v2244_v36  ;;  %v1979_v47 = vadd.f32 %v2929_v1, %v3549_v26  ;;  %v2932_v48 = vadd.f32 %v2931_v46, %v2930_v38  ;;  %v3043_v25 = vpop.f32.mrb[127].mxu1 }
 0x1f7   : > { %v3044_v7 = vadd.f32 %v3043_v25, %v3042_v42 }
 0x1f8   : > { %v2140_v50 = vadd.f32 %v3041_v40, %v1979_v47  ;;  %v1982_v52 = vadd.f32 %v2932_v48, %v3551_v30 }
 0x1fa   : > { %2176 = vst [vmem:[%s3558_s13 + $0xf0] sm:$0xff] %v2140_v50  ;;  %v2207_v56 = vadd.f32 %v2206_v35, %v2140_v50  ;;  %v2245_v27 = vmul.f32 %v2140_v50, %v2140_v50  ;;  %v2143_v58 = vadd.f32 %v3044_v7, %v1982_v52 }
 0x1fc   : > { %v2276_v9 = vadd.f32 %v2275_v3, %v2245_v27  ;;  %2177 = vst [vmem:[%s3558_s13 + $0xf8] sm:$0xff] %v2143_v58  ;;  %v2208_v54 = vadd.f32 %v2207_v56, %v2143_v58  ;;  %v2246_v53 = vmul.f32 %v2143_v58, %v2143_v58 }
 0x1fe   : > { %v2209_v19 = vrot.slane %v2208_v54, 4  ;;  %v2277_v59 = vadd.f32 %v2276_v9, %v2246_v53 }
 0x200   : > { %v2210_v26 = vadd.f32 %v2209_v19, %v2208_v54  ;;  %v2278_v21 = vrot.slane %v2277_v59, 4 }
 0x202   : > { %v2211_v60 = vrot.slane %v2210_v26, 2  ;;  %v2279_v57 = vadd.f32 %v2278_v21, %v2277_v59 }
 0x204   : > { %v2212_v22 = vadd.f32 %v2211_v60, %v2210_v26  ;;  %v2280_v61 = vrot.slane %v2279_v57, 2 }
 0x206   : > { %v2213_v30 = vrot.slane %v2212_v22, 1  ;;  %v2281_v62 = vadd.f32 %v2280_v61, %v2279_v57 }
 0x208   : > { %v2214_v55 = vadd.f32 %v2213_v30, %v2212_v22  ;;  %v2282_v23 = vrot.slane %v2281_v62, 1 }
 0x20a   : > { %v2283_v2 = vadd.f32 %v2282_v23, %v2281_v62  ;;  %2284 = vst [vmem:[%s217_s17] sm:$0x1] %v2214_v55 }
 0x20c   : > { %2285 = vst [vmem:[%s220_s20] sm:$0x1] %v2283_v2 }
 0x20d PF: > { %s15_s15 = sadd.s32 1, %s3123_s15  }
 0x20e   : > { %p12_p5 = scmp.ge.s32.totalorder %s15_s15, 4  }
 0x210   :  { %14 = sbr.rel (!%p12_p5) target bundleno = 1 (0x1), region = 82 }

// kernel: discriminator_forward.7
= control target key start
LH: loop header
LB: loop body
LE: loop exit
PB: predicated region body
PF: predicated region fallthrough
CT: control target
= control target key end

     0   :  { %8 = vsyncpa [#allocation3], 0  ;;  %s12460_s0 = inlined_call_operand.vmem [shape: bf16[2,32768], index: 0, kind: input, shape index: {}]   ;;  %s12461_s1 = inlined_call_operand.hbm [shape: bf16[32768,1024], index: 1, kind: input, shape index: {}]   ;;  %s12462_s2 = inlined_call_operand.vmem [shape: f32[1,1024], index: 2, kind: input, shape index: {}]   ;;  %s12463_s3 = inlined_call_operand.vmem [shape: f32[2,1024], index: 3, kind: output, shape index: {}]  }
   0x1   :  { %10 = vsyncpa [#allocation3 + $0x1], 0  ;;  %s11081_s12 = smov 0   ;;  %s11083_s13 = smov 0  }
   0x2   :  { %s11085_s14 = smov 0   ;;  %s11087_s15 = smov 0  }
   0x3   :  { %s11089_s16 = smov 0   ;;  %s11091_s17 = smov 0  }
   0x4   :  { %s11093_s18 = smov 0   ;;  %s11095_s19 = smov 0  }
   0x5 LB: > { %s8173_s20 = sadd.s32 4294967295, %s11052_s19   ;;  %s28_s21 = sadd.s32 1, %s11044_s17  ;;  %s11052_s19 = sphi %s11095_s19, %s16_s19   ;;  %s11048_s18 = sphi %s11093_s18, %s12473_s18   ;;  %s11044_s17 = sphi %s11091_s17, %s12472_s17   ;;  %s11040_s16 = sphi %s11089_s16, %s12471_s16   ;;  %s11036_s15 = sphi %s11087_s15, %s12470_s15   ;;  %s11032_s14 = sphi %s11085_s14, %s12469_s14   ;;  %s11028_s13 = sphi %s11083_s13, %s12468_s13   ;;  %s11024_s12 = sphi %s11081_s12, %s12467_s12  }
   0x6   : > { %p29_p0 = scmp.ge.s32.totalorder %s28_s21, 8  ;;  %s31_s22 = sadd.s32 1, %s11048_s18 }
   0x7   : > { %s72_s23 = sadd.s32 1, %s11032_s14  ;;  %p79_p1 = scmp.ne.s32.totalorder %s11032_s14, %s11028_s13 }
   0x8   : > { %s12475_s21 = smov (%p29_p0, %s28_s21), 0  ;;  %s12477_s22 = smov (!%p29_p0, %s31_s22), %s11048_s18 }
   0x9   : > { %s67_s24 = ssub.s32 %s11044_s17, %s12475_s21  ;;  %p80_p2 = scmp.eq.s32.totalorder %s11052_s19, 0 }
   0xa   : > { %p33_p3 = scmp.ge.s32.totalorder %s12477_s22, 2  ;;  %p85_p4 = scmp.ne.s32.totalorder %s11028_s13, %s11024_s12 }
   0xb   : > { %p11132_p5 = por %p80_p2, %p79_p1  ;;  %p86_p6 = scmp.eq.s32.totalorder %s8173_s20, 0 }
   0xc   : > { %s12479_s22 = smov (%p33_p3, %s12477_s22), 0  ;;  %p9343_p8 = scmp.lt.s32.totalorder %s11052_s19, 16 }
   0xd   : > { %p11138_p7 = por %p86_p6, %p85_p4  ;;  %s68_s27 = ssub.s32 %s11048_s18, %s12479_s22 }
   0xe   : > { %s69_s28 = sor.u32 %s68_s27, %s67_s24  ;;  %s175_s29 = sand.u32 1, %s11032_s14  }
   0xf   : > { %p70_p9 = scmp.eq.s32.totalorder %s69_s28, 0  ;;  %s8177_s30 = sshll.u32 %s175_s29, 13 }
  0x10   : > { %s8179_s4 = sshll.u32 %s11048_s18, 2  ;;  %s9216_s6 = sshll.u32 %s11044_s17, 12 }
  0x11   : > { %s11148_s5 = scalar_select %p70_p9, %s11032_s14, %s72_s23  }
  0x12   : > { %s186_s7 = sadd.s32 %s9216_s6, %s8179_s4  ;;  %s179_s8 = scalar_lea.vmem [#allocation2], %s8177_s30 }
  0x13   : > { %s189_s9 = sshll.u32 %s179_s8, 4  ;;  %s8181_s10 = sshll.u32 %s186_s7, 6  ;;  %s11151_s9 = int_to_ptr.vmem [resolvable:$true] %s189_s9 }
  0x14   : > { %s11156_s20 = scalar_lea.hbm %s12461_s1, %s8181_s10  ;;  %p11162_p10 = pnand %p9343_p8, %p11132_p5 }
  0x15   : > { %s11166_s24 = scalar_lea.sflag [#allocation3], %s175_s29  ;;  %s10956_s27 = scalar_lea.hbm %s11156_s20, 131072 }
  0x16   : > { %p10957_p11 = scmp.ne.s32.totalorder %s11156_s20, %s10956_s27  ;;  %p10958_p12 = pneg %p11162_p10 }
  0x17   : > { %s10961_s30 = scalar_lea.hbm %s12461_s1, 2097152  ;;  %p10962_p1 = scmp.lt.u32.totalorder %s11156_s20, %s12461_s1 }
  0x18   : > { %p10959_p13 = pnand %p10958_p12, %p10957_p11  ;;  %p10963_p2 = scmp.lt.u32.totalorder %s10961_s30, %s10956_s27 }
  0x19   : > { %p10965_p4 = scmp.lt.u32.totalorder %s10956_s27, %s11156_s20 }
  0x1a   : > { %p10960_p0 = pneg %p10959_p13  ;;  %p10964_p3 = por %p10963_p2, %p10962_p1 }
  0x1c   : > { %p10966_p5 = por %p10965_p4, %p10964_p3 }
  0x1e   : > { %p10967_p6 = pnand %p10966_p5, %p10960_p0 }
  0x20   : > { %10970 = shalt.err (!%p10967_p6)
}
  0x21   : > { %s10971_s29 = scalar_lea.vmem %s11151_s9, 131072  ;;  %s11054_s7 = smov [#allocation2]  }
  0x22   : > { %p10972_p8 = scmp.ne.s32.totalorder %s11151_s9, %s10971_s29  ;;  %s10976_s8 = sshll.u32 %s11054_s7, 4  ;;  %s10977_s8 = int_to_ptr.vmem [resolvable:$false] %s10976_s8 }
  0x23   : > { %s10978_s10 = scalar_lea.vmem %s10977_s8, 262144  ;;  %p10979_p13 = scmp.lt.s32.totalorder %s11151_s9, %s10977_s8 }
  0x24   : > { %p10974_p9 = pnand %p10972_p8, %p10958_p12  ;;  %p10980_p1 = scmp.lt.s32.totalorder %s10978_s10, %s10971_s29 }
  0x26   : > { %p10975_p11 = pneg %p10974_p9  ;;  %p10981_p2 = por %p10980_p1, %p10979_p13 }
  0x28   : > { %p10982_p3 = pnand %p10981_p2, %p10975_p11 }
  0x2a   : > { %10985 = shalt.err (!%p10982_p3)
}
  0x2b   : > { %s11055_s11 = smov 512   ;;  %s11056_s12 = smov 256  }
  0x2c   : > { %s11057_s27 = smov 16   ;;  %p8182_p12 = scmp.ge.s32.totalorder %s11052_s19, 1 }
  0x2d   : > { %9342 = dma.hbm_to_vmem [thread:$0]  (!%p11162_p10), %s11156_s20, 131072, %s11151_s9, %s11166_s24, %s11055_s11, %s11056_s12, %s11057_s27  }
  0x2e   : > { %p205_p0 = scmp.lt.s32.totalorder %s11052_s19, 17 }
  0x30   : > { %p206_p4 = pnand %p8182_p12, %p205_p0 }
  0x31   : > { %s211_s25 = sand.u32 (!%p206_p4), 1, %s11028_s13  }
  0x32   : > { %209 = sbr.rel (%p206_p4) target bundleno = 1330 (0x532), region = 32  ;;  %s8183_s28 = sshll.u32 (!%p206_p4), %s211_s25, 13 }
  0x33   : > { %s212_s30 = scalar_lea.sflag (!%p206_p4), [#allocation3], %s211_s25  ;;  %s11197_s4 = scalar_lea.vmem (!%p206_p4), [#allocation2], %s8183_s28 }
  0x39   : > { %11019 = dma.done.wait (%p11138_p7), %s212_s30, 131072  }
  0x3a   : > { %11021 = vsyncadd (%p11138_p7), %s212_s30, 4294836224  ;;  %s8184_s23 = sshll.u32 %s11036_s15, 5  ;;  %s8185_s9 = sshll.u32 %s11040_s16, 2 }
  0x3b   : > { %p257_p10 = scmp.lt.s32.totalorder %s8184_s23, 255  ;;  %p266_p5 = scmp.lt.s32.totalorder %s8185_s9, 7 }
  0x3c   : > { %p8188_p7 = scmp.ne.s32.totalorder %s11036_s15, 0 }
  0x3d   : > { %s12481_s23 = smov (!%p257_p10, %s8184_s23), 255  ;;  %s12483_s9 = smov (!%p266_p5, %s8185_s9), 7 }
  0x3e   : > { %s11210_s6 = scalar_lea.vmem %s12460_s0, %s12481_s23  ;;  %s268_s26 = scalar_lea.vmem %s12462_s2, %s12483_s9  ;;  %v11058_v0 = vmov (!%p8188_p7), 0.0  }
  0x3f   : > { %s8187_s8 = sshll.u32 %s12483_s9, 1  ;;  %283 = sbr.rel (%p8188_p7) target bundleno = 70 (0x46), region = 40 }
  0x40   : > { %s11220_s16 = scalar_lea.vmem %s12463_s3, %s8187_s8 }
  0x41   : > { %284 = vst [vmem:[%s11220_s16] sm:$0xff] (!%p8188_p7), %v11058_v0 }
  0x46 PF: > { %v9414_v1 = vld [vmem:[%s11197_s4 + $0x4] ss:$16 sps:$4 sm:$0xff]   ;;  %v9416_v2 = vld [vmem:[%s11197_s4 + $0xc] ss:$16 sps:$4 sm:$0xff]   ;;  %v9418_v3 = vld [vmem:[%s11197_s4] ss:$16 sps:$4 sm:$0xff]   ;;  %v1322_v39 = vlaneseq }
  0x47   : > { %6666 = vmatprep.subr.bf16.mxu0 %v9414_v1  ;;  %v9419_v4 = vld [vmem:[%s11197_s4 + $0x8] ss:$16 sps:$4 sm:$0xff]   ;;  %7322 = vmatprep.subr.bf16.mxu1 %v9416_v2  ;;  %v9420_v5 = vld [vmem:[%s11197_s4 + $0x24] ss:$16 sps:$4 sm:$0xff]   ;;  %v9422_v6 = vld [vmem:[%s11197_s4 + $0x2c] ss:$16 sps:$4 sm:$0xff]  }
  0x48   : > { %6667 = vmatpush1.bf16.msra.mxu0 %v9418_v3  ;;  %7323 = vmatpush1.bf16.msra.mxu1 %v9419_v4  ;;  %v9424_v7 = vld [vmem:[%s11197_s4 + $0x20] ss:$16 sps:$4 sm:$0xff]   ;;  %v9425_v8 = vld [vmem:[%s11197_s4 + $0x28] ss:$16 sps:$4 sm:$0xff]   ;;  %v9426_v9 = vld [vmem:[%s11197_s4 + $0x44] ss:$16 sps:$4 sm:$0xff]  }
  0x49   : > { %6668 = vmatprep.subr.bf16.mxu0 %v9420_v5  ;;  %7324 = vmatprep.subr.bf16.mxu1 %v9422_v6  ;;  %v9428_v10 = vld [vmem:[%s11197_s4 + $0x4c] ss:$16 sps:$4 sm:$0xff]   ;;  %v9430_v11 = vld [vmem:[%s11197_s4 + $0x40] ss:$16 sps:$4 sm:$0xff]   ;;  %v9431_v12 = vld [vmem:[%s11197_s4 + $0x48] ss:$16 sps:$4 sm:$0xff]  }
  0x4a   : > { %v9432_v13 = vld [vmem:[%s11197_s4 + $0x64] ss:$16 sps:$4 sm:$0xff]   ;;  %v9434_v14 = vld [vmem:[%s11197_s4 + $0x6c] ss:$16 sps:$4 sm:$0xff]   ;;  %v9436_v15 = vld [vmem:[%s11197_s4 + $0x60] ss:$16 sps:$4 sm:$0xff]  }
  0x4b   : > { %v9437_v16 = vld [vmem:[%s11197_s4 + $0x68] ss:$16 sps:$4 sm:$0xff]   ;;  %v9438_v17 = vld [vmem:[%s11197_s4 + $0x84] ss:$16 sps:$4 sm:$0xff]   ;;  %v9440_v18 = vld [vmem:[%s11197_s4 + $0x8c] ss:$16 sps:$4 sm:$0xff]  }
  0x4c   : > { %6669 = vmatpush1.bf16.msra.mxu0 %v9424_v7  ;;  %7325 = vmatpush1.bf16.msra.mxu1 %v9425_v8  ;;  %v9442_v19 = vld [vmem:[%s11197_s4 + $0x80] ss:$16 sps:$4 sm:$0xff]   ;;  %v9443_v20 = vld [vmem:[%s11197_s4 + $0x88] ss:$16 sps:$4 sm:$0xff]   ;;  %v9444_v21 = vld [vmem:[%s11197_s4 + $0xa4] ss:$16 sps:$4 sm:$0xff]  }
  0x4d   : > { %6670 = vmatprep.subr.bf16.mxu0 %v9426_v9  ;;  %7326 = vmatprep.subr.bf16.mxu1 %v9428_v10  ;;  %v9446_v22 = vld [vmem:[%s11197_s4 + $0xac] ss:$16 sps:$4 sm:$0xff]   ;;  %v9448_v23 = vld [vmem:[%s11197_s4 + $0xa0] ss:$16 sps:$4 sm:$0xff]   ;;  %v9449_v24 = vld [vmem:[%s11197_s4 + $0xa8] ss:$16 sps:$4 sm:$0xff]  }
  0x4e   : > { %v9450_v25 = vld [vmem:[%s11197_s4 + $0xc4] ss:$16 sps:$4 sm:$0xff]   ;;  %v9452_v26 = vld [vmem:[%s11197_s4 + $0xcc] ss:$16 sps:$4 sm:$0xff]   ;;  %v9454_v27 = vld [vmem:[%s11197_s4 + $0xc0] ss:$16 sps:$4 sm:$0xff]  }
  0x4f   : > { %v9455_v28 = vld [vmem:[%s11197_s4 + $0xc8] ss:$16 sps:$4 sm:$0xff]   ;;  %v9456_v29 = vld [vmem:[%s11197_s4 + $0xe4] ss:$16 sps:$4 sm:$0xff]   ;;  %v9458_v30 = vld [vmem:[%s11197_s4 + $0xec] ss:$16 sps:$4 sm:$0xff]  }
  0x50   : > { %6671 = vmatpush1.bf16.msra.mxu0 %v9430_v11  ;;  %7327 = vmatpush1.bf16.msra.mxu1 %v9431_v12  ;;  %v9460_v31 = vld [vmem:[%s11197_s4 + $0xe0] ss:$16 sps:$4 sm:$0xff]   ;;  %v9461_v32 = vld [vmem:[%s11197_s4 + $0xe8] ss:$16 sps:$4 sm:$0xff]   ;;  %v9462_v33 = vld [vmem:[%s11197_s4 + $0x104] ss:$16 sps:$4 sm:$0xff]  }
  0x51   : > { %6672 = vmatprep.subr.bf16.mxu0 %v9432_v13  ;;  %7328 = vmatprep.subr.bf16.mxu1 %v9434_v14  ;;  %v9464_v34 = vld [vmem:[%s11197_s4 + $0x10c] ss:$16 sps:$4 sm:$0xff]   ;;  %v9466_v35 = vld [vmem:[%s11197_s4 + $0x100] ss:$16 sps:$4 sm:$0xff]   ;;  %v9467_v36 = vld [vmem:[%s11197_s4 + $0x108] ss:$16 sps:$4 sm:$0xff]  }
  0x52   : > { %v11059_v37 = vmov 1966171168   ;;  %v9468_v40 = vld [vmem:[%s11197_s4 + $0x124] ss:$16 sps:$4 sm:$0xff]   ;;  %v9470_v41 = vld [vmem:[%s11197_s4 + $0x12c] ss:$16 sps:$4 sm:$0xff]  }
  0x53   : > { %v1320_v38 = vunpack.c.l.s4 %v11059_v37  ;;  %v9472_v42 = vld [vmem:[%s11197_s4 + $0x120] ss:$16 sps:$4 sm:$0xff]   ;;  %v11263_v44 = vshrl.u32 %v1322_v39, 7  ;;  %v9473_v45 = vld [vmem:[%s11197_s4 + $0x128] ss:$16 sps:$4 sm:$0xff]   ;;  %p9213_p6 = scmp.ne.s32.totalorder %s11036_s15, 7 }
  0x54   : > { %6673 = vmatpush1.bf16.msra.mxu0 %v9436_v15  ;;  %7329 = vmatpush1.bf16.msra.mxu1 %v9437_v16  ;;  %v9474_v46 = vld [vmem:[%s11197_s4 + $0x144] ss:$16 sps:$4 sm:$0xff]   ;;  %v9476_v47 = vld [vmem:[%s11197_s4 + $0x14c] ss:$16 sps:$4 sm:$0xff]   ;;  %v9478_v48 = vld [vmem:[%s11197_s4 + $0x140] ss:$16 sps:$4 sm:$0xff]  }
  0x55   : > { %6674 = vmatprep.subr.bf16.mxu0 %v9438_v17  ;;  %7330 = vmatprep.subr.bf16.mxu1 %v9440_v18  ;;  %v1321_v43 = vunpack.c.0.s8 %v1320_v38  ;;  %v9479_v49 = vld [vmem:[%s11197_s4 + $0x148] ss:$16 sps:$4 sm:$0xff]   ;;  %v9480_v51 = vld [vmem:[%s11197_s4 + $0x164] ss:$16 sps:$4 sm:$0xff]   ;;  %v9482_v52 = vld [vmem:[%s11197_s4 + $0x16c] ss:$16 sps:$4 sm:$0xff]  }
  0x56   : > { %v11276_v53 = vld [vmem:[%s11210_s6] sm:$0xff]  ;;  %v9485_v56 = vld [vmem:[%s11197_s4 + $0x168] ss:$16 sps:$4 sm:$0xff]   ;;  %v9488_v58 = vld [vmem:[%s11197_s4 + $0x18c] ss:$16 sps:$4 sm:$0xff]  }
  0x57   : > { %v11271_v50 = vsub.s32 %v1321_v43, %v11263_v44  ;;  %v9484_v54 = vld [vmem:[%s11197_s4 + $0x160] ss:$16 sps:$4 sm:$0xff]   ;;  %v9486_v57 = vld [vmem:[%s11197_s4 + $0x184] ss:$16 sps:$4 sm:$0xff]   ;;  %v9491_v62 = vld [vmem:[%s11197_s4 + $0x188] ss:$16 sps:$4 sm:$0xff]  }
  0x58   : > { %6675 = vmatpush1.bf16.msra.mxu0 %v9442_v19  ;;  %7331 = vmatpush1.bf16.msra.mxu1 %v9443_v20  ;;  %v9490_v60 = vld [vmem:[%s11197_s4 + $0x180] ss:$16 sps:$4 sm:$0xff]   ;;  %v9492_v63 = vld [vmem:[%s11197_s4 + $0x1a4] ss:$16 sps:$4 sm:$0xff]   ;;  %v9494_v0 = vld [vmem:[%s11197_s4 + $0x1ac] ss:$16 sps:$4 sm:$0xff]  }
  0x59   : > { %6676 = vmatprep.subr.bf16.mxu0 %v9444_v21  ;;  %7332 = vmatprep.subr.bf16.mxu1 %v9446_v22  ;;  %v1325_v55 = vrot.slane %v11276_v53, %v11271_v50  ;;  %v9496_v1 = vld [vmem:[%s11197_s4 + $0x1a0] ss:$16 sps:$4 sm:$0xff]   ;;  %v9497_v2 = vld [vmem:[%s11197_s4 + $0x1a8] ss:$16 sps:$4 sm:$0xff]   ;;  %v9498_v3 = vld [vmem:[%s11197_s4 + $0x1c4] ss:$16 sps:$4 sm:$0xff]  }
  0x5a   : > { %v9500_v4 = vld [vmem:[%s11197_s4 + $0x1cc] ss:$16 sps:$4 sm:$0xff]   ;;  %v9502_v5 = vld [vmem:[%s11197_s4 + $0x1c0] ss:$16 sps:$4 sm:$0xff]   ;;  %v9503_v6 = vld [vmem:[%s11197_s4 + $0x1c8] ss:$16 sps:$4 sm:$0xff]  }
  0x5b   : > { %v1333_v59 = vcombine.high %v1325_v55, %v1325_v55  ;;  %v9504_v7 = vld [vmem:[%s11197_s4 + $0x1e4] ss:$16 sps:$4 sm:$0xff]   ;;  %v9506_v8 = vld [vmem:[%s11197_s4 + $0x1ec] ss:$16 sps:$4 sm:$0xff]   ;;  %v9508_v9 = vld [vmem:[%s11197_s4 + $0x1e0] ss:$16 sps:$4 sm:$0xff]   ;;  %v11303_v14 = vrot.slane %v1325_v55, %v11271_v50 }
  0x5c   : > { %6677 = vmatpush1.bf16.msra.mxu0 %v9448_v23  ;;  %7333 = vmatpush1.bf16.msra.mxu1 %v9449_v24  ;;  %v9509_v10 = vld [vmem:[%s11197_s4 + $0x1e8] ss:$16 sps:$4 sm:$0xff]   ;;  %v9512_v11 = vld [vmem:[%s11197_s4 + $0x204] ss:$16 sps:$4 sm:$0xff]   ;;  %v9515_v12 = vld [vmem:[%s11197_s4 + $0x20c] ss:$16 sps:$4 sm:$0xff]  }
  0x5d   : > { %6678 = vmatprep.subr.bf16.mxu0 %v9450_v25  ;;  %7334 = vmatprep.subr.bf16.mxu1 %v9452_v26  ;;  %v1355_v61 = vrot.slane %v1333_v59, %v11271_v50  ;;  %v9510_v13 = vld [vmem:[%s11197_s4 + $0x200] ss:$16 sps:$4 sm:$0xff]   ;;  %v9513_v15 = vld [vmem:[%s11197_s4 + $0x208] ss:$16 sps:$4 sm:$0xff]   ;;  %v9518_v16 = vld [vmem:[%s11197_s4 + $0x224] ss:$16 sps:$4 sm:$0xff]  }
  0x5e   : > { %v9521_v17 = vld [vmem:[%s11197_s4 + $0x22c] ss:$16 sps:$4 sm:$0xff]   ;;  %v9516_v19 = vld [vmem:[%s11197_s4 + $0x220] ss:$16 sps:$4 sm:$0xff]   ;;  %v9519_v20 = vld [vmem:[%s11197_s4 + $0x228] ss:$16 sps:$4 sm:$0xff]  }
  0x5f   : > { %6698 = vmatprep.mubr.bf16.mxu0 %v1355_v61  ;;  %7354 = vmatprep.mubr.bf16.mxu1 %v1355_v61  ;;  %v1365_v18 = vcombine.high %v1355_v61, %v1355_v61  ;;  %v9524_v21 = vld [vmem:[%s11197_s4 + $0x244] ss:$16 sps:$4 sm:$0xff]   ;;  %v9527_v22 = vld [vmem:[%s11197_s4 + $0x24c] ss:$16 sps:$4 sm:$0xff]   ;;  %v9522_v23 = vld [vmem:[%s11197_s4 + $0x240] ss:$16 sps:$4 sm:$0xff]  }
  0x60   : > { %6679 = vmatpush1.bf16.msra.mxu0 %v9454_v27  ;;  %7335 = vmatpush1.bf16.msra.mxu1 %v9455_v28  ;;  %v9525_v24 = vld [vmem:[%s11197_s4 + $0x248] ss:$16 sps:$4 sm:$0xff]   ;;  %v9530_v25 = vld [vmem:[%s11197_s4 + $0x264] ss:$16 sps:$4 sm:$0xff]   ;;  %v9533_v26 = vld [vmem:[%s11197_s4 + $0x26c] ss:$16 sps:$4 sm:$0xff]  }
  0x61   : > { %6680 = vmatprep.subr.bf16.mxu0 %v9456_v29  ;;  %7336 = vmatprep.subr.bf16.mxu1 %v9458_v30  ;;  %v9528_v27 = vld [vmem:[%s11197_s4 + $0x260] ss:$16 sps:$4 sm:$0xff]   ;;  %v9531_v28 = vld [vmem:[%s11197_s4 + $0x268] ss:$16 sps:$4 sm:$0xff]   ;;  %v9536_v29 = vld [vmem:[%s11197_s4 + $0x284] ss:$16 sps:$4 sm:$0xff]  }
  0x62   : > { %v9539_v30 = vld [vmem:[%s11197_s4 + $0x28c] ss:$16 sps:$4 sm:$0xff]   ;;  %v9548_v37 = vld [vmem:[%s11197_s4 + $0x2c4] ss:$16 sps:$4 sm:$0xff]   ;;  %v9546_v39 = vld [vmem:[%s11197_s4 + $0x2c0] ss:$16 sps:$4 sm:$0xff]  }
  0x63   : > { %v9551_v38 = vld [vmem:[%s11197_s4 + $0x2cc] ss:$16 sps:$4 sm:$0xff]   ;;  %v9552_v43 = vld [vmem:[%s11197_s4 + $0x2e0] ss:$16 sps:$4 sm:$0xff]   ;;  %v9567_v55 = vld [vmem:[%s11197_s4 + $0x328] ss:$16 sps:$4 sm:$0xff]  }
  0x64   : > { %6681 = vmatpush1.bf16.msra.mxu0 %v9460_v31  ;;  %7337 = vmatpush1.bf16.msra.mxu1 %v9461_v32  ;;  %v9534_v31 = vld [vmem:[%s11197_s4 + $0x280] ss:$16 sps:$4 sm:$0xff]   ;;  %v9537_v32 = vld [vmem:[%s11197_s4 + $0x288] ss:$16 sps:$4 sm:$0xff]   ;;  %v9581_v61 = vld [vmem:[%s11197_s4 + $0x36c] ss:$16 sps:$4 sm:$0xff]  }
  0x65   : > { %6682 = vmatprep.subr.bf16.mxu0 %v9462_v33  ;;  %7338 = vmatprep.subr.bf16.mxu1 %v9464_v34  ;;  %v9542_v33 = vld [vmem:[%s11197_s4 + $0x2a4] ss:$16 sps:$4 sm:$0xff]   ;;  %v9545_v34 = vld [vmem:[%s11197_s4 + $0x2ac] ss:$16 sps:$4 sm:$0xff]   ;;  %v9573_v59 = vld [vmem:[%s11197_s4 + $0x348] ss:$16 sps:$4 sm:$0xff]  }
  0x68   : > { %6683 = vmatpush1.bf16.msra.mxu0 %v9466_v35  ;;  %7339 = vmatpush1.bf16.msra.mxu1 %v9467_v36  ;;  %v9540_v35 = vld [vmem:[%s11197_s4 + $0x2a0] ss:$16 sps:$4 sm:$0xff]   ;;  %v9543_v36 = vld [vmem:[%s11197_s4 + $0x2a8] ss:$16 sps:$4 sm:$0xff]  }
  0x69   : > { %6684 = vmatprep.subr.bf16.mxu0 %v9468_v40  ;;  %7340 = vmatprep.subr.bf16.mxu1 %v9470_v41  ;;  %v9549_v40 = vld [vmem:[%s11197_s4 + $0x2c8] ss:$16 sps:$4 sm:$0xff]   ;;  %v9554_v41 = vld [vmem:[%s11197_s4 + $0x2e4] ss:$16 sps:$4 sm:$0xff]  }
  0x6c   : > { %6685 = vmatpush1.bf16.msra.mxu0 %v9472_v42  ;;  %7341 = vmatpush1.bf16.msra.mxu1 %v9473_v45  ;;  %v9557_v42 = vld [vmem:[%s11197_s4 + $0x2ec] ss:$16 sps:$4 sm:$0xff]   ;;  %v9555_v45 = vld [vmem:[%s11197_s4 + $0x2e8] ss:$16 sps:$4 sm:$0xff]  }
  0x6d   : > { %6686 = vmatprep.subr.bf16.mxu0 %v9474_v46  ;;  %7342 = vmatprep.subr.bf16.mxu1 %v9476_v47  ;;  %v9560_v46 = vld [vmem:[%s11197_s4 + $0x304] ss:$16 sps:$4 sm:$0xff]   ;;  %v9563_v47 = vld [vmem:[%s11197_s4 + $0x30c] ss:$16 sps:$4 sm:$0xff]  }
  0x70   : > { %6687 = vmatpush1.bf16.msra.mxu0 %v9478_v48  ;;  %7343 = vmatpush1.bf16.msra.mxu1 %v9479_v49  ;;  %v9558_v48 = vld [vmem:[%s11197_s4 + $0x300] ss:$16 sps:$4 sm:$0xff]   ;;  %v9561_v49 = vld [vmem:[%s11197_s4 + $0x308] ss:$16 sps:$4 sm:$0xff]  }
  0x71   : > { %6688 = vmatprep.subr.bf16.mxu0 %v9480_v51  ;;  %7344 = vmatprep.subr.bf16.mxu1 %v9482_v52  ;;  %v9566_v51 = vld [vmem:[%s11197_s4 + $0x324] ss:$16 sps:$4 sm:$0xff]   ;;  %v9569_v52 = vld [vmem:[%s11197_s4 + $0x32c] ss:$16 sps:$4 sm:$0xff]  }
  0x74   : > { %6689 = vmatpush1.bf16.msra.mxu0 %v9484_v54  ;;  %7345 = vmatpush1.bf16.msra.mxu1 %v9485_v56  ;;  %v9564_v54 = vld [vmem:[%s11197_s4 + $0x320] ss:$16 sps:$4 sm:$0xff]   ;;  %v9572_v56 = vld [vmem:[%s11197_s4 + $0x344] ss:$16 sps:$4 sm:$0xff]  }
  0x75   : > { %6690 = vmatprep.subr.bf16.mxu0 %v9486_v57  ;;  %7346 = vmatprep.subr.bf16.mxu1 %v9488_v58  ;;  %v9575_v57 = vld [vmem:[%s11197_s4 + $0x34c] ss:$16 sps:$4 sm:$0xff]   ;;  %v9570_v58 = vld [vmem:[%s11197_s4 + $0x340] ss:$16 sps:$4 sm:$0xff]  }
  0x78   : > { %6691 = vmatpush1.bf16.msra.mxu0 %v9490_v60  ;;  %7347 = vmatpush1.bf16.msra.mxu1 %v9491_v62  ;;  %v9578_v60 = vld [vmem:[%s11197_s4 + $0x364] ss:$16 sps:$4 sm:$0xff]   ;;  %v9576_v62 = vld [vmem:[%s11197_s4 + $0x360] ss:$16 sps:$4 sm:$0xff]  }
  0x79   : > { %6692 = vmatprep.subr.bf16.mxu0 %v9492_v63  ;;  %7348 = vmatprep.subr.bf16.mxu1 %v9494_v0  ;;  %v9579_v63 = vld [vmem:[%s11197_s4 + $0x368] ss:$16 sps:$4 sm:$0xff]   ;;  %v9584_v0 = vld [vmem:[%s11197_s4 + $0x384] ss:$16 sps:$4 sm:$0xff]  }
  0x7c   : > { %6693 = vmatpush1.bf16.msra.mxu0 %v9496_v1  ;;  %7349 = vmatpush1.bf16.msra.mxu1 %v9497_v2  ;;  %v9587_v1 = vld [vmem:[%s11197_s4 + $0x38c] ss:$16 sps:$4 sm:$0xff]   ;;  %v9582_v2 = vld [vmem:[%s11197_s4 + $0x380] ss:$16 sps:$4 sm:$0xff]  }
  0x7d   : > { %6694 = vmatprep.subr.bf16.mxu0 %v9498_v3  ;;  %7350 = vmatprep.subr.bf16.mxu1 %v9500_v4  ;;  %v9585_v3 = vld [vmem:[%s11197_s4 + $0x388] ss:$16 sps:$4 sm:$0xff]   ;;  %v9590_v4 = vld [vmem:[%s11197_s4 + $0x3a4] ss:$16 sps:$4 sm:$0xff]  }
  0x80   : > { %6695 = vmatpush1.bf16.msra.mxu0 %v9502_v5  ;;  %7351 = vmatpush1.bf16.msra.mxu1 %v9503_v6  ;;  %v9593_v5 = vld [vmem:[%s11197_s4 + $0x3ac] ss:$16 sps:$4 sm:$0xff]   ;;  %v9588_v6 = vld [vmem:[%s11197_s4 + $0x3a0] ss:$16 sps:$4 sm:$0xff]  }
  0x81   : > { %6696 = vmatprep.subr.bf16.mxu0 %v9504_v7  ;;  %7352 = vmatprep.subr.bf16.mxu1 %v9506_v8  ;;  %v9591_v7 = vld [vmem:[%s11197_s4 + $0x3a8] ss:$16 sps:$4 sm:$0xff]   ;;  %v9596_v8 = vld [vmem:[%s11197_s4 + $0x3c4] ss:$16 sps:$4 sm:$0xff]  }
  0x84   : > { %6697 = vmatpush1.bf16.msra.mxu0 %v9508_v9  ;;  %7353 = vmatpush1.bf16.msra.mxu1 %v9509_v10  ;;  %v9599_v9 = vld [vmem:[%s11197_s4 + $0x3cc] ss:$16 sps:$4 sm:$0xff]   ;;  %v1318_v10 = vcombine.high %v11276_v53, %v11276_v53  ;;  %v9603_v53 = vld [vmem:[%s11197_s4 + $0x3e8] ss:$16 sps:$4 sm:$0xff]  }
  0x85   : > { %6707 = vmatprep.subr.bf16.mxu0 %v9512_v11  ;;  %7363 = vmatprep.subr.bf16.mxu1 %v9515_v12  ;;  %v9594_v11 = vld [vmem:[%s11197_s4 + $0x3c0] ss:$16 sps:$4 sm:$0xff]   ;;  %v9597_v12 = vld [vmem:[%s11197_s4 + $0x3c8] ss:$16 sps:$4 sm:$0xff]  }
  0x87   : > { %6699 = vmatmul.mubr.bf16.vlgmr.msra.gmra.mrb[0].mxu0 %v11303_v14  ;;  %7355 = vmatmul.mubr.bf16.vlgmr.msra.gmra.mrb[0].mxu1 %v11303_v14 }
  0x88   : > { %6708 = vmatpush1.bf16.msra.mxu0 %v9510_v13  ;;  %7364 = vmatpush1.bf16.msra.mxu1 %v9513_v15  ;;  %v9602_v13 = vld [vmem:[%s11197_s4 + $0x3e4] ss:$16 sps:$4 sm:$0xff]   ;;  %v9605_v15 = vld [vmem:[%s11197_s4 + $0x3ec] ss:$16 sps:$4 sm:$0xff]  }
  0x89   : > { %6709 = vmatprep.subr.bf16.mxu0 %v9518_v16  ;;  %7365 = vmatprep.subr.bf16.mxu1 %v9521_v17  ;;  %v11369_v16 = vrot.slane %v1318_v10, %v11271_v50  ;;  %v9600_v17 = vld [vmem:[%s11197_s4 + $0x3e0] ss:$16 sps:$4 sm:$0xff]   ;;  %v9681_v10 = vld [vmem:[%s11197_s4 + $0x588] ss:$16 sps:$4 sm:$0xff]  }
  0x8a   : > { %6739 = vmatprep.mubr.bf16.mxu0 %v1365_v18  ;;  %7395 = vmatprep.mubr.bf16.mxu1 %v1365_v18  ;;  %v9608_v18 = vld [vmem:[%s11197_s4 + $0x404] ss:$16 sps:$4 sm:$0xff]  }
  0x8c   : > { %6710 = vmatpush1.bf16.msra.mxu0 %v9516_v19  ;;  %7366 = vmatpush1.bf16.msra.mxu1 %v9519_v20  ;;  %v9611_v19 = vld [vmem:[%s11197_s4 + $0x40c] ss:$16 sps:$4 sm:$0xff]   ;;  %v1334_v20 = vcombine.high %v11369_v16, %v11369_v16 }
  0x8d   : > { %6711 = vmatprep.subr.bf16.mxu0 %v9524_v21  ;;  %7367 = vmatprep.subr.bf16.mxu1 %v9527_v22  ;;  %v9606_v21 = vld [vmem:[%s11197_s4 + $0x400] ss:$16 sps:$4 sm:$0xff]   ;;  %v1363_v22 = vcombine.high %v11303_v14, %v11303_v14  ;;  %v9615_v14 = vld [vmem:[%s11197_s4 + $0x428] ss:$16 sps:$4 sm:$0xff]  }
  0x90   : > { %6712 = vmatpush1.bf16.msra.mxu0 %v9522_v23  ;;  %7368 = vmatpush1.bf16.msra.mxu1 %v9525_v24  ;;  %v9609_v23 = vld [vmem:[%s11197_s4 + $0x408] ss:$16 sps:$4 sm:$0xff]   ;;  %v9614_v24 = vld [vmem:[%s11197_s4 + $0x424] ss:$16 sps:$4 sm:$0xff]  }
  0x91   : > { %6713 = vmatprep.subr.bf16.mxu0 %v9530_v25  ;;  %7369 = vmatprep.subr.bf16.mxu1 %v9533_v26  ;;  %v9617_v25 = vld [vmem:[%s11197_s4 + $0x42c] ss:$16 sps:$4 sm:$0xff]   ;;  %v11384_v26 = vrot.slane %v1334_v20, %v11271_v50  ;;  %v9698_v20 = vld [vmem:[%s11197_s4 + $0x5e4] ss:$16 sps:$4 sm:$0xff]  }
  0x94   : > { %6714 = vmatpush1.bf16.msra.mxu0 %v9528_v27  ;;  %7370 = vmatpush1.bf16.msra.mxu1 %v9531_v28  ;;  %v9612_v27 = vld [vmem:[%s11197_s4 + $0x420] ss:$16 sps:$4 sm:$0xff]   ;;  %v9620_v28 = vld [vmem:[%s11197_s4 + $0x444] ss:$16 sps:$4 sm:$0xff]  }
  0x95   : > { %6715 = vmatprep.subr.bf16.mxu0 %v9536_v29  ;;  %7371 = vmatprep.subr.bf16.mxu1 %v9539_v30  ;;  %v9623_v29 = vld [vmem:[%s11197_s4 + $0x44c] ss:$16 sps:$4 sm:$0xff]   ;;  %v9618_v30 = vld [vmem:[%s11197_s4 + $0x440] ss:$16 sps:$4 sm:$0xff]  }
  0x98   : > { %6716 = vmatpush1.bf16.msra.mxu0 %v9534_v31  ;;  %7372 = vmatpush1.bf16.msra.mxu1 %v9537_v32  ;;  %v9621_v31 = vld [vmem:[%s11197_s4 + $0x448] ss:$16 sps:$4 sm:$0xff]   ;;  %v9626_v32 = vld [vmem:[%s11197_s4 + $0x464] ss:$16 sps:$4 sm:$0xff]  }
  0x99   : > { %6717 = vmatprep.subr.bf16.mxu0 %v9542_v33  ;;  %7373 = vmatprep.subr.bf16.mxu1 %v9545_v34  ;;  %v9629_v33 = vld [vmem:[%s11197_s4 + $0x46c] ss:$16 sps:$4 sm:$0xff]   ;;  %v9624_v34 = vld [vmem:[%s11197_s4 + $0x460] ss:$16 sps:$4 sm:$0xff]  }
  0x9c   : > { %6718 = vmatpush1.bf16.msra.mxu0 %v9540_v35  ;;  %7374 = vmatpush1.bf16.msra.mxu1 %v9543_v36  ;;  %v9627_v35 = vld [vmem:[%s11197_s4 + $0x468] ss:$16 sps:$4 sm:$0xff]   ;;  %v9632_v36 = vld [vmem:[%s11197_s4 + $0x484] ss:$16 sps:$4 sm:$0xff]  }
  0x9d   : > { %6719 = vmatprep.subr.bf16.mxu0 %v9548_v37  ;;  %7375 = vmatprep.subr.bf16.mxu1 %v9551_v38  ;;  %v9635_v37 = vld [vmem:[%s11197_s4 + $0x48c] ss:$16 sps:$4 sm:$0xff]   ;;  %v9630_v38 = vld [vmem:[%s11197_s4 + $0x480] ss:$16 sps:$4 sm:$0xff]  }
  0xa0   : > { %6720 = vmatpush1.bf16.msra.mxu0 %v9546_v39  ;;  %7376 = vmatpush1.bf16.msra.mxu1 %v9549_v40  ;;  %v9633_v39 = vld [vmem:[%s11197_s4 + $0x488] ss:$16 sps:$4 sm:$0xff]   ;;  %v9638_v40 = vld [vmem:[%s11197_s4 + $0x4a4] ss:$16 sps:$4 sm:$0xff]  }
  0xa1   : > { %6721 = vmatprep.subr.bf16.mxu0 %v9554_v41  ;;  %7377 = vmatprep.subr.bf16.mxu1 %v9557_v42  ;;  %v9641_v41 = vld [vmem:[%s11197_s4 + $0x4ac] ss:$16 sps:$4 sm:$0xff]   ;;  %v9636_v42 = vld [vmem:[%s11197_s4 + $0x4a0] ss:$16 sps:$4 sm:$0xff]  }
  0xa4   : > { %6722 = vmatpush1.bf16.msra.mxu0 %v9552_v43  ;;  %7378 = vmatpush1.bf16.msra.mxu1 %v9555_v45  ;;  %v9639_v43 = vld [vmem:[%s11197_s4 + $0x4a8] ss:$16 sps:$4 sm:$0xff]   ;;  %v9644_v45 = vld [vmem:[%s11197_s4 + $0x4c4] ss:$16 sps:$4 sm:$0xff]  }
  0xa5   : > { %6723 = vmatprep.subr.bf16.mxu0 %v9560_v46  ;;  %7379 = vmatprep.subr.bf16.mxu1 %v9563_v47  ;;  %v9647_v46 = vld [vmem:[%s11197_s4 + $0x4cc] ss:$16 sps:$4 sm:$0xff]   ;;  %v9642_v47 = vld [vmem:[%s11197_s4 + $0x4c0] ss:$16 sps:$4 sm:$0xff]  }
  0xa8   : > { %6724 = vmatpush1.bf16.msra.mxu0 %v9558_v48  ;;  %7380 = vmatpush1.bf16.msra.mxu1 %v9561_v49  ;;  %v9645_v48 = vld [vmem:[%s11197_s4 + $0x4c8] ss:$16 sps:$4 sm:$0xff]   ;;  %v9650_v49 = vld [vmem:[%s11197_s4 + $0x4e4] ss:$16 sps:$4 sm:$0xff]  }
  0xa9   : > { %6725 = vmatprep.subr.bf16.mxu0 %v9566_v51  ;;  %7381 = vmatprep.subr.bf16.mxu1 %v9569_v52  ;;  %v9653_v51 = vld [vmem:[%s11197_s4 + $0x4ec] ss:$16 sps:$4 sm:$0xff]   ;;  %v9648_v52 = vld [vmem:[%s11197_s4 + $0x4e0] ss:$16 sps:$4 sm:$0xff]  }
  0xac   : > { %6726 = vmatpush1.bf16.msra.mxu0 %v9564_v54  ;;  %7382 = vmatpush1.bf16.msra.mxu1 %v9567_v55  ;;  %v9651_v54 = vld [vmem:[%s11197_s4 + $0x4e8] ss:$16 sps:$4 sm:$0xff]   ;;  %v9656_v55 = vld [vmem:[%s11197_s4 + $0x504] ss:$16 sps:$4 sm:$0xff]  }
  0xad   : > { %6727 = vmatprep.subr.bf16.mxu0 %v9572_v56  ;;  %7383 = vmatprep.subr.bf16.mxu1 %v9575_v57  ;;  %v9659_v56 = vld [vmem:[%s11197_s4 + $0x50c] ss:$16 sps:$4 sm:$0xff]   ;;  %v9654_v57 = vld [vmem:[%s11197_s4 + $0x500] ss:$16 sps:$4 sm:$0xff]  }
  0xb0   : > { %6728 = vmatpush1.bf16.msra.mxu0 %v9570_v58  ;;  %7384 = vmatpush1.bf16.msra.mxu1 %v9573_v59  ;;  %v9657_v58 = vld [vmem:[%s11197_s4 + $0x508] ss:$16 sps:$4 sm:$0xff]   ;;  %v9662_v59 = vld [vmem:[%s11197_s4 + $0x524] ss:$16 sps:$4 sm:$0xff]  }
  0xb1   : > { %6729 = vmatprep.subr.bf16.mxu0 %v9578_v60  ;;  %7385 = vmatprep.subr.bf16.mxu1 %v9581_v61  ;;  %v9665_v60 = vld [vmem:[%s11197_s4 + $0x52c] ss:$16 sps:$4 sm:$0xff]   ;;  %v9660_v61 = vld [vmem:[%s11197_s4 + $0x520] ss:$16 sps:$4 sm:$0xff]  }
  0xb4   : > { %6730 = vmatpush1.bf16.msra.mxu0 %v9576_v62  ;;  %7386 = vmatpush1.bf16.msra.mxu1 %v9579_v63  ;;  %v9663_v62 = vld [vmem:[%s11197_s4 + $0x528] ss:$16 sps:$4 sm:$0xff]   ;;  %v9668_v63 = vld [vmem:[%s11197_s4 + $0x544] ss:$16 sps:$4 sm:$0xff]  }
  0xb5   : > { %6731 = vmatprep.subr.bf16.mxu0 %v9584_v0  ;;  %7387 = vmatprep.subr.bf16.mxu1 %v9587_v1  ;;  %v9671_v0 = vld [vmem:[%s11197_s4 + $0x54c] ss:$16 sps:$4 sm:$0xff]   ;;  %v9666_v1 = vld [vmem:[%s11197_s4 + $0x540] ss:$16 sps:$4 sm:$0xff]  }
  0xb8   : > { %6732 = vmatpush1.bf16.msra.mxu0 %v9582_v2  ;;  %7388 = vmatpush1.bf16.msra.mxu1 %v9585_v3  ;;  %v9669_v2 = vld [vmem:[%s11197_s4 + $0x548] ss:$16 sps:$4 sm:$0xff]   ;;  %v9674_v3 = vld [vmem:[%s11197_s4 + $0x564] ss:$16 sps:$4 sm:$0xff]  }
  0xb9   : > { %6733 = vmatprep.subr.bf16.mxu0 %v9590_v4  ;;  %7389 = vmatprep.subr.bf16.mxu1 %v9593_v5  ;;  %v9677_v4 = vld [vmem:[%s11197_s4 + $0x56c] ss:$16 sps:$4 sm:$0xff]   ;;  %v9672_v5 = vld [vmem:[%s11197_s4 + $0x560] ss:$16 sps:$4 sm:$0xff]  }
  0xbc   : > { %6734 = vmatpush1.bf16.msra.mxu0 %v9588_v6  ;;  %7390 = vmatpush1.bf16.msra.mxu1 %v9591_v7  ;;  %v9675_v6 = vld [vmem:[%s11197_s4 + $0x568] ss:$16 sps:$4 sm:$0xff]   ;;  %v9680_v7 = vld [vmem:[%s11197_s4 + $0x584] ss:$16 sps:$4 sm:$0xff]  }
  0xbd   : > { %6735 = vmatprep.subr.bf16.mxu0 %v9596_v8  ;;  %7391 = vmatprep.subr.bf16.mxu1 %v9599_v9  ;;  %v9683_v8 = vld [vmem:[%s11197_s4 + $0x58c] ss:$16 sps:$4 sm:$0xff]   ;;  %v9678_v9 = vld [vmem:[%s11197_s4 + $0x580] ss:$16 sps:$4 sm:$0xff]  }
  0xc0   : > { %6736 = vmatpush1.bf16.msra.mxu0 %v9594_v11  ;;  %7392 = vmatpush1.bf16.msra.mxu1 %v9597_v12  ;;  %v9686_v11 = vld [vmem:[%s11197_s4 + $0x5a4] ss:$16 sps:$4 sm:$0xff]   ;;  %v9689_v12 = vld [vmem:[%s11197_s4 + $0x5ac] ss:$16 sps:$4 sm:$0xff]  }
  0xc1   : > { %6737 = vmatprep.subr.bf16.mxu0 %v9602_v13  ;;  %7393 = vmatprep.subr.bf16.mxu1 %v9605_v15  ;;  %v9684_v13 = vld [vmem:[%s11197_s4 + $0x5a0] ss:$16 sps:$4 sm:$0xff]   ;;  %v9687_v15 = vld [vmem:[%s11197_s4 + $0x5a8] ss:$16 sps:$4 sm:$0xff]  }
  0xc4   : > { %6738 = vmatpush1.bf16.msra.mxu0 %v9600_v17  ;;  %7394 = vmatpush1.bf16.msra.mxu1 %v9603_v53  ;;  %v9692_v17 = vld [vmem:[%s11197_s4 + $0x5c4] ss:$16 sps:$4 sm:$0xff]   ;;  %v9695_v53 = vld [vmem:[%s11197_s4 + $0x5cc] ss:$16 sps:$4 sm:$0xff]  }
  0xc5   : > { %6748 = vmatprep.subr.bf16.mxu0 %v9608_v18  ;;  %7404 = vmatprep.subr.bf16.mxu1 %v9611_v19  ;;  %v9690_v18 = vld [vmem:[%s11197_s4 + $0x5c0] ss:$16 sps:$4 sm:$0xff]   ;;  %v9693_v19 = vld [vmem:[%s11197_s4 + $0x5c8] ss:$16 sps:$4 sm:$0xff]  }
  0xc7   : > { %6740 = vmatmul.mubr.bf16.vlgmr.msra.gmra.mrb[0].mxu0 %v1363_v22  ;;  %7396 = vmatmul.mubr.bf16.vlgmr.msra.gmra.mrb[0].mxu1 %v1363_v22  ;;  %v9696_v22 = vld [vmem:[%s11197_s4 + $0x5e0] ss:$16 sps:$4 sm:$0xff]  }
  0xc8   : > { %6749 = vmatpush1.bf16.msra.mxu0 %v9606_v21  ;;  %7405 = vmatpush1.bf16.msra.mxu1 %v9609_v23  ;;  %v9701_v21 = vld [vmem:[%s11197_s4 + $0x5ec] ss:$16 sps:$4 sm:$0xff]   ;;  %v9699_v23 = vld [vmem:[%s11197_s4 + $0x5e8] ss:$16 sps:$4 sm:$0xff]  }
  0xc9   : > { %6750 = vmatprep.subr.bf16.mxu0 %v9614_v24  ;;  %7406 = vmatprep.subr.bf16.mxu1 %v9617_v25  ;;  %v9705_v24 = vld [vmem:[%s11197_s4 + $0x604] ss:$16 sps:$4 sm:$0xff]   ;;  %v9708_v25 = vld [vmem:[%s11197_s4 + $0x60c] ss:$16 sps:$4 sm:$0xff]  }
  0xca   : > { %6780 = vmatprep.mubr.bf16.mxu0 %v11384_v26  ;;  %7436 = vmatprep.mubr.bf16.mxu1 %v11384_v26 }
  0xcc   : > { %6751 = vmatpush1.bf16.msra.mxu0 %v9612_v27  ;;  %7407 = vmatpush1.bf16.msra.mxu1 %v9615_v14  ;;  %v9703_v27 = vld [vmem:[%s11197_s4 + $0x600] ss:$16 sps:$4 sm:$0xff]   ;;  %v11451_v14 = vrot.slane %v11369_v16, %v11271_v50 }
  0xcd   : > { %6752 = vmatprep.subr.bf16.mxu0 %v9620_v28  ;;  %7408 = vmatprep.subr.bf16.mxu1 %v9623_v29  ;;  %v9706_v28 = vld [vmem:[%s11197_s4 + $0x608] ss:$16 sps:$4 sm:$0xff]   ;;  %v9711_v29 = vld [vmem:[%s11197_s4 + $0x624] ss:$16 sps:$4 sm:$0xff]   ;;  %v9709_v16 = vld [vmem:[%s11197_s4 + $0x620] ss:$16 sps:$4 sm:$0xff]  }
  0xd0   : > { %6753 = vmatpush1.bf16.msra.mxu0 %v9618_v30  ;;  %7409 = vmatpush1.bf16.msra.mxu1 %v9621_v31  ;;  %v9714_v30 = vld [vmem:[%s11197_s4 + $0x62c] ss:$16 sps:$4 sm:$0xff]   ;;  %v1366_v31 = vcombine.high %v11384_v26, %v11384_v26  ;;  %v9715_v26 = vld [vmem:[%s11197_s4 + $0x640] ss:$16 sps:$4 sm:$0xff]  }
  0xd1   : > { %6754 = vmatprep.subr.bf16.mxu0 %v9626_v32  ;;  %7410 = vmatprep.subr.bf16.mxu1 %v9629_v33  ;;  %v9712_v32 = vld [vmem:[%s11197_s4 + $0x628] ss:$16 sps:$4 sm:$0xff]   ;;  %v9717_v33 = vld [vmem:[%s11197_s4 + $0x644] ss:$16 sps:$4 sm:$0xff]  }
  0xd4   : > { %6755 = vmatpush1.bf16.msra.mxu0 %v9624_v34  ;;  %7411 = vmatpush1.bf16.msra.mxu1 %v9627_v35  ;;  %v9720_v34 = vld [vmem:[%s11197_s4 + $0x64c] ss:$16 sps:$4 sm:$0xff]   ;;  %v9718_v35 = vld [vmem:[%s11197_s4 + $0x648] ss:$16 sps:$4 sm:$0xff]  }
  0xd5   : > { %6756 = vmatprep.subr.bf16.mxu0 %v9632_v36  ;;  %7412 = vmatprep.subr.bf16.mxu1 %v9635_v37  ;;  %v9723_v36 = vld [vmem:[%s11197_s4 + $0x664] ss:$16 sps:$4 sm:$0xff]   ;;  %v9726_v37 = vld [vmem:[%s11197_s4 + $0x66c] ss:$16 sps:$4 sm:$0xff]  }
  0xd8   : > { %6757 = vmatpush1.bf16.msra.mxu0 %v9630_v38  ;;  %7413 = vmatpush1.bf16.msra.mxu1 %v9633_v39  ;;  %v9721_v38 = vld [vmem:[%s11197_s4 + $0x660] ss:$16 sps:$4 sm:$0xff]   ;;  %v9724_v39 = vld [vmem:[%s11197_s4 + $0x668] ss:$16 sps:$4 sm:$0xff]  }
  0xd9   : > { %6758 = vmatprep.subr.bf16.mxu0 %v9638_v40  ;;  %7414 = vmatprep.subr.bf16.mxu1 %v9641_v41  ;;  %v9729_v40 = vld [vmem:[%s11197_s4 + $0x684] ss:$16 sps:$4 sm:$0xff]   ;;  %v9732_v41 = vld [vmem:[%s11197_s4 + $0x68c] ss:$16 sps:$4 sm:$0xff]  }
  0xdc   : > { %6759 = vmatpush1.bf16.msra.mxu0 %v9636_v42  ;;  %7415 = vmatpush1.bf16.msra.mxu1 %v9639_v43  ;;  %v9727_v42 = vld [vmem:[%s11197_s4 + $0x680] ss:$16 sps:$4 sm:$0xff]   ;;  %v9730_v43 = vld [vmem:[%s11197_s4 + $0x688] ss:$16 sps:$4 sm:$0xff]  }
  0xdd   : > { %6760 = vmatprep.subr.bf16.mxu0 %v9644_v45  ;;  %7416 = vmatprep.subr.bf16.mxu1 %v9647_v46  ;;  %v9735_v45 = vld [vmem:[%s11197_s4 + $0x6a4] ss:$16 sps:$4 sm:$0xff]   ;;  %v9738_v46 = vld [vmem:[%s11197_s4 + $0x6ac] ss:$16 sps:$4 sm:$0xff]  }
  0xe0   : > { %6761 = vmatpush1.bf16.msra.mxu0 %v9642_v47  ;;  %7417 = vmatpush1.bf16.msra.mxu1 %v9645_v48  ;;  %v9733_v47 = vld [vmem:[%s11197_s4 + $0x6a0] ss:$16 sps:$4 sm:$0xff]   ;;  %v9736_v48 = vld [vmem:[%s11197_s4 + $0x6a8] ss:$16 sps:$4 sm:$0xff]  }
  0xe1   : > { %6762 = vmatprep.subr.bf16.mxu0 %v9650_v49  ;;  %7418 = vmatprep.subr.bf16.mxu1 %v9653_v51  ;;  %v9741_v49 = vld [vmem:[%s11197_s4 + $0x6c4] ss:$16 sps:$4 sm:$0xff]   ;;  %v9744_v51 = vld [vmem:[%s11197_s4 + $0x6cc] ss:$16 sps:$4 sm:$0xff]  }
  0xe4   : > { %6763 = vmatpush1.bf16.msra.mxu0 %v9648_v52  ;;  %7419 = vmatpush1.bf16.msra.mxu1 %v9651_v54  ;;  %v9739_v52 = vld [vmem:[%s11197_s4 + $0x6c0] ss:$16 sps:$4 sm:$0xff]   ;;  %v9742_v54 = vld [vmem:[%s11197_s4 + $0x6c8] ss:$16 sps:$4 sm:$0xff]  }
  0xe5   : > { %6764 = vmatprep.subr.bf16.mxu0 %v9656_v55  ;;  %7420 = vmatprep.subr.bf16.mxu1 %v9659_v56  ;;  %v9747_v55 = vld [vmem:[%s11197_s4 + $0x6e4] ss:$16 sps:$4 sm:$0xff]   ;;  %v9750_v56 = vld [vmem:[%s11197_s4 + $0x6ec] ss:$16 sps:$4 sm:$0xff]  }
  0xe8   : > { %6765 = vmatpush1.bf16.msra.mxu0 %v9654_v57  ;;  %7421 = vmatpush1.bf16.msra.mxu1 %v9657_v58  ;;  %v9745_v57 = vld [vmem:[%s11197_s4 + $0x6e0] ss:$16 sps:$4 sm:$0xff]   ;;  %v9748_v58 = vld [vmem:[%s11197_s4 + $0x6e8] ss:$16 sps:$4 sm:$0xff]  }
  0xe9   : > { %6766 = vmatprep.subr.bf16.mxu0 %v9662_v59  ;;  %7422 = vmatprep.subr.bf16.mxu1 %v9665_v60  ;;  %v9753_v59 = vld [vmem:[%s11197_s4 + $0x704] ss:$16 sps:$4 sm:$0xff]   ;;  %v9756_v60 = vld [vmem:[%s11197_s4 + $0x70c] ss:$16 sps:$4 sm:$0xff]  }
  0xec   : > { %6767 = vmatpush1.bf16.msra.mxu0 %v9660_v61  ;;  %7423 = vmatpush1.bf16.msra.mxu1 %v9663_v62  ;;  %v9751_v61 = vld [vmem:[%s11197_s4 + $0x700] ss:$16 sps:$4 sm:$0xff]   ;;  %v9754_v62 = vld [vmem:[%s11197_s4 + $0x708] ss:$16 sps:$4 sm:$0xff]  }
  0xed   : > { %6768 = vmatprep.subr.bf16.mxu0 %v9668_v63  ;;  %7424 = vmatprep.subr.bf16.mxu1 %v9671_v0  ;;  %v9759_v63 = vld [vmem:[%s11197_s4 + $0x724] ss:$16 sps:$4 sm:$0xff]   ;;  %v9762_v0 = vld [vmem:[%s11197_s4 + $0x72c] ss:$16 sps:$4 sm:$0xff]  }
  0xf0   : > { %6769 = vmatpush1.bf16.msra.mxu0 %v9666_v1  ;;  %7425 = vmatpush1.bf16.msra.mxu1 %v9669_v2  ;;  %v9757_v1 = vld [vmem:[%s11197_s4 + $0x720] ss:$16 sps:$4 sm:$0xff]   ;;  %v9760_v2 = vld [vmem:[%s11197_s4 + $0x728] ss:$16 sps:$4 sm:$0xff]  }
  0xf1   : > { %6770 = vmatprep.subr.bf16.mxu0 %v9674_v3  ;;  %7426 = vmatprep.subr.bf16.mxu1 %v9677_v4  ;;  %v9765_v3 = vld [vmem:[%s11197_s4 + $0x744] ss:$16 sps:$4 sm:$0xff]   ;;  %v9768_v4 = vld [vmem:[%s11197_s4 + $0x74c] ss:$16 sps:$4 sm:$0xff]  }
  0xf4   : > { %6771 = vmatpush1.bf16.msra.mxu0 %v9672_v5  ;;  %7427 = vmatpush1.bf16.msra.mxu1 %v9675_v6  ;;  %v9763_v5 = vld [vmem:[%s11197_s4 + $0x740] ss:$16 sps:$4 sm:$0xff]   ;;  %v9766_v6 = vld [vmem:[%s11197_s4 + $0x748] ss:$16 sps:$4 sm:$0xff]  }
  0xf5   : > { %6772 = vmatprep.subr.bf16.mxu0 %v9680_v7  ;;  %7428 = vmatprep.subr.bf16.mxu1 %v9683_v8  ;;  %v9771_v7 = vld [vmem:[%s11197_s4 + $0x764] ss:$16 sps:$4 sm:$0xff]   ;;  %v9774_v8 = vld [vmem:[%s11197_s4 + $0x76c] ss:$16 sps:$4 sm:$0xff]  }
  0xf8   : > { %6773 = vmatpush1.bf16.msra.mxu0 %v9678_v9  ;;  %7429 = vmatpush1.bf16.msra.mxu1 %v9681_v10  ;;  %v9769_v9 = vld [vmem:[%s11197_s4 + $0x760] ss:$16 sps:$4 sm:$0xff]   ;;  %v9772_v10 = vld [vmem:[%s11197_s4 + $0x768] ss:$16 sps:$4 sm:$0xff]  }
  0xf9   : > { %6774 = vmatprep.subr.bf16.mxu0 %v9686_v11  ;;  %7430 = vmatprep.subr.bf16.mxu1 %v9689_v12  ;;  %v9777_v11 = vld [vmem:[%s11197_s4 + $0x784] ss:$16 sps:$4 sm:$0xff]   ;;  %v9780_v12 = vld [vmem:[%s11197_s4 + $0x78c] ss:$16 sps:$4 sm:$0xff]  }
  0xfc   : > { %6775 = vmatpush1.bf16.msra.mxu0 %v9684_v13  ;;  %7431 = vmatpush1.bf16.msra.mxu1 %v9687_v15  ;;  %v9775_v13 = vld [vmem:[%s11197_s4 + $0x780] ss:$16 sps:$4 sm:$0xff]   ;;  %v9778_v15 = vld [vmem:[%s11197_s4 + $0x788] ss:$16 sps:$4 sm:$0xff]  }
  0xfd   : > { %6776 = vmatprep.subr.bf16.mxu0 %v9692_v17  ;;  %7432 = vmatprep.subr.bf16.mxu1 %v9695_v53  ;;  %v9783_v17 = vld [vmem:[%s11197_s4 + $0x7a4] ss:$16 sps:$4 sm:$0xff]   ;;  %v9786_v53 = vld [vmem:[%s11197_s4 + $0x7ac] ss:$16 sps:$4 sm:$0xff]  }
 0x100   : > { %6777 = vmatpush1.bf16.msra.mxu0 %v9690_v18  ;;  %7433 = vmatpush1.bf16.msra.mxu1 %v9693_v19  ;;  %v9781_v18 = vld [vmem:[%s11197_s4 + $0x7a0] ss:$16 sps:$4 sm:$0xff]   ;;  %v9784_v19 = vld [vmem:[%s11197_s4 + $0x7a8] ss:$16 sps:$4 sm:$0xff]  }
 0x101   : > { %6778 = vmatprep.subr.bf16.mxu0 %v9698_v20  ;;  %7434 = vmatprep.subr.bf16.mxu1 %v9701_v21  ;;  %v9789_v20 = vld [vmem:[%s11197_s4 + $0x7c4] ss:$16 sps:$4 sm:$0xff]   ;;  %v9792_v21 = vld [vmem:[%s11197_s4 + $0x7cc] ss:$16 sps:$4 sm:$0xff]  }
 0x104   : > { %6779 = vmatpush1.bf16.msra.mxu0 %v9696_v22  ;;  %7435 = vmatpush1.bf16.msra.mxu1 %v9699_v23  ;;  %v11513_v22 = vld.sshfl [vmem:[%s11210_s6 + $0x8] sm:$0xff pattern:$0x75316420]  ;;  %v9787_v23 = vld [vmem:[%s11197_s4 + $0x7c0] ss:$16 sps:$4 sm:$0xff]  }
 0x105   : > { %6789 = vmatprep.subr.bf16.mxu0 %v9705_v24  ;;  %7445 = vmatprep.subr.bf16.mxu1 %v9708_v25  ;;  %v9790_v24 = vld [vmem:[%s11197_s4 + $0x7c8] ss:$16 sps:$4 sm:$0xff]   ;;  %v9795_v25 = vld [vmem:[%s11197_s4 + $0x7e4] ss:$16 sps:$4 sm:$0xff]  }
 0x107   : > { %6781 = vmatmul.mubr.bf16.vlgmr.msra.gmra.mrb[0].mxu0 %v11451_v14  ;;  %7437 = vmatmul.mubr.bf16.vlgmr.msra.gmra.mrb[0].mxu1 %v11451_v14 }
 0x108   : > { %6790 = vmatpush1.bf16.msra.mxu0 %v9703_v27  ;;  %7446 = vmatpush1.bf16.msra.mxu1 %v9706_v28  ;;  %v9798_v27 = vld [vmem:[%s11197_s4 + $0x7ec] ss:$16 sps:$4 sm:$0xff]   ;;  %v9793_v28 = vld [vmem:[%s11197_s4 + $0x7e0] ss:$16 sps:$4 sm:$0xff]  }
 0x109   : > { %6791 = vmatprep.subr.bf16.mxu0 %v9711_v29  ;;  %7447 = vmatprep.subr.bf16.mxu1 %v9714_v30  ;;  %v9796_v29 = vld [vmem:[%s11197_s4 + $0x7e8] ss:$16 sps:$4 sm:$0xff]   ;;  %v9801_v30 = vld [vmem:[%s11197_s4 + $0x804] ss:$16 sps:$4 sm:$0xff]  }
 0x10a   : > { %6821 = vmatprep.mubr.bf16.mxu0 %v1366_v31  ;;  %7477 = vmatprep.mubr.bf16.mxu1 %v1366_v31  ;;  %v9804_v31 = vld [vmem:[%s11197_s4 + $0x80c] ss:$16 sps:$4 sm:$0xff]  }
 0x10c   : > { %6792 = vmatpush1.bf16.msra.mxu0 %v9709_v16  ;;  %7448 = vmatpush1.bf16.msra.mxu1 %v9712_v32  ;;  %v1382_v16 = vcombine.high %v11513_v22, %v11513_v22  ;;  %v1364_v32 = vcombine.high %v11451_v14, %v11451_v14  ;;  %v9805_v14 = vld [vmem:[%s11197_s4 + $0x820] ss:$16 sps:$4 sm:$0xff]  }
 0x10d   : > { %6793 = vmatprep.subr.bf16.mxu0 %v9717_v33  ;;  %7449 = vmatprep.subr.bf16.mxu1 %v9720_v34  ;;  %v9799_v33 = vld [vmem:[%s11197_s4 + $0x800] ss:$16 sps:$4 sm:$0xff]   ;;  %v9802_v34 = vld [vmem:[%s11197_s4 + $0x808] ss:$16 sps:$4 sm:$0xff]  }
 0x110   : > { %6794 = vmatpush1.bf16.msra.mxu0 %v9715_v26  ;;  %7450 = vmatpush1.bf16.msra.mxu1 %v9718_v35  ;;  %v9807_v26 = vld [vmem:[%s11197_s4 + $0x824] ss:$16 sps:$4 sm:$0xff]   ;;  %v9810_v35 = vld [vmem:[%s11197_s4 + $0x82c] ss:$16 sps:$4 sm:$0xff]  }
 0x111   : > { %6795 = vmatprep.subr.bf16.mxu0 %v9723_v36  ;;  %7451 = vmatprep.subr.bf16.mxu1 %v9726_v37  ;;  %v11532_v36 = vrot.slane %v1382_v16, %v11271_v50  ;;  %v9808_v37 = vld [vmem:[%s11197_s4 + $0x828] ss:$16 sps:$4 sm:$0xff]   ;;  %v9891_v16 = vld [vmem:[%s11197_s4 + $0x9e4] ss:$16 sps:$4 sm:$0xff]  }
 0x114   : > { %6796 = vmatpush1.bf16.msra.mxu0 %v9721_v38  ;;  %7452 = vmatpush1.bf16.msra.mxu1 %v9724_v39  ;;  %v9813_v38 = vld [vmem:[%s11197_s4 + $0x844] ss:$16 sps:$4 sm:$0xff]   ;;  %v9816_v39 = vld [vmem:[%s11197_s4 + $0x84c] ss:$16 sps:$4 sm:$0xff]  }
 0x115   : > { %6797 = vmatprep.subr.bf16.mxu0 %v9729_v40  ;;  %7453 = vmatprep.subr.bf16.mxu1 %v9732_v41  ;;  %v9811_v40 = vld [vmem:[%s11197_s4 + $0x840] ss:$16 sps:$4 sm:$0xff]   ;;  %v9814_v41 = vld [vmem:[%s11197_s4 + $0x848] ss:$16 sps:$4 sm:$0xff]  }
 0x118   : > { %6798 = vmatpush1.bf16.msra.mxu0 %v9727_v42  ;;  %7454 = vmatpush1.bf16.msra.mxu1 %v9730_v43  ;;  %v9819_v42 = vld [vmem:[%s11197_s4 + $0x864] ss:$16 sps:$4 sm:$0xff]   ;;  %v9822_v43 = vld [vmem:[%s11197_s4 + $0x86c] ss:$16 sps:$4 sm:$0xff]  }
 0x119   : > { %6799 = vmatprep.subr.bf16.mxu0 %v9735_v45  ;;  %7455 = vmatprep.subr.bf16.mxu1 %v9738_v46  ;;  %v9817_v45 = vld [vmem:[%s11197_s4 + $0x860] ss:$16 sps:$4 sm:$0xff]   ;;  %v9820_v46 = vld [vmem:[%s11197_s4 + $0x868] ss:$16 sps:$4 sm:$0xff]  }
 0x11c   : > { %6800 = vmatpush1.bf16.msra.mxu0 %v9733_v47  ;;  %7456 = vmatpush1.bf16.msra.mxu1 %v9736_v48  ;;  %v9825_v47 = vld [vmem:[%s11197_s4 + $0x884] ss:$16 sps:$4 sm:$0xff]   ;;  %v9828_v48 = vld [vmem:[%s11197_s4 + $0x88c] ss:$16 sps:$4 sm:$0xff]  }
 0x11d   : > { %6801 = vmatprep.subr.bf16.mxu0 %v9741_v49  ;;  %7457 = vmatprep.subr.bf16.mxu1 %v9744_v51  ;;  %v9823_v49 = vld [vmem:[%s11197_s4 + $0x880] ss:$16 sps:$4 sm:$0xff]   ;;  %v9826_v51 = vld [vmem:[%s11197_s4 + $0x888] ss:$16 sps:$4 sm:$0xff]  }
 0x120   : > { %6802 = vmatpush1.bf16.msra.mxu0 %v9739_v52  ;;  %7458 = vmatpush1.bf16.msra.mxu1 %v9742_v54  ;;  %v9831_v52 = vld [vmem:[%s11197_s4 + $0x8a4] ss:$16 sps:$4 sm:$0xff]   ;;  %v9834_v54 = vld [vmem:[%s11197_s4 + $0x8ac] ss:$16 sps:$4 sm:$0xff]  }
 0x121   : > { %6803 = vmatprep.subr.bf16.mxu0 %v9747_v55  ;;  %7459 = vmatprep.subr.bf16.mxu1 %v9750_v56  ;;  %v9829_v55 = vld [vmem:[%s11197_s4 + $0x8a0] ss:$16 sps:$4 sm:$0xff]   ;;  %v9832_v56 = vld [vmem:[%s11197_s4 + $0x8a8] ss:$16 sps:$4 sm:$0xff]  }
 0x124   : > { %6804 = vmatpush1.bf16.msra.mxu0 %v9745_v57  ;;  %7460 = vmatpush1.bf16.msra.mxu1 %v9748_v58  ;;  %v9837_v57 = vld [vmem:[%s11197_s4 + $0x8c4] ss:$16 sps:$4 sm:$0xff]   ;;  %v9840_v58 = vld [vmem:[%s11197_s4 + $0x8cc] ss:$16 sps:$4 sm:$0xff]  }
 0x125   : > { %6805 = vmatprep.subr.bf16.mxu0 %v9753_v59  ;;  %7461 = vmatprep.subr.bf16.mxu1 %v9756_v60  ;;  %v9835_v59 = vld [vmem:[%s11197_s4 + $0x8c0] ss:$16 sps:$4 sm:$0xff]   ;;  %v9838_v60 = vld [vmem:[%s11197_s4 + $0x8c8] ss:$16 sps:$4 sm:$0xff]  }
 0x128   : > { %6806 = vmatpush1.bf16.msra.mxu0 %v9751_v61  ;;  %7462 = vmatpush1.bf16.msra.mxu1 %v9754_v62  ;;  %v9843_v61 = vld [vmem:[%s11197_s4 + $0x8e4] ss:$16 sps:$4 sm:$0xff]   ;;  %v9846_v62 = vld [vmem:[%s11197_s4 + $0x8ec] ss:$16 sps:$4 sm:$0xff]  }
 0x129   : > { %6807 = vmatprep.subr.bf16.mxu0 %v9759_v63  ;;  %7463 = vmatprep.subr.bf16.mxu1 %v9762_v0  ;;  %v9841_v63 = vld [vmem:[%s11197_s4 + $0x8e0] ss:$16 sps:$4 sm:$0xff]   ;;  %v9844_v0 = vld [vmem:[%s11197_s4 + $0x8e8] ss:$16 sps:$4 sm:$0xff]  }
 0x12c   : > { %6808 = vmatpush1.bf16.msra.mxu0 %v9757_v1  ;;  %7464 = vmatpush1.bf16.msra.mxu1 %v9760_v2  ;;  %v9849_v1 = vld [vmem:[%s11197_s4 + $0x904] ss:$16 sps:$4 sm:$0xff]   ;;  %v9852_v2 = vld [vmem:[%s11197_s4 + $0x90c] ss:$16 sps:$4 sm:$0xff]  }
 0x12d   : > { %6809 = vmatprep.subr.bf16.mxu0 %v9765_v3  ;;  %7465 = vmatprep.subr.bf16.mxu1 %v9768_v4  ;;  %v9847_v3 = vld [vmem:[%s11197_s4 + $0x900] ss:$16 sps:$4 sm:$0xff]   ;;  %v9850_v4 = vld [vmem:[%s11197_s4 + $0x908] ss:$16 sps:$4 sm:$0xff]  }
 0x130   : > { %6810 = vmatpush1.bf16.msra.mxu0 %v9763_v5  ;;  %7466 = vmatpush1.bf16.msra.mxu1 %v9766_v6  ;;  %v9855_v5 = vld [vmem:[%s11197_s4 + $0x924] ss:$16 sps:$4 sm:$0xff]   ;;  %v9858_v6 = vld [vmem:[%s11197_s4 + $0x92c] ss:$16 sps:$4 sm:$0xff]  }
 0x131   : > { %6811 = vmatprep.subr.bf16.mxu0 %v9771_v7  ;;  %7467 = vmatprep.subr.bf16.mxu1 %v9774_v8  ;;  %v9853_v7 = vld [vmem:[%s11197_s4 + $0x920] ss:$16 sps:$4 sm:$0xff]   ;;  %v9856_v8 = vld [vmem:[%s11197_s4 + $0x928] ss:$16 sps:$4 sm:$0xff]  }
 0x134   : > { %6812 = vmatpush1.bf16.msra.mxu0 %v9769_v9  ;;  %7468 = vmatpush1.bf16.msra.mxu1 %v9772_v10  ;;  %v9861_v9 = vld [vmem:[%s11197_s4 + $0x944] ss:$16 sps:$4 sm:$0xff]   ;;  %v9864_v10 = vld [vmem:[%s11197_s4 + $0x94c] ss:$16 sps:$4 sm:$0xff]  }
 0x135   : > { %6813 = vmatprep.subr.bf16.mxu0 %v9777_v11  ;;  %7469 = vmatprep.subr.bf16.mxu1 %v9780_v12  ;;  %v9859_v11 = vld [vmem:[%s11197_s4 + $0x940] ss:$16 sps:$4 sm:$0xff]   ;;  %v9862_v12 = vld [vmem:[%s11197_s4 + $0x948] ss:$16 sps:$4 sm:$0xff]  }
 0x138   : > { %6814 = vmatpush1.bf16.msra.mxu0 %v9775_v13  ;;  %7470 = vmatpush1.bf16.msra.mxu1 %v9778_v15  ;;  %v9867_v13 = vld [vmem:[%s11197_s4 + $0x964] ss:$16 sps:$4 sm:$0xff]   ;;  %v9870_v15 = vld [vmem:[%s11197_s4 + $0x96c] ss:$16 sps:$4 sm:$0xff]  }
 0x139   : > { %6815 = vmatprep.subr.bf16.mxu0 %v9783_v17  ;;  %7471 = vmatprep.subr.bf16.mxu1 %v9786_v53  ;;  %v9865_v17 = vld [vmem:[%s11197_s4 + $0x960] ss:$16 sps:$4 sm:$0xff]   ;;  %v9868_v53 = vld [vmem:[%s11197_s4 + $0x968] ss:$16 sps:$4 sm:$0xff]  }
 0x13c   : > { %6816 = vmatpush1.bf16.msra.mxu0 %v9781_v18  ;;  %7472 = vmatpush1.bf16.msra.mxu1 %v9784_v19  ;;  %v9873_v18 = vld [vmem:[%s11197_s4 + $0x984] ss:$16 sps:$4 sm:$0xff]   ;;  %v9876_v19 = vld [vmem:[%s11197_s4 + $0x98c] ss:$16 sps:$4 sm:$0xff]  }
 0x13d   : > { %6817 = vmatprep.subr.bf16.mxu0 %v9789_v20  ;;  %7473 = vmatprep.subr.bf16.mxu1 %v9792_v21  ;;  %v9871_v20 = vld [vmem:[%s11197_s4 + $0x980] ss:$16 sps:$4 sm:$0xff]   ;;  %v9874_v21 = vld [vmem:[%s11197_s4 + $0x988] ss:$16 sps:$4 sm:$0xff]  }
 0x140   : > { %6818 = vmatpush1.bf16.msra.mxu0 %v9787_v23  ;;  %7474 = vmatpush1.bf16.msra.mxu1 %v9790_v24  ;;  %v9879_v23 = vld [vmem:[%s11197_s4 + $0x9a4] ss:$16 sps:$4 sm:$0xff]   ;;  %v9882_v24 = vld [vmem:[%s11197_s4 + $0x9ac] ss:$16 sps:$4 sm:$0xff]  }
 0x141   : > { %6819 = vmatprep.subr.bf16.mxu0 %v9795_v25  ;;  %7475 = vmatprep.subr.bf16.mxu1 %v9798_v27  ;;  %v9877_v25 = vld [vmem:[%s11197_s4 + $0x9a0] ss:$16 sps:$4 sm:$0xff]   ;;  %v9880_v27 = vld [vmem:[%s11197_s4 + $0x9a8] ss:$16 sps:$4 sm:$0xff]  }
 0x144   : > { %6820 = vmatpush1.bf16.msra.mxu0 %v9793_v28  ;;  %7476 = vmatpush1.bf16.msra.mxu1 %v9796_v29  ;;  %v9885_v28 = vld [vmem:[%s11197_s4 + $0x9c4] ss:$16 sps:$4 sm:$0xff]   ;;  %v9888_v29 = vld [vmem:[%s11197_s4 + $0x9cc] ss:$16 sps:$4 sm:$0xff]  }
 0x145   : > { %6830 = vmatprep.subr.bf16.mxu0 %v9801_v30  ;;  %7486 = vmatprep.subr.bf16.mxu1 %v9804_v31  ;;  %v9883_v30 = vld [vmem:[%s11197_s4 + $0x9c0] ss:$16 sps:$4 sm:$0xff]   ;;  %v9886_v31 = vld [vmem:[%s11197_s4 + $0x9c8] ss:$16 sps:$4 sm:$0xff]  }
 0x147   : > { %6822 = vmatmul.mubr.bf16.vlgmr.msra.gmra.mrb[0].mxu0 %v1364_v32  ;;  %7478 = vmatmul.mubr.bf16.vlgmr.msra.gmra.mrb[0].mxu1 %v1364_v32  ;;  %v9894_v32 = vld [vmem:[%s11197_s4 + $0x9ec] ss:$16 sps:$4 sm:$0xff]  }
 0x148   : > { %6831 = vmatpush1.bf16.msra.mxu0 %v9799_v33  ;;  %7487 = vmatpush1.bf16.msra.mxu1 %v9802_v34  ;;  %v9889_v33 = vld [vmem:[%s11197_s4 + $0x9e0] ss:$16 sps:$4 sm:$0xff]   ;;  %v9892_v34 = vld [vmem:[%s11197_s4 + $0x9e8] ss:$16 sps:$4 sm:$0xff]  }
 0x149   : > { %6832 = vmatprep.subr.bf16.mxu0 %v9807_v26  ;;  %7488 = vmatprep.subr.bf16.mxu1 %v9810_v35  ;;  %v9897_v26 = vld [vmem:[%s11197_s4 + $0xa04] ss:$16 sps:$4 sm:$0xff]   ;;  %v9900_v35 = vld [vmem:[%s11197_s4 + $0xa0c] ss:$16 sps:$4 sm:$0xff]  }
 0x14a   : > { %6862 = vmatprep.mubr.bf16.mxu0 %v11532_v36  ;;  %7518 = vmatprep.mubr.bf16.mxu1 %v11532_v36 }
 0x14c   : > { %6833 = vmatpush1.bf16.msra.mxu0 %v9805_v14  ;;  %7489 = vmatpush1.bf16.msra.mxu1 %v9808_v37  ;;  %v11598_v14 = vrot.slane %v11513_v22, %v11271_v50  ;;  %v9895_v37 = vld [vmem:[%s11197_s4 + $0xa00] ss:$16 sps:$4 sm:$0xff]  }
 0x14d   : > { %6834 = vmatprep.subr.bf16.mxu0 %v9813_v38  ;;  %7490 = vmatprep.subr.bf16.mxu1 %v9816_v39  ;;  %v9898_v38 = vld [vmem:[%s11197_s4 + $0xa08] ss:$16 sps:$4 sm:$0xff]   ;;  %v9903_v39 = vld [vmem:[%s11197_s4 + $0xa24] ss:$16 sps:$4 sm:$0xff]   ;;  %v9901_v22 = vld [vmem:[%s11197_s4 + $0xa20] ss:$16 sps:$4 sm:$0xff]  }
 0x150   : > { %6835 = vmatpush1.bf16.msra.mxu0 %v9811_v40  ;;  %7491 = vmatpush1.bf16.msra.mxu1 %v9814_v41  ;;  %v9906_v40 = vld [vmem:[%s11197_s4 + $0xa2c] ss:$16 sps:$4 sm:$0xff]   ;;  %v1414_v41 = vcombine.high %v11532_v36, %v11532_v36  ;;  %v9907_v36 = vld [vmem:[%s11197_s4 + $0xa40] ss:$16 sps:$4 sm:$0xff]  }
 0x151   : > { %6836 = vmatprep.subr.bf16.mxu0 %v9819_v42  ;;  %7492 = vmatprep.subr.bf16.mxu1 %v9822_v43  ;;  %v9904_v42 = vld [vmem:[%s11197_s4 + $0xa28] ss:$16 sps:$4 sm:$0xff]   ;;  %v9909_v43 = vld [vmem:[%s11197_s4 + $0xa44] ss:$16 sps:$4 sm:$0xff]  }
 0x154   : > { %6837 = vmatpush1.bf16.msra.mxu0 %v9817_v45  ;;  %7493 = vmatpush1.bf16.msra.mxu1 %v9820_v46  ;;  %v9912_v45 = vld [vmem:[%s11197_s4 + $0xa4c] ss:$16 sps:$4 sm:$0xff]   ;;  %v9910_v46 = vld [vmem:[%s11197_s4 + $0xa48] ss:$16 sps:$4 sm:$0xff]  }
 0x155   : > { %6838 = vmatprep.subr.bf16.mxu0 %v9825_v47  ;;  %7494 = vmatprep.subr.bf16.mxu1 %v9828_v48  ;;  %v9915_v47 = vld [vmem:[%s11197_s4 + $0xa64] ss:$16 sps:$4 sm:$0xff]   ;;  %v9918_v48 = vld [vmem:[%s11197_s4 + $0xa6c] ss:$16 sps:$4 sm:$0xff]  }
 0x158   : > { %6839 = vmatpush1.bf16.msra.mxu0 %v9823_v49  ;;  %7495 = vmatpush1.bf16.msra.mxu1 %v9826_v51  ;;  %v9913_v49 = vld [vmem:[%s11197_s4 + $0xa60] ss:$16 sps:$4 sm:$0xff]   ;;  %v9916_v51 = vld [vmem:[%s11197_s4 + $0xa68] ss:$16 sps:$4 sm:$0xff]  }
 0x159   : > { %6840 = vmatprep.subr.bf16.mxu0 %v9831_v52  ;;  %7496 = vmatprep.subr.bf16.mxu1 %v9834_v54  ;;  %v9921_v52 = vld [vmem:[%s11197_s4 + $0xa84] ss:$16 sps:$4 sm:$0xff]   ;;  %v9924_v54 = vld [vmem:[%s11197_s4 + $0xa8c] ss:$16 sps:$4 sm:$0xff]  }
 0x15c   : > { %6841 = vmatpush1.bf16.msra.mxu0 %v9829_v55  ;;  %7497 = vmatpush1.bf16.msra.mxu1 %v9832_v56  ;;  %v9919_v55 = vld [vmem:[%s11197_s4 + $0xa80] ss:$16 sps:$4 sm:$0xff]   ;;  %v9922_v56 = vld [vmem:[%s11197_s4 + $0xa88] ss:$16 sps:$4 sm:$0xff]  }
 0x15d   : > { %6842 = vmatprep.subr.bf16.mxu0 %v9837_v57  ;;  %7498 = vmatprep.subr.bf16.mxu1 %v9840_v58  ;;  %v9927_v57 = vld [vmem:[%s11197_s4 + $0xaa4] ss:$16 sps:$4 sm:$0xff]   ;;  %v9930_v58 = vld [vmem:[%s11197_s4 + $0xaac] ss:$16 sps:$4 sm:$0xff]  }
 0x160   : > { %6843 = vmatpush1.bf16.msra.mxu0 %v9835_v59  ;;  %7499 = vmatpush1.bf16.msra.mxu1 %v9838_v60  ;;  %v9925_v59 = vld [vmem:[%s11197_s4 + $0xaa0] ss:$16 sps:$4 sm:$0xff]   ;;  %v9928_v60 = vld [vmem:[%s11197_s4 + $0xaa8] ss:$16 sps:$4 sm:$0xff]  }
 0x161   : > { %6844 = vmatprep.subr.bf16.mxu0 %v9843_v61  ;;  %7500 = vmatprep.subr.bf16.mxu1 %v9846_v62  ;;  %v9933_v61 = vld [vmem:[%s11197_s4 + $0xac4] ss:$16 sps:$4 sm:$0xff]   ;;  %v9936_v62 = vld [vmem:[%s11197_s4 + $0xacc] ss:$16 sps:$4 sm:$0xff]  }
 0x164   : > { %6845 = vmatpush1.bf16.msra.mxu0 %v9841_v63  ;;  %7501 = vmatpush1.bf16.msra.mxu1 %v9844_v0  ;;  %v9931_v63 = vld [vmem:[%s11197_s4 + $0xac0] ss:$16 sps:$4 sm:$0xff]   ;;  %v9934_v0 = vld [vmem:[%s11197_s4 + $0xac8] ss:$16 sps:$4 sm:$0xff]  }
 0x165   : > { %6846 = vmatprep.subr.bf16.mxu0 %v9849_v1  ;;  %7502 = vmatprep.subr.bf16.mxu1 %v9852_v2  ;;  %v9939_v1 = vld [vmem:[%s11197_s4 + $0xae4] ss:$16 sps:$4 sm:$0xff]   ;;  %v9942_v2 = vld [vmem:[%s11197_s4 + $0xaec] ss:$16 sps:$4 sm:$0xff]  }
 0x168   : > { %6847 = vmatpush1.bf16.msra.mxu0 %v9847_v3  ;;  %7503 = vmatpush1.bf16.msra.mxu1 %v9850_v4  ;;  %v9937_v3 = vld [vmem:[%s11197_s4 + $0xae0] ss:$16 sps:$4 sm:$0xff]   ;;  %v9940_v4 = vld [vmem:[%s11197_s4 + $0xae8] ss:$16 sps:$4 sm:$0xff]  }
 0x169   : > { %6848 = vmatprep.subr.bf16.mxu0 %v9855_v5  ;;  %7504 = vmatprep.subr.bf16.mxu1 %v9858_v6  ;;  %v9945_v5 = vld [vmem:[%s11197_s4 + $0xb04] ss:$16 sps:$4 sm:$0xff]   ;;  %v9948_v6 = vld [vmem:[%s11197_s4 + $0xb0c] ss:$16 sps:$4 sm:$0xff]  }
 0x16c   : > { %6849 = vmatpush1.bf16.msra.mxu0 %v9853_v7  ;;  %7505 = vmatpush1.bf16.msra.mxu1 %v9856_v8  ;;  %v9943_v7 = vld [vmem:[%s11197_s4 + $0xb00] ss:$16 sps:$4 sm:$0xff]   ;;  %v9946_v8 = vld [vmem:[%s11197_s4 + $0xb08] ss:$16 sps:$4 sm:$0xff]  }
 0x16d   : > { %6850 = vmatprep.subr.bf16.mxu0 %v9861_v9  ;;  %7506 = vmatprep.subr.bf16.mxu1 %v9864_v10  ;;  %v9951_v9 = vld [vmem:[%s11197_s4 + $0xb24] ss:$16 sps:$4 sm:$0xff]   ;;  %v9954_v10 = vld [vmem:[%s11197_s4 + $0xb2c] ss:$16 sps:$4 sm:$0xff]  }
 0x170   : > { %6851 = vmatpush1.bf16.msra.mxu0 %v9859_v11  ;;  %7507 = vmatpush1.bf16.msra.mxu1 %v9862_v12  ;;  %v9949_v11 = vld [vmem:[%s11197_s4 + $0xb20] ss:$16 sps:$4 sm:$0xff]   ;;  %v9952_v12 = vld [vmem:[%s11197_s4 + $0xb28] ss:$16 sps:$4 sm:$0xff]  }
 0x171   : > { %6852 = vmatprep.subr.bf16.mxu0 %v9867_v13  ;;  %7508 = vmatprep.subr.bf16.mxu1 %v9870_v15  ;;  %v9957_v13 = vld [vmem:[%s11197_s4 + $0xb44] ss:$16 sps:$4 sm:$0xff]   ;;  %v9960_v15 = vld [vmem:[%s11197_s4 + $0xb4c] ss:$16 sps:$4 sm:$0xff]  }
 0x174   : > { %6853 = vmatpush1.bf16.msra.mxu0 %v9865_v17  ;;  %7509 = vmatpush1.bf16.msra.mxu1 %v9868_v53  ;;  %v9955_v17 = vld [vmem:[%s11197_s4 + $0xb40] ss:$16 sps:$4 sm:$0xff]   ;;  %v9958_v53 = vld [vmem:[%s11197_s4 + $0xb48] ss:$16 sps:$4 sm:$0xff]  }
 0x175   : > { %6854 = vmatprep.subr.bf16.mxu0 %v9873_v18  ;;  %7510 = vmatprep.subr.bf16.mxu1 %v9876_v19  ;;  %v9963_v18 = vld [vmem:[%s11197_s4 + $0xb64] ss:$16 sps:$4 sm:$0xff]   ;;  %v9966_v19 = vld [vmem:[%s11197_s4 + $0xb6c] ss:$16 sps:$4 sm:$0xff]  }
 0x178   : > { %6855 = vmatpush1.bf16.msra.mxu0 %v9871_v20  ;;  %7511 = vmatpush1.bf16.msra.mxu1 %v9874_v21  ;;  %v9961_v20 = vld [vmem:[%s11197_s4 + $0xb60] ss:$16 sps:$4 sm:$0xff]   ;;  %v9964_v21 = vld [vmem:[%s11197_s4 + $0xb68] ss:$16 sps:$4 sm:$0xff]  }
 0x179   : > { %6856 = vmatprep.subr.bf16.mxu0 %v9879_v23  ;;  %7512 = vmatprep.subr.bf16.mxu1 %v9882_v24  ;;  %v9969_v23 = vld [vmem:[%s11197_s4 + $0xb84] ss:$16 sps:$4 sm:$0xff]   ;;  %v9972_v24 = vld [vmem:[%s11197_s4 + $0xb8c] ss:$16 sps:$4 sm:$0xff]  }
 0x17c   : > { %6857 = vmatpush1.bf16.msra.mxu0 %v9877_v25  ;;  %7513 = vmatpush1.bf16.msra.mxu1 %v9880_v27  ;;  %v9967_v25 = vld [vmem:[%s11197_s4 + $0xb80] ss:$16 sps:$4 sm:$0xff]   ;;  %v9970_v27 = vld [vmem:[%s11197_s4 + $0xb88] ss:$16 sps:$4 sm:$0xff]  }
 0x17d   : > { %6858 = vmatprep.subr.bf16.mxu0 %v9885_v28  ;;  %7514 = vmatprep.subr.bf16.mxu1 %v9888_v29  ;;  %v9975_v28 = vld [vmem:[%s11197_s4 + $0xba4] ss:$16 sps:$4 sm:$0xff]   ;;  %v9978_v29 = vld [vmem:[%s11197_s4 + $0xbac] ss:$16 sps:$4 sm:$0xff]  }
 0x180   : > { %6859 = vmatpush1.bf16.msra.mxu0 %v9883_v30  ;;  %7515 = vmatpush1.bf16.msra.mxu1 %v9886_v31  ;;  %v9973_v30 = vld [vmem:[%s11197_s4 + $0xba0] ss:$16 sps:$4 sm:$0xff]   ;;  %v9976_v31 = vld [vmem:[%s11197_s4 + $0xba8] ss:$16 sps:$4 sm:$0xff]  }
 0x181   : > { %6860 = vmatprep.subr.bf16.mxu0 %v9891_v16  ;;  %7516 = vmatprep.subr.bf16.mxu1 %v9894_v32  ;;  %v9981_v16 = vld [vmem:[%s11197_s4 + $0xbc4] ss:$16 sps:$4 sm:$0xff]   ;;  %v9984_v32 = vld [vmem:[%s11197_s4 + $0xbcc] ss:$16 sps:$4 sm:$0xff]  }
 0x184   : > { %6861 = vmatpush1.bf16.msra.mxu0 %v9889_v33  ;;  %7517 = vmatpush1.bf16.msra.mxu1 %v9892_v34  ;;  %v10954_v33 = vld [vmem:[%s11210_s6 + $0x8] sm:$0xff] }
 0x185   : > { %6871 = vmatprep.subr.bf16.mxu0 %v9897_v26  ;;  %7527 = vmatprep.subr.bf16.mxu1 %v9900_v35  ;;  %v1367_v34 = vcombine.high %v10954_v33, %v10954_v33  ;;  %v9979_v26 = vld [vmem:[%s11197_s4 + $0xbc0] ss:$16 sps:$4 sm:$0xff]   ;;  %v9982_v35 = vld [vmem:[%s11197_s4 + $0xbc8] ss:$16 sps:$4 sm:$0xff]  }
 0x186   : > { %v10063_v33 = vld [vmem:[%s11197_s4 + $0xd80] ss:$16 sps:$4 sm:$0xff]  }
 0x187   : > { %6863 = vmatmul.mubr.bf16.vlgmr.msra.gmra.mrb[0].mxu0 %v11598_v14  ;;  %7519 = vmatmul.mubr.bf16.vlgmr.msra.gmra.mrb[0].mxu1 %v11598_v14 }
 0x188   : > { %6872 = vmatpush1.bf16.msra.mxu0 %v9895_v37  ;;  %7528 = vmatpush1.bf16.msra.mxu1 %v9898_v38  ;;  %v9987_v37 = vld [vmem:[%s11197_s4 + $0xbe4] ss:$16 sps:$4 sm:$0xff]   ;;  %v9990_v38 = vld [vmem:[%s11197_s4 + $0xbec] ss:$16 sps:$4 sm:$0xff]  }
 0x189   : > { %6873 = vmatprep.subr.bf16.mxu0 %v9903_v39  ;;  %7529 = vmatprep.subr.bf16.mxu1 %v9906_v40  ;;  %v11666_v39 = vrot.slane %v1367_v34, %v11271_v50  ;;  %v9985_v40 = vld [vmem:[%s11197_s4 + $0xbe0] ss:$16 sps:$4 sm:$0xff]   ;;  %v10066_v34 = vld [vmem:[%s11197_s4 + $0xd88] ss:$16 sps:$4 sm:$0xff]  }
 0x18a   : > { %6903 = vmatprep.mubr.bf16.mxu0 %v1414_v41  ;;  %7559 = vmatprep.mubr.bf16.mxu1 %v1414_v41  ;;  %v9988_v41 = vld [vmem:[%s11197_s4 + $0xbe8] ss:$16 sps:$4 sm:$0xff]  }
 0x18c   : > { %6874 = vmatpush1.bf16.msra.mxu0 %v9901_v22  ;;  %7530 = vmatpush1.bf16.msra.mxu1 %v9904_v42  ;;  %v9993_v22 = vld [vmem:[%s11197_s4 + $0xc04] ss:$16 sps:$4 sm:$0xff]   ;;  %v9996_v42 = vld [vmem:[%s11197_s4 + $0xc0c] ss:$16 sps:$4 sm:$0xff]  }
 0x18d   : > { %6875 = vmatprep.subr.bf16.mxu0 %v9909_v43  ;;  %7531 = vmatprep.subr.bf16.mxu1 %v9912_v45  ;;  %v1383_v43 = vcombine.high %v11666_v39, %v11666_v39  ;;  %v1412_v45 = vcombine.high %v11598_v14, %v11598_v14  ;;  %v9997_v14 = vld [vmem:[%s11197_s4 + $0xc20] ss:$16 sps:$4 sm:$0xff]  }
 0x190   : > { %6876 = vmatpush1.bf16.msra.mxu0 %v9907_v36  ;;  %7532 = vmatpush1.bf16.msra.mxu1 %v9910_v46  ;;  %v9991_v36 = vld [vmem:[%s11197_s4 + $0xc00] ss:$16 sps:$4 sm:$0xff]   ;;  %v9994_v46 = vld [vmem:[%s11197_s4 + $0xc08] ss:$16 sps:$4 sm:$0xff]  }
 0x191   : > { %6877 = vmatprep.subr.bf16.mxu0 %v9915_v47  ;;  %7533 = vmatprep.subr.bf16.mxu1 %v9918_v48  ;;  %v9999_v47 = vld [vmem:[%s11197_s4 + $0xc24] ss:$16 sps:$4 sm:$0xff]   ;;  %v10002_v48 = vld [vmem:[%s11197_s4 + $0xc2c] ss:$16 sps:$4 sm:$0xff]  }
 0x194   : > { %6878 = vmatpush1.bf16.msra.mxu0 %v9913_v49  ;;  %7534 = vmatpush1.bf16.msra.mxu1 %v9916_v51  ;;  %v11681_v49 = vrot.slane %v1383_v43, %v11271_v50  ;;  %v10000_v51 = vld [vmem:[%s11197_s4 + $0xc28] ss:$16 sps:$4 sm:$0xff]   ;;  %v10083_v43 = vld [vmem:[%s11197_s4 + $0xde4] ss:$16 sps:$4 sm:$0xff]  }
 0x195   : > { %6879 = vmatprep.subr.bf16.mxu0 %v9921_v52  ;;  %7535 = vmatprep.subr.bf16.mxu1 %v9924_v54  ;;  %v10005_v52 = vld [vmem:[%s11197_s4 + $0xc44] ss:$16 sps:$4 sm:$0xff]   ;;  %v10008_v54 = vld [vmem:[%s11197_s4 + $0xc4c] ss:$16 sps:$4 sm:$0xff]  }
 0x198   : > { %6880 = vmatpush1.bf16.msra.mxu0 %v9919_v55  ;;  %7536 = vmatpush1.bf16.msra.mxu1 %v9922_v56  ;;  %v10003_v55 = vld [vmem:[%s11197_s4 + $0xc40] ss:$16 sps:$4 sm:$0xff]   ;;  %v10006_v56 = vld [vmem:[%s11197_s4 + $0xc48] ss:$16 sps:$4 sm:$0xff]  }
 0x199   : > { %6881 = vmatprep.subr.bf16.mxu0 %v9927_v57  ;;  %7537 = vmatprep.subr.bf16.mxu1 %v9930_v58  ;;  %v10011_v57 = vld [vmem:[%s11197_s4 + $0xc64] ss:$16 sps:$4 sm:$0xff]   ;;  %v10014_v58 = vld [vmem:[%s11197_s4 + $0xc6c] ss:$16 sps:$4 sm:$0xff]  }
 0x19c   : > { %6882 = vmatpush1.bf16.msra.mxu0 %v9925_v59  ;;  %7538 = vmatpush1.bf16.msra.mxu1 %v9928_v60  ;;  %v10009_v59 = vld [vmem:[%s11197_s4 + $0xc60] ss:$16 sps:$4 sm:$0xff]   ;;  %v10012_v60 = vld [vmem:[%s11197_s4 + $0xc68] ss:$16 sps:$4 sm:$0xff]  }
 0x19d   : > { %6883 = vmatprep.subr.bf16.mxu0 %v9933_v61  ;;  %7539 = vmatprep.subr.bf16.mxu1 %v9936_v62  ;;  %v10017_v61 = vld [vmem:[%s11197_s4 + $0xc84] ss:$16 sps:$4 sm:$0xff]   ;;  %v10020_v62 = vld [vmem:[%s11197_s4 + $0xc8c] ss:$16 sps:$4 sm:$0xff]  }
 0x1a0   : > { %6884 = vmatpush1.bf16.msra.mxu0 %v9931_v63  ;;  %7540 = vmatpush1.bf16.msra.mxu1 %v9934_v0  ;;  %v10015_v63 = vld [vmem:[%s11197_s4 + $0xc80] ss:$16 sps:$4 sm:$0xff]   ;;  %v10018_v0 = vld [vmem:[%s11197_s4 + $0xc88] ss:$16 sps:$4 sm:$0xff]  }
 0x1a1   : > { %6885 = vmatprep.subr.bf16.mxu0 %v9939_v1  ;;  %7541 = vmatprep.subr.bf16.mxu1 %v9942_v2  ;;  %v10023_v1 = vld [vmem:[%s11197_s4 + $0xca4] ss:$16 sps:$4 sm:$0xff]   ;;  %v10026_v2 = vld [vmem:[%s11197_s4 + $0xcac] ss:$16 sps:$4 sm:$0xff]  }
 0x1a4   : > { %6886 = vmatpush1.bf16.msra.mxu0 %v9937_v3  ;;  %7542 = vmatpush1.bf16.msra.mxu1 %v9940_v4  ;;  %v10021_v3 = vld [vmem:[%s11197_s4 + $0xca0] ss:$16 sps:$4 sm:$0xff]   ;;  %v10024_v4 = vld [vmem:[%s11197_s4 + $0xca8] ss:$16 sps:$4 sm:$0xff]  }
 0x1a5   : > { %6887 = vmatprep.subr.bf16.mxu0 %v9945_v5  ;;  %7543 = vmatprep.subr.bf16.mxu1 %v9948_v6  ;;  %v10029_v5 = vld [vmem:[%s11197_s4 + $0xcc4] ss:$16 sps:$4 sm:$0xff]   ;;  %v10032_v6 = vld [vmem:[%s11197_s4 + $0xccc] ss:$16 sps:$4 sm:$0xff]  }
 0x1a8   : > { %6888 = vmatpush1.bf16.msra.mxu0 %v9943_v7  ;;  %7544 = vmatpush1.bf16.msra.mxu1 %v9946_v8  ;;  %v10027_v7 = vld [vmem:[%s11197_s4 + $0xcc0] ss:$16 sps:$4 sm:$0xff]   ;;  %v10030_v8 = vld [vmem:[%s11197_s4 + $0xcc8] ss:$16 sps:$4 sm:$0xff]  }
 0x1a9   : > { %6889 = vmatprep.subr.bf16.mxu0 %v9951_v9  ;;  %7545 = vmatprep.subr.bf16.mxu1 %v9954_v10  ;;  %v10035_v9 = vld [vmem:[%s11197_s4 + $0xce4] ss:$16 sps:$4 sm:$0xff]   ;;  %v10038_v10 = vld [vmem:[%s11197_s4 + $0xcec] ss:$16 sps:$4 sm:$0xff]  }
 0x1ac   : > { %6890 = vmatpush1.bf16.msra.mxu0 %v9949_v11  ;;  %7546 = vmatpush1.bf16.msra.mxu1 %v9952_v12  ;;  %v10033_v11 = vld [vmem:[%s11197_s4 + $0xce0] ss:$16 sps:$4 sm:$0xff]   ;;  %v10036_v12 = vld [vmem:[%s11197_s4 + $0xce8] ss:$16 sps:$4 sm:$0xff]  }
 0x1ad   : > { %6891 = vmatprep.subr.bf16.mxu0 %v9957_v13  ;;  %7547 = vmatprep.subr.bf16.mxu1 %v9960_v15  ;;  %v10041_v13 = vld [vmem:[%s11197_s4 + $0xd04] ss:$16 sps:$4 sm:$0xff]   ;;  %v10044_v15 = vld [vmem:[%s11197_s4 + $0xd0c] ss:$16 sps:$4 sm:$0xff]  }
 0x1b0   : > { %6892 = vmatpush1.bf16.msra.mxu0 %v9955_v17  ;;  %7548 = vmatpush1.bf16.msra.mxu1 %v9958_v53  ;;  %v10039_v17 = vld [vmem:[%s11197_s4 + $0xd00] ss:$16 sps:$4 sm:$0xff]   ;;  %v10042_v53 = vld [vmem:[%s11197_s4 + $0xd08] ss:$16 sps:$4 sm:$0xff]  }
 0x1b1   : > { %6893 = vmatprep.subr.bf16.mxu0 %v9963_v18  ;;  %7549 = vmatprep.subr.bf16.mxu1 %v9966_v19  ;;  %v10047_v18 = vld [vmem:[%s11197_s4 + $0xd24] ss:$16 sps:$4 sm:$0xff]   ;;  %v10050_v19 = vld [vmem:[%s11197_s4 + $0xd2c] ss:$16 sps:$4 sm:$0xff]  }
 0x1b4   : > { %6894 = vmatpush1.bf16.msra.mxu0 %v9961_v20  ;;  %7550 = vmatpush1.bf16.msra.mxu1 %v9964_v21  ;;  %v10045_v20 = vld [vmem:[%s11197_s4 + $0xd20] ss:$16 sps:$4 sm:$0xff]   ;;  %v10048_v21 = vld [vmem:[%s11197_s4 + $0xd28] ss:$16 sps:$4 sm:$0xff]  }
 0x1b5   : > { %6895 = vmatprep.subr.bf16.mxu0 %v9969_v23  ;;  %7551 = vmatprep.subr.bf16.mxu1 %v9972_v24  ;;  %v10053_v23 = vld [vmem:[%s11197_s4 + $0xd44] ss:$16 sps:$4 sm:$0xff]   ;;  %v10056_v24 = vld [vmem:[%s11197_s4 + $0xd4c] ss:$16 sps:$4 sm:$0xff]  }
 0x1b8   : > { %6896 = vmatpush1.bf16.msra.mxu0 %v9967_v25  ;;  %7552 = vmatpush1.bf16.msra.mxu1 %v9970_v27  ;;  %v10051_v25 = vld [vmem:[%s11197_s4 + $0xd40] ss:$16 sps:$4 sm:$0xff]   ;;  %v10054_v27 = vld [vmem:[%s11197_s4 + $0xd48] ss:$16 sps:$4 sm:$0xff]  }
 0x1b9   : > { %6897 = vmatprep.subr.bf16.mxu0 %v9975_v28  ;;  %7553 = vmatprep.subr.bf16.mxu1 %v9978_v29  ;;  %v10059_v28 = vld [vmem:[%s11197_s4 + $0xd64] ss:$16 sps:$4 sm:$0xff]   ;;  %v10062_v29 = vld [vmem:[%s11197_s4 + $0xd6c] ss:$16 sps:$4 sm:$0xff]  }
 0x1bc   : > { %6898 = vmatpush1.bf16.msra.mxu0 %v9973_v30  ;;  %7554 = vmatpush1.bf16.msra.mxu1 %v9976_v31  ;;  %v10057_v30 = vld [vmem:[%s11197_s4 + $0xd60] ss:$16 sps:$4 sm:$0xff]   ;;  %v10060_v31 = vld [vmem:[%s11197_s4 + $0xd68] ss:$16 sps:$4 sm:$0xff]  }
 0x1bd   : > { %6899 = vmatprep.subr.bf16.mxu0 %v9981_v16  ;;  %7555 = vmatprep.subr.bf16.mxu1 %v9984_v32  ;;  %v10065_v16 = vld [vmem:[%s11197_s4 + $0xd84] ss:$16 sps:$4 sm:$0xff]   ;;  %v10068_v32 = vld [vmem:[%s11197_s4 + $0xd8c] ss:$16 sps:$4 sm:$0xff]  }
 0x1c0   : > { %6900 = vmatpush1.bf16.msra.mxu0 %v9979_v26  ;;  %7556 = vmatpush1.bf16.msra.mxu1 %v9982_v35  ;;  %v10071_v26 = vld [vmem:[%s11197_s4 + $0xda4] ss:$16 sps:$4 sm:$0xff]   ;;  %v10074_v35 = vld [vmem:[%s11197_s4 + $0xdac] ss:$16 sps:$4 sm:$0xff]  }
 0x1c1   : > { %6901 = vmatprep.subr.bf16.mxu0 %v9987_v37  ;;  %7557 = vmatprep.subr.bf16.mxu1 %v9990_v38  ;;  %v10069_v37 = vld [vmem:[%s11197_s4 + $0xda0] ss:$16 sps:$4 sm:$0xff]   ;;  %v10072_v38 = vld [vmem:[%s11197_s4 + $0xda8] ss:$16 sps:$4 sm:$0xff]  }
 0x1c4   : > { %6902 = vmatpush1.bf16.msra.mxu0 %v9985_v40  ;;  %7558 = vmatpush1.bf16.msra.mxu1 %v9988_v41  ;;  %v10077_v40 = vld [vmem:[%s11197_s4 + $0xdc4] ss:$16 sps:$4 sm:$0xff]   ;;  %v10080_v41 = vld [vmem:[%s11197_s4 + $0xdcc] ss:$16 sps:$4 sm:$0xff]  }
 0x1c5   : > { %6912 = vmatprep.subr.bf16.mxu0 %v9993_v22  ;;  %7568 = vmatprep.subr.bf16.mxu1 %v9996_v42  ;;  %v10075_v22 = vld [vmem:[%s11197_s4 + $0xdc0] ss:$16 sps:$4 sm:$0xff]   ;;  %v10078_v42 = vld [vmem:[%s11197_s4 + $0xdc8] ss:$16 sps:$4 sm:$0xff]  }
 0x1c7   : > { %6904 = vmatmul.mubr.bf16.vlgmr.msra.gmra.mrb[0].mxu0 %v1412_v45  ;;  %7560 = vmatmul.mubr.bf16.vlgmr.msra.gmra.mrb[0].mxu1 %v1412_v45  ;;  %v10086_v45 = vld [vmem:[%s11197_s4 + $0xdec] ss:$16 sps:$4 sm:$0xff]  }
 0x1c8   : > { %6913 = vmatpush1.bf16.msra.mxu0 %v9991_v36  ;;  %7569 = vmatpush1.bf16.msra.mxu1 %v9994_v46  ;;  %v10081_v36 = vld [vmem:[%s11197_s4 + $0xde0] ss:$16 sps:$4 sm:$0xff]   ;;  %v10084_v46 = vld [vmem:[%s11197_s4 + $0xde8] ss:$16 sps:$4 sm:$0xff]  }
 0x1c9   : > { %6914 = vmatprep.subr.bf16.mxu0 %v9999_v47  ;;  %7570 = vmatprep.subr.bf16.mxu1 %v10002_v48  ;;  %v10090_v47 = vld [vmem:[%s11197_s4 + $0xe04] ss:$16 sps:$4 sm:$0xff]   ;;  %v10093_v48 = vld [vmem:[%s11197_s4 + $0xe0c] ss:$16 sps:$4 sm:$0xff]  }
 0x1ca   : > { %6944 = vmatprep.mubr.bf16.mxu0 %v11681_v49  ;;  %7600 = vmatprep.mubr.bf16.mxu1 %v11681_v49 }
 0x1cc   : > { %6915 = vmatpush1.bf16.msra.mxu0 %v9997_v14  ;;  %7571 = vmatpush1.bf16.msra.mxu1 %v10000_v51  ;;  %v11747_v14 = vrot.slane %v11666_v39, %v11271_v50  ;;  %v10088_v51 = vld [vmem:[%s11197_s4 + $0xe00] ss:$16 sps:$4 sm:$0xff]  }
 0x1cd   : > { %6916 = vmatprep.subr.bf16.mxu0 %v10005_v52  ;;  %7572 = vmatprep.subr.bf16.mxu1 %v10008_v54  ;;  %v10091_v52 = vld [vmem:[%s11197_s4 + $0xe08] ss:$16 sps:$4 sm:$0xff]   ;;  %v10096_v54 = vld [vmem:[%s11197_s4 + $0xe24] ss:$16 sps:$4 sm:$0xff]   ;;  %v10094_v39 = vld [vmem:[%s11197_s4 + $0xe20] ss:$16 sps:$4 sm:$0xff]  }
 0x1d0   : > { %6917 = vmatpush1.bf16.msra.mxu0 %v10003_v55  ;;  %7573 = vmatpush1.bf16.msra.mxu1 %v10006_v56  ;;  %v10099_v55 = vld [vmem:[%s11197_s4 + $0xe2c] ss:$16 sps:$4 sm:$0xff]   ;;  %v1415_v56 = vcombine.high %v11681_v49, %v11681_v49  ;;  %v10100_v49 = vld [vmem:[%s11197_s4 + $0xe40] ss:$16 sps:$4 sm:$0xff]  }
 0x1d1   : > { %6918 = vmatprep.subr.bf16.mxu0 %v10011_v57  ;;  %7574 = vmatprep.subr.bf16.mxu1 %v10014_v58  ;;  %v10097_v57 = vld [vmem:[%s11197_s4 + $0xe28] ss:$16 sps:$4 sm:$0xff]   ;;  %v10102_v58 = vld [vmem:[%s11197_s4 + $0xe44] ss:$16 sps:$4 sm:$0xff]  }
 0x1d4   : > { %6919 = vmatpush1.bf16.msra.mxu0 %v10009_v59  ;;  %7575 = vmatpush1.bf16.msra.mxu1 %v10012_v60  ;;  %v10105_v59 = vld [vmem:[%s11197_s4 + $0xe4c] ss:$16 sps:$4 sm:$0xff]   ;;  %v10103_v60 = vld [vmem:[%s11197_s4 + $0xe48] ss:$16 sps:$4 sm:$0xff]  }
 0x1d5   : > { %6920 = vmatprep.subr.bf16.mxu0 %v10017_v61  ;;  %7576 = vmatprep.subr.bf16.mxu1 %v10020_v62  ;;  %v10108_v61 = vld [vmem:[%s11197_s4 + $0xe64] ss:$16 sps:$4 sm:$0xff]   ;;  %v10111_v62 = vld [vmem:[%s11197_s4 + $0xe6c] ss:$16 sps:$4 sm:$0xff]  }
 0x1d8   : > { %6921 = vmatpush1.bf16.msra.mxu0 %v10015_v63  ;;  %7577 = vmatpush1.bf16.msra.mxu1 %v10018_v0  ;;  %v10106_v63 = vld [vmem:[%s11197_s4 + $0xe60] ss:$16 sps:$4 sm:$0xff]   ;;  %v10109_v0 = vld [vmem:[%s11197_s4 + $0xe68] ss:$16 sps:$4 sm:$0xff]  }
 0x1d9   : > { %6922 = vmatprep.subr.bf16.mxu0 %v10023_v1  ;;  %7578 = vmatprep.subr.bf16.mxu1 %v10026_v2  ;;  %v10114_v1 = vld [vmem:[%s11197_s4 + $0xe84] ss:$16 sps:$4 sm:$0xff]   ;;  %v10117_v2 = vld [vmem:[%s11197_s4 + $0xe8c] ss:$16 sps:$4 sm:$0xff]  }
 0x1dc   : > { %6923 = vmatpush1.bf16.msra.mxu0 %v10021_v3  ;;  %7579 = vmatpush1.bf16.msra.mxu1 %v10024_v4  ;;  %v10112_v3 = vld [vmem:[%s11197_s4 + $0xe80] ss:$16 sps:$4 sm:$0xff]   ;;  %v10115_v4 = vld [vmem:[%s11197_s4 + $0xe88] ss:$16 sps:$4 sm:$0xff]  }
 0x1dd   : > { %6924 = vmatprep.subr.bf16.mxu0 %v10029_v5  ;;  %7580 = vmatprep.subr.bf16.mxu1 %v10032_v6  ;;  %v10120_v5 = vld [vmem:[%s11197_s4 + $0xea4] ss:$16 sps:$4 sm:$0xff]   ;;  %v10123_v6 = vld [vmem:[%s11197_s4 + $0xeac] ss:$16 sps:$4 sm:$0xff]  }
 0x1e0   : > { %6925 = vmatpush1.bf16.msra.mxu0 %v10027_v7  ;;  %7581 = vmatpush1.bf16.msra.mxu1 %v10030_v8  ;;  %v10118_v7 = vld [vmem:[%s11197_s4 + $0xea0] ss:$16 sps:$4 sm:$0xff]   ;;  %v10121_v8 = vld [vmem:[%s11197_s4 + $0xea8] ss:$16 sps:$4 sm:$0xff]  }
 0x1e1   : > { %6926 = vmatprep.subr.bf16.mxu0 %v10035_v9  ;;  %7582 = vmatprep.subr.bf16.mxu1 %v10038_v10  ;;  %v10126_v9 = vld [vmem:[%s11197_s4 + $0xec4] ss:$16 sps:$4 sm:$0xff]   ;;  %v10129_v10 = vld [vmem:[%s11197_s4 + $0xecc] ss:$16 sps:$4 sm:$0xff]  }
 0x1e4   : > { %6927 = vmatpush1.bf16.msra.mxu0 %v10033_v11  ;;  %7583 = vmatpush1.bf16.msra.mxu1 %v10036_v12  ;;  %v10124_v11 = vld [vmem:[%s11197_s4 + $0xec0] ss:$16 sps:$4 sm:$0xff]   ;;  %v10127_v12 = vld [vmem:[%s11197_s4 + $0xec8] ss:$16 sps:$4 sm:$0xff]  }
 0x1e5   : > { %6928 = vmatprep.subr.bf16.mxu0 %v10041_v13  ;;  %7584 = vmatprep.subr.bf16.mxu1 %v10044_v15  ;;  %v10132_v13 = vld [vmem:[%s11197_s4 + $0xee4] ss:$16 sps:$4 sm:$0xff]   ;;  %v10135_v15 = vld [vmem:[%s11197_s4 + $0xeec] ss:$16 sps:$4 sm:$0xff]  }
 0x1e8   : > { %6929 = vmatpush1.bf16.msra.mxu0 %v10039_v17  ;;  %7585 = vmatpush1.bf16.msra.mxu1 %v10042_v53  ;;  %v10130_v17 = vld [vmem:[%s11197_s4 + $0xee0] ss:$16 sps:$4 sm:$0xff]   ;;  %v10133_v53 = vld [vmem:[%s11197_s4 + $0xee8] ss:$16 sps:$4 sm:$0xff]  }
 0x1e9   : > { %6930 = vmatprep.subr.bf16.mxu0 %v10047_v18  ;;  %7586 = vmatprep.subr.bf16.mxu1 %v10050_v19  ;;  %v10138_v18 = vld [vmem:[%s11197_s4 + $0xf04] ss:$16 sps:$4 sm:$0xff]   ;;  %v10141_v19 = vld [vmem:[%s11197_s4 + $0xf0c] ss:$16 sps:$4 sm:$0xff]  }
 0x1ec   : > { %6931 = vmatpush1.bf16.msra.mxu0 %v10045_v20  ;;  %7587 = vmatpush1.bf16.msra.mxu1 %v10048_v21  ;;  %v10136_v20 = vld [vmem:[%s11197_s4 + $0xf00] ss:$16 sps:$4 sm:$0xff]   ;;  %v10139_v21 = vld [vmem:[%s11197_s4 + $0xf08] ss:$16 sps:$4 sm:$0xff]  }
 0x1ed   : > { %6932 = vmatprep.subr.bf16.mxu0 %v10053_v23  ;;  %7588 = vmatprep.subr.bf16.mxu1 %v10056_v24  ;;  %v10144_v23 = vld [vmem:[%s11197_s4 + $0xf24] ss:$16 sps:$4 sm:$0xff]   ;;  %v10147_v24 = vld [vmem:[%s11197_s4 + $0xf2c] ss:$16 sps:$4 sm:$0xff]  }
 0x1f0   : > { %6933 = vmatpush1.bf16.msra.mxu0 %v10051_v25  ;;  %7589 = vmatpush1.bf16.msra.mxu1 %v10054_v27  ;;  %v10142_v25 = vld [vmem:[%s11197_s4 + $0xf20] ss:$16 sps:$4 sm:$0xff]   ;;  %v10145_v27 = vld [vmem:[%s11197_s4 + $0xf28] ss:$16 sps:$4 sm:$0xff]  }
 0x1f1   : > { %6934 = vmatprep.subr.bf16.mxu0 %v10059_v28  ;;  %7590 = vmatprep.subr.bf16.mxu1 %v10062_v29  ;;  %v10150_v28 = vld [vmem:[%s11197_s4 + $0xf44] ss:$16 sps:$4 sm:$0xff]   ;;  %v10153_v29 = vld [vmem:[%s11197_s4 + $0xf4c] ss:$16 sps:$4 sm:$0xff]  }
 0x1f4   : > { %6935 = vmatpush1.bf16.msra.mxu0 %v10057_v30  ;;  %7591 = vmatpush1.bf16.msra.mxu1 %v10060_v31  ;;  %v10148_v30 = vld [vmem:[%s11197_s4 + $0xf40] ss:$16 sps:$4 sm:$0xff]   ;;  %v10151_v31 = vld [vmem:[%s11197_s4 + $0xf48] ss:$16 sps:$4 sm:$0xff]  }
 0x1f5   : > { %6936 = vmatprep.subr.bf16.mxu0 %v10065_v16  ;;  %7592 = vmatprep.subr.bf16.mxu1 %v10068_v32  ;;  %v10156_v16 = vld [vmem:[%s11197_s4 + $0xf64] ss:$16 sps:$4 sm:$0xff]   ;;  %v10159_v32 = vld [vmem:[%s11197_s4 + $0xf6c] ss:$16 sps:$4 sm:$0xff]  }
 0x1f8   : > { %6937 = vmatpush1.bf16.msra.mxu0 %v10063_v33  ;;  %7593 = vmatpush1.bf16.msra.mxu1 %v10066_v34  ;;  %v10154_v33 = vld [vmem:[%s11197_s4 + $0xf60] ss:$16 sps:$4 sm:$0xff]   ;;  %v10157_v34 = vld [vmem:[%s11197_s4 + $0xf68] ss:$16 sps:$4 sm:$0xff]  }
 0x1f9   : > { %6938 = vmatprep.subr.bf16.mxu0 %v10071_v26  ;;  %7594 = vmatprep.subr.bf16.mxu1 %v10074_v35  ;;  %v10162_v26 = vld [vmem:[%s11197_s4 + $0xf84] ss:$16 sps:$4 sm:$0xff]   ;;  %v10165_v35 = vld [vmem:[%s11197_s4 + $0xf8c] ss:$16 sps:$4 sm:$0xff]  }
 0x1fc   : > { %6939 = vmatpush1.bf16.msra.mxu0 %v10069_v37  ;;  %7595 = vmatpush1.bf16.msra.mxu1 %v10072_v38  ;;  %v10160_v37 = vld [vmem:[%s11197_s4 + $0xf80] ss:$16 sps:$4 sm:$0xff]   ;;  %v10163_v38 = vld [vmem:[%s11197_s4 + $0xf88] ss:$16 sps:$4 sm:$0xff]  }
 0x1fd   : > { %6940 = vmatprep.subr.bf16.mxu0 %v10077_v40  ;;  %7596 = vmatprep.subr.bf16.mxu1 %v10080_v41  ;;  %v10168_v40 = vld [vmem:[%s11197_s4 + $0xfa4] ss:$16 sps:$4 sm:$0xff]   ;;  %v10171_v41 = vld [vmem:[%s11197_s4 + $0xfac] ss:$16 sps:$4 sm:$0xff]  }
 0x200   : > { %6941 = vmatpush1.bf16.msra.mxu0 %v10075_v22  ;;  %7597 = vmatpush1.bf16.msra.mxu1 %v10078_v42  ;;  %v10166_v22 = vld [vmem:[%s11197_s4 + $0xfa0] ss:$16 sps:$4 sm:$0xff]   ;;  %v10169_v42 = vld [vmem:[%s11197_s4 + $0xfa8] ss:$16 sps:$4 sm:$0xff]  }
 0x201   : > { %6942 = vmatprep.subr.bf16.mxu0 %v10083_v43  ;;  %7598 = vmatprep.subr.bf16.mxu1 %v10086_v45  ;;  %v10174_v43 = vld [vmem:[%s11197_s4 + $0xfc4] ss:$16 sps:$4 sm:$0xff]   ;;  %v10177_v45 = vld [vmem:[%s11197_s4 + $0xfcc] ss:$16 sps:$4 sm:$0xff]  }
 0x204   : > { %6943 = vmatpush1.bf16.msra.mxu0 %v10081_v36  ;;  %7599 = vmatpush1.bf16.msra.mxu1 %v10084_v46  ;;  %v11810_v36 = vld [vmem:[%s11210_s6 + $0x10] sm:$0xff] }
 0x205   : > { %6953 = vmatprep.subr.bf16.mxu0 %v10090_v47  ;;  %7609 = vmatprep.subr.bf16.mxu1 %v10093_v48  ;;  %v10172_v46 = vld [vmem:[%s11197_s4 + $0xfc0] ss:$16 sps:$4 sm:$0xff]   ;;  %v10175_v47 = vld [vmem:[%s11197_s4 + $0xfc8] ss:$16 sps:$4 sm:$0xff]   ;;  %v10180_v48 = vld [vmem:[%s11197_s4 + $0xfe4] ss:$16 sps:$4 sm:$0xff]  }
 0x207   : > { %6945 = vmatmul.mubr.bf16.vlgmr.msra.gmra.mrb[0].mxu0 %v11747_v14  ;;  %7601 = vmatmul.mubr.bf16.vlgmr.msra.gmra.mrb[0].mxu1 %v11747_v14 }
 0x208   : > { %6954 = vmatpush1.bf16.msra.mxu0 %v10088_v51  ;;  %7610 = vmatpush1.bf16.msra.mxu1 %v10091_v52  ;;  %v10183_v51 = vld [vmem:[%s11197_s4 + $0xfec] ss:$16 sps:$4 sm:$0xff]   ;;  %v11818_v52 = vrot.slane %v11810_v36, %v11271_v50 }
 0x209   : > { %6955 = vmatprep.subr.bf16.mxu0 %v10096_v54  ;;  %7611 = vmatprep.subr.bf16.mxu1 %v10099_v55  ;;  %v10178_v54 = vld [vmem:[%s11197_s4 + $0xfe0] ss:$16 sps:$4 sm:$0xff]   ;;  %v10181_v55 = vld [vmem:[%s11197_s4 + $0xfe8] ss:$16 sps:$4 sm:$0xff]  }
 0x20a   : > { %6985 = vmatprep.mubr.bf16.mxu0 %v1415_v56  ;;  %7641 = vmatprep.mubr.bf16.mxu1 %v1415_v56  ;;  %v10186_v56 = vld [vmem:[%s11197_s4 + $0x1004] ss:$16 sps:$4 sm:$0xff]  }
 0x20c   : > { %6956 = vmatpush1.bf16.msra.mxu0 %v10094_v39  ;;  %7612 = vmatpush1.bf16.msra.mxu1 %v10097_v57  ;;  %v10189_v39 = vld [vmem:[%s11197_s4 + $0x100c] ss:$16 sps:$4 sm:$0xff]   ;;  %v1431_v57 = vcombine.high %v11818_v52, %v11818_v52 }
 0x20d   : > { %6957 = vmatprep.subr.bf16.mxu0 %v10102_v58  ;;  %7613 = vmatprep.subr.bf16.mxu1 %v10105_v59  ;;  %v1413_v58 = vcombine.high %v11747_v14, %v11747_v14  ;;  %v10184_v59 = vld [vmem:[%s11197_s4 + $0x1000] ss:$16 sps:$4 sm:$0xff]  }
 0x20e   : > { %v10190_v14 = vld [vmem:[%s11197_s4 + $0x1020] ss:$16 sps:$4 sm:$0xff]  }
 0x210   : > { %6958 = vmatpush1.bf16.msra.mxu0 %v10100_v49  ;;  %7614 = vmatpush1.bf16.msra.mxu1 %v10103_v60  ;;  %v10187_v49 = vld [vmem:[%s11197_s4 + $0x1008] ss:$16 sps:$4 sm:$0xff]   ;;  %v10192_v60 = vld [vmem:[%s11197_s4 + $0x1024] ss:$16 sps:$4 sm:$0xff]  }
 0x211   : > { %6959 = vmatprep.subr.bf16.mxu0 %v10108_v61  ;;  %7615 = vmatprep.subr.bf16.mxu1 %v10111_v62  ;;  %v10195_v61 = vld [vmem:[%s11197_s4 + $0x102c] ss:$16 sps:$4 sm:$0xff]   ;;  %v11833_v62 = vrot.slane %v1431_v57, %v11271_v50  ;;  %v10271_v57 = vld [vmem:[%s11197_s4 + $0x11c8] ss:$16 sps:$4 sm:$0xff]  }
 0x214   : > { %6960 = vmatpush1.bf16.msra.mxu0 %v10106_v63  ;;  %7616 = vmatpush1.bf16.msra.mxu1 %v10109_v0  ;;  %v10193_v63 = vld [vmem:[%s11197_s4 + $0x1028] ss:$16 sps:$4 sm:$0xff]   ;;  %v10198_v0 = vld [vmem:[%s11197_s4 + $0x1044] ss:$16 sps:$4 sm:$0xff]  }
 0x215   : > { %6961 = vmatprep.subr.bf16.mxu0 %v10114_v1  ;;  %7617 = vmatprep.subr.bf16.mxu1 %v10117_v2  ;;  %v10201_v1 = vld [vmem:[%s11197_s4 + $0x104c] ss:$16 sps:$4 sm:$0xff]   ;;  %v10196_v2 = vld [vmem:[%s11197_s4 + $0x1040] ss:$16 sps:$4 sm:$0xff]  }
 0x218   : > { %6962 = vmatpush1.bf16.msra.mxu0 %v10112_v3  ;;  %7618 = vmatpush1.bf16.msra.mxu1 %v10115_v4  ;;  %v10199_v3 = vld [vmem:[%s11197_s4 + $0x1048] ss:$16 sps:$4 sm:$0xff]   ;;  %v10204_v4 = vld [vmem:[%s11197_s4 + $0x1064] ss:$16 sps:$4 sm:$0xff]  }
 0x219   : > { %6963 = vmatprep.subr.bf16.mxu0 %v10120_v5  ;;  %7619 = vmatprep.subr.bf16.mxu1 %v10123_v6  ;;  %v10207_v5 = vld [vmem:[%s11197_s4 + $0x106c] ss:$16 sps:$4 sm:$0xff]   ;;  %v10202_v6 = vld [vmem:[%s11197_s4 + $0x1060] ss:$16 sps:$4 sm:$0xff]  }
 0x21c   : > { %6964 = vmatpush1.bf16.msra.mxu0 %v10118_v7  ;;  %7620 = vmatpush1.bf16.msra.mxu1 %v10121_v8  ;;  %v10205_v7 = vld [vmem:[%s11197_s4 + $0x1068] ss:$16 sps:$4 sm:$0xff]   ;;  %v10210_v8 = vld [vmem:[%s11197_s4 + $0x1084] ss:$16 sps:$4 sm:$0xff]  }
 0x21d   : > { %6965 = vmatprep.subr.bf16.mxu0 %v10126_v9  ;;  %7621 = vmatprep.subr.bf16.mxu1 %v10129_v10  ;;  %v10213_v9 = vld [vmem:[%s11197_s4 + $0x108c] ss:$16 sps:$4 sm:$0xff]   ;;  %v10208_v10 = vld [vmem:[%s11197_s4 + $0x1080] ss:$16 sps:$4 sm:$0xff]  }
 0x220   : > { %6966 = vmatpush1.bf16.msra.mxu0 %v10124_v11  ;;  %7622 = vmatpush1.bf16.msra.mxu1 %v10127_v12  ;;  %v10211_v11 = vld [vmem:[%s11197_s4 + $0x1088] ss:$16 sps:$4 sm:$0xff]   ;;  %v10216_v12 = vld [vmem:[%s11197_s4 + $0x10a4] ss:$16 sps:$4 sm:$0xff]  }
 0x221   : > { %6967 = vmatprep.subr.bf16.mxu0 %v10132_v13  ;;  %7623 = vmatprep.subr.bf16.mxu1 %v10135_v15  ;;  %v10219_v13 = vld [vmem:[%s11197_s4 + $0x10ac] ss:$16 sps:$4 sm:$0xff]   ;;  %v10214_v15 = vld [vmem:[%s11197_s4 + $0x10a0] ss:$16 sps:$4 sm:$0xff]  }
 0x224   : > { %6968 = vmatpush1.bf16.msra.mxu0 %v10130_v17  ;;  %7624 = vmatpush1.bf16.msra.mxu1 %v10133_v53  ;;  %v10217_v17 = vld [vmem:[%s11197_s4 + $0x10a8] ss:$16 sps:$4 sm:$0xff]   ;;  %v10222_v53 = vld [vmem:[%s11197_s4 + $0x10c4] ss:$16 sps:$4 sm:$0xff]  }
 0x225   : > { %6969 = vmatprep.subr.bf16.mxu0 %v10138_v18  ;;  %7625 = vmatprep.subr.bf16.mxu1 %v10141_v19  ;;  %v10225_v18 = vld [vmem:[%s11197_s4 + $0x10cc] ss:$16 sps:$4 sm:$0xff]   ;;  %v10220_v19 = vld [vmem:[%s11197_s4 + $0x10c0] ss:$16 sps:$4 sm:$0xff]  }
 0x228   : > { %6970 = vmatpush1.bf16.msra.mxu0 %v10136_v20  ;;  %7626 = vmatpush1.bf16.msra.mxu1 %v10139_v21  ;;  %v10223_v20 = vld [vmem:[%s11197_s4 + $0x10c8] ss:$16 sps:$4 sm:$0xff]   ;;  %v10228_v21 = vld [vmem:[%s11197_s4 + $0x10e4] ss:$16 sps:$4 sm:$0xff]  }
 0x229   : > { %6971 = vmatprep.subr.bf16.mxu0 %v10144_v23  ;;  %7627 = vmatprep.subr.bf16.mxu1 %v10147_v24  ;;  %v10231_v23 = vld [vmem:[%s11197_s4 + $0x10ec] ss:$16 sps:$4 sm:$0xff]   ;;  %v10226_v24 = vld [vmem:[%s11197_s4 + $0x10e0] ss:$16 sps:$4 sm:$0xff]  }
 0x22c   : > { %6972 = vmatpush1.bf16.msra.mxu0 %v10142_v25  ;;  %7628 = vmatpush1.bf16.msra.mxu1 %v10145_v27  ;;  %v10229_v25 = vld [vmem:[%s11197_s4 + $0x10e8] ss:$16 sps:$4 sm:$0xff]   ;;  %v10234_v27 = vld [vmem:[%s11197_s4 + $0x1104] ss:$16 sps:$4 sm:$0xff]  }
 0x22d   : > { %6973 = vmatprep.subr.bf16.mxu0 %v10150_v28  ;;  %7629 = vmatprep.subr.bf16.mxu1 %v10153_v29  ;;  %v10237_v28 = vld [vmem:[%s11197_s4 + $0x110c] ss:$16 sps:$4 sm:$0xff]   ;;  %v10232_v29 = vld [vmem:[%s11197_s4 + $0x1100] ss:$16 sps:$4 sm:$0xff]  }
 0x230   : > { %6974 = vmatpush1.bf16.msra.mxu0 %v10148_v30  ;;  %7630 = vmatpush1.bf16.msra.mxu1 %v10151_v31  ;;  %v10235_v30 = vld [vmem:[%s11197_s4 + $0x1108] ss:$16 sps:$4 sm:$0xff]   ;;  %v10240_v31 = vld [vmem:[%s11197_s4 + $0x1124] ss:$16 sps:$4 sm:$0xff]  }
 0x231   : > { %6975 = vmatprep.subr.bf16.mxu0 %v10156_v16  ;;  %7631 = vmatprep.subr.bf16.mxu1 %v10159_v32  ;;  %v10243_v16 = vld [vmem:[%s11197_s4 + $0x112c] ss:$16 sps:$4 sm:$0xff]   ;;  %v10238_v32 = vld [vmem:[%s11197_s4 + $0x1120] ss:$16 sps:$4 sm:$0xff]  }
 0x234   : > { %6976 = vmatpush1.bf16.msra.mxu0 %v10154_v33  ;;  %7632 = vmatpush1.bf16.msra.mxu1 %v10157_v34  ;;  %v10241_v33 = vld [vmem:[%s11197_s4 + $0x1128] ss:$16 sps:$4 sm:$0xff]   ;;  %v10246_v34 = vld [vmem:[%s11197_s4 + $0x1144] ss:$16 sps:$4 sm:$0xff]  }
 0x235   : > { %6977 = vmatprep.subr.bf16.mxu0 %v10162_v26  ;;  %7633 = vmatprep.subr.bf16.mxu1 %v10165_v35  ;;  %v10249_v26 = vld [vmem:[%s11197_s4 + $0x114c] ss:$16 sps:$4 sm:$0xff]   ;;  %v10244_v35 = vld [vmem:[%s11197_s4 + $0x1140] ss:$16 sps:$4 sm:$0xff]  }
 0x238   : > { %6978 = vmatpush1.bf16.msra.mxu0 %v10160_v37  ;;  %7634 = vmatpush1.bf16.msra.mxu1 %v10163_v38  ;;  %v10247_v37 = vld [vmem:[%s11197_s4 + $0x1148] ss:$16 sps:$4 sm:$0xff]   ;;  %v10252_v38 = vld [vmem:[%s11197_s4 + $0x1164] ss:$16 sps:$4 sm:$0xff]  }
 0x239   : > { %6979 = vmatprep.subr.bf16.mxu0 %v10168_v40  ;;  %7635 = vmatprep.subr.bf16.mxu1 %v10171_v41  ;;  %v10255_v40 = vld [vmem:[%s11197_s4 + $0x116c] ss:$16 sps:$4 sm:$0xff]   ;;  %v10250_v41 = vld [vmem:[%s11197_s4 + $0x1160] ss:$16 sps:$4 sm:$0xff]  }
 0x23c   : > { %6980 = vmatpush1.bf16.msra.mxu0 %v10166_v22  ;;  %7636 = vmatpush1.bf16.msra.mxu1 %v10169_v42  ;;  %v10253_v22 = vld [vmem:[%s11197_s4 + $0x1168] ss:$16 sps:$4 sm:$0xff]   ;;  %v10258_v42 = vld [vmem:[%s11197_s4 + $0x1184] ss:$16 sps:$4 sm:$0xff]  }
 0x23d   : > { %6981 = vmatprep.subr.bf16.mxu0 %v10174_v43  ;;  %7637 = vmatprep.subr.bf16.mxu1 %v10177_v45  ;;  %v10261_v43 = vld [vmem:[%s11197_s4 + $0x118c] ss:$16 sps:$4 sm:$0xff]   ;;  %v10256_v45 = vld [vmem:[%s11197_s4 + $0x1180] ss:$16 sps:$4 sm:$0xff]  }
 0x240   : > { %6982 = vmatpush1.bf16.msra.mxu0 %v10172_v46  ;;  %7638 = vmatpush1.bf16.msra.mxu1 %v10175_v47  ;;  %v10259_v46 = vld [vmem:[%s11197_s4 + $0x1188] ss:$16 sps:$4 sm:$0xff]   ;;  %v10264_v47 = vld [vmem:[%s11197_s4 + $0x11a4] ss:$16 sps:$4 sm:$0xff]  }
 0x241   : > { %6983 = vmatprep.subr.bf16.mxu0 %v10180_v48  ;;  %7639 = vmatprep.subr.bf16.mxu1 %v10183_v51  ;;  %v10267_v48 = vld [vmem:[%s11197_s4 + $0x11ac] ss:$16 sps:$4 sm:$0xff]   ;;  %v10262_v51 = vld [vmem:[%s11197_s4 + $0x11a0] ss:$16 sps:$4 sm:$0xff]  }
 0x244   : > { %6984 = vmatpush1.bf16.msra.mxu0 %v10178_v54  ;;  %7640 = vmatpush1.bf16.msra.mxu1 %v10181_v55  ;;  %v10265_v54 = vld [vmem:[%s11197_s4 + $0x11a8] ss:$16 sps:$4 sm:$0xff]   ;;  %v10270_v55 = vld [vmem:[%s11197_s4 + $0x11c4] ss:$16 sps:$4 sm:$0xff]  }
 0x245   : > { %6994 = vmatprep.subr.bf16.mxu0 %v10186_v56  ;;  %7650 = vmatprep.subr.bf16.mxu1 %v10189_v39  ;;  %v10273_v56 = vld [vmem:[%s11197_s4 + $0x11cc] ss:$16 sps:$4 sm:$0xff]   ;;  %v10268_v39 = vld [vmem:[%s11197_s4 + $0x11c0] ss:$16 sps:$4 sm:$0xff]  }
 0x247   : > { %6986 = vmatmul.mubr.bf16.vlgmr.msra.gmra.mrb[0].mxu0 %v1413_v58  ;;  %7642 = vmatmul.mubr.bf16.vlgmr.msra.gmra.mrb[0].mxu1 %v1413_v58  ;;  %v10276_v58 = vld [vmem:[%s11197_s4 + $0x11e4] ss:$16 sps:$4 sm:$0xff]  }
 0x248   : > { %6995 = vmatpush1.bf16.msra.mxu0 %v10184_v59  ;;  %7651 = vmatpush1.bf16.msra.mxu1 %v10187_v49  ;;  %v10279_v59 = vld [vmem:[%s11197_s4 + $0x11ec] ss:$16 sps:$4 sm:$0xff]   ;;  %v10274_v49 = vld [vmem:[%s11197_s4 + $0x11e0] ss:$16 sps:$4 sm:$0xff]  }
 0x249   : > { %6996 = vmatprep.subr.bf16.mxu0 %v10192_v60  ;;  %7652 = vmatprep.subr.bf16.mxu1 %v10195_v61  ;;  %v10277_v60 = vld [vmem:[%s11197_s4 + $0x11e8] ss:$16 sps:$4 sm:$0xff]   ;;  %v10282_v61 = vld [vmem:[%s11197_s4 + $0x1204] ss:$16 sps:$4 sm:$0xff]  }
 0x24a   : > { %7026 = vmatprep.mubr.bf16.mxu0 %v11833_v62  ;;  %7682 = vmatprep.mubr.bf16.mxu1 %v11833_v62 }
 0x24c   : > { %6997 = vmatpush1.bf16.msra.mxu0 %v10190_v14  ;;  %7653 = vmatpush1.bf16.msra.mxu1 %v10193_v63  ;;  %v10285_v14 = vld [vmem:[%s11197_s4 + $0x120c] ss:$16 sps:$4 sm:$0xff]   ;;  %v11899_v63 = vrot.slane %v11818_v52, %v11271_v50  ;;  %v10286_v52 = vld [vmem:[%s11197_s4 + $0x1220] ss:$16 sps:$4 sm:$0xff]  }
 0x24d   : > { %6998 = vmatprep.subr.bf16.mxu0 %v10198_v0  ;;  %7654 = vmatprep.subr.bf16.mxu1 %v10201_v1  ;;  %v10280_v0 = vld [vmem:[%s11197_s4 + $0x1200] ss:$16 sps:$4 sm:$0xff]   ;;  %v10283_v1 = vld [vmem:[%s11197_s4 + $0x1208] ss:$16 sps:$4 sm:$0xff]  }
 0x250   : > { %6999 = vmatpush1.bf16.msra.mxu0 %v10196_v2  ;;  %7655 = vmatpush1.bf16.msra.mxu1 %v10199_v3  ;;  %v10288_v2 = vld [vmem:[%s11197_s4 + $0x1224] ss:$16 sps:$4 sm:$0xff]   ;;  %v10291_v3 = vld [vmem:[%s11197_s4 + $0x122c] ss:$16 sps:$4 sm:$0xff]  }
 0x251   : > { %7000 = vmatprep.subr.bf16.mxu0 %v10204_v4  ;;  %7656 = vmatprep.subr.bf16.mxu1 %v10207_v5  ;;  %v1463_v4 = vcombine.high %v11833_v62, %v11833_v62  ;;  %v10289_v5 = vld [vmem:[%s11197_s4 + $0x1228] ss:$16 sps:$4 sm:$0xff]   ;;  %v10292_v62 = vld [vmem:[%s11197_s4 + $0x1240] ss:$16 sps:$4 sm:$0xff]  }
 0x254   : > { %7001 = vmatpush1.bf16.msra.mxu0 %v10202_v6  ;;  %7657 = vmatpush1.bf16.msra.mxu1 %v10205_v7  ;;  %v10294_v6 = vld [vmem:[%s11197_s4 + $0x1244] ss:$16 sps:$4 sm:$0xff]   ;;  %v10297_v7 = vld [vmem:[%s11197_s4 + $0x124c] ss:$16 sps:$4 sm:$0xff]  }
 0x255   : > { %7002 = vmatprep.subr.bf16.mxu0 %v10210_v8  ;;  %7658 = vmatprep.subr.bf16.mxu1 %v10213_v9  ;;  %v10295_v8 = vld [vmem:[%s11197_s4 + $0x1248] ss:$16 sps:$4 sm:$0xff]   ;;  %v10300_v9 = vld [vmem:[%s11197_s4 + $0x1264] ss:$16 sps:$4 sm:$0xff]  }
 0x258   : > { %7003 = vmatpush1.bf16.msra.mxu0 %v10208_v10  ;;  %7659 = vmatpush1.bf16.msra.mxu1 %v10211_v11  ;;  %v10303_v10 = vld [vmem:[%s11197_s4 + $0x126c] ss:$16 sps:$4 sm:$0xff]   ;;  %v10298_v11 = vld [vmem:[%s11197_s4 + $0x1260] ss:$16 sps:$4 sm:$0xff]  }
 0x259   : > { %7004 = vmatprep.subr.bf16.mxu0 %v10216_v12  ;;  %7660 = vmatprep.subr.bf16.mxu1 %v10219_v13  ;;  %v10301_v12 = vld [vmem:[%s11197_s4 + $0x1268] ss:$16 sps:$4 sm:$0xff]   ;;  %v10306_v13 = vld [vmem:[%s11197_s4 + $0x1284] ss:$16 sps:$4 sm:$0xff]  }
 0x25c   : > { %7005 = vmatpush1.bf16.msra.mxu0 %v10214_v15  ;;  %7661 = vmatpush1.bf16.msra.mxu1 %v10217_v17  ;;  %v10309_v15 = vld [vmem:[%s11197_s4 + $0x128c] ss:$16 sps:$4 sm:$0xff]   ;;  %v10304_v17 = vld [vmem:[%s11197_s4 + $0x1280] ss:$16 sps:$4 sm:$0xff]  }
 0x25d   : > { %7006 = vmatprep.subr.bf16.mxu0 %v10222_v53  ;;  %7662 = vmatprep.subr.bf16.mxu1 %v10225_v18  ;;  %v10307_v53 = vld [vmem:[%s11197_s4 + $0x1288] ss:$16 sps:$4 sm:$0xff]   ;;  %v10312_v18 = vld [vmem:[%s11197_s4 + $0x12a4] ss:$16 sps:$4 sm:$0xff]  }
 0x260   : > { %7007 = vmatpush1.bf16.msra.mxu0 %v10220_v19  ;;  %7663 = vmatpush1.bf16.msra.mxu1 %v10223_v20  ;;  %v10315_v19 = vld [vmem:[%s11197_s4 + $0x12ac] ss:$16 sps:$4 sm:$0xff]   ;;  %v10310_v20 = vld [vmem:[%s11197_s4 + $0x12a0] ss:$16 sps:$4 sm:$0xff]  }
 0x261   : > { %7008 = vmatprep.subr.bf16.mxu0 %v10228_v21  ;;  %7664 = vmatprep.subr.bf16.mxu1 %v10231_v23  ;;  %v10313_v21 = vld [vmem:[%s11197_s4 + $0x12a8] ss:$16 sps:$4 sm:$0xff]   ;;  %v10318_v23 = vld [vmem:[%s11197_s4 + $0x12c4] ss:$16 sps:$4 sm:$0xff]  }
 0x264   : > { %7009 = vmatpush1.bf16.msra.mxu0 %v10226_v24  ;;  %7665 = vmatpush1.bf16.msra.mxu1 %v10229_v25  ;;  %v10321_v24 = vld [vmem:[%s11197_s4 + $0x12cc] ss:$16 sps:$4 sm:$0xff]   ;;  %v10316_v25 = vld [vmem:[%s11197_s4 + $0x12c0] ss:$16 sps:$4 sm:$0xff]  }
 0x265   : > { %7010 = vmatprep.subr.bf16.mxu0 %v10234_v27  ;;  %7666 = vmatprep.subr.bf16.mxu1 %v10237_v28  ;;  %v10319_v27 = vld [vmem:[%s11197_s4 + $0x12c8] ss:$16 sps:$4 sm:$0xff]   ;;  %v10324_v28 = vld [vmem:[%s11197_s4 + $0x12e4] ss:$16 sps:$4 sm:$0xff]  }
 0x268   : > { %7011 = vmatpush1.bf16.msra.mxu0 %v10232_v29  ;;  %7667 = vmatpush1.bf16.msra.mxu1 %v10235_v30  ;;  %v10327_v29 = vld [vmem:[%s11197_s4 + $0x12ec] ss:$16 sps:$4 sm:$0xff]   ;;  %v10322_v30 = vld [vmem:[%s11197_s4 + $0x12e0] ss:$16 sps:$4 sm:$0xff]  }
 0x269   : > { %7012 = vmatprep.subr.bf16.mxu0 %v10240_v31  ;;  %7668 = vmatprep.subr.bf16.mxu1 %v10243_v16  ;;  %v10325_v31 = vld [vmem:[%s11197_s4 + $0x12e8] ss:$16 sps:$4 sm:$0xff]   ;;  %v10330_v16 = vld [vmem:[%s11197_s4 + $0x1304] ss:$16 sps:$4 sm:$0xff]  }
 0x26c   : > { %7013 = vmatpush1.bf16.msra.mxu0 %v10238_v32  ;;  %7669 = vmatpush1.bf16.msra.mxu1 %v10241_v33  ;;  %v10333_v32 = vld [vmem:[%s11197_s4 + $0x130c] ss:$16 sps:$4 sm:$0xff]   ;;  %v10328_v33 = vld [vmem:[%s11197_s4 + $0x1300] ss:$16 sps:$4 sm:$0xff]  }
 0x26d   : > { %7014 = vmatprep.subr.bf16.mxu0 %v10246_v34  ;;  %7670 = vmatprep.subr.bf16.mxu1 %v10249_v26  ;;  %v10331_v34 = vld [vmem:[%s11197_s4 + $0x1308] ss:$16 sps:$4 sm:$0xff]   ;;  %v10336_v26 = vld [vmem:[%s11197_s4 + $0x1324] ss:$16 sps:$4 sm:$0xff]  }
 0x270   : > { %7015 = vmatpush1.bf16.msra.mxu0 %v10244_v35  ;;  %7671 = vmatpush1.bf16.msra.mxu1 %v10247_v37  ;;  %v10339_v35 = vld [vmem:[%s11197_s4 + $0x132c] ss:$16 sps:$4 sm:$0xff]   ;;  %v10334_v37 = vld [vmem:[%s11197_s4 + $0x1320] ss:$16 sps:$4 sm:$0xff]  }
 0x271   : > { %7016 = vmatprep.subr.bf16.mxu0 %v10252_v38  ;;  %7672 = vmatprep.subr.bf16.mxu1 %v10255_v40  ;;  %v10337_v38 = vld [vmem:[%s11197_s4 + $0x1328] ss:$16 sps:$4 sm:$0xff]   ;;  %v10342_v40 = vld [vmem:[%s11197_s4 + $0x1344] ss:$16 sps:$4 sm:$0xff]  }
 0x274   : > { %7017 = vmatpush1.bf16.msra.mxu0 %v10250_v41  ;;  %7673 = vmatpush1.bf16.msra.mxu1 %v10253_v22  ;;  %v10345_v41 = vld [vmem:[%s11197_s4 + $0x134c] ss:$16 sps:$4 sm:$0xff]   ;;  %v10340_v22 = vld [vmem:[%s11197_s4 + $0x1340] ss:$16 sps:$4 sm:$0xff]  }
 0x275   : > { %7018 = vmatprep.subr.bf16.mxu0 %v10258_v42  ;;  %7674 = vmatprep.subr.bf16.mxu1 %v10261_v43  ;;  %v10343_v42 = vld [vmem:[%s11197_s4 + $0x1348] ss:$16 sps:$4 sm:$0xff]   ;;  %v10348_v43 = vld [vmem:[%s11197_s4 + $0x1364] ss:$16 sps:$4 sm:$0xff]  }
 0x278   : > { %7019 = vmatpush1.bf16.msra.mxu0 %v10256_v45  ;;  %7675 = vmatpush1.bf16.msra.mxu1 %v10259_v46  ;;  %v10351_v45 = vld [vmem:[%s11197_s4 + $0x136c] ss:$16 sps:$4 sm:$0xff]   ;;  %v10346_v46 = vld [vmem:[%s11197_s4 + $0x1360] ss:$16 sps:$4 sm:$0xff]  }
 0x279   : > { %7020 = vmatprep.subr.bf16.mxu0 %v10264_v47  ;;  %7676 = vmatprep.subr.bf16.mxu1 %v10267_v48  ;;  %v10349_v47 = vld [vmem:[%s11197_s4 + $0x1368] ss:$16 sps:$4 sm:$0xff]   ;;  %v10354_v48 = vld [vmem:[%s11197_s4 + $0x1384] ss:$16 sps:$4 sm:$0xff]  }
 0x27c   : > { %7021 = vmatpush1.bf16.msra.mxu0 %v10262_v51  ;;  %7677 = vmatpush1.bf16.msra.mxu1 %v10265_v54  ;;  %v10357_v51 = vld [vmem:[%s11197_s4 + $0x138c] ss:$16 sps:$4 sm:$0xff]   ;;  %v10352_v54 = vld [vmem:[%s11197_s4 + $0x1380] ss:$16 sps:$4 sm:$0xff]  }
 0x27d   : > { %7022 = vmatprep.subr.bf16.mxu0 %v10270_v55  ;;  %7678 = vmatprep.subr.bf16.mxu1 %v10273_v56  ;;  %v10355_v55 = vld [vmem:[%s11197_s4 + $0x1388] ss:$16 sps:$4 sm:$0xff]   ;;  %v10360_v56 = vld [vmem:[%s11197_s4 + $0x13a4] ss:$16 sps:$4 sm:$0xff]  }
 0x280   : > { %7023 = vmatpush1.bf16.msra.mxu0 %v10268_v39  ;;  %7679 = vmatpush1.bf16.msra.mxu1 %v10271_v57  ;;  %v10363_v39 = vld [vmem:[%s11197_s4 + $0x13ac] ss:$16 sps:$4 sm:$0xff]   ;;  %v10358_v57 = vld [vmem:[%s11197_s4 + $0x13a0] ss:$16 sps:$4 sm:$0xff]  }
 0x281   : > { %7024 = vmatprep.subr.bf16.mxu0 %v10276_v58  ;;  %7680 = vmatprep.subr.bf16.mxu1 %v10279_v59  ;;  %v10361_v58 = vld [vmem:[%s11197_s4 + $0x13a8] ss:$16 sps:$4 sm:$0xff]   ;;  %v10366_v59 = vld [vmem:[%s11197_s4 + $0x13c4] ss:$16 sps:$4 sm:$0xff]  }
 0x284   : > { %7025 = vmatpush1.bf16.msra.mxu0 %v10274_v49  ;;  %7681 = vmatpush1.bf16.msra.mxu1 %v10277_v60  ;;  %v10369_v49 = vld [vmem:[%s11197_s4 + $0x13cc] ss:$16 sps:$4 sm:$0xff]   ;;  %v1416_v60 = vcombine.high %v11810_v36, %v11810_v36  ;;  %v10370_v36 = vld [vmem:[%s11197_s4 + $0x13e0] ss:$16 sps:$4 sm:$0xff]  }
 0x285   : > { %7035 = vmatprep.subr.bf16.mxu0 %v10282_v61  ;;  %7691 = vmatprep.subr.bf16.mxu1 %v10285_v14  ;;  %v10364_v61 = vld [vmem:[%s11197_s4 + $0x13c0] ss:$16 sps:$4 sm:$0xff]   ;;  %v10367_v14 = vld [vmem:[%s11197_s4 + $0x13c8] ss:$16 sps:$4 sm:$0xff]  }
 0x287   : > { %7027 = vmatmul.mubr.bf16.vlgmr.msra.gmra.mrb[0].mxu0 %v11899_v63  ;;  %7683 = vmatmul.mubr.bf16.vlgmr.msra.gmra.mrb[0].mxu1 %v11899_v63 }
 0x288   : > { %7036 = vmatpush1.bf16.msra.mxu0 %v10280_v0  ;;  %7692 = vmatpush1.bf16.msra.mxu1 %v10283_v1  ;;  %v10372_v0 = vld [vmem:[%s11197_s4 + $0x13e4] ss:$16 sps:$4 sm:$0xff]   ;;  %v10375_v1 = vld [vmem:[%s11197_s4 + $0x13ec] ss:$16 sps:$4 sm:$0xff]  }
 0x289   : > { %7037 = vmatprep.subr.bf16.mxu0 %v10288_v2  ;;  %7693 = vmatprep.subr.bf16.mxu1 %v10291_v3  ;;  %v11968_v2 = vrot.slane %v1416_v60, %v11271_v50  ;;  %v10373_v3 = vld [vmem:[%s11197_s4 + $0x13e8] ss:$16 sps:$4 sm:$0xff]  }
 0x28a   : > { %7067 = vmatprep.mubr.bf16.mxu0 %v1463_v4  ;;  %7723 = vmatprep.mubr.bf16.mxu1 %v1463_v4  ;;  %v10378_v4 = vld [vmem:[%s11197_s4 + $0x1404] ss:$16 sps:$4 sm:$0xff]   ;;  %v10451_v60 = vld [vmem:[%s11197_s4 + $0x1588] ss:$16 sps:$4 sm:$0xff]  }
 0x28c   : > { %7038 = vmatpush1.bf16.msra.mxu0 %v10286_v52  ;;  %7694 = vmatpush1.bf16.msra.mxu1 %v10289_v5  ;;  %v10381_v52 = vld [vmem:[%s11197_s4 + $0x140c] ss:$16 sps:$4 sm:$0xff]   ;;  %v1432_v5 = vcombine.high %v11968_v2, %v11968_v2 }
 0x28d   : > { %7039 = vmatprep.subr.bf16.mxu0 %v10294_v6  ;;  %7695 = vmatprep.subr.bf16.mxu1 %v10297_v7  ;;  %v1461_v6 = vcombine.high %v11899_v63, %v11899_v63  ;;  %v10376_v7 = vld [vmem:[%s11197_s4 + $0x1400] ss:$16 sps:$4 sm:$0xff]  }
 0x28e   : > { %v10382_v63 = vld [vmem:[%s11197_s4 + $0x1420] ss:$16 sps:$4 sm:$0xff]  }
 0x290   : > { %7040 = vmatpush1.bf16.msra.mxu0 %v10292_v62  ;;  %7696 = vmatpush1.bf16.msra.mxu1 %v10295_v8  ;;  %v10379_v62 = vld [vmem:[%s11197_s4 + $0x1408] ss:$16 sps:$4 sm:$0xff]   ;;  %v10384_v8 = vld [vmem:[%s11197_s4 + $0x1424] ss:$16 sps:$4 sm:$0xff]  }
 0x291   : > { %7041 = vmatprep.subr.bf16.mxu0 %v10300_v9  ;;  %7697 = vmatprep.subr.bf16.mxu1 %v10303_v10  ;;  %v10387_v9 = vld [vmem:[%s11197_s4 + $0x142c] ss:$16 sps:$4 sm:$0xff]   ;;  %v11983_v10 = vrot.slane %v1432_v5, %v11271_v50  ;;  %v10468_v5 = vld [vmem:[%s11197_s4 + $0x15e4] ss:$16 sps:$4 sm:$0xff]  }
 0x294   : > { %7042 = vmatpush1.bf16.msra.mxu0 %v10298_v11  ;;  %7698 = vmatpush1.bf16.msra.mxu1 %v10301_v12  ;;  %v10385_v11 = vld [vmem:[%s11197_s4 + $0x1428] ss:$16 sps:$4 sm:$0xff]   ;;  %v10390_v12 = vld [vmem:[%s11197_s4 + $0x1444] ss:$16 sps:$4 sm:$0xff]  }
 0x295   : > { %7043 = vmatprep.subr.bf16.mxu0 %v10306_v13  ;;  %7699 = vmatprep.subr.bf16.mxu1 %v10309_v15  ;;  %v10393_v13 = vld [vmem:[%s11197_s4 + $0x144c] ss:$16 sps:$4 sm:$0xff]   ;;  %v10388_v15 = vld [vmem:[%s11197_s4 + $0x1440] ss:$16 sps:$4 sm:$0xff]  }
 0x298   : > { %7044 = vmatpush1.bf16.msra.mxu0 %v10304_v17  ;;  %7700 = vmatpush1.bf16.msra.mxu1 %v10307_v53  ;;  %v10391_v17 = vld [vmem:[%s11197_s4 + $0x1448] ss:$16 sps:$4 sm:$0xff]   ;;  %v10396_v53 = vld [vmem:[%s11197_s4 + $0x1464] ss:$16 sps:$4 sm:$0xff]  }
 0x299   : > { %7045 = vmatprep.subr.bf16.mxu0 %v10312_v18  ;;  %7701 = vmatprep.subr.bf16.mxu1 %v10315_v19  ;;  %v10399_v18 = vld [vmem:[%s11197_s4 + $0x146c] ss:$16 sps:$4 sm:$0xff]   ;;  %v10394_v19 = vld [vmem:[%s11197_s4 + $0x1460] ss:$16 sps:$4 sm:$0xff]  }
 0x29c   : > { %7046 = vmatpush1.bf16.msra.mxu0 %v10310_v20  ;;  %7702 = vmatpush1.bf16.msra.mxu1 %v10313_v21  ;;  %v10397_v20 = vld [vmem:[%s11197_s4 + $0x1468] ss:$16 sps:$4 sm:$0xff]   ;;  %v10402_v21 = vld [vmem:[%s11197_s4 + $0x1484] ss:$16 sps:$4 sm:$0xff]  }
 0x29d   : > { %7047 = vmatprep.subr.bf16.mxu0 %v10318_v23  ;;  %7703 = vmatprep.subr.bf16.mxu1 %v10321_v24  ;;  %v10405_v23 = vld [vmem:[%s11197_s4 + $0x148c] ss:$16 sps:$4 sm:$0xff]   ;;  %v10400_v24 = vld [vmem:[%s11197_s4 + $0x1480] ss:$16 sps:$4 sm:$0xff]  }
 0x2a0   : > { %7048 = vmatpush1.bf16.msra.mxu0 %v10316_v25  ;;  %7704 = vmatpush1.bf16.msra.mxu1 %v10319_v27  ;;  %v10403_v25 = vld [vmem:[%s11197_s4 + $0x1488] ss:$16 sps:$4 sm:$0xff]   ;;  %v10408_v27 = vld [vmem:[%s11197_s4 + $0x14a4] ss:$16 sps:$4 sm:$0xff]  }
 0x2a1   : > { %7049 = vmatprep.subr.bf16.mxu0 %v10324_v28  ;;  %7705 = vmatprep.subr.bf16.mxu1 %v10327_v29  ;;  %v10411_v28 = vld [vmem:[%s11197_s4 + $0x14ac] ss:$16 sps:$4 sm:$0xff]   ;;  %v10406_v29 = vld [vmem:[%s11197_s4 + $0x14a0] ss:$16 sps:$4 sm:$0xff]  }
 0x2a4   : > { %7050 = vmatpush1.bf16.msra.mxu0 %v10322_v30  ;;  %7706 = vmatpush1.bf16.msra.mxu1 %v10325_v31  ;;  %v10409_v30 = vld [vmem:[%s11197_s4 + $0x14a8] ss:$16 sps:$4 sm:$0xff]   ;;  %v10414_v31 = vld [vmem:[%s11197_s4 + $0x14c4] ss:$16 sps:$4 sm:$0xff]  }
 0x2a5   : > { %7051 = vmatprep.subr.bf16.mxu0 %v10330_v16  ;;  %7707 = vmatprep.subr.bf16.mxu1 %v10333_v32  ;;  %v10417_v16 = vld [vmem:[%s11197_s4 + $0x14cc] ss:$16 sps:$4 sm:$0xff]   ;;  %v10412_v32 = vld [vmem:[%s11197_s4 + $0x14c0] ss:$16 sps:$4 sm:$0xff]  }
 0x2a8   : > { %7052 = vmatpush1.bf16.msra.mxu0 %v10328_v33  ;;  %7708 = vmatpush1.bf16.msra.mxu1 %v10331_v34  ;;  %v10415_v33 = vld [vmem:[%s11197_s4 + $0x14c8] ss:$16 sps:$4 sm:$0xff]   ;;  %v10420_v34 = vld [vmem:[%s11197_s4 + $0x14e4] ss:$16 sps:$4 sm:$0xff]  }
 0x2a9   : > { %7053 = vmatprep.subr.bf16.mxu0 %v10336_v26  ;;  %7709 = vmatprep.subr.bf16.mxu1 %v10339_v35  ;;  %v10423_v26 = vld [vmem:[%s11197_s4 + $0x14ec] ss:$16 sps:$4 sm:$0xff]   ;;  %v10418_v35 = vld [vmem:[%s11197_s4 + $0x14e0] ss:$16 sps:$4 sm:$0xff]  }
 0x2ac   : > { %7054 = vmatpush1.bf16.msra.mxu0 %v10334_v37  ;;  %7710 = vmatpush1.bf16.msra.mxu1 %v10337_v38  ;;  %v10421_v37 = vld [vmem:[%s11197_s4 + $0x14e8] ss:$16 sps:$4 sm:$0xff]   ;;  %v10426_v38 = vld [vmem:[%s11197_s4 + $0x1504] ss:$16 sps:$4 sm:$0xff]  }
 0x2ad   : > { %7055 = vmatprep.subr.bf16.mxu0 %v10342_v40  ;;  %7711 = vmatprep.subr.bf16.mxu1 %v10345_v41  ;;  %v10429_v40 = vld [vmem:[%s11197_s4 + $0x150c] ss:$16 sps:$4 sm:$0xff]   ;;  %v10424_v41 = vld [vmem:[%s11197_s4 + $0x1500] ss:$16 sps:$4 sm:$0xff]  }
 0x2b0   : > { %7056 = vmatpush1.bf16.msra.mxu0 %v10340_v22  ;;  %7712 = vmatpush1.bf16.msra.mxu1 %v10343_v42  ;;  %v10427_v22 = vld [vmem:[%s11197_s4 + $0x1508] ss:$16 sps:$4 sm:$0xff]   ;;  %v10432_v42 = vld [vmem:[%s11197_s4 + $0x1524] ss:$16 sps:$4 sm:$0xff]  }
 0x2b1   : > { %7057 = vmatprep.subr.bf16.mxu0 %v10348_v43  ;;  %7713 = vmatprep.subr.bf16.mxu1 %v10351_v45  ;;  %v10435_v43 = vld [vmem:[%s11197_s4 + $0x152c] ss:$16 sps:$4 sm:$0xff]   ;;  %v10430_v45 = vld [vmem:[%s11197_s4 + $0x1520] ss:$16 sps:$4 sm:$0xff]  }
 0x2b4   : > { %7058 = vmatpush1.bf16.msra.mxu0 %v10346_v46  ;;  %7714 = vmatpush1.bf16.msra.mxu1 %v10349_v47  ;;  %v10433_v46 = vld [vmem:[%s11197_s4 + $0x1528] ss:$16 sps:$4 sm:$0xff]   ;;  %v10438_v47 = vld [vmem:[%s11197_s4 + $0x1544] ss:$16 sps:$4 sm:$0xff]  }
 0x2b5   : > { %7059 = vmatprep.subr.bf16.mxu0 %v10354_v48  ;;  %7715 = vmatprep.subr.bf16.mxu1 %v10357_v51  ;;  %v10441_v48 = vld [vmem:[%s11197_s4 + $0x154c] ss:$16 sps:$4 sm:$0xff]   ;;  %v10436_v51 = vld [vmem:[%s11197_s4 + $0x1540] ss:$16 sps:$4 sm:$0xff]  }
 0x2b8   : > { %7060 = vmatpush1.bf16.msra.mxu0 %v10352_v54  ;;  %7716 = vmatpush1.bf16.msra.mxu1 %v10355_v55  ;;  %v10439_v54 = vld [vmem:[%s11197_s4 + $0x1548] ss:$16 sps:$4 sm:$0xff]   ;;  %v10444_v55 = vld [vmem:[%s11197_s4 + $0x1564] ss:$16 sps:$4 sm:$0xff]  }
 0x2b9   : > { %7061 = vmatprep.subr.bf16.mxu0 %v10360_v56  ;;  %7717 = vmatprep.subr.bf16.mxu1 %v10363_v39  ;;  %v10447_v56 = vld [vmem:[%s11197_s4 + $0x156c] ss:$16 sps:$4 sm:$0xff]   ;;  %v10442_v39 = vld [vmem:[%s11197_s4 + $0x1560] ss:$16 sps:$4 sm:$0xff]  }
 0x2bc   : > { %7062 = vmatpush1.bf16.msra.mxu0 %v10358_v57  ;;  %7718 = vmatpush1.bf16.msra.mxu1 %v10361_v58  ;;  %v10445_v57 = vld [vmem:[%s11197_s4 + $0x1568] ss:$16 sps:$4 sm:$0xff]   ;;  %v10450_v58 = vld [vmem:[%s11197_s4 + $0x1584] ss:$16 sps:$4 sm:$0xff]  }
 0x2bd   : > { %7063 = vmatprep.subr.bf16.mxu0 %v10366_v59  ;;  %7719 = vmatprep.subr.bf16.mxu1 %v10369_v49  ;;  %v10453_v59 = vld [vmem:[%s11197_s4 + $0x158c] ss:$16 sps:$4 sm:$0xff]   ;;  %v10448_v49 = vld [vmem:[%s11197_s4 + $0x1580] ss:$16 sps:$4 sm:$0xff]  }
 0x2c0   : > { %7064 = vmatpush1.bf16.msra.mxu0 %v10364_v61  ;;  %7720 = vmatpush1.bf16.msra.mxu1 %v10367_v14  ;;  %v10456_v61 = vld [vmem:[%s11197_s4 + $0x15a4] ss:$16 sps:$4 sm:$0xff]   ;;  %v10459_v14 = vld [vmem:[%s11197_s4 + $0x15ac] ss:$16 sps:$4 sm:$0xff]  }
 0x2c1   : > { %7065 = vmatprep.subr.bf16.mxu0 %v10372_v0  ;;  %7721 = vmatprep.subr.bf16.mxu1 %v10375_v1  ;;  %v10454_v0 = vld [vmem:[%s11197_s4 + $0x15a0] ss:$16 sps:$4 sm:$0xff]   ;;  %v10457_v1 = vld [vmem:[%s11197_s4 + $0x15a8] ss:$16 sps:$4 sm:$0xff]  }
 0x2c4   : > { %7066 = vmatpush1.bf16.msra.mxu0 %v10370_v36  ;;  %7722 = vmatpush1.bf16.msra.mxu1 %v10373_v3  ;;  %v10462_v36 = vld [vmem:[%s11197_s4 + $0x15c4] ss:$16 sps:$4 sm:$0xff]   ;;  %v10465_v3 = vld [vmem:[%s11197_s4 + $0x15cc] ss:$16 sps:$4 sm:$0xff]  }
 0x2c5   : > { %7076 = vmatprep.subr.bf16.mxu0 %v10378_v4  ;;  %7732 = vmatprep.subr.bf16.mxu1 %v10381_v52  ;;  %v10460_v4 = vld [vmem:[%s11197_s4 + $0x15c0] ss:$16 sps:$4 sm:$0xff]   ;;  %v10463_v52 = vld [vmem:[%s11197_s4 + $0x15c8] ss:$16 sps:$4 sm:$0xff]  }
 0x2c7   : > { %7068 = vmatmul.mubr.bf16.vlgmr.msra.gmra.mrb[0].mxu0 %v1461_v6  ;;  %7724 = vmatmul.mubr.bf16.vlgmr.msra.gmra.mrb[0].mxu1 %v1461_v6  ;;  %v10471_v6 = vld [vmem:[%s11197_s4 + $0x15ec] ss:$16 sps:$4 sm:$0xff]  }
 0x2c8   : > { %7077 = vmatpush1.bf16.msra.mxu0 %v10376_v7  ;;  %7733 = vmatpush1.bf16.msra.mxu1 %v10379_v62  ;;  %v10466_v7 = vld [vmem:[%s11197_s4 + $0x15e0] ss:$16 sps:$4 sm:$0xff]   ;;  %v10469_v62 = vld [vmem:[%s11197_s4 + $0x15e8] ss:$16 sps:$4 sm:$0xff]  }
 0x2c9   : > { %7078 = vmatprep.subr.bf16.mxu0 %v10384_v8  ;;  %7734 = vmatprep.subr.bf16.mxu1 %v10387_v9  ;;  %v10475_v8 = vld [vmem:[%s11197_s4 + $0x1604] ss:$16 sps:$4 sm:$0xff]   ;;  %v10478_v9 = vld [vmem:[%s11197_s4 + $0x160c] ss:$16 sps:$4 sm:$0xff]  }
 0x2ca   : > { %7108 = vmatprep.mubr.bf16.mxu0 %v11983_v10  ;;  %7764 = vmatprep.mubr.bf16.mxu1 %v11983_v10 }
 0x2cc   : > { %7079 = vmatpush1.bf16.msra.mxu0 %v10382_v63  ;;  %7735 = vmatpush1.bf16.msra.mxu1 %v10385_v11  ;;  %v12049_v63 = vrot.slane %v11968_v2, %v11271_v50  ;;  %v10473_v11 = vld [vmem:[%s11197_s4 + $0x1600] ss:$16 sps:$4 sm:$0xff]  }
 0x2cd   : > { %7080 = vmatprep.subr.bf16.mxu0 %v10390_v12  ;;  %7736 = vmatprep.subr.bf16.mxu1 %v10393_v13  ;;  %v10476_v12 = vld [vmem:[%s11197_s4 + $0x1608] ss:$16 sps:$4 sm:$0xff]   ;;  %v10481_v13 = vld [vmem:[%s11197_s4 + $0x1624] ss:$16 sps:$4 sm:$0xff]   ;;  %v10479_v2 = vld [vmem:[%s11197_s4 + $0x1620] ss:$16 sps:$4 sm:$0xff]  }
 0x2d0   : > { %7081 = vmatpush1.bf16.msra.mxu0 %v10388_v15  ;;  %7737 = vmatpush1.bf16.msra.mxu1 %v10391_v17  ;;  %v10484_v15 = vld [vmem:[%s11197_s4 + $0x162c] ss:$16 sps:$4 sm:$0xff]   ;;  %v1464_v17 = vcombine.high %v11983_v10, %v11983_v10  ;;  %v10485_v10 = vld [vmem:[%s11197_s4 + $0x1640] ss:$16 sps:$4 sm:$0xff]  }
 0x2d1   : > { %7082 = vmatprep.subr.bf16.mxu0 %v10396_v53  ;;  %7738 = vmatprep.subr.bf16.mxu1 %v10399_v18  ;;  %v10482_v53 = vld [vmem:[%s11197_s4 + $0x1628] ss:$16 sps:$4 sm:$0xff]   ;;  %v10487_v18 = vld [vmem:[%s11197_s4 + $0x1644] ss:$16 sps:$4 sm:$0xff]  }
 0x2d4   : > { %7083 = vmatpush1.bf16.msra.mxu0 %v10394_v19  ;;  %7739 = vmatpush1.bf16.msra.mxu1 %v10397_v20  ;;  %v10490_v19 = vld [vmem:[%s11197_s4 + $0x164c] ss:$16 sps:$4 sm:$0xff]   ;;  %v10488_v20 = vld [vmem:[%s11197_s4 + $0x1648] ss:$16 sps:$4 sm:$0xff]  }
 0x2d5   : > { %7084 = vmatprep.subr.bf16.mxu0 %v10402_v21  ;;  %7740 = vmatprep.subr.bf16.mxu1 %v10405_v23  ;;  %v10493_v21 = vld [vmem:[%s11197_s4 + $0x1664] ss:$16 sps:$4 sm:$0xff]   ;;  %v10496_v23 = vld [vmem:[%s11197_s4 + $0x166c] ss:$16 sps:$4 sm:$0xff]  }
 0x2d8   : > { %7085 = vmatpush1.bf16.msra.mxu0 %v10400_v24  ;;  %7741 = vmatpush1.bf16.msra.mxu1 %v10403_v25  ;;  %v10491_v24 = vld [vmem:[%s11197_s4 + $0x1660] ss:$16 sps:$4 sm:$0xff]   ;;  %v10494_v25 = vld [vmem:[%s11197_s4 + $0x1668] ss:$16 sps:$4 sm:$0xff]  }
 0x2d9   : > { %7086 = vmatprep.subr.bf16.mxu0 %v10408_v27  ;;  %7742 = vmatprep.subr.bf16.mxu1 %v10411_v28  ;;  %v10499_v27 = vld [vmem:[%s11197_s4 + $0x1684] ss:$16 sps:$4 sm:$0xff]   ;;  %v10502_v28 = vld [vmem:[%s11197_s4 + $0x168c] ss:$16 sps:$4 sm:$0xff]  }
 0x2dc   : > { %7087 = vmatpush1.bf16.msra.mxu0 %v10406_v29  ;;  %7743 = vmatpush1.bf16.msra.mxu1 %v10409_v30  ;;  %v10497_v29 = vld [vmem:[%s11197_s4 + $0x1680] ss:$16 sps:$4 sm:$0xff]   ;;  %v10500_v30 = vld [vmem:[%s11197_s4 + $0x1688] ss:$16 sps:$4 sm:$0xff]  }
 0x2dd   : > { %7088 = vmatprep.subr.bf16.mxu0 %v10414_v31  ;;  %7744 = vmatprep.subr.bf16.mxu1 %v10417_v16  ;;  %v10505_v31 = vld [vmem:[%s11197_s4 + $0x16a4] ss:$16 sps:$4 sm:$0xff]   ;;  %v10508_v16 = vld [vmem:[%s11197_s4 + $0x16ac] ss:$16 sps:$4 sm:$0xff]  }
 0x2e0   : > { %7089 = vmatpush1.bf16.msra.mxu0 %v10412_v32  ;;  %7745 = vmatpush1.bf16.msra.mxu1 %v10415_v33  ;;  %v10503_v32 = vld [vmem:[%s11197_s4 + $0x16a0] ss:$16 sps:$4 sm:$0xff]   ;;  %v10506_v33 = vld [vmem:[%s11197_s4 + $0x16a8] ss:$16 sps:$4 sm:$0xff]  }
 0x2e1   : > { %7090 = vmatprep.subr.bf16.mxu0 %v10420_v34  ;;  %7746 = vmatprep.subr.bf16.mxu1 %v10423_v26  ;;  %v10511_v34 = vld [vmem:[%s11197_s4 + $0x16c4] ss:$16 sps:$4 sm:$0xff]   ;;  %v10514_v26 = vld [vmem:[%s11197_s4 + $0x16cc] ss:$16 sps:$4 sm:$0xff]  }
 0x2e4   : > { %7091 = vmatpush1.bf16.msra.mxu0 %v10418_v35  ;;  %7747 = vmatpush1.bf16.msra.mxu1 %v10421_v37  ;;  %v10509_v35 = vld [vmem:[%s11197_s4 + $0x16c0] ss:$16 sps:$4 sm:$0xff]   ;;  %v10512_v37 = vld [vmem:[%s11197_s4 + $0x16c8] ss:$16 sps:$4 sm:$0xff]  }
 0x2e5   : > { %7092 = vmatprep.subr.bf16.mxu0 %v10426_v38  ;;  %7748 = vmatprep.subr.bf16.mxu1 %v10429_v40  ;;  %v10517_v38 = vld [vmem:[%s11197_s4 + $0x16e4] ss:$16 sps:$4 sm:$0xff]   ;;  %v10520_v40 = vld [vmem:[%s11197_s4 + $0x16ec] ss:$16 sps:$4 sm:$0xff]  }
 0x2e8   : > { %7093 = vmatpush1.bf16.msra.mxu0 %v10424_v41  ;;  %7749 = vmatpush1.bf16.msra.mxu1 %v10427_v22  ;;  %v10515_v41 = vld [vmem:[%s11197_s4 + $0x16e0] ss:$16 sps:$4 sm:$0xff]   ;;  %v10518_v22 = vld [vmem:[%s11197_s4 + $0x16e8] ss:$16 sps:$4 sm:$0xff]  }
 0x2e9   : > { %7094 = vmatprep.subr.bf16.mxu0 %v10432_v42  ;;  %7750 = vmatprep.subr.bf16.mxu1 %v10435_v43  ;;  %v10523_v42 = vld [vmem:[%s11197_s4 + $0x1704] ss:$16 sps:$4 sm:$0xff]   ;;  %v10526_v43 = vld [vmem:[%s11197_s4 + $0x170c] ss:$16 sps:$4 sm:$0xff]  }
 0x2ec   : > { %7095 = vmatpush1.bf16.msra.mxu0 %v10430_v45  ;;  %7751 = vmatpush1.bf16.msra.mxu1 %v10433_v46  ;;  %v10521_v45 = vld [vmem:[%s11197_s4 + $0x1700] ss:$16 sps:$4 sm:$0xff]   ;;  %v10524_v46 = vld [vmem:[%s11197_s4 + $0x1708] ss:$16 sps:$4 sm:$0xff]  }
 0x2ed   : > { %7096 = vmatprep.subr.bf16.mxu0 %v10438_v47  ;;  %7752 = vmatprep.subr.bf16.mxu1 %v10441_v48  ;;  %v10529_v47 = vld [vmem:[%s11197_s4 + $0x1724] ss:$16 sps:$4 sm:$0xff]   ;;  %v10532_v48 = vld [vmem:[%s11197_s4 + $0x172c] ss:$16 sps:$4 sm:$0xff]  }
 0x2f0   : > { %7097 = vmatpush1.bf16.msra.mxu0 %v10436_v51  ;;  %7753 = vmatpush1.bf16.msra.mxu1 %v10439_v54  ;;  %v10527_v51 = vld [vmem:[%s11197_s4 + $0x1720] ss:$16 sps:$4 sm:$0xff]   ;;  %v10530_v54 = vld [vmem:[%s11197_s4 + $0x1728] ss:$16 sps:$4 sm:$0xff]  }
 0x2f1   : > { %7098 = vmatprep.subr.bf16.mxu0 %v10444_v55  ;;  %7754 = vmatprep.subr.bf16.mxu1 %v10447_v56  ;;  %v10535_v55 = vld [vmem:[%s11197_s4 + $0x1744] ss:$16 sps:$4 sm:$0xff]   ;;  %v10538_v56 = vld [vmem:[%s11197_s4 + $0x174c] ss:$16 sps:$4 sm:$0xff]  }
 0x2f4   : > { %7099 = vmatpush1.bf16.msra.mxu0 %v10442_v39  ;;  %7755 = vmatpush1.bf16.msra.mxu1 %v10445_v57  ;;  %v10533_v39 = vld [vmem:[%s11197_s4 + $0x1740] ss:$16 sps:$4 sm:$0xff]   ;;  %v10536_v57 = vld [vmem:[%s11197_s4 + $0x1748] ss:$16 sps:$4 sm:$0xff]  }
 0x2f5   : > { %7100 = vmatprep.subr.bf16.mxu0 %v10450_v58  ;;  %7756 = vmatprep.subr.bf16.mxu1 %v10453_v59  ;;  %v10541_v58 = vld [vmem:[%s11197_s4 + $0x1764] ss:$16 sps:$4 sm:$0xff]   ;;  %v10544_v59 = vld [vmem:[%s11197_s4 + $0x176c] ss:$16 sps:$4 sm:$0xff]  }
 0x2f8   : > { %7101 = vmatpush1.bf16.msra.mxu0 %v10448_v49  ;;  %7757 = vmatpush1.bf16.msra.mxu1 %v10451_v60  ;;  %v10539_v49 = vld [vmem:[%s11197_s4 + $0x1760] ss:$16 sps:$4 sm:$0xff]   ;;  %v10542_v60 = vld [vmem:[%s11197_s4 + $0x1768] ss:$16 sps:$4 sm:$0xff]  }
 0x2f9   : > { %7102 = vmatprep.subr.bf16.mxu0 %v10456_v61  ;;  %7758 = vmatprep.subr.bf16.mxu1 %v10459_v14  ;;  %v10547_v61 = vld [vmem:[%s11197_s4 + $0x1784] ss:$16 sps:$4 sm:$0xff]   ;;  %v10550_v14 = vld [vmem:[%s11197_s4 + $0x178c] ss:$16 sps:$4 sm:$0xff]  }
 0x2fc   : > { %7103 = vmatpush1.bf16.msra.mxu0 %v10454_v0  ;;  %7759 = vmatpush1.bf16.msra.mxu1 %v10457_v1  ;;  %v10545_v0 = vld [vmem:[%s11197_s4 + $0x1780] ss:$16 sps:$4 sm:$0xff]   ;;  %v10548_v1 = vld [vmem:[%s11197_s4 + $0x1788] ss:$16 sps:$4 sm:$0xff]  }
 0x2fd   : > { %7104 = vmatprep.subr.bf16.mxu0 %v10462_v36  ;;  %7760 = vmatprep.subr.bf16.mxu1 %v10465_v3  ;;  %v10553_v36 = vld [vmem:[%s11197_s4 + $0x17a4] ss:$16 sps:$4 sm:$0xff]   ;;  %v10556_v3 = vld [vmem:[%s11197_s4 + $0x17ac] ss:$16 sps:$4 sm:$0xff]  }
 0x300   : > { %7105 = vmatpush1.bf16.msra.mxu0 %v10460_v4  ;;  %7761 = vmatpush1.bf16.msra.mxu1 %v10463_v52  ;;  %v10551_v4 = vld [vmem:[%s11197_s4 + $0x17a0] ss:$16 sps:$4 sm:$0xff]   ;;  %v10554_v52 = vld [vmem:[%s11197_s4 + $0x17a8] ss:$16 sps:$4 sm:$0xff]  }
 0x301   : > { %7106 = vmatprep.subr.bf16.mxu0 %v10468_v5  ;;  %7762 = vmatprep.subr.bf16.mxu1 %v10471_v6  ;;  %v10559_v5 = vld [vmem:[%s11197_s4 + $0x17c4] ss:$16 sps:$4 sm:$0xff]   ;;  %v10562_v6 = vld [vmem:[%s11197_s4 + $0x17cc] ss:$16 sps:$4 sm:$0xff]  }
 0x304   : > { %7107 = vmatpush1.bf16.msra.mxu0 %v10466_v7  ;;  %7763 = vmatpush1.bf16.msra.mxu1 %v10469_v62  ;;  %v12112_v7 = vld [vmem:[%s11210_s6 + $0x18] sm:$0xff]  ;;  %v10557_v62 = vld [vmem:[%s11197_s4 + $0x17c0] ss:$16 sps:$4 sm:$0xff]  }
 0x305   : > { %7117 = vmatprep.subr.bf16.mxu0 %v10475_v8  ;;  %7773 = vmatprep.subr.bf16.mxu1 %v10478_v9  ;;  %v10560_v8 = vld [vmem:[%s11197_s4 + $0x17c8] ss:$16 sps:$4 sm:$0xff]   ;;  %v10565_v9 = vld [vmem:[%s11197_s4 + $0x17e4] ss:$16 sps:$4 sm:$0xff]  }
 0x307   : > { %7109 = vmatmul.mubr.bf16.vlgmr.msra.gmra.mrb[0].mxu0 %v12049_v63  ;;  %7765 = vmatmul.mubr.bf16.vlgmr.msra.gmra.mrb[0].mxu1 %v12049_v63 }
 0x308   : > { %7118 = vmatpush1.bf16.msra.mxu0 %v10473_v11  ;;  %7774 = vmatpush1.bf16.msra.mxu1 %v10476_v12  ;;  %v10568_v11 = vld [vmem:[%s11197_s4 + $0x17ec] ss:$16 sps:$4 sm:$0xff]   ;;  %v12120_v12 = vrot.slane %v12112_v7, %v11271_v50 }
 0x309   : > { %7119 = vmatprep.subr.bf16.mxu0 %v10481_v13  ;;  %7775 = vmatprep.subr.bf16.mxu1 %v10484_v15  ;;  %v10563_v13 = vld [vmem:[%s11197_s4 + $0x17e0] ss:$16 sps:$4 sm:$0xff]   ;;  %v10566_v15 = vld [vmem:[%s11197_s4 + $0x17e8] ss:$16 sps:$4 sm:$0xff]  }
 0x30a   : > { %7149 = vmatprep.mubr.bf16.mxu0 %v1464_v17  ;;  %7805 = vmatprep.mubr.bf16.mxu1 %v1464_v17  ;;  %v10571_v17 = vld [vmem:[%s11197_s4 + $0x1804] ss:$16 sps:$4 sm:$0xff]  }
 0x30c   : > { %7120 = vmatpush1.bf16.msra.mxu0 %v10479_v2  ;;  %7776 = vmatpush1.bf16.msra.mxu1 %v10482_v53  ;;  %v10574_v2 = vld [vmem:[%s11197_s4 + $0x180c] ss:$16 sps:$4 sm:$0xff]   ;;  %v1480_v53 = vcombine.high %v12120_v12, %v12120_v12 }
 0x30d   : > { %7121 = vmatprep.subr.bf16.mxu0 %v10487_v18  ;;  %7777 = vmatprep.subr.bf16.mxu1 %v10490_v19  ;;  %v1462_v18 = vcombine.high %v12049_v63, %v12049_v63  ;;  %v10569_v19 = vld [vmem:[%s11197_s4 + $0x1800] ss:$16 sps:$4 sm:$0xff]  }
 0x30e   : > { %v10575_v63 = vld [vmem:[%s11197_s4 + $0x1820] ss:$16 sps:$4 sm:$0xff]  }
 0x310   : > { %7122 = vmatpush1.bf16.msra.mxu0 %v10485_v10  ;;  %7778 = vmatpush1.bf16.msra.mxu1 %v10488_v20  ;;  %v10572_v10 = vld [vmem:[%s11197_s4 + $0x1808] ss:$16 sps:$4 sm:$0xff]   ;;  %v10577_v20 = vld [vmem:[%s11197_s4 + $0x1824] ss:$16 sps:$4 sm:$0xff]  }
 0x311   : > { %7123 = vmatprep.subr.bf16.mxu0 %v10493_v21  ;;  %7779 = vmatprep.subr.bf16.mxu1 %v10496_v23  ;;  %v10580_v21 = vld [vmem:[%s11197_s4 + $0x182c] ss:$16 sps:$4 sm:$0xff]   ;;  %v12135_v23 = vrot.slane %v1480_v53, %v11271_v50  ;;  %v10656_v53 = vld [vmem:[%s11197_s4 + $0x19c8] ss:$16 sps:$4 sm:$0xff]  }
 0x314   : > { %7124 = vmatpush1.bf16.msra.mxu0 %v10491_v24  ;;  %7780 = vmatpush1.bf16.msra.mxu1 %v10494_v25  ;;  %v10578_v24 = vld [vmem:[%s11197_s4 + $0x1828] ss:$16 sps:$4 sm:$0xff]   ;;  %v10583_v25 = vld [vmem:[%s11197_s4 + $0x1844] ss:$16 sps:$4 sm:$0xff]  }
 0x315   : > { %7125 = vmatprep.subr.bf16.mxu0 %v10499_v27  ;;  %7781 = vmatprep.subr.bf16.mxu1 %v10502_v28  ;;  %v10586_v27 = vld [vmem:[%s11197_s4 + $0x184c] ss:$16 sps:$4 sm:$0xff]   ;;  %v10581_v28 = vld [vmem:[%s11197_s4 + $0x1840] ss:$16 sps:$4 sm:$0xff]  }
 0x318   : > { %7126 = vmatpush1.bf16.msra.mxu0 %v10497_v29  ;;  %7782 = vmatpush1.bf16.msra.mxu1 %v10500_v30  ;;  %v10584_v29 = vld [vmem:[%s11197_s4 + $0x1848] ss:$16 sps:$4 sm:$0xff]   ;;  %v10589_v30 = vld [vmem:[%s11197_s4 + $0x1864] ss:$16 sps:$4 sm:$0xff]  }
 0x319   : > { %7127 = vmatprep.subr.bf16.mxu0 %v10505_v31  ;;  %7783 = vmatprep.subr.bf16.mxu1 %v10508_v16  ;;  %v10592_v31 = vld [vmem:[%s11197_s4 + $0x186c] ss:$16 sps:$4 sm:$0xff]   ;;  %v10587_v16 = vld [vmem:[%s11197_s4 + $0x1860] ss:$16 sps:$4 sm:$0xff]  }
 0x31c   : > { %7128 = vmatpush1.bf16.msra.mxu0 %v10503_v32  ;;  %7784 = vmatpush1.bf16.msra.mxu1 %v10506_v33  ;;  %v10590_v32 = vld [vmem:[%s11197_s4 + $0x1868] ss:$16 sps:$4 sm:$0xff]   ;;  %v10595_v33 = vld [vmem:[%s11197_s4 + $0x1884] ss:$16 sps:$4 sm:$0xff]  }
 0x31d   : > { %7129 = vmatprep.subr.bf16.mxu0 %v10511_v34  ;;  %7785 = vmatprep.subr.bf16.mxu1 %v10514_v26  ;;  %v10598_v34 = vld [vmem:[%s11197_s4 + $0x188c] ss:$16 sps:$4 sm:$0xff]   ;;  %v10593_v26 = vld [vmem:[%s11197_s4 + $0x1880] ss:$16 sps:$4 sm:$0xff]  }
 0x320   : > { %7130 = vmatpush1.bf16.msra.mxu0 %v10509_v35  ;;  %7786 = vmatpush1.bf16.msra.mxu1 %v10512_v37  ;;  %v10596_v35 = vld [vmem:[%s11197_s4 + $0x1888] ss:$16 sps:$4 sm:$0xff]   ;;  %v10601_v37 = vld [vmem:[%s11197_s4 + $0x18a4] ss:$16 sps:$4 sm:$0xff]  }
 0x321   : > { %7131 = vmatprep.subr.bf16.mxu0 %v10517_v38  ;;  %7787 = vmatprep.subr.bf16.mxu1 %v10520_v40  ;;  %v10604_v38 = vld [vmem:[%s11197_s4 + $0x18ac] ss:$16 sps:$4 sm:$0xff]   ;;  %v10599_v40 = vld [vmem:[%s11197_s4 + $0x18a0] ss:$16 sps:$4 sm:$0xff]  }
 0x324   : > { %7132 = vmatpush1.bf16.msra.mxu0 %v10515_v41  ;;  %7788 = vmatpush1.bf16.msra.mxu1 %v10518_v22  ;;  %v10602_v41 = vld [vmem:[%s11197_s4 + $0x18a8] ss:$16 sps:$4 sm:$0xff]   ;;  %v10607_v22 = vld [vmem:[%s11197_s4 + $0x18c4] ss:$16 sps:$4 sm:$0xff]  }
 0x325   : > { %7133 = vmatprep.subr.bf16.mxu0 %v10523_v42  ;;  %7789 = vmatprep.subr.bf16.mxu1 %v10526_v43  ;;  %v10610_v42 = vld [vmem:[%s11197_s4 + $0x18cc] ss:$16 sps:$4 sm:$0xff]   ;;  %v10605_v43 = vld [vmem:[%s11197_s4 + $0x18c0] ss:$16 sps:$4 sm:$0xff]  }
 0x328   : > { %7134 = vmatpush1.bf16.msra.mxu0 %v10521_v45  ;;  %7790 = vmatpush1.bf16.msra.mxu1 %v10524_v46  ;;  %v10608_v45 = vld [vmem:[%s11197_s4 + $0x18c8] ss:$16 sps:$4 sm:$0xff]   ;;  %v10613_v46 = vld [vmem:[%s11197_s4 + $0x18e4] ss:$16 sps:$4 sm:$0xff]  }
 0x329   : > { %7135 = vmatprep.subr.bf16.mxu0 %v10529_v47  ;;  %7791 = vmatprep.subr.bf16.mxu1 %v10532_v48  ;;  %v10616_v47 = vld [vmem:[%s11197_s4 + $0x18ec] ss:$16 sps:$4 sm:$0xff]   ;;  %v10611_v48 = vld [vmem:[%s11197_s4 + $0x18e0] ss:$16 sps:$4 sm:$0xff]  }
 0x32c   : > { %7136 = vmatpush1.bf16.msra.mxu0 %v10527_v51  ;;  %7792 = vmatpush1.bf16.msra.mxu1 %v10530_v54  ;;  %v10614_v51 = vld [vmem:[%s11197_s4 + $0x18e8] ss:$16 sps:$4 sm:$0xff]   ;;  %v10619_v54 = vld [vmem:[%s11197_s4 + $0x1904] ss:$16 sps:$4 sm:$0xff]  }
 0x32d   : > { %7137 = vmatprep.subr.bf16.mxu0 %v10535_v55  ;;  %7793 = vmatprep.subr.bf16.mxu1 %v10538_v56  ;;  %v10622_v55 = vld [vmem:[%s11197_s4 + $0x190c] ss:$16 sps:$4 sm:$0xff]   ;;  %v10617_v56 = vld [vmem:[%s11197_s4 + $0x1900] ss:$16 sps:$4 sm:$0xff]  }
 0x330   : > { %7138 = vmatpush1.bf16.msra.mxu0 %v10533_v39  ;;  %7794 = vmatpush1.bf16.msra.mxu1 %v10536_v57  ;;  %v10620_v39 = vld [vmem:[%s11197_s4 + $0x1908] ss:$16 sps:$4 sm:$0xff]   ;;  %v10625_v57 = vld [vmem:[%s11197_s4 + $0x1924] ss:$16 sps:$4 sm:$0xff]  }
 0x331   : > { %7139 = vmatprep.subr.bf16.mxu0 %v10541_v58  ;;  %7795 = vmatprep.subr.bf16.mxu1 %v10544_v59  ;;  %v10628_v58 = vld [vmem:[%s11197_s4 + $0x192c] ss:$16 sps:$4 sm:$0xff]   ;;  %v10623_v59 = vld [vmem:[%s11197_s4 + $0x1920] ss:$16 sps:$4 sm:$0xff]  }
 0x334   : > { %7140 = vmatpush1.bf16.msra.mxu0 %v10539_v49  ;;  %7796 = vmatpush1.bf16.msra.mxu1 %v10542_v60  ;;  %v10626_v49 = vld [vmem:[%s11197_s4 + $0x1928] ss:$16 sps:$4 sm:$0xff]   ;;  %v10631_v60 = vld [vmem:[%s11197_s4 + $0x1944] ss:$16 sps:$4 sm:$0xff]  }
 0x335   : > { %7141 = vmatprep.subr.bf16.mxu0 %v10547_v61  ;;  %7797 = vmatprep.subr.bf16.mxu1 %v10550_v14  ;;  %v10634_v61 = vld [vmem:[%s11197_s4 + $0x194c] ss:$16 sps:$4 sm:$0xff]   ;;  %v10629_v14 = vld [vmem:[%s11197_s4 + $0x1940] ss:$16 sps:$4 sm:$0xff]  }
 0x338   : > { %7142 = vmatpush1.bf16.msra.mxu0 %v10545_v0  ;;  %7798 = vmatpush1.bf16.msra.mxu1 %v10548_v1  ;;  %v10632_v0 = vld [vmem:[%s11197_s4 + $0x1948] ss:$16 sps:$4 sm:$0xff]   ;;  %v10637_v1 = vld [vmem:[%s11197_s4 + $0x1964] ss:$16 sps:$4 sm:$0xff]  }
 0x339   : > { %7143 = vmatprep.subr.bf16.mxu0 %v10553_v36  ;;  %7799 = vmatprep.subr.bf16.mxu1 %v10556_v3  ;;  %v10640_v36 = vld [vmem:[%s11197_s4 + $0x196c] ss:$16 sps:$4 sm:$0xff]   ;;  %v10635_v3 = vld [vmem:[%s11197_s4 + $0x1960] ss:$16 sps:$4 sm:$0xff]  }
 0x33c   : > { %7144 = vmatpush1.bf16.msra.mxu0 %v10551_v4  ;;  %7800 = vmatpush1.bf16.msra.mxu1 %v10554_v52  ;;  %v10638_v4 = vld [vmem:[%s11197_s4 + $0x1968] ss:$16 sps:$4 sm:$0xff]   ;;  %v10643_v52 = vld [vmem:[%s11197_s4 + $0x1984] ss:$16 sps:$4 sm:$0xff]  }
 0x33d   : > { %7145 = vmatprep.subr.bf16.mxu0 %v10559_v5  ;;  %7801 = vmatprep.subr.bf16.mxu1 %v10562_v6  ;;  %v10646_v5 = vld [vmem:[%s11197_s4 + $0x198c] ss:$16 sps:$4 sm:$0xff]   ;;  %v10641_v6 = vld [vmem:[%s11197_s4 + $0x1980] ss:$16 sps:$4 sm:$0xff]  }
 0x340   : > { %7146 = vmatpush1.bf16.msra.mxu0 %v10557_v62  ;;  %7802 = vmatpush1.bf16.msra.mxu1 %v10560_v8  ;;  %v10644_v62 = vld [vmem:[%s11197_s4 + $0x1988] ss:$16 sps:$4 sm:$0xff]   ;;  %v10649_v8 = vld [vmem:[%s11197_s4 + $0x19a4] ss:$16 sps:$4 sm:$0xff]  }
 0x341   : > { %7147 = vmatprep.subr.bf16.mxu0 %v10565_v9  ;;  %7803 = vmatprep.subr.bf16.mxu1 %v10568_v11  ;;  %v10652_v9 = vld [vmem:[%s11197_s4 + $0x19ac] ss:$16 sps:$4 sm:$0xff]   ;;  %v10647_v11 = vld [vmem:[%s11197_s4 + $0x19a0] ss:$16 sps:$4 sm:$0xff]  }
 0x344   : > { %7148 = vmatpush1.bf16.msra.mxu0 %v10563_v13  ;;  %7804 = vmatpush1.bf16.msra.mxu1 %v10566_v15  ;;  %v10650_v13 = vld [vmem:[%s11197_s4 + $0x19a8] ss:$16 sps:$4 sm:$0xff]   ;;  %v10655_v15 = vld [vmem:[%s11197_s4 + $0x19c4] ss:$16 sps:$4 sm:$0xff]  }
 0x345   : > { %7158 = vmatprep.subr.bf16.mxu0 %v10571_v17  ;;  %7814 = vmatprep.subr.bf16.mxu1 %v10574_v2  ;;  %v10658_v17 = vld [vmem:[%s11197_s4 + $0x19cc] ss:$16 sps:$4 sm:$0xff]   ;;  %v10653_v2 = vld [vmem:[%s11197_s4 + $0x19c0] ss:$16 sps:$4 sm:$0xff]  }
 0x347   : > { %7150 = vmatmul.mubr.bf16.vlgmr.msra.gmra.mrb[0].mxu0 %v1462_v18  ;;  %7806 = vmatmul.mubr.bf16.vlgmr.msra.gmra.mrb[0].mxu1 %v1462_v18  ;;  %v10661_v18 = vld [vmem:[%s11197_s4 + $0x19e4] ss:$16 sps:$4 sm:$0xff]  }
 0x348   : > { %7159 = vmatpush1.bf16.msra.mxu0 %v10569_v19  ;;  %7815 = vmatpush1.bf16.msra.mxu1 %v10572_v10  ;;  %v10664_v19 = vld [vmem:[%s11197_s4 + $0x19ec] ss:$16 sps:$4 sm:$0xff]   ;;  %v10659_v10 = vld [vmem:[%s11197_s4 + $0x19e0] ss:$16 sps:$4 sm:$0xff]  }
 0x349   : > { %7160 = vmatprep.subr.bf16.mxu0 %v10577_v20  ;;  %7816 = vmatprep.subr.bf16.mxu1 %v10580_v21  ;;  %v10662_v20 = vld [vmem:[%s11197_s4 + $0x19e8] ss:$16 sps:$4 sm:$0xff]   ;;  %v10667_v21 = vld [vmem:[%s11197_s4 + $0x1a04] ss:$16 sps:$4 sm:$0xff]  }
 0x34a   : > { %7190 = vmatprep.mubr.bf16.mxu0 %v12135_v23  ;;  %7846 = vmatprep.mubr.bf16.mxu1 %v12135_v23 }
 0x34c   : > { %7161 = vmatpush1.bf16.msra.mxu0 %v10575_v63  ;;  %7817 = vmatpush1.bf16.msra.mxu1 %v10578_v24  ;;  %v10670_v63 = vld [vmem:[%s11197_s4 + $0x1a0c] ss:$16 sps:$4 sm:$0xff]   ;;  %v12201_v24 = vrot.slane %v12120_v12, %v11271_v50  ;;  %v10671_v12 = vld [vmem:[%s11197_s4 + $0x1a20] ss:$16 sps:$4 sm:$0xff]  }
 0x34d   : > { %7162 = vmatprep.subr.bf16.mxu0 %v10583_v25  ;;  %7818 = vmatprep.subr.bf16.mxu1 %v10586_v27  ;;  %v10665_v25 = vld [vmem:[%s11197_s4 + $0x1a00] ss:$16 sps:$4 sm:$0xff]   ;;  %v10668_v27 = vld [vmem:[%s11197_s4 + $0x1a08] ss:$16 sps:$4 sm:$0xff]  }
 0x350   : > { %7163 = vmatpush1.bf16.msra.mxu0 %v10581_v28  ;;  %7819 = vmatpush1.bf16.msra.mxu1 %v10584_v29  ;;  %v10673_v28 = vld [vmem:[%s11197_s4 + $0x1a24] ss:$16 sps:$4 sm:$0xff]   ;;  %v10676_v29 = vld [vmem:[%s11197_s4 + $0x1a2c] ss:$16 sps:$4 sm:$0xff]  }
 0x351   : > { %7164 = vmatprep.subr.bf16.mxu0 %v10589_v30  ;;  %7820 = vmatprep.subr.bf16.mxu1 %v10592_v31  ;;  %v1512_v30 = vcombine.high %v12135_v23, %v12135_v23  ;;  %v10674_v31 = vld [vmem:[%s11197_s4 + $0x1a28] ss:$16 sps:$4 sm:$0xff]   ;;  %v10677_v23 = vld [vmem:[%s11197_s4 + $0x1a40] ss:$16 sps:$4 sm:$0xff]  }
 0x354   : > { %7165 = vmatpush1.bf16.msra.mxu0 %v10587_v16  ;;  %7821 = vmatpush1.bf16.msra.mxu1 %v10590_v32  ;;  %v10679_v16 = vld [vmem:[%s11197_s4 + $0x1a44] ss:$16 sps:$4 sm:$0xff]   ;;  %v10682_v32 = vld [vmem:[%s11197_s4 + $0x1a4c] ss:$16 sps:$4 sm:$0xff]  }
 0x355   : > { %7166 = vmatprep.subr.bf16.mxu0 %v10595_v33  ;;  %7822 = vmatprep.subr.bf16.mxu1 %v10598_v34  ;;  %v10680_v33 = vld [vmem:[%s11197_s4 + $0x1a48] ss:$16 sps:$4 sm:$0xff]   ;;  %v10685_v34 = vld [vmem:[%s11197_s4 + $0x1a64] ss:$16 sps:$4 sm:$0xff]  }
 0x358   : > { %7167 = vmatpush1.bf16.msra.mxu0 %v10593_v26  ;;  %7823 = vmatpush1.bf16.msra.mxu1 %v10596_v35  ;;  %v10688_v26 = vld [vmem:[%s11197_s4 + $0x1a6c] ss:$16 sps:$4 sm:$0xff]   ;;  %v10683_v35 = vld [vmem:[%s11197_s4 + $0x1a60] ss:$16 sps:$4 sm:$0xff]  }
 0x359   : > { %7168 = vmatprep.subr.bf16.mxu0 %v10601_v37  ;;  %7824 = vmatprep.subr.bf16.mxu1 %v10604_v38  ;;  %v10686_v37 = vld [vmem:[%s11197_s4 + $0x1a68] ss:$16 sps:$4 sm:$0xff]   ;;  %v10691_v38 = vld [vmem:[%s11197_s4 + $0x1a84] ss:$16 sps:$4 sm:$0xff]  }
 0x35c   : > { %7169 = vmatpush1.bf16.msra.mxu0 %v10599_v40  ;;  %7825 = vmatpush1.bf16.msra.mxu1 %v10602_v41  ;;  %v10694_v40 = vld [vmem:[%s11197_s4 + $0x1a8c] ss:$16 sps:$4 sm:$0xff]   ;;  %v10689_v41 = vld [vmem:[%s11197_s4 + $0x1a80] ss:$16 sps:$4 sm:$0xff]  }
 0x35d   : > { %7170 = vmatprep.subr.bf16.mxu0 %v10607_v22  ;;  %7826 = vmatprep.subr.bf16.mxu1 %v10610_v42  ;;  %v10692_v22 = vld [vmem:[%s11197_s4 + $0x1a88] ss:$16 sps:$4 sm:$0xff]   ;;  %v10697_v42 = vld [vmem:[%s11197_s4 + $0x1aa4] ss:$16 sps:$4 sm:$0xff]  }
 0x360   : > { %7171 = vmatpush1.bf16.msra.mxu0 %v10605_v43  ;;  %7827 = vmatpush1.bf16.msra.mxu1 %v10608_v45  ;;  %v10700_v43 = vld [vmem:[%s11197_s4 + $0x1aac] ss:$16 sps:$4 sm:$0xff]   ;;  %v10695_v45 = vld [vmem:[%s11197_s4 + $0x1aa0] ss:$16 sps:$4 sm:$0xff]  }
 0x361   : > { %7172 = vmatprep.subr.bf16.mxu0 %v10613_v46  ;;  %7828 = vmatprep.subr.bf16.mxu1 %v10616_v47  ;;  %v10698_v46 = vld [vmem:[%s11197_s4 + $0x1aa8] ss:$16 sps:$4 sm:$0xff]   ;;  %v10703_v47 = vld [vmem:[%s11197_s4 + $0x1ac4] ss:$16 sps:$4 sm:$0xff]  }
 0x364   : > { %7173 = vmatpush1.bf16.msra.mxu0 %v10611_v48  ;;  %7829 = vmatpush1.bf16.msra.mxu1 %v10614_v51  ;;  %v10706_v48 = vld [vmem:[%s11197_s4 + $0x1acc] ss:$16 sps:$4 sm:$0xff]   ;;  %v10701_v51 = vld [vmem:[%s11197_s4 + $0x1ac0] ss:$16 sps:$4 sm:$0xff]  }
 0x365   : > { %7174 = vmatprep.subr.bf16.mxu0 %v10619_v54  ;;  %7830 = vmatprep.subr.bf16.mxu1 %v10622_v55  ;;  %v10704_v54 = vld [vmem:[%s11197_s4 + $0x1ac8] ss:$16 sps:$4 sm:$0xff]   ;;  %v10709_v55 = vld [vmem:[%s11197_s4 + $0x1ae4] ss:$16 sps:$4 sm:$0xff]  }
 0x368   : > { %7175 = vmatpush1.bf16.msra.mxu0 %v10617_v56  ;;  %7831 = vmatpush1.bf16.msra.mxu1 %v10620_v39  ;;  %v10712_v56 = vld [vmem:[%s11197_s4 + $0x1aec] ss:$16 sps:$4 sm:$0xff]   ;;  %v10707_v39 = vld [vmem:[%s11197_s4 + $0x1ae0] ss:$16 sps:$4 sm:$0xff]  }
 0x369   : > { %7176 = vmatprep.subr.bf16.mxu0 %v10625_v57  ;;  %7832 = vmatprep.subr.bf16.mxu1 %v10628_v58  ;;  %v10710_v57 = vld [vmem:[%s11197_s4 + $0x1ae8] ss:$16 sps:$4 sm:$0xff]   ;;  %v10715_v58 = vld [vmem:[%s11197_s4 + $0x1b04] ss:$16 sps:$4 sm:$0xff]  }
 0x36c   : > { %7177 = vmatpush1.bf16.msra.mxu0 %v10623_v59  ;;  %7833 = vmatpush1.bf16.msra.mxu1 %v10626_v49  ;;  %v10718_v59 = vld [vmem:[%s11197_s4 + $0x1b0c] ss:$16 sps:$4 sm:$0xff]   ;;  %v10713_v49 = vld [vmem:[%s11197_s4 + $0x1b00] ss:$16 sps:$4 sm:$0xff]  }
 0x36d   : > { %7178 = vmatprep.subr.bf16.mxu0 %v10631_v60  ;;  %7834 = vmatprep.subr.bf16.mxu1 %v10634_v61  ;;  %v10716_v60 = vld [vmem:[%s11197_s4 + $0x1b08] ss:$16 sps:$4 sm:$0xff]   ;;  %v10721_v61 = vld [vmem:[%s11197_s4 + $0x1b24] ss:$16 sps:$4 sm:$0xff]  }
 0x370   : > { %7179 = vmatpush1.bf16.msra.mxu0 %v10629_v14  ;;  %7835 = vmatpush1.bf16.msra.mxu1 %v10632_v0  ;;  %v10724_v14 = vld [vmem:[%s11197_s4 + $0x1b2c] ss:$16 sps:$4 sm:$0xff]   ;;  %v10719_v0 = vld [vmem:[%s11197_s4 + $0x1b20] ss:$16 sps:$4 sm:$0xff]  }
 0x371   : > { %7180 = vmatprep.subr.bf16.mxu0 %v10637_v1  ;;  %7836 = vmatprep.subr.bf16.mxu1 %v10640_v36  ;;  %v10722_v1 = vld [vmem:[%s11197_s4 + $0x1b28] ss:$16 sps:$4 sm:$0xff]   ;;  %v10727_v36 = vld [vmem:[%s11197_s4 + $0x1b44] ss:$16 sps:$4 sm:$0xff]  }
 0x374   : > { %7181 = vmatpush1.bf16.msra.mxu0 %v10635_v3  ;;  %7837 = vmatpush1.bf16.msra.mxu1 %v10638_v4  ;;  %v10730_v3 = vld [vmem:[%s11197_s4 + $0x1b4c] ss:$16 sps:$4 sm:$0xff]   ;;  %v10725_v4 = vld [vmem:[%s11197_s4 + $0x1b40] ss:$16 sps:$4 sm:$0xff]  }
 0x375   : > { %7182 = vmatprep.subr.bf16.mxu0 %v10643_v52  ;;  %7838 = vmatprep.subr.bf16.mxu1 %v10646_v5  ;;  %v10728_v52 = vld [vmem:[%s11197_s4 + $0x1b48] ss:$16 sps:$4 sm:$0xff]   ;;  %v10733_v5 = vld [vmem:[%s11197_s4 + $0x1b64] ss:$16 sps:$4 sm:$0xff]  }
 0x378   : > { %7183 = vmatpush1.bf16.msra.mxu0 %v10641_v6  ;;  %7839 = vmatpush1.bf16.msra.mxu1 %v10644_v62  ;;  %v10736_v6 = vld [vmem:[%s11197_s4 + $0x1b6c] ss:$16 sps:$4 sm:$0xff]   ;;  %v10731_v62 = vld [vmem:[%s11197_s4 + $0x1b60] ss:$16 sps:$4 sm:$0xff]  }
 0x379   : > { %7184 = vmatprep.subr.bf16.mxu0 %v10649_v8  ;;  %7840 = vmatprep.subr.bf16.mxu1 %v10652_v9  ;;  %v10734_v8 = vld [vmem:[%s11197_s4 + $0x1b68] ss:$16 sps:$4 sm:$0xff]   ;;  %v10739_v9 = vld [vmem:[%s11197_s4 + $0x1b84] ss:$16 sps:$4 sm:$0xff]  }
 0x37c   : > { %7185 = vmatpush1.bf16.msra.mxu0 %v10647_v11  ;;  %7841 = vmatpush1.bf16.msra.mxu1 %v10650_v13  ;;  %v10742_v11 = vld [vmem:[%s11197_s4 + $0x1b8c] ss:$16 sps:$4 sm:$0xff]   ;;  %v10737_v13 = vld [vmem:[%s11197_s4 + $0x1b80] ss:$16 sps:$4 sm:$0xff]  }
 0x37d   : > { %7186 = vmatprep.subr.bf16.mxu0 %v10655_v15  ;;  %7842 = vmatprep.subr.bf16.mxu1 %v10658_v17  ;;  %v10740_v15 = vld [vmem:[%s11197_s4 + $0x1b88] ss:$16 sps:$4 sm:$0xff]   ;;  %v10745_v17 = vld [vmem:[%s11197_s4 + $0x1ba4] ss:$16 sps:$4 sm:$0xff]  }
 0x380   : > { %7187 = vmatpush1.bf16.msra.mxu0 %v10653_v2  ;;  %7843 = vmatpush1.bf16.msra.mxu1 %v10656_v53  ;;  %v10748_v2 = vld [vmem:[%s11197_s4 + $0x1bac] ss:$16 sps:$4 sm:$0xff]   ;;  %v10743_v53 = vld [vmem:[%s11197_s4 + $0x1ba0] ss:$16 sps:$4 sm:$0xff]  }
 0x381   : > { %7188 = vmatprep.subr.bf16.mxu0 %v10661_v18  ;;  %7844 = vmatprep.subr.bf16.mxu1 %v10664_v19  ;;  %v10746_v18 = vld [vmem:[%s11197_s4 + $0x1ba8] ss:$16 sps:$4 sm:$0xff]   ;;  %v10751_v19 = vld [vmem:[%s11197_s4 + $0x1bc4] ss:$16 sps:$4 sm:$0xff]  }
 0x384   : > { %7189 = vmatpush1.bf16.msra.mxu0 %v10659_v10  ;;  %7845 = vmatpush1.bf16.msra.mxu1 %v10662_v20  ;;  %v10754_v10 = vld [vmem:[%s11197_s4 + $0x1bcc] ss:$16 sps:$4 sm:$0xff]   ;;  %v1465_v20 = vcombine.high %v12112_v7, %v12112_v7  ;;  %v10755_v7 = vld [vmem:[%s11197_s4 + $0x1be0] ss:$16 sps:$4 sm:$0xff]  }
 0x385   : > { %7199 = vmatprep.subr.bf16.mxu0 %v10667_v21  ;;  %7855 = vmatprep.subr.bf16.mxu1 %v10670_v63  ;;  %v10749_v21 = vld [vmem:[%s11197_s4 + $0x1bc0] ss:$16 sps:$4 sm:$0xff]   ;;  %v10752_v63 = vld [vmem:[%s11197_s4 + $0x1bc8] ss:$16 sps:$4 sm:$0xff]  }
 0x387   : > { %7191 = vmatmul.mubr.bf16.vlgmr.msra.gmra.mrb[0].mxu0 %v12201_v24  ;;  %7847 = vmatmul.mubr.bf16.vlgmr.msra.gmra.mrb[0].mxu1 %v12201_v24 }
 0x388   : > { %7200 = vmatpush1.bf16.msra.mxu0 %v10665_v25  ;;  %7856 = vmatpush1.bf16.msra.mxu1 %v10668_v27  ;;  %v10757_v25 = vld [vmem:[%s11197_s4 + $0x1be4] ss:$16 sps:$4 sm:$0xff]   ;;  %v10760_v27 = vld [vmem:[%s11197_s4 + $0x1bec] ss:$16 sps:$4 sm:$0xff]  }
 0x389   : > { %7201 = vmatprep.subr.bf16.mxu0 %v10673_v28  ;;  %7857 = vmatprep.subr.bf16.mxu1 %v10676_v29  ;;  %v12270_v28 = vrot.slane %v1465_v20, %v11271_v50  ;;  %v10758_v29 = vld [vmem:[%s11197_s4 + $0x1be8] ss:$16 sps:$4 sm:$0xff]  }
 0x38a   : > { %7231 = vmatprep.mubr.bf16.mxu0 %v1512_v30  ;;  %7887 = vmatprep.mubr.bf16.mxu1 %v1512_v30  ;;  %v10763_v30 = vld [vmem:[%s11197_s4 + $0x1c04] ss:$16 sps:$4 sm:$0xff]   ;;  %v10836_v20 = vld [vmem:[%s11197_s4 + $0x1d88] ss:$16 sps:$4 sm:$0xff]  }
 0x38c   : > { %7202 = vmatpush1.bf16.msra.mxu0 %v10671_v12  ;;  %7858 = vmatpush1.bf16.msra.mxu1 %v10674_v31  ;;  %v10766_v12 = vld [vmem:[%s11197_s4 + $0x1c0c] ss:$16 sps:$4 sm:$0xff]   ;;  %v1481_v31 = vcombine.high %v12270_v28, %v12270_v28 }
 0x38d   : > { %7203 = vmatprep.subr.bf16.mxu0 %v10679_v16  ;;  %7859 = vmatprep.subr.bf16.mxu1 %v10682_v32  ;;  %v1510_v16 = vcombine.high %v12201_v24, %v12201_v24  ;;  %v10761_v32 = vld [vmem:[%s11197_s4 + $0x1c00] ss:$16 sps:$4 sm:$0xff]  }
 0x38e   : > { %v10767_v24 = vld [vmem:[%s11197_s4 + $0x1c20] ss:$16 sps:$4 sm:$0xff]  }
 0x390   : > { %7204 = vmatpush1.bf16.msra.mxu0 %v10677_v23  ;;  %7860 = vmatpush1.bf16.msra.mxu1 %v10680_v33  ;;  %v10764_v23 = vld [vmem:[%s11197_s4 + $0x1c08] ss:$16 sps:$4 sm:$0xff]   ;;  %v10769_v33 = vld [vmem:[%s11197_s4 + $0x1c24] ss:$16 sps:$4 sm:$0xff]  }
 0x391   : > { %7205 = vmatprep.subr.bf16.mxu0 %v10685_v34  ;;  %7861 = vmatprep.subr.bf16.mxu1 %v10688_v26  ;;  %v10772_v34 = vld [vmem:[%s11197_s4 + $0x1c2c] ss:$16 sps:$4 sm:$0xff]   ;;  %v12285_v26 = vrot.slane %v1481_v31, %v11271_v50  ;;  %v10853_v31 = vld [vmem:[%s11197_s4 + $0x1de4] ss:$16 sps:$4 sm:$0xff]  }
 0x394   : > { %7206 = vmatpush1.bf16.msra.mxu0 %v10683_v35  ;;  %7862 = vmatpush1.bf16.msra.mxu1 %v10686_v37  ;;  %v10770_v35 = vld [vmem:[%s11197_s4 + $0x1c28] ss:$16 sps:$4 sm:$0xff]   ;;  %v10775_v37 = vld [vmem:[%s11197_s4 + $0x1c44] ss:$16 sps:$4 sm:$0xff]  }
 0x395   : > { %7207 = vmatprep.subr.bf16.mxu0 %v10691_v38  ;;  %7863 = vmatprep.subr.bf16.mxu1 %v10694_v40  ;;  %v10778_v38 = vld [vmem:[%s11197_s4 + $0x1c4c] ss:$16 sps:$4 sm:$0xff]   ;;  %v10773_v40 = vld [vmem:[%s11197_s4 + $0x1c40] ss:$16 sps:$4 sm:$0xff]  }
 0x398   : > { %7208 = vmatpush1.bf16.msra.mxu0 %v10689_v41  ;;  %7864 = vmatpush1.bf16.msra.mxu1 %v10692_v22  ;;  %v10776_v41 = vld [vmem:[%s11197_s4 + $0x1c48] ss:$16 sps:$4 sm:$0xff]   ;;  %v10781_v22 = vld [vmem:[%s11197_s4 + $0x1c64] ss:$16 sps:$4 sm:$0xff]  }
 0x399   : > { %7209 = vmatprep.subr.bf16.mxu0 %v10697_v42  ;;  %7865 = vmatprep.subr.bf16.mxu1 %v10700_v43  ;;  %v10784_v42 = vld [vmem:[%s11197_s4 + $0x1c6c] ss:$16 sps:$4 sm:$0xff]   ;;  %v10779_v43 = vld [vmem:[%s11197_s4 + $0x1c60] ss:$16 sps:$4 sm:$0xff]  }
 0x39c   : > { %7210 = vmatpush1.bf16.msra.mxu0 %v10695_v45  ;;  %7866 = vmatpush1.bf16.msra.mxu1 %v10698_v46  ;;  %v10782_v45 = vld [vmem:[%s11197_s4 + $0x1c68] ss:$16 sps:$4 sm:$0xff]   ;;  %v10787_v46 = vld [vmem:[%s11197_s4 + $0x1c84] ss:$16 sps:$4 sm:$0xff]  }
 0x39d   : > { %7211 = vmatprep.subr.bf16.mxu0 %v10703_v47  ;;  %7867 = vmatprep.subr.bf16.mxu1 %v10706_v48  ;;  %v10790_v47 = vld [vmem:[%s11197_s4 + $0x1c8c] ss:$16 sps:$4 sm:$0xff]   ;;  %v10785_v48 = vld [vmem:[%s11197_s4 + $0x1c80] ss:$16 sps:$4 sm:$0xff]  }
 0x3a0   : > { %7212 = vmatpush1.bf16.msra.mxu0 %v10701_v51  ;;  %7868 = vmatpush1.bf16.msra.mxu1 %v10704_v54  ;;  %v10788_v51 = vld [vmem:[%s11197_s4 + $0x1c88] ss:$16 sps:$4 sm:$0xff]   ;;  %v10793_v54 = vld [vmem:[%s11197_s4 + $0x1ca4] ss:$16 sps:$4 sm:$0xff]  }
 0x3a1   : > { %7213 = vmatprep.subr.bf16.mxu0 %v10709_v55  ;;  %7869 = vmatprep.subr.bf16.mxu1 %v10712_v56  ;;  %v10796_v55 = vld [vmem:[%s11197_s4 + $0x1cac] ss:$16 sps:$4 sm:$0xff]   ;;  %v10791_v56 = vld [vmem:[%s11197_s4 + $0x1ca0] ss:$16 sps:$4 sm:$0xff]  }
 0x3a4   : > { %7214 = vmatpush1.bf16.msra.mxu0 %v10707_v39  ;;  %7870 = vmatpush1.bf16.msra.mxu1 %v10710_v57  ;;  %v10794_v39 = vld [vmem:[%s11197_s4 + $0x1ca8] ss:$16 sps:$4 sm:$0xff]   ;;  %v10799_v57 = vld [vmem:[%s11197_s4 + $0x1cc4] ss:$16 sps:$4 sm:$0xff]  }
 0x3a5   : > { %7215 = vmatprep.subr.bf16.mxu0 %v10715_v58  ;;  %7871 = vmatprep.subr.bf16.mxu1 %v10718_v59  ;;  %v10802_v58 = vld [vmem:[%s11197_s4 + $0x1ccc] ss:$16 sps:$4 sm:$0xff]   ;;  %v10797_v59 = vld [vmem:[%s11197_s4 + $0x1cc0] ss:$16 sps:$4 sm:$0xff]  }
 0x3a8   : > { %7216 = vmatpush1.bf16.msra.mxu0 %v10713_v49  ;;  %7872 = vmatpush1.bf16.msra.mxu1 %v10716_v60  ;;  %v10800_v49 = vld [vmem:[%s11197_s4 + $0x1cc8] ss:$16 sps:$4 sm:$0xff]   ;;  %v10805_v60 = vld [vmem:[%s11197_s4 + $0x1ce4] ss:$16 sps:$4 sm:$0xff]  }
 0x3a9   : > { %7217 = vmatprep.subr.bf16.mxu0 %v10721_v61  ;;  %7873 = vmatprep.subr.bf16.mxu1 %v10724_v14  ;;  %v10808_v61 = vld [vmem:[%s11197_s4 + $0x1cec] ss:$16 sps:$4 sm:$0xff]   ;;  %v10803_v14 = vld [vmem:[%s11197_s4 + $0x1ce0] ss:$16 sps:$4 sm:$0xff]  }
 0x3ac   : > { %7218 = vmatpush1.bf16.msra.mxu0 %v10719_v0  ;;  %7874 = vmatpush1.bf16.msra.mxu1 %v10722_v1  ;;  %v10806_v0 = vld [vmem:[%s11197_s4 + $0x1ce8] ss:$16 sps:$4 sm:$0xff]   ;;  %v10811_v1 = vld [vmem:[%s11197_s4 + $0x1d04] ss:$16 sps:$4 sm:$0xff]  }
 0x3ad   : > { %7219 = vmatprep.subr.bf16.mxu0 %v10727_v36  ;;  %7875 = vmatprep.subr.bf16.mxu1 %v10730_v3  ;;  %v10814_v36 = vld [vmem:[%s11197_s4 + $0x1d0c] ss:$16 sps:$4 sm:$0xff]   ;;  %v10809_v3 = vld [vmem:[%s11197_s4 + $0x1d00] ss:$16 sps:$4 sm:$0xff]  }
 0x3b0   : > { %7220 = vmatpush1.bf16.msra.mxu0 %v10725_v4  ;;  %7876 = vmatpush1.bf16.msra.mxu1 %v10728_v52  ;;  %v10812_v4 = vld [vmem:[%s11197_s4 + $0x1d08] ss:$16 sps:$4 sm:$0xff]   ;;  %v10817_v52 = vld [vmem:[%s11197_s4 + $0x1d24] ss:$16 sps:$4 sm:$0xff]  }
 0x3b1   : > { %7221 = vmatprep.subr.bf16.mxu0 %v10733_v5  ;;  %7877 = vmatprep.subr.bf16.mxu1 %v10736_v6  ;;  %v10820_v5 = vld [vmem:[%s11197_s4 + $0x1d2c] ss:$16 sps:$4 sm:$0xff]   ;;  %v10815_v6 = vld [vmem:[%s11197_s4 + $0x1d20] ss:$16 sps:$4 sm:$0xff]  }
 0x3b4   : > { %7222 = vmatpush1.bf16.msra.mxu0 %v10731_v62  ;;  %7878 = vmatpush1.bf16.msra.mxu1 %v10734_v8  ;;  %v10818_v62 = vld [vmem:[%s11197_s4 + $0x1d28] ss:$16 sps:$4 sm:$0xff]   ;;  %v10823_v8 = vld [vmem:[%s11197_s4 + $0x1d44] ss:$16 sps:$4 sm:$0xff]  }
 0x3b5   : > { %7223 = vmatprep.subr.bf16.mxu0 %v10739_v9  ;;  %7879 = vmatprep.subr.bf16.mxu1 %v10742_v11  ;;  %v10826_v9 = vld [vmem:[%s11197_s4 + $0x1d4c] ss:$16 sps:$4 sm:$0xff]   ;;  %v10821_v11 = vld [vmem:[%s11197_s4 + $0x1d40] ss:$16 sps:$4 sm:$0xff]  }
 0x3b8   : > { %7224 = vmatpush1.bf16.msra.mxu0 %v10737_v13  ;;  %7880 = vmatpush1.bf16.msra.mxu1 %v10740_v15  ;;  %v10824_v13 = vld [vmem:[%s11197_s4 + $0x1d48] ss:$16 sps:$4 sm:$0xff]   ;;  %v10829_v15 = vld [vmem:[%s11197_s4 + $0x1d64] ss:$16 sps:$4 sm:$0xff]  }
 0x3b9   : > { %7225 = vmatprep.subr.bf16.mxu0 %v10745_v17  ;;  %7881 = vmatprep.subr.bf16.mxu1 %v10748_v2  ;;  %v10832_v17 = vld [vmem:[%s11197_s4 + $0x1d6c] ss:$16 sps:$4 sm:$0xff]   ;;  %v10827_v2 = vld [vmem:[%s11197_s4 + $0x1d60] ss:$16 sps:$4 sm:$0xff]  }
 0x3bc   : > { %7226 = vmatpush1.bf16.msra.mxu0 %v10743_v53  ;;  %7882 = vmatpush1.bf16.msra.mxu1 %v10746_v18  ;;  %v10830_v53 = vld [vmem:[%s11197_s4 + $0x1d68] ss:$16 sps:$4 sm:$0xff]   ;;  %v10835_v18 = vld [vmem:[%s11197_s4 + $0x1d84] ss:$16 sps:$4 sm:$0xff]  }
 0x3bd   : > { %7227 = vmatprep.subr.bf16.mxu0 %v10751_v19  ;;  %7883 = vmatprep.subr.bf16.mxu1 %v10754_v10  ;;  %v10838_v19 = vld [vmem:[%s11197_s4 + $0x1d8c] ss:$16 sps:$4 sm:$0xff]   ;;  %v10833_v10 = vld [vmem:[%s11197_s4 + $0x1d80] ss:$16 sps:$4 sm:$0xff]  }
 0x3c0   : > { %7228 = vmatpush1.bf16.msra.mxu0 %v10749_v21  ;;  %7884 = vmatpush1.bf16.msra.mxu1 %v10752_v63  ;;  %v10841_v21 = vld [vmem:[%s11197_s4 + $0x1da4] ss:$16 sps:$4 sm:$0xff]   ;;  %v10844_v63 = vld [vmem:[%s11197_s4 + $0x1dac] ss:$16 sps:$4 sm:$0xff]  }
 0x3c1   : > { %7229 = vmatprep.subr.bf16.mxu0 %v10757_v25  ;;  %7885 = vmatprep.subr.bf16.mxu1 %v10760_v27  ;;  %v10839_v25 = vld [vmem:[%s11197_s4 + $0x1da0] ss:$16 sps:$4 sm:$0xff]   ;;  %v10842_v27 = vld [vmem:[%s11197_s4 + $0x1da8] ss:$16 sps:$4 sm:$0xff]  }
 0x3c4   : > { %7230 = vmatpush1.bf16.msra.mxu0 %v10755_v7  ;;  %7886 = vmatpush1.bf16.msra.mxu1 %v10758_v29  ;;  %v10847_v7 = vld [vmem:[%s11197_s4 + $0x1dc4] ss:$16 sps:$4 sm:$0xff]   ;;  %v10850_v29 = vld [vmem:[%s11197_s4 + $0x1dcc] ss:$16 sps:$4 sm:$0xff]  }
 0x3c5   : > { %7240 = vmatprep.subr.bf16.mxu0 %v10763_v30  ;;  %7896 = vmatprep.subr.bf16.mxu1 %v10766_v12  ;;  %v10845_v30 = vld [vmem:[%s11197_s4 + $0x1dc0] ss:$16 sps:$4 sm:$0xff]   ;;  %v10848_v12 = vld [vmem:[%s11197_s4 + $0x1dc8] ss:$16 sps:$4 sm:$0xff]  }
 0x3c7   : > { %7232 = vmatmul.mubr.bf16.vlgmr.msra.gmra.mrb[0].mxu0 %v1510_v16  ;;  %7888 = vmatmul.mubr.bf16.vlgmr.msra.gmra.mrb[0].mxu1 %v1510_v16  ;;  %v10856_v16 = vld [vmem:[%s11197_s4 + $0x1dec] ss:$16 sps:$4 sm:$0xff]  }
 0x3c8   : > { %7241 = vmatpush1.bf16.msra.mxu0 %v10761_v32  ;;  %7897 = vmatpush1.bf16.msra.mxu1 %v10764_v23  ;;  %v10851_v32 = vld [vmem:[%s11197_s4 + $0x1de0] ss:$16 sps:$4 sm:$0xff]   ;;  %v10854_v23 = vld [vmem:[%s11197_s4 + $0x1de8] ss:$16 sps:$4 sm:$0xff]  }
 0x3c9   : > { %7242 = vmatprep.subr.bf16.mxu0 %v10769_v33  ;;  %7898 = vmatprep.subr.bf16.mxu1 %v10772_v34  ;;  %v10860_v33 = vld [vmem:[%s11197_s4 + $0x1e04] ss:$16 sps:$4 sm:$0xff]   ;;  %v10863_v34 = vld [vmem:[%s11197_s4 + $0x1e0c] ss:$16 sps:$4 sm:$0xff]  }
 0x3ca   : > { %7272 = vmatprep.mubr.bf16.mxu0 %v12285_v26  ;;  %7928 = vmatprep.mubr.bf16.mxu1 %v12285_v26 }
 0x3cc   : > { %7243 = vmatpush1.bf16.msra.mxu0 %v10767_v24  ;;  %7899 = vmatpush1.bf16.msra.mxu1 %v10770_v35  ;;  %v12351_v24 = vrot.slane %v12270_v28, %v11271_v50  ;;  %v10858_v35 = vld [vmem:[%s11197_s4 + $0x1e00] ss:$16 sps:$4 sm:$0xff]   ;;  %v10867_v28 = vld [vmem:[%s11197_s4 + $0x1e28] ss:$16 sps:$4 sm:$0xff]  }
 0x3cd   : > { %7244 = vmatprep.subr.bf16.mxu0 %v10775_v37  ;;  %7900 = vmatprep.subr.bf16.mxu1 %v10778_v38  ;;  %v10861_v37 = vld [vmem:[%s11197_s4 + $0x1e08] ss:$16 sps:$4 sm:$0xff]   ;;  %v10866_v38 = vld [vmem:[%s11197_s4 + $0x1e24] ss:$16 sps:$4 sm:$0xff]   ;;  %v10864_v50 = vld [vmem:[%s11197_s4 + $0x1e20] ss:$16 sps:$4 sm:$0xff]  }
 0x3d0   : > { %7245 = vmatpush1.bf16.msra.mxu0 %v10773_v40  ;;  %7901 = vmatpush1.bf16.msra.mxu1 %v10776_v41  ;;  %v10869_v40 = vld [vmem:[%s11197_s4 + $0x1e2c] ss:$16 sps:$4 sm:$0xff]   ;;  %v1513_v41 = vcombine.high %v12285_v26, %v12285_v26  ;;  %v10870_v26 = vld [vmem:[%s11197_s4 + $0x1e40] ss:$16 sps:$4 sm:$0xff]  }
 0x3d1   : > { %7246 = vmatprep.subr.bf16.mxu0 %v10781_v22  ;;  %7902 = vmatprep.subr.bf16.mxu1 %v10784_v42  ;;  %v10872_v22 = vld [vmem:[%s11197_s4 + $0x1e44] ss:$16 sps:$4 sm:$0xff]   ;;  %v10875_v42 = vld [vmem:[%s11197_s4 + $0x1e4c] ss:$16 sps:$4 sm:$0xff]  }
 0x3d4   : > { %7247 = vmatpush1.bf16.msra.mxu0 %v10779_v43  ;;  %7903 = vmatpush1.bf16.msra.mxu1 %v10782_v45  ;;  %v10873_v43 = vld [vmem:[%s11197_s4 + $0x1e48] ss:$16 sps:$4 sm:$0xff]   ;;  %v10878_v45 = vld [vmem:[%s11197_s4 + $0x1e64] ss:$16 sps:$4 sm:$0xff]  }
 0x3d5   : > { %7248 = vmatprep.subr.bf16.mxu0 %v10787_v46  ;;  %7904 = vmatprep.subr.bf16.mxu1 %v10790_v47  ;;  %v10881_v46 = vld [vmem:[%s11197_s4 + $0x1e6c] ss:$16 sps:$4 sm:$0xff]   ;;  %v10876_v47 = vld [vmem:[%s11197_s4 + $0x1e60] ss:$16 sps:$4 sm:$0xff]  }
 0x3d8   : > { %7249 = vmatpush1.bf16.msra.mxu0 %v10785_v48  ;;  %7905 = vmatpush1.bf16.msra.mxu1 %v10788_v51  ;;  %v10879_v48 = vld [vmem:[%s11197_s4 + $0x1e68] ss:$16 sps:$4 sm:$0xff]   ;;  %v10884_v51 = vld [vmem:[%s11197_s4 + $0x1e84] ss:$16 sps:$4 sm:$0xff]  }
 0x3d9   : > { %7250 = vmatprep.subr.bf16.mxu0 %v10793_v54  ;;  %7906 = vmatprep.subr.bf16.mxu1 %v10796_v55  ;;  %v10887_v54 = vld [vmem:[%s11197_s4 + $0x1e8c] ss:$16 sps:$4 sm:$0xff]   ;;  %v10882_v55 = vld [vmem:[%s11197_s4 + $0x1e80] ss:$16 sps:$4 sm:$0xff]  }
 0x3dc   : > { %7251 = vmatpush1.bf16.msra.mxu0 %v10791_v56  ;;  %7907 = vmatpush1.bf16.msra.mxu1 %v10794_v39  ;;  %v10885_v56 = vld [vmem:[%s11197_s4 + $0x1e88] ss:$16 sps:$4 sm:$0xff]   ;;  %v10890_v39 = vld [vmem:[%s11197_s4 + $0x1ea4] ss:$16 sps:$4 sm:$0xff]  }
 0x3dd   : > { %7252 = vmatprep.subr.bf16.mxu0 %v10799_v57  ;;  %7908 = vmatprep.subr.bf16.mxu1 %v10802_v58  ;;  %v10893_v57 = vld [vmem:[%s11197_s4 + $0x1eac] ss:$16 sps:$4 sm:$0xff]   ;;  %v10888_v58 = vld [vmem:[%s11197_s4 + $0x1ea0] ss:$16 sps:$4 sm:$0xff]  }
 0x3e0   : > { %7253 = vmatpush1.bf16.msra.mxu0 %v10797_v59  ;;  %7909 = vmatpush1.bf16.msra.mxu1 %v10800_v49  ;;  %v10891_v59 = vld [vmem:[%s11197_s4 + $0x1ea8] ss:$16 sps:$4 sm:$0xff]   ;;  %v10896_v49 = vld [vmem:[%s11197_s4 + $0x1ec4] ss:$16 sps:$4 sm:$0xff]  }
 0x3e1   : > { %7254 = vmatprep.subr.bf16.mxu0 %v10805_v60  ;;  %7910 = vmatprep.subr.bf16.mxu1 %v10808_v61  ;;  %v10899_v60 = vld [vmem:[%s11197_s4 + $0x1ecc] ss:$16 sps:$4 sm:$0xff]   ;;  %v10894_v61 = vld [vmem:[%s11197_s4 + $0x1ec0] ss:$16 sps:$4 sm:$0xff]  }
 0x3e4   : > { %7255 = vmatpush1.bf16.msra.mxu0 %v10803_v14  ;;  %7911 = vmatpush1.bf16.msra.mxu1 %v10806_v0  ;;  %v10897_v14 = vld [vmem:[%s11197_s4 + $0x1ec8] ss:$16 sps:$4 sm:$0xff]   ;;  %v10902_v0 = vld [vmem:[%s11197_s4 + $0x1ee4] ss:$16 sps:$4 sm:$0xff]  }
 0x3e5   : > { %7256 = vmatprep.subr.bf16.mxu0 %v10811_v1  ;;  %7912 = vmatprep.subr.bf16.mxu1 %v10814_v36  ;;  %v10905_v1 = vld [vmem:[%s11197_s4 + $0x1eec] ss:$16 sps:$4 sm:$0xff]   ;;  %v10900_v36 = vld [vmem:[%s11197_s4 + $0x1ee0] ss:$16 sps:$4 sm:$0xff]  }
 0x3e8   : > { %7257 = vmatpush1.bf16.msra.mxu0 %v10809_v3  ;;  %7913 = vmatpush1.bf16.msra.mxu1 %v10812_v4  ;;  %v10903_v3 = vld [vmem:[%s11197_s4 + $0x1ee8] ss:$16 sps:$4 sm:$0xff]   ;;  %v10908_v4 = vld [vmem:[%s11197_s4 + $0x1f04] ss:$16 sps:$4 sm:$0xff]  }
 0x3e9   : > { %7258 = vmatprep.subr.bf16.mxu0 %v10817_v52  ;;  %7914 = vmatprep.subr.bf16.mxu1 %v10820_v5  ;;  %v10911_v52 = vld [vmem:[%s11197_s4 + $0x1f0c] ss:$16 sps:$4 sm:$0xff]   ;;  %v10906_v5 = vld [vmem:[%s11197_s4 + $0x1f00] ss:$16 sps:$4 sm:$0xff]  }
 0x3ec   : > { %7259 = vmatpush1.bf16.msra.mxu0 %v10815_v6  ;;  %7915 = vmatpush1.bf16.msra.mxu1 %v10818_v62  ;;  %v10909_v6 = vld [vmem:[%s11197_s4 + $0x1f08] ss:$16 sps:$4 sm:$0xff]   ;;  %v10914_v62 = vld [vmem:[%s11197_s4 + $0x1f24] ss:$16 sps:$4 sm:$0xff]  }
 0x3ed   : > { %7260 = vmatprep.subr.bf16.mxu0 %v10823_v8  ;;  %7916 = vmatprep.subr.bf16.mxu1 %v10826_v9  ;;  %v10917_v8 = vld [vmem:[%s11197_s4 + $0x1f2c] ss:$16 sps:$4 sm:$0xff]   ;;  %v10912_v9 = vld [vmem:[%s11197_s4 + $0x1f20] ss:$16 sps:$4 sm:$0xff]  }
 0x3f0   : > { %7261 = vmatpush1.bf16.msra.mxu0 %v10821_v11  ;;  %7917 = vmatpush1.bf16.msra.mxu1 %v10824_v13  ;;  %v10915_v11 = vld [vmem:[%s11197_s4 + $0x1f28] ss:$16 sps:$4 sm:$0xff]   ;;  %v10920_v13 = vld [vmem:[%s11197_s4 + $0x1f44] ss:$16 sps:$4 sm:$0xff]  }
 0x3f1   : > { %7262 = vmatprep.subr.bf16.mxu0 %v10829_v15  ;;  %7918 = vmatprep.subr.bf16.mxu1 %v10832_v17  ;;  %v10923_v15 = vld [vmem:[%s11197_s4 + $0x1f4c] ss:$16 sps:$4 sm:$0xff]   ;;  %v10918_v17 = vld [vmem:[%s11197_s4 + $0x1f40] ss:$16 sps:$4 sm:$0xff]  }
 0x3f4   : > { %7263 = vmatpush1.bf16.msra.mxu0 %v10827_v2  ;;  %7919 = vmatpush1.bf16.msra.mxu1 %v10830_v53  ;;  %v10921_v2 = vld [vmem:[%s11197_s4 + $0x1f48] ss:$16 sps:$4 sm:$0xff]   ;;  %v10926_v53 = vld [vmem:[%s11197_s4 + $0x1f64] ss:$16 sps:$4 sm:$0xff]  }
 0x3f5   : > { %7264 = vmatprep.subr.bf16.mxu0 %v10835_v18  ;;  %7920 = vmatprep.subr.bf16.mxu1 %v10838_v19  ;;  %v10929_v18 = vld [vmem:[%s11197_s4 + $0x1f6c] ss:$16 sps:$4 sm:$0xff]   ;;  %v10924_v19 = vld [vmem:[%s11197_s4 + $0x1f60] ss:$16 sps:$4 sm:$0xff]  }
 0x3f8   : > { %7265 = vmatpush1.bf16.msra.mxu0 %v10833_v10  ;;  %7921 = vmatpush1.bf16.msra.mxu1 %v10836_v20  ;;  %v10927_v10 = vld [vmem:[%s11197_s4 + $0x1f68] ss:$16 sps:$4 sm:$0xff]   ;;  %v10932_v20 = vld [vmem:[%s11197_s4 + $0x1f84] ss:$16 sps:$4 sm:$0xff]  }
 0x3f9   : > { %7266 = vmatprep.subr.bf16.mxu0 %v10841_v21  ;;  %7922 = vmatprep.subr.bf16.mxu1 %v10844_v63  ;;  %v10935_v21 = vld [vmem:[%s11197_s4 + $0x1f8c] ss:$16 sps:$4 sm:$0xff]   ;;  %v10930_v63 = vld [vmem:[%s11197_s4 + $0x1f80] ss:$16 sps:$4 sm:$0xff]  }
 0x3fc   : > { %7267 = vmatpush1.bf16.msra.mxu0 %v10839_v25  ;;  %7923 = vmatpush1.bf16.msra.mxu1 %v10842_v27  ;;  %v10933_v25 = vld [vmem:[%s11197_s4 + $0x1f88] ss:$16 sps:$4 sm:$0xff]   ;;  %v10938_v27 = vld [vmem:[%s11197_s4 + $0x1fa4] ss:$16 sps:$4 sm:$0xff]  }
 0x3fd   : > { %7268 = vmatprep.subr.bf16.mxu0 %v10847_v7  ;;  %7924 = vmatprep.subr.bf16.mxu1 %v10850_v29  ;;  %v10941_v7 = vld [vmem:[%s11197_s4 + $0x1fac] ss:$16 sps:$4 sm:$0xff]   ;;  %v10936_v29 = vld [vmem:[%s11197_s4 + $0x1fa0] ss:$16 sps:$4 sm:$0xff]  }
 0x400   : > { %7269 = vmatpush1.bf16.msra.mxu0 %v10845_v30  ;;  %7925 = vmatpush1.bf16.msra.mxu1 %v10848_v12  ;;  %v10939_v30 = vld [vmem:[%s11197_s4 + $0x1fa8] ss:$16 sps:$4 sm:$0xff]   ;;  %v10944_v12 = vld [vmem:[%s11197_s4 + $0x1fc4] ss:$16 sps:$4 sm:$0xff]  }
 0x401   : > { %7270 = vmatprep.subr.bf16.mxu0 %v10853_v31  ;;  %7926 = vmatprep.subr.bf16.mxu1 %v10856_v16  ;;  %v10947_v31 = vld [vmem:[%s11197_s4 + $0x1fcc] ss:$16 sps:$4 sm:$0xff]   ;;  %v10942_v16 = vld [vmem:[%s11197_s4 + $0x1fc0] ss:$16 sps:$4 sm:$0xff]  }
 0x404   : > { %7271 = vmatpush1.bf16.msra.mxu0 %v10851_v32  ;;  %7927 = vmatpush1.bf16.msra.mxu1 %v10854_v23  ;;  %v10945_v32 = vld [vmem:[%s11197_s4 + $0x1fc8] ss:$16 sps:$4 sm:$0xff]   ;;  %v10950_v23 = vld [vmem:[%s11197_s4 + $0x1fe4] ss:$16 sps:$4 sm:$0xff]  }
 0x405   : > { %7281 = vmatprep.subr.bf16.mxu0 %v10860_v33  ;;  %7937 = vmatprep.subr.bf16.mxu1 %v10863_v34  ;;  %v10953_v33 = vld [vmem:[%s11197_s4 + $0x1fec] ss:$16 sps:$4 sm:$0xff]   ;;  %v10948_v34 = vld [vmem:[%s11197_s4 + $0x1fe0] ss:$16 sps:$4 sm:$0xff]  }
 0x407   : > { %7273 = vmatmul.mubr.bf16.vlgmr.msra.gmra.mrb[0].mxu0 %v12351_v24  ;;  %7929 = vmatmul.mubr.bf16.vlgmr.msra.gmra.mrb[0].mxu1 %v12351_v24 }
 0x408   : > { %7282 = vmatpush1.bf16.msra.mxu0 %v10858_v35  ;;  %7938 = vmatpush1.bf16.msra.mxu1 %v10861_v37  ;;  %v10951_v35 = vld [vmem:[%s11197_s4 + $0x1fe8] ss:$16 sps:$4 sm:$0xff]   ;;  %v1511_v37 = vcombine.high %v12351_v24, %v12351_v24 }
 0x409   : > { %7283 = vmatprep.subr.bf16.mxu0 %v10866_v38  ;;  %7939 = vmatprep.subr.bf16.mxu1 %v10869_v40  ;;  %v11060_v38 = vmov 1983009808  }
 0x40a   : > { %7313 = vmatprep.mubr.bf16.mxu0 %v1513_v41  ;;  %7969 = vmatprep.mubr.bf16.mxu1 %v1513_v41  ;;  %v7985_v40 = vunpack.c.l.s4 %v11060_v38 }
 0x40c   : > { %7284 = vmatpush1.bf16.msra.mxu0 %v10864_v50  ;;  %7940 = vmatpush1.bf16.msra.mxu1 %v10867_v28  ;;  %v7986_v41 = vunpack.c.0.s8 %v7985_v40 }
 0x40d   : > { %7285 = vmatprep.subr.bf16.mxu0 %v10872_v22  ;;  %7941 = vmatprep.subr.bf16.mxu1 %v10875_v42 }
 0x40e   : > { %v7989_v22 = vsub.s32 %v7986_v41, %v11263_v44 }
 0x410   : > { %7286 = vmatpush1.bf16.msra.mxu0 %v10870_v26  ;;  %7942 = vmatpush1.bf16.msra.mxu1 %v10873_v43 }
 0x411   : > { %7287 = vmatprep.subr.bf16.mxu0 %v10878_v45  ;;  %7943 = vmatprep.subr.bf16.mxu1 %v10881_v46 }
 0x414   : > { %7288 = vmatpush1.bf16.msra.mxu0 %v10876_v47  ;;  %7944 = vmatpush1.bf16.msra.mxu1 %v10879_v48 }
 0x415   : > { %7289 = vmatprep.subr.bf16.mxu0 %v10884_v51  ;;  %7945 = vmatprep.subr.bf16.mxu1 %v10887_v54 }
 0x418   : > { %7290 = vmatpush1.bf16.msra.mxu0 %v10882_v55  ;;  %7946 = vmatpush1.bf16.msra.mxu1 %v10885_v56  ;;  %v285_v55 = vld [vmem:[%s11220_s16] sm:$0xff] }
 0x419   : > { %7291 = vmatprep.subr.bf16.mxu0 %v10890_v39  ;;  %7947 = vmatprep.subr.bf16.mxu1 %v10893_v57  ;;  %v8007_v57 = vld [vmem:[%s268_s26] sm:$0xf] (!%p9213_p6) }
 0x41c   : > { %7292 = vmatpush1.bf16.msra.mxu0 %v10888_v58  ;;  %7948 = vmatpush1.bf16.msra.mxu1 %v10891_v59  ;;  %v8011_v58 = vsub.s32 (!%p9213_p6), 0, %v11263_v44  ;;  %v8015_v59 = vsub.s32 (!%p9213_p6), 1, %v11263_v44 }
 0x41d   : > { %7293 = vmatprep.subr.bf16.mxu0 %v10896_v49  ;;  %7949 = vmatprep.subr.bf16.mxu1 %v10899_v60  ;;  %v8019_v49 = vsub.s32 (!%p9213_p6), 2, %v11263_v44  ;;  %v8023_v60 = vsub.s32 (!%p9213_p6), 3, %v11263_v44 }
 0x420   : > { %7294 = vmatpush1.bf16.msra.mxu0 %v10894_v61  ;;  %7950 = vmatpush1.bf16.msra.mxu1 %v10897_v14  ;;  %v8012_v61 = vrot.slane (!%p9213_p6), %v8007_v57, %v8011_v58  ;;  %v8016_v14 = vrot.slane (!%p9213_p6), %v8007_v57, %v8015_v59 }
 0x421   : > { %7295 = vmatprep.subr.bf16.mxu0 %v10902_v0  ;;  %7951 = vmatprep.subr.bf16.mxu1 %v10905_v1  ;;  %v8020_v0 = vrot.slane (!%p9213_p6), %v8007_v57, %v8019_v49  ;;  %v8024_v1 = vrot.slane (!%p9213_p6), %v8007_v57, %v8023_v60 }
 0x424   : > { %7296 = vmatpush1.bf16.msra.mxu0 %v10900_v36  ;;  %7952 = vmatpush1.bf16.msra.mxu1 %v10903_v3  ;;  %v8025_v36 = vcombine.low (!%p9213_p6), %v8012_v61, %v8016_v14  ;;  %v8026_v3 = vcombine.low (!%p9213_p6), %v8020_v0, %v8024_v1 }
 0x425   : > { %7297 = vmatprep.subr.bf16.mxu0 %v10908_v4  ;;  %7953 = vmatprep.subr.bf16.mxu1 %v10911_v52 }
 0x426   : > { %v8033_v4 = vrot.slane (!%p9213_p6), %v8025_v36, %v7989_v22  ;;  %v8040_v52 = vrot.slane (!%p9213_p6), %v8026_v3, %v7989_v22 }
 0x428   : > { %7298 = vmatpush1.bf16.msra.mxu0 %v10906_v5  ;;  %7954 = vmatpush1.bf16.msra.mxu1 %v10909_v6  ;;  %v8041_v6 = vcombine.low (!%p9213_p6), %v8033_v4, %v8040_v52 }
 0x429   : > { %7299 = vmatprep.subr.bf16.mxu0 %v10914_v62  ;;  %7955 = vmatprep.subr.bf16.mxu1 %v10917_v8 }
 0x42c   : > { %7300 = vmatpush1.bf16.msra.mxu0 %v10912_v9  ;;  %7956 = vmatpush1.bf16.msra.mxu1 %v10915_v11 }
 0x42d   : > { %7301 = vmatprep.subr.bf16.mxu0 %v10920_v13  ;;  %7957 = vmatprep.subr.bf16.mxu1 %v10923_v15 }
 0x430   : > { %7302 = vmatpush1.bf16.msra.mxu0 %v10918_v17  ;;  %7958 = vmatpush1.bf16.msra.mxu1 %v10921_v2 }
 0x431   : > { %7303 = vmatprep.subr.bf16.mxu0 %v10926_v53  ;;  %7959 = vmatprep.subr.bf16.mxu1 %v10929_v18 }
 0x434   : > { %7304 = vmatpush1.bf16.msra.mxu0 %v10924_v19  ;;  %7960 = vmatpush1.bf16.msra.mxu1 %v10927_v10 }
 0x435   : > { %7305 = vmatprep.subr.bf16.mxu0 %v10932_v20  ;;  %7961 = vmatprep.subr.bf16.mxu1 %v10935_v21 }
 0x438   : > { %7306 = vmatpush1.bf16.msra.mxu0 %v10930_v63  ;;  %7962 = vmatpush1.bf16.msra.mxu1 %v10933_v25 }
 0x439   : > { %7307 = vmatprep.subr.bf16.mxu0 %v10938_v27  ;;  %7963 = vmatprep.subr.bf16.mxu1 %v10941_v7 }
 0x43c   : > { %7308 = vmatpush1.bf16.msra.mxu0 %v10936_v29  ;;  %7964 = vmatpush1.bf16.msra.mxu1 %v10939_v30 }
 0x43d   : > { %7309 = vmatprep.subr.bf16.mxu0 %v10944_v12  ;;  %7965 = vmatprep.subr.bf16.mxu1 %v10947_v31 }
 0x440   : > { %7310 = vmatpush1.bf16.msra.mxu0 %v10942_v16  ;;  %7966 = vmatpush1.bf16.msra.mxu1 %v10945_v32 }
 0x441   : > { %7311 = vmatprep.subr.bf16.mxu0 %v10950_v23  ;;  %7967 = vmatprep.subr.bf16.mxu1 %v10953_v33 }
 0x444   : > { %7312 = vmatpush1.bf16.msra.mxu0 %v10948_v34  ;;  %7968 = vmatpush1.bf16.msra.mxu1 %v10951_v35 }
 0x447   : > { %7314 = vmatmul.mubr.bf16.vlgmr.msra.gmra.mrb[0].mxu0 %v1511_v37  ;;  %7970 = vmatmul.mubr.bf16.vlgmr.msra.gmra.mrb[0].mxu1 %v1511_v37 }
 0x51a   : > { %v7315_v50 = vpop.f32.mrb[0].mxu0  ;;  %v7971_v28 = vpop.f32.mrb[0].mxu1 }
 0x51b   : > { %v7317_v42 = vpop.f32.mrb[1].mxu0  ;;  %v7973_v26 = vpop.f32.mrb[1].mxu1 }
 0x51c   : > { %v7982_v43 = vcombine.low %v7315_v50, %v7317_v42  ;;  %v7983_v45 = vcombine.low %v7971_v28, %v7973_v26  ;;  %v7319_v46 = vpop.f32.mrb[2].mxu0  ;;  %v7975_v47 = vpop.f32.mrb[2].mxu1 }
 0x51d   : > { %v7320_v24 = vpop.f32.mrb[3].mxu0  ;;  %v7976_v48 = vpop.f32.mrb[3].mxu1 }
 0x51e   : > { %v7990_v51 = vrot.slane %v7982_v43, %v7989_v22  ;;  %v7997_v54 = vrot.slane %v7983_v45, %v7989_v22  ;;  %8005 = sbr.rel (%p9213_p6) target bundleno = 1330 (0x532), region = 44 }
 0x520   : > { %v7998_v56 = vcombine.low %v7990_v51, %v7997_v54 }
 0x522   : > { %v8000_v39 = vadd.f32 %v7998_v56, %v285_v55 }
 0x524   : > { %8001 = vst [vmem:[%s11220_s16] sm:$0xff] %v8000_v39 }
 0x52b   : > { %v8006_v5 = vld [vmem:[%s11220_s16] sm:$0xff] }
 0x52c   : > { %v8043_v62 = vadd.f32 %v8041_v6, %v8006_v5 }
 0x52e   : > { %vm8044_vm0 = vcmp.ge.f32.partialorder %v8043_v62, 0.0  ;;  %v8045_v8 = vmul.f32 0.2, %v8043_v62 }
 0x530   : > { %v8046_v9 = vsel %vm8044_vm0, %v8043_v62, %v8045_v8 }
 0x531   : > { %8047 = vst [vmem:[%s11220_s16] sm:$0xff] %v8046_v9 }
 0x532 PF: > { %s16_s19 = sadd.s32 1, %s11052_s19   ;;  %s12467_s12 = smov %s11028_s13 }
 0x533   : > { %p13_p8 = scmp.ge.s32.totalorder %s16_s19, 18   ;;  %s12468_s13 = smov %s11032_s14 }
 0x534   : > { %s12469_s14 = smov %s11148_s5  ;;  %s12470_s15 = smov %s11044_s17 }
 0x535   : > { %s12471_s16 = smov %s11048_s18  ;;  %s12472_s17 = smov %s12475_s21 }
 0x536   : > { %s12473_s18 = smov %s12479_s22  ;;  %15 = sbr.rel (!%p13_p8) target bundleno = 5 (0x5), region = 86 }
 0x53d   :  { %8078 = vsyncpa [#allocation3], 1 }
 0x53e   :  { %8080 = vsyncpa [#allocation3 + $0x1], 1 }

</bundles_post_ra>
